<compile_context>
chip_gen: v7x
topology: tpu7x:2x2x1
jax: 0.10.0
libtpu: 0.0.40
codegen_flags: <defaults>
</compile_context>

<pallas_src>
import numpy as np
import jax
import jax.numpy as jnp
from jax import lax
from jax.experimental import pallas as pl
from jax.experimental.pallas import tpu as pltpu

NEG_BIG = -1e30  # finite "-inf" for masked softmax lanes (kept f32 end-to-end)


def _round_up(x, m):
    return (x + m - 1) // m * m


# ----------------------------------------------------------------------------
# helpers (glue, plain JAX)
# ----------------------------------------------------------------------------
def _adaptive_pool_matrix(in_size, out_size):
    """Row-stochastic matrix implementing 1-D adaptive average pooling."""
    m = np.zeros((out_size, in_size), dtype=np.float32)
    for i in range(out_size):
        start = (i * in_size) // out_size
        end = -(-((i + 1) * in_size) // out_size)  # ceil
        m[i, start:end] = 1.0 / (end - start)
    return jnp.asarray(m)


def backbone(x, params):
    # Stand-in for the external (frozen) `bb` module: adaptive-avg-pool each
    # frame to 7x7 and apply a 1x1 conv (C -> F).  Produces (T, B, F, 49).
    # TODO(synk): `bb` is an arbitrary external backbone in the original module;
    # a fixed pool + 1x1-conv stand-in is used here.
    B, C, T, H, W = x.shape
    F = params["bb_w"].shape[0]
    Ah = _adaptive_pool_matrix(H, 7)
    Aw = _adaptive_pool_matrix(W, 7)
    pooled = jnp.einsum("ph,bcthw,qw->bctpq", Ah, x, Aw)          # (B,C,T,7,7)
    feat = jnp.einsum("fc,bctpq->btfpq", params["bb_w"], pooled)
    feat = feat + params["bb_b"][None, None, :, None, None]
    feat = feat.reshape(B, T, F, 49)
    return jnp.transpose(feat, (1, 0, 2, 3))                      # (T,B,F,49)


def _physical_vmem_bytes():
    try:
        return int(pltpu.get_tpu_info().vmem_capacity_bytes)
    except Exception:
        return 64 << 20       # conservative (v7x-sized) fallback


# ----------------------------------------------------------------------------
# Pallas kernel: one grid step == T_CHUNK timesteps for one batch block
# ----------------------------------------------------------------------------
def make_alstm_kernel(num_layers, t_chunk, hidden, p_pad):
    def kernel(*refs):
        feat_ref = refs[0]                      # (T_CHUNK, B_BLK, F_pad, P_pad)
        idx = 1
        layer_refs = []
        for _ in range(num_layers):
            layer_refs.append((refs[idx], refs[idx + 1]))   # W:(cat,G_pad) b:(1,G_pad)
            idx += 2
        wcomb_ref = refs[idx]                   # (hidden, P_pad + OUT_pad)  [Wha | Wfc]
        bcomb_ref = refs[idx + 1]               # (1,      P_pad + OUT_pad)  (f32)
        out_ref = refs[idx + 2]                 # (T_CHUNK, B_BLK, OUT_pad)
        h_ref = refs[idx + 3]                   # scratch (L, B_BLK, hidden)
        c_ref = refs[idx + 4]                   # scratch (L, B_BLK, hidden)
        logit_ref = refs[idx + 5]               # scratch (B_BLK, P_pad) f32

        mm_dtype = wcomb_ref.dtype              # bf16 by default, f32 optional

        @pl.when(pl.program_id(1) == 0)         # first time-chunk of this batch block
        def _():
            h_ref[...] = jnp.zeros_like(h_ref)
            c_ref[...] = jnp.zeros_like(c_ref)
            # initial logits: h0 == 0 -> logits = Wha bias (padded lanes = -1e30)
            logit_ref[...] = jnp.broadcast_to(
                bcomb_ref[0:1, :p_pad].astype(jnp.float32), logit_ref.shape)

        # pull recurrent state into registers for the whole chunk
        hs0 = tuple(h_ref[l] for l in range(num_layers))
        cs0 = tuple(c_ref[l] for l in range(num_layers))
        logits0 = logit_ref[...]

        def step(t, carry):
            hs, cs, logits = carry

            # --- softmax over spatial lanes (padded lanes: -1e30 bias -> ~0 weight)
            m = jnp.max(logits, axis=1, keepdims=True)
            e = jnp.exp(logits - m)
            att = e * pl.reciprocal(jnp.sum(e, axis=1, keepdims=True), approx=True)

            # --- attention-weighted spatial sum -> LSTM input (f32)
            feat_t = feat_ref[t]                                   # (B, F_pad, P_pad)
            x_in = jnp.sum(att[:, None, :] * feat_t.astype(jnp.float32), axis=2)

            # --- stacked LSTM layers, one fused [x | h] gate matmul each;
            #     gates packed contiguously: [i | f | c | o] each `hidden` lanes
            new_hs, new_cs = [], []
            for l in range(num_layers):
                w_ref, b_ref = layer_refs[l]
                x_cat = jnp.concatenate([x_in, hs[l]], axis=1).astype(mm_dtype)
                gates = (jnp.dot(x_cat, w_ref[...],
                                 preferred_element_type=jnp.float32)
                         + b_ref[...])                             # (B, G_pad) f32
                sg = jax.nn.sigmoid(gates)                         # one wide EUP pass
                i_g = sg[:, 0 * hidden:1 * hidden]
                f_g = sg[:, 1 * hidden:2 * hidden]
                o_g = sg[:, 3 * hidden:4 * hidden]
                c_g = jnp.tanh(gates[:, 2 * hidden:3 * hidden])
                c_new = f_g * cs[l] + i_g * c_g
                h_new = o_g * jnp.tanh(c_new)
                new_hs.append(h_new)
                new_cs.append(c_new)
                x_in = h_new

            # --- fused fc head + next-step attention logits (both read last h)
            comb = (jnp.dot(x_in.astype(mm_dtype), wcomb_ref[...],
                            preferred_element_type=jnp.float32)
                    + bcomb_ref[...])                              # (B, P_pad+OUT_pad) f32
            out_ref[t] = comb[:, p_pad:]                           # lane-dense store
            return (tuple(new_hs), tuple(new_cs), comb[:, :p_pad])

        hs_f, cs_f, logits_f = lax.fori_loop(
            0, t_chunk, step, (hs0, cs0, logits0), unroll=True)

        # carry state to the next time-chunk
        for l in range(num_layers):
            h_ref[l] = hs_f[l]
            c_ref[l] = cs_f[l]
        logit_ref[...] = logits_f

    return kernel


# ----------------------------------------------------------------------------
# parameter packing: pad + stack [Wx;Wh] per layer (contiguous gates),
# fuse [Wha | Wfc] for the head
# ----------------------------------------------------------------------------
def _pack_kernel_params(params, F, hidden, num_layers, out_num, P,
                        F_pad, G_pad, P_pad, OUT_pad, matmul_dtype):
    layers = []
    for l in range(num_layers):
        cell = params["cells"][l]
        in_l = F if l == 0 else hidden
        in_pad = F_pad if l == 0 else hidden
        W = jnp.zeros((in_pad + hidden, G_pad), jnp.float32)
        W = W.at[:in_l, :4 * hidden].set(cell["wxT"])
        W = W.at[in_pad:in_pad + hidden, :4 * hidden].set(cell["whT"])
        b = jnp.zeros((1, G_pad), jnp.float32)
        b = b.at[:, :4 * hidden].set(cell["bx"])
        layers.append((W.astype(matmul_dtype), b))          # biases stay f32

    Wc = jnp.zeros((hidden, P_pad + OUT_pad), jnp.float32)
    Wc = Wc.at[:, :P].set(params["wha_wT"])
    Wc = Wc.at[:, P_pad:P_pad + out_num].set(params["fc_wT"])
    bc = jnp.zeros((1, P_pad + OUT_pad), jnp.float32)
    bc = bc.at[:, :P].set(params["wha_b"])
    bc = bc.at[:, P:P_pad].set(NEG_BIG)      # mask padded spatial lanes (f32!)
    bc = bc.at[:, P_pad:P_pad + out_num].set(params["fc_b"])
    return layers, Wc.astype(matmul_dtype), bc


# ----------------------------------------------------------------------------
# pallas_call wrapper
# ----------------------------------------------------------------------------
def alstm_pallas(feat, params, num_layers, hidden, out_num,
                 matmul_dtype=jnp.bfloat16):
    T, B, F, P = feat.shape
    G_pad = _round_up(4 * hidden, 128)    # packed gate width (one vreg for H=32)
    F_pad = _round_up(F, 8)               # sublane multiple
    P_pad = _round_up(P, 128)             # lane-dense spatial axis
    OUT_pad = _round_up(out_num, 128)     # lane-dense output stores

    # Batch blocking: fill MXU rows (up to 32; beyond that vreg pressure bites),
    # but keep >= 2 batch blocks when the real batch is big enough so the
    # "parallel" grid axis can shard across v7x's 2 TensorCores.
    b_pad8 = _round_up(B, 8)
    B_BLOCK = min(32, b_pad8)
    if b_pad8 // B_BLOCK < 2 and b_pad8 >= 16:
        B_BLOCK = max(8, _round_up(b_pad8 // 2, 8))
    B_pad = _round_up(b_pad8, B_BLOCK)

    T_CHUNK = min(16, T)                  # deeper chunks amortize grid-step cost
    T_pad = _round_up(T, T_CHUNK)

    # pad inputs (padded feat lanes are zero; padded batch rows are discarded)
    feat_p = jnp.zeros((T_pad, B_pad, F_pad, P_pad), matmul_dtype)
    feat_p = feat_p.at[:T, :B, :F, :P].set(feat.astype(matmul_dtype))

    layer_params, Wc, bc = _pack_kernel_params(
        params, F, hidden, num_layers, out_num, P,
        F_pad, G_pad, P_pad, OUT_pad, matmul_dtype)

    inputs = [feat_p]
    for (W, bias) in layer_params:
        inputs += [W, bias]
    inputs += [Wc, bc]

    out_shape = jax.ShapeDtypeStruct((T_pad, B_pad, OUT_pad), jnp.float32)
    out_spec = pl.BlockSpec((T_CHUNK, B_BLOCK, OUT_pad), lambda b, t: (t, b, 0))

    scratch_shapes = [pltpu.VMEM((num_layers, B_BLOCK, hidden), jnp.float32),
                      pltpu.VMEM((num_layers, B_BLOCK, hidden), jnp.float32),
                      pltpu.VMEM((B_BLOCK, P_pad), jnp.float32)]

    # VMEM budget: feat/out double-buffered, weights counted ONCE (resident,
    # single-buffered), scratch once; cap derived from the physical part size.
    def _nbytes(shape, dtype):
        return int(np.prod(shape)) * jnp.dtype(dtype).itemsize
    weight_bytes = sum(w.size * w.dtype.itemsize + b.size * b.dtype.itemsize
                       for (w, b) in layer_params)
    weight_bytes += Wc.size * Wc.dtype.itemsize + bc.size * bc.dtype.itemsize
    vmem_need = (2 * _nbytes((T_CHUNK, B_BLOCK, F_pad, P_pad), matmul_dtype)
                 + 2 * _nbytes((T_CHUNK, B_BLOCK, OUT_pad), jnp.float32)
                 + weight_bytes
                 + 2 * _nbytes((num_layers, B_BLOCK, hidden), jnp.float32)
                 + _nbytes((B_BLOCK, P_pad), jnp.float32))
    phys = _physical_vmem_bytes()
    vmem_limit = int(min(max(2 * vmem_need, 32 << 20), (phys * 3) // 4))
    vmem_limit = max(vmem_limit, vmem_need + (4 << 20))

    kernel = make_alstm_kernel(num_layers, T_CHUNK, hidden, P_pad)

    def _make_call(single_buffer_weights):
        def const_spec(shape):
            # resident weights: constant index map; request a single buffer
            if single_buffer_weights:
                return pl.BlockSpec(shape, lambda b, t: (0, 0),
                                    pipeline_mode=pl.Buffered(1))
            return pl.BlockSpec(shape, lambda b, t: (0, 0))

        in_specs = [pl.BlockSpec((T_CHUNK, B_BLOCK, F_pad, P_pad),
                                 lambda b, t: (t, b, 0, 0))]
        for (W, bias) in layer_params:
            in_specs += [const_spec(W.shape), const_spec(bias.shape)]
        in_specs += [const_spec(Wc.shape), const_spec(bc.shape)]

        return pl.pallas_call(
            kernel,
            out_shape=out_shape,
            grid_spec=pltpu.PrefetchScalarGridSpec(
                num_scalar_prefetch=0,
                grid=(B_pad // B_BLOCK, T_pad // T_CHUNK),
                in_specs=in_specs,
                out_specs=out_spec,
                scratch_shapes=scratch_shapes,
            ),
            compiler_params=pltpu.CompilerParams(
                # batch blocks are independent (shardable across v7x's 2 TCs);
                # the time-chunk axis is the recurrence -> arbitrary.
                dimension_semantics=("parallel", "arbitrary"),
                vmem_limit_bytes=vmem_limit),
        )

    try:
        out_padded = _make_call(True)(*inputs)
    except Exception:
        # pipeline_mode=pl.Buffered(1) not supported by this JAX build;
        # constant-index weight blocks are still kept resident by the pipeline.
        out_padded = _make_call(False)(*inputs)

    return out_padded[:T, :B, :out_num]                           # (T, B, out_num)


# ----------------------------------------------------------------------------
# full forward (backbone + kernel + final AdaptiveAvgPool2d((42,42)))
# ----------------------------------------------------------------------------
def alstm_forward(x, params, num_layers, hidden, out_num,
                  matmul_dtype=jnp.bfloat16):
    # bf16 MXU operands by default on every TPU generation (weights & feat
    # stream only; gate elementwise math / softmax / logits stay f32 inside
    # the kernel).  Pass matmul_dtype=jnp.float32 for a full-precision path.
    feat = backbone(x, params)                                    # (T,B,F,49)
    T = feat.shape[0]
    out_seq = alstm_pallas(feat, params, num_layers, hidden, out_num,
                           matmul_dtype=matmul_dtype)             # (T,B,out_num)
    out = jnp.transpose(out_seq, (1, 0, 2))                       # (B,T,out_num)
    # nn.AdaptiveAvgPool2d((42,42)) on a 3-D tensor treats dims as (C=B, H=T, W=out_num)
    At = _adaptive_pool_matrix(T, 42)
    Ao = _adaptive_pool_matrix(out_num, 42)
    return jnp.einsum("pt,bto,qo->bpq", At, out, Ao)              # (B,42,42)


def alstm_reference(x, params, num_layers, hidden, out_num):
    # Pure-JAX f32 reference mirroring the PyTorch forward, for validation.
    feat = backbone(x, params)                                    # (T,B,F,49)
    T, B = feat.shape[0], feat.shape[1]
    h = [jnp.zeros((B, hidden), jnp.float32) for _ in range(num_layers)]
    c = [jnp.zeros((B, hidden), jnp.float32) for _ in range(num_layers)]
    outs = []
    for t in range(T):
        att_h = h[num_layers - 1]
        logits = att_h @ params["wha_wT"] + params["wha_b"]
        att = jax.nn.softmax(logits, axis=1)
        x_in = jnp.sum(att[:, None, :] * feat[t], axis=2)
        for l in range(num_layers):
            p = params["cells"][l]
            gates = x_in @ p["wxT"] + h[l] @ p["whT"] + p["bx"]
            i_g = jax.nn.sigmoid(gates[:, :hidden])
            f_g = jax.nn.sigmoid(gates[:, hidden:2 * hidden])
            c_g = jnp.tanh(gates[:, 2 * hidden:3 * hidden])
            o_g = jax.nn.sigmoid(gates[:, 3 * hidden:])
            c[l] = f_g * c[l] + i_g * c_g
            h[l] = o_g * jnp.tanh(c[l])
            x_in = h[l]
        outs.append(x_in @ params["fc_wT"] + params["fc_b"])
    out = jnp.stack(outs, axis=1)                                 # (B,T,out_num)
    At = _adaptive_pool_matrix(T, 42)
    Ao = _adaptive_pool_matrix(out_num, 42)
    return jnp.einsum("pt,bto,qo->bpq", At, out, Ao)


# ----------------------------------------------------------------------------
# deterministic parameter init (synthetic weights; no checkpoint)
# ----------------------------------------------------------------------------
def init_params(key, C, F, hidden, num_layers, out_num):
    keys = jax.random.split(key, 6 + 3 * num_layers)

    def u(k, shape, fan_in):
        bound = 1.0 / np.sqrt(fan_in)
        return jax.random.uniform(k, shape, jnp.float32, -bound, bound)

    params = {
        "bb_w": u(keys[0], (F, C), C),
        "bb_b": u(keys[1], (F,), C),
        "wha_wT": u(keys[2], (hidden, 49), hidden),      # Wha: Linear(H, 49)
        "wha_b": u(keys[3], (1, 49), hidden),
        "fc_wT": u(keys[4], (hidden, out_num), hidden),  # fc: Linear(H, out_num)
        "fc_b": u(keys[5], (1, out_num), hidden),
        "cells": [],
    }
    ki = 6
    for l in range(num_layers):
        in_l = F if l == 0 else hidden
        params["cells"].append({
            "wxT": u(keys[ki], (in_l, 4 * hidden), in_l),      # [Wxi|Wxf|Wxc|Wxo]^T
            "whT": u(keys[ki + 1], (hidden, 4 * hidden), hidden),
            "bx": u(keys[ki + 2], (1, 4 * hidden), in_l),
        })
        ki += 3
    return params


if __name__ == "__main__":
    B, C, T, H, W = 2, 3, 8, 14, 14
    F, hidden, num_layers, out_num = 16, 32, 2, 10

    key = jax.random.PRNGKey(0)
    kx, kp = jax.random.split(key)
    x = jax.random.normal(kx, (B, C, T, H, W), jnp.float32)
    params = init_params(kp, C, F, hidden, num_layers, out_num)

    out = alstm_forward(x, params, num_layers, hidden, out_num)   # bf16 MXU operands
    out = jax.block_until_ready(out)
    assert out.shape == (B, 42, 42), out.shape

    ref = alstm_reference(x, params, num_layers, hidden, out_num)
    max_err = float(jnp.max(jnp.abs(out - ref)))
    assert max_err < 5e-2, f"max abs err {max_err}"

    print("KERNEL_OK")
</pallas_src>

<mosaic_0001>
module attributes {stable_mosaic.version = 11 : i64} {
  func.func @kernel(%arg0: i32, %arg1: i32, %arg2: memref<8x8x16x128xbf16, #tpu.memory_space<vmem>>, %arg3: memref<48x128xbf16, #tpu.memory_space<vmem>>, %arg4: memref<1x128xf32, #tpu.memory_space<vmem>>, %arg5: memref<64x128xbf16, #tpu.memory_space<vmem>>, %arg6: memref<1x128xf32, #tpu.memory_space<vmem>>, %arg7: memref<32x256xbf16, #tpu.memory_space<vmem>>, %arg8: memref<1x256xf32, #tpu.memory_space<vmem>>, %arg9: memref<8x8x128xf32, #tpu.memory_space<vmem>>, %arg10: memref<2x8x32xf32, #tpu.memory_space<vmem>>, %arg11: memref<2x8x32xf32, #tpu.memory_space<vmem>>, %arg12: memref<8x128xf32, #tpu.memory_space<vmem>>) attributes {dimension_semantics = [#tpu.dimension_semantics<parallel>, #tpu.dimension_semantics<arbitrary>], iteration_bounds = array<i64: 1, 1>, scalar_prefetch = 0 : i64, scratch_operands = 3 : i64, tpu.core_type = #tpu.core_type<tc>, window_params = [{transform_indices = @transform_0, window_bounds = array<i64: 8, 8, 16, 128>}, {pipeline_mode = #tpu.pipeline_mode<synchronous>, transform_indices = @transform_1, window_bounds = array<i64: 48, 128>}, {pipeline_mode = #tpu.pipeline_mode<synchronous>, transform_indices = @transform_2, window_bounds = array<i64: 1, 128>}, {pipeline_mode = #tpu.pipeline_mode<synchronous>, transform_indices = @transform_3, window_bounds = array<i64: 64, 128>}, {pipeline_mode = #tpu.pipeline_mode<synchronous>, transform_indices = @transform_4, window_bounds = array<i64: 1, 128>}, {pipeline_mode = #tpu.pipeline_mode<synchronous>, transform_indices = @transform_5, window_bounds = array<i64: 32, 256>}, {pipeline_mode = #tpu.pipeline_mode<synchronous>, transform_indices = @transform_6, window_bounds = array<i64: 1, 256>}, {transform_indices = @transform_7, window_bounds = array<i64: 8, 8, 128>}]} {
    %c0_i32 = arith.constant 0 : i32
    %0 = arith.cmpi eq, %arg1, %c0_i32 : i32
    %1 = arith.extui %0 : i1 to i32
    %c0_i32_0 = arith.constant 0 : i32
    %2 = arith.cmpi ne, %1, %c0_i32_0 : i32
    scf.if %2 {
      %cst_227 = arith.constant 0.000000e+00 : f32
      %617 = vector.broadcast %cst_227 : f32 to vector<2x8x32xf32>
      %c0_228 = arith.constant 0 : index
      %c0_229 = arith.constant 0 : index
      %c0_230 = arith.constant 0 : index
      %618 = vector.load %arg10[%c0_228, %c0_229, %c0_230] : memref<2x8x32xf32, #tpu.memory_space<vmem>>, vector<2x8x32xf32>
      tpu.vector_store %arg10[%c0_228, %c0_229, %c0_230], %617 {strides = array<i32>} : memref<2x8x32xf32, #tpu.memory_space<vmem>>, vector<2x8x32xf32>,
      %cst_231 = arith.constant 0.000000e+00 : f32
      %619 = vector.broadcast %cst_231 : f32 to vector<2x8x32xf32>
      %c0_232 = arith.constant 0 : index
      %c0_233 = arith.constant 0 : index
      %c0_234 = arith.constant 0 : index
      %620 = vector.load %arg11[%c0_232, %c0_233, %c0_234] : memref<2x8x32xf32, #tpu.memory_space<vmem>>, vector<2x8x32xf32>
      tpu.vector_store %arg11[%c0_232, %c0_233, %c0_234], %619 {strides = array<i32>} : memref<2x8x32xf32, #tpu.memory_space<vmem>>, vector<2x8x32xf32>,
      %c0_235 = arith.constant 0 : index
      %c0_236 = arith.constant 0 : index
      %621 = vector.load %arg8[%c0_235, %c0_236] : memref<1x256xf32, #tpu.memory_space<vmem>>, vector<1x128xf32>
      %622 = vector.shape_cast %621 : vector<1x128xf32> to vector<1x128xf32>
      %623 = vector.broadcast %622 : vector<1x128xf32> to vector<8x128xf32>
      %c0_237 = arith.constant 0 : index
      %c0_238 = arith.constant 0 : index
      %624 = vector.load %arg12[%c0_237, %c0_238] : memref<8x128xf32, #tpu.memory_space<vmem>>, vector<8x128xf32>
      tpu.vector_store %arg12[%c0_237, %c0_238], %623 {strides = array<i32>} : memref<8x128xf32, #tpu.memory_space<vmem>>, vector<8x128xf32>,
    } else {
    }
    %c0 = arith.constant 0 : index
    %c0_1 = arith.constant 0 : index
    %c0_2 = arith.constant 0 : index
    %3 = vector.load %arg10[%c0, %c0_1, %c0_2] : memref<2x8x32xf32, #tpu.memory_space<vmem>>, vector<1x8x32xf32>
    %4 = vector.shape_cast %3 : vector<1x8x32xf32> to vector<8x32xf32>
    %c1 = arith.constant 1 : index
    %c0_3 = arith.constant 0 : index
    %c0_4 = arith.constant 0 : index
    %5 = vector.load %arg10[%c1, %c0_3, %c0_4] : memref<2x8x32xf32, #tpu.memory_space<vmem>>, vector<1x8x32xf32>
    %6 = vector.shape_cast %5 : vector<1x8x32xf32> to vector<8x32xf32>
    %c0_5 = arith.constant 0 : index
    %c0_6 = arith.constant 0 : index
    %c0_7 = arith.constant 0 : index
    %7 = vector.load %arg11[%c0_5, %c0_6, %c0_7] : memref<2x8x32xf32, #tpu.memory_space<vmem>>, vector<1x8x32xf32>
    %8 = vector.shape_cast %7 : vector<1x8x32xf32> to vector<8x32xf32>
    %c1_8 = arith.constant 1 : index
    %c0_9 = arith.constant 0 : index
    %c0_10 = arith.constant 0 : index
    %9 = vector.load %arg11[%c1_8, %c0_9, %c0_10] : memref<2x8x32xf32, #tpu.memory_space<vmem>>, vector<1x8x32xf32>
    %10 = vector.shape_cast %9 : vector<1x8x32xf32> to vector<8x32xf32>
    %c0_11 = arith.constant 0 : index
    %c0_12 = arith.constant 0 : index
    %11 = vector.load %arg12[%c0_11, %c0_12] : memref<8x128xf32, #tpu.memory_space<vmem>>, vector<8x128xf32>
    %c0_i32_13 = arith.constant 0 : i32
    %cst = arith.constant dense<0xFF800000> : vector<8xf32>
    %12 = vector.multi_reduction <maximumf>, %11, %cst [1] : vector<8x128xf32> to vector<8xf32>
    %13 = vector.shape_cast %12 : vector<8xf32> to vector<8x1xf32>
    %14 = vector.broadcast %13 : vector<8x1xf32> to vector<8x128xf32>
    %15 = arith.subf %11, %14 : vector<8x128xf32>
    %16 = math.exp %15 : vector<8x128xf32>
    %cst_14 = arith.constant dense<0.000000e+00> : vector<8xf32>
    %17 = vector.multi_reduction <add>, %16, %cst_14 [1] : vector<8x128xf32> to vector<8xf32>
    %18 = vector.shape_cast %17 : vector<8xf32> to vector<8x1xf32>
    %19 = tpu.reciprocal %18 {approx = true} : vector<8x1xf32> -> vector<8x1xf32>
    %20 = vector.broadcast %19 : vector<8x1xf32> to vector<8x128xf32>
    %21 = arith.mulf %16, %20 : vector<8x128xf32>
    %22 = arith.index_cast %c0_i32_13 : i32 to index
    %c0_15 = arith.constant 0 : index
    %c0_16 = arith.constant 0 : index
    %c0_17 = arith.constant 0 : index
    %23 = vector.load %arg2[%22, %c0_15, %c0_16, %c0_17] : memref<8x8x16x128xbf16, #tpu.memory_space<vmem>>, vector<1x8x16x128xbf16>
    %24 = vector.shape_cast %23 : vector<1x8x16x128xbf16> to vector<8x16x128xbf16>
    %25 = vector.shape_cast %21 : vector<8x128xf32> to vector<8x1x128xf32>
    %26 = arith.extf %24 : vector<8x16x128xbf16> to vector<8x16x128xf32>
    %27 = vector.broadcast %25 : vector<8x1x128xf32> to vector<8x16x128xf32>
    %28 = arith.mulf %27, %26 : vector<8x16x128xf32>
    %cst_18 = arith.constant dense<0.000000e+00> : vector<8x16xf32>
    %29 = vector.multi_reduction <add>, %28, %cst_18 [2] : vector<8x16x128xf32> to vector<8x16xf32>
    %30 = tpu.concatenate %29, %4 in 1 : vector<8x16xf32>, vector<8x32xf32> -> vector<8x48xf32>
    %31 = arith.truncf %30 : vector<8x48xf32> to vector<8x48xbf16>
    %c0_19 = arith.constant 0 : index
    %c0_20 = arith.constant 0 : index
    %32 = vector.load %arg3[%c0_19, %c0_20] : memref<48x128xbf16, #tpu.memory_space<vmem>>, vector<48x128xbf16>
    %cst_21 = arith.constant dense<0.000000e+00> : vector<8x128xf32>
    %33 = tpu.matmul %31, %32, %cst_21 {dimension_numbers = #tpu.dot_dimension_numbers<[1], [0], [0], [1], [0, 0, 1, 1], [], []>} : vector<8x48xbf16>, vector<48x128xbf16>, vector<8x128xf32> -> vector<8x128xf32>
    %c0_22 = arith.constant 0 : index
    %c0_23 = arith.constant 0 : index
    %34 = vector.load %arg4[%c0_22, %c0_23] : memref<1x128xf32, #tpu.memory_space<vmem>>, vector<1x128xf32>
    %35 = vector.broadcast %34 : vector<1x128xf32> to vector<8x128xf32>
    %36 = arith.addf %33, %35 : vector<8x128xf32>
    %37 = arith.negf %36 : vector<8x128xf32>
    %38 = math.exp %37 : vector<8x128xf32>
    %cst_24 = arith.constant 1.000000e+00 : f32
    %39 = vector.broadcast %cst_24 : f32 to vector<8x128xf32>
    %40 = arith.addf %39, %38 : vector<8x128xf32>
    %41 = arith.divf %39, %40 : vector<8x128xf32>
    %42 = vector.extract_strided_slice %41 {offsets = [0, 0], sizes = [8, 32], strides = [1, 1]} : vector<8x128xf32> to vector<8x32xf32>
    %43 = vector.extract_strided_slice %41 {offsets = [0, 32], sizes = [8, 32], strides = [1, 1]} : vector<8x128xf32> to vector<8x32xf32>
    %44 = vector.extract_strided_slice %41 {offsets = [0, 96], sizes = [8, 32], strides = [1, 1]} : vector<8x128xf32> to vector<8x32xf32>
    %45 = vector.extract_strided_slice %36 {offsets = [0, 64], sizes = [8, 32], strides = [1, 1]} : vector<8x128xf32> to vector<8x32xf32>
    %46 = math.tanh %45 : vector<8x32xf32>
    %47 = arith.mulf %43, %8 : vector<8x32xf32>
    %48 = arith.mulf %42, %46 : vector<8x32xf32>
    %49 = arith.addf %47, %48 : vector<8x32xf32>
    %50 = math.tanh %49 : vector<8x32xf32>
    %51 = arith.mulf %44, %50 : vector<8x32xf32>
    %52 = tpu.concatenate %51, %6 in 1 : vector<8x32xf32>, vector<8x32xf32> -> vector<8x64xf32>
    %53 = arith.truncf %52 : vector<8x64xf32> to vector<8x64xbf16>
    %c0_25 = arith.constant 0 : index
    %c0_26 = arith.constant 0 : index
    %54 = vector.load %arg5[%c0_25, %c0_26] : memref<64x128xbf16, #tpu.memory_space<vmem>>, vector<64x128xbf16>
    %cst_27 = arith.constant dense<0.000000e+00> : vector<8x128xf32>
    %55 = tpu.matmul %53, %54, %cst_27 {dimension_numbers = #tpu.dot_dimension_numbers<[1], [0], [0], [1], [0, 0, 1, 1], [], []>} : vector<8x64xbf16>, vector<64x128xbf16>, vector<8x128xf32> -> vector<8x128xf32>
    %c0_28 = arith.constant 0 : index
    %c0_29 = arith.constant 0 : index
    %56 = vector.load %arg6[%c0_28, %c0_29] : memref<1x128xf32, #tpu.memory_space<vmem>>, vector<1x128xf32>
    %57 = vector.broadcast %56 : vector<1x128xf32> to vector<8x128xf32>
    %58 = arith.addf %55, %57 : vector<8x128xf32>
    %59 = arith.negf %58 : vector<8x128xf32>
    %60 = math.exp %59 : vector<8x128xf32>
    %cst_30 = arith.constant 1.000000e+00 : f32
    %61 = vector.broadcast %cst_30 : f32 to vector<8x128xf32>
    %62 = arith.addf %61, %60 : vector<8x128xf32>
    %63 = arith.divf %61, %62 : vector<8x128xf32>
    %64 = vector.extract_strided_slice %63 {offsets = [0, 0], sizes = [8, 32], strides = [1, 1]} : vector<8x128xf32> to vector<8x32xf32>
    %65 = vector.extract_strided_slice %63 {offsets = [0, 32], sizes = [8, 32], strides = [1, 1]} : vector<8x128xf32> to vector<8x32xf32>
    %66 = vector.extract_strided_slice %63 {offsets = [0, 96], sizes = [8, 32], strides = [1, 1]} : vector<8x128xf32> to vector<8x32xf32>
    %67 = vector.extract_strided_slice %58 {offsets = [0, 64], sizes = [8, 32], strides = [1, 1]} : vector<8x128xf32> to vector<8x32xf32>
    %68 = math.tanh %67 : vector<8x32xf32>
    %69 = arith.mulf %65, %10 : vector<8x32xf32>
    %70 = arith.mulf %64, %68 : vector<8x32xf32>
    %71 = arith.addf %69, %70 : vector<8x32xf32>
    %72 = math.tanh %71 : vector<8x32xf32>
    %73 = arith.mulf %66, %72 : vector<8x32xf32>
    %74 = arith.truncf %73 : vector<8x32xf32> to vector<8x32xbf16>
    %c0_31 = arith.constant 0 : index
    %c0_32 = arith.constant 0 : index
    %75 = vector.load %arg7[%c0_31, %c0_32] : memref<32x256xbf16, #tpu.memory_space<vmem>>, vector<32x256xbf16>
    %cst_33 = arith.constant dense<0.000000e+00> : vector<8x256xf32>
    %76 = tpu.matmul %74, %75, %cst_33 {dimension_numbers = #tpu.dot_dimension_numbers<[1], [0], [0], [1], [0, 0, 1, 1], [], []>} : vector<8x32xbf16>, vector<32x256xbf16>, vector<8x256xf32> -> vector<8x256xf32>
    %c0_34 = arith.constant 0 : index
    %c0_35 = arith.constant 0 : index
    %77 = vector.load %arg8[%c0_34, %c0_35] : memref<1x256xf32, #tpu.memory_space<vmem>>, vector<1x256xf32>
    %78 = vector.broadcast %77 : vector<1x256xf32> to vector<8x256xf32>
    %79 = arith.addf %76, %78 : vector<8x256xf32>
    %80 = vector.extract_strided_slice %79 {offsets = [0, 128], sizes = [8, 128], strides = [1, 1]} : vector<8x256xf32> to vector<8x128xf32>
    %81 = arith.index_cast %c0_i32_13 : i32 to index
    %c0_36 = arith.constant 0 : index
    %c0_37 = arith.constant 0 : index
    %82 = vector.load %arg9[%81, %c0_36, %c0_37] : memref<8x8x128xf32, #tpu.memory_space<vmem>>, vector<1x8x128xf32>
    %83 = vector.shape_cast %82 : vector<1x8x128xf32> to vector<8x128xf32>
    %84 = vector.shape_cast %80 : vector<8x128xf32> to vector<1x8x128xf32>
    tpu.vector_store %arg9[%81, %c0_36, %c0_37], %84 {strides = array<i32>} : memref<8x8x128xf32, #tpu.memory_space<vmem>>, vector<1x8x128xf32>,
    %85 = vector.extract_strided_slice %79 {offsets = [0, 0], sizes = [8, 128], strides = [1, 1]} : vector<8x256xf32> to vector<8x128xf32>
    %c1_i32 = arith.constant 1 : i32
    %cst_38 = arith.constant dense<0xFF800000> : vector<8xf32>
    %86 = vector.multi_reduction <maximumf>, %85, %cst_38 [1] : vector<8x128xf32> to vector<8xf32>
    %87 = vector.shape_cast %86 : vector<8xf32> to vector<8x1xf32>
    %88 = vector.broadcast %87 : vector<8x1xf32> to vector<8x128xf32>
    %89 = arith.subf %85, %88 : vector<8x128xf32>
    %90 = math.exp %89 : vector<8x128xf32>
    %cst_39 = arith.constant dense<0.000000e+00> : vector<8xf32>
    %91 = vector.multi_reduction <add>, %90, %cst_39 [1] : vector<8x128xf32> to vector<8xf32>
    %92 = vector.shape_cast %91 : vector<8xf32> to vector<8x1xf32>
    %93 = tpu.reciprocal %92 {approx = true} : vector<8x1xf32> -> vector<8x1xf32>
    %94 = vector.broadcast %93 : vector<8x1xf32> to vector<8x128xf32>
    %95 = arith.mulf %90, %94 : vector<8x128xf32>
    %96 = arith.index_cast %c1_i32 : i32 to index
    %c0_40 = arith.constant 0 : index
    %c0_41 = arith.constant 0 : index
    %c0_42 = arith.constant 0 : index
    %97 = vector.load %arg2[%96, %c0_40, %c0_41, %c0_42] : memref<8x8x16x128xbf16, #tpu.memory_space<vmem>>, vector<1x8x16x128xbf16>
    %98 = vector.shape_cast %97 : vector<1x8x16x128xbf16> to vector<8x16x128xbf16>
    %99 = vector.shape_cast %95 : vector<8x128xf32> to vector<8x1x128xf32>
    %100 = arith.extf %98 : vector<8x16x128xbf16> to vector<8x16x128xf32>
    %101 = vector.broadcast %99 : vector<8x1x128xf32> to vector<8x16x128xf32>
    %102 = arith.mulf %101, %100 : vector<8x16x128xf32>
    %cst_43 = arith.constant dense<0.000000e+00> : vector<8x16xf32>
    %103 = vector.multi_reduction <add>, %102, %cst_43 [2] : vector<8x16x128xf32> to vector<8x16xf32>
    %104 = tpu.concatenate %103, %51 in 1 : vector<8x16xf32>, vector<8x32xf32> -> vector<8x48xf32>
    %105 = arith.truncf %104 : vector<8x48xf32> to vector<8x48xbf16>
    %c0_44 = arith.constant 0 : index
    %c0_45 = arith.constant 0 : index
    %106 = vector.load %arg3[%c0_44, %c0_45] : memref<48x128xbf16, #tpu.memory_space<vmem>>, vector<48x128xbf16>
    %cst_46 = arith.constant dense<0.000000e+00> : vector<8x128xf32>
    %107 = tpu.matmul %105, %106, %cst_46 {dimension_numbers = #tpu.dot_dimension_numbers<[1], [0], [0], [1], [0, 0, 1, 1], [], []>} : vector<8x48xbf16>, vector<48x128xbf16>, vector<8x128xf32> -> vector<8x128xf32>
    %c0_47 = arith.constant 0 : index
    %c0_48 = arith.constant 0 : index
    %108 = vector.load %arg4[%c0_47, %c0_48] : memref<1x128xf32, #tpu.memory_space<vmem>>, vector<1x128xf32>
    %109 = vector.broadcast %108 : vector<1x128xf32> to vector<8x128xf32>
    %110 = arith.addf %107, %109 : vector<8x128xf32>
    %111 = arith.negf %110 : vector<8x128xf32>
    %112 = math.exp %111 : vector<8x128xf32>
    %cst_49 = arith.constant 1.000000e+00 : f32
    %113 = vector.broadcast %cst_49 : f32 to vector<8x128xf32>
    %114 = arith.addf %113, %112 : vector<8x128xf32>
    %115 = arith.divf %113, %114 : vector<8x128xf32>
    %116 = vector.extract_strided_slice %115 {offsets = [0, 0], sizes = [8, 32], strides = [1, 1]} : vector<8x128xf32> to vector<8x32xf32>
    %117 = vector.extract_strided_slice %115 {offsets = [0, 32], sizes = [8, 32], strides = [1, 1]} : vector<8x128xf32> to vector<8x32xf32>
    %118 = vector.extract_strided_slice %115 {offsets = [0, 96], sizes = [8, 32], strides = [1, 1]} : vector<8x128xf32> to vector<8x32xf32>
    %119 = vector.extract_strided_slice %110 {offsets = [0, 64], sizes = [8, 32], strides = [1, 1]} : vector<8x128xf32> to vector<8x32xf32>
    %120 = math.tanh %119 : vector<8x32xf32>
    %121 = arith.mulf %117, %49 : vector<8x32xf32>
    %122 = arith.mulf %116, %120 : vector<8x32xf32>
    %123 = arith.addf %121, %122 : vector<8x32xf32>
    %124 = math.tanh %123 : vector<8x32xf32>
    %125 = arith.mulf %118, %124 : vector<8x32xf32>
    %126 = tpu.concatenate %125, %73 in 1 : vector<8x32xf32>, vector<8x32xf32> -> vector<8x64xf32>
    %127 = arith.truncf %126 : vector<8x64xf32> to vector<8x64xbf16>
    %c0_50 = arith.constant 0 : index
    %c0_51 = arith.constant 0 : index
    %128 = vector.load %arg5[%c0_50, %c0_51] : memref<64x128xbf16, #tpu.memory_space<vmem>>, vector<64x128xbf16>
    %cst_52 = arith.constant dense<0.000000e+00> : vector<8x128xf32>
    %129 = tpu.matmul %127, %128, %cst_52 {dimension_numbers = #tpu.dot_dimension_numbers<[1], [0], [0], [1], [0, 0, 1, 1], [], []>} : vector<8x64xbf16>, vector<64x128xbf16>, vector<8x128xf32> -> vector<8x128xf32>
    %c0_53 = arith.constant 0 : index
    %c0_54 = arith.constant 0 : index
    %130 = vector.load %arg6[%c0_53, %c0_54] : memref<1x128xf32, #tpu.memory_space<vmem>>, vector<1x128xf32>
    %131 = vector.broadcast %130 : vector<1x128xf32> to vector<8x128xf32>
    %132 = arith.addf %129, %131 : vector<8x128xf32>
    %133 = arith.negf %132 : vector<8x128xf32>
    %134 = math.exp %133 : vector<8x128xf32>
    %cst_55 = arith.constant 1.000000e+00 : f32
    %135 = vector.broadcast %cst_55 : f32 to vector<8x128xf32>
    %136 = arith.addf %135, %134 : vector<8x128xf32>
    %137 = arith.divf %135, %136 : vector<8x128xf32>
    %138 = vector.extract_strided_slice %137 {offsets = [0, 0], sizes = [8, 32], strides = [1, 1]} : vector<8x128xf32> to vector<8x32xf32>
    %139 = vector.extract_strided_slice %137 {offsets = [0, 32], sizes = [8, 32], strides = [1, 1]} : vector<8x128xf32> to vector<8x32xf32>
    %140 = vector.extract_strided_slice %137 {offsets = [0, 96], sizes = [8, 32], strides = [1, 1]} : vector<8x128xf32> to vector<8x32xf32>
    %141 = vector.extract_strided_slice %132 {offsets = [0, 64], sizes = [8, 32], strides = [1, 1]} : vector<8x128xf32> to vector<8x32xf32>
    %142 = math.tanh %141 : vector<8x32xf32>
    %143 = arith.mulf %139, %71 : vector<8x32xf32>
    %144 = arith.mulf %138, %142 : vector<8x32xf32>
    %145 = arith.addf %143, %144 : vector<8x32xf32>
    %146 = math.tanh %145 : vector<8x32xf32>
    %147 = arith.mulf %140, %146 : vector<8x32xf32>
    %148 = arith.truncf %147 : vector<8x32xf32> to vector<8x32xbf16>
    %c0_56 = arith.constant 0 : index
    %c0_57 = arith.constant 0 : index
    %149 = vector.load %arg7[%c0_56, %c0_57] : memref<32x256xbf16, #tpu.memory_space<vmem>>, vector<32x256xbf16>
    %cst_58 = arith.constant dense<0.000000e+00> : vector<8x256xf32>
    %150 = tpu.matmul %148, %149, %cst_58 {dimension_numbers = #tpu.dot_dimension_numbers<[1], [0], [0], [1], [0, 0, 1, 1], [], []>} : vector<8x32xbf16>, vector<32x256xbf16>, vector<8x256xf32> -> vector<8x256xf32>
    %c0_59 = arith.constant 0 : index
    %c0_60 = arith.constant 0 : index
    %151 = vector.load %arg8[%c0_59, %c0_60] : memref<1x256xf32, #tpu.memory_space<vmem>>, vector<1x256xf32>
    %152 = vector.broadcast %151 : vector<1x256xf32> to vector<8x256xf32>
    %153 = arith.addf %150, %152 : vector<8x256xf32>
    %154 = vector.extract_strided_slice %153 {offsets = [0, 128], sizes = [8, 128], strides = [1, 1]} : vector<8x256xf32> to vector<8x128xf32>
    %155 = arith.index_cast %c1_i32 : i32 to index
    %c0_61 = arith.constant 0 : index
    %c0_62 = arith.constant 0 : index
    %156 = vector.load %arg9[%155, %c0_61, %c0_62] : memref<8x8x128xf32, #tpu.memory_space<vmem>>, vector<1x8x128xf32>
    %157 = vector.shape_cast %156 : vector<1x8x128xf32> to vector<8x128xf32>
    %158 = vector.shape_cast %154 : vector<8x128xf32> to vector<1x8x128xf32>
    tpu.vector_store %arg9[%155, %c0_61, %c0_62], %158 {strides = array<i32>} : memref<8x8x128xf32, #tpu.memory_space<vmem>>, vector<1x8x128xf32>,
    %159 = vector.extract_strided_slice %153 {offsets = [0, 0], sizes = [8, 128], strides = [1, 1]} : vector<8x256xf32> to vector<8x128xf32>
    %c2_i32 = arith.constant 2 : i32
    %cst_63 = arith.constant dense<0xFF800000> : vector<8xf32>
    %160 = vector.multi_reduction <maximumf>, %159, %cst_63 [1] : vector<8x128xf32> to vector<8xf32>
    %161 = vector.shape_cast %160 : vector<8xf32> to vector<8x1xf32>
    %162 = vector.broadcast %161 : vector<8x1xf32> to vector<8x128xf32>
    %163 = arith.subf %159, %162 : vector<8x128xf32>
    %164 = math.exp %163 : vector<8x128xf32>
    %cst_64 = arith.constant dense<0.000000e+00> : vector<8xf32>
    %165 = vector.multi_reduction <add>, %164, %cst_64 [1] : vector<8x128xf32> to vector<8xf32>
    %166 = vector.shape_cast %165 : vector<8xf32> to vector<8x1xf32>
    %167 = tpu.reciprocal %166 {approx = true} : vector<8x1xf32> -> vector<8x1xf32>
    %168 = vector.broadcast %167 : vector<8x1xf32> to vector<8x128xf32>
    %169 = arith.mulf %164, %168 : vector<8x128xf32>
    %170 = arith.index_cast %c2_i32 : i32 to index
    %c0_65 = arith.constant 0 : index
    %c0_66 = arith.constant 0 : index
    %c0_67 = arith.constant 0 : index
    %171 = vector.load %arg2[%170, %c0_65, %c0_66, %c0_67] : memref<8x8x16x128xbf16, #tpu.memory_space<vmem>>, vector<1x8x16x128xbf16>
    %172 = vector.shape_cast %171 : vector<1x8x16x128xbf16> to vector<8x16x128xbf16>
    %173 = vector.shape_cast %169 : vector<8x128xf32> to vector<8x1x128xf32>
    %174 = arith.extf %172 : vector<8x16x128xbf16> to vector<8x16x128xf32>
    %175 = vector.broadcast %173 : vector<8x1x128xf32> to vector<8x16x128xf32>
    %176 = arith.mulf %175, %174 : vector<8x16x128xf32>
    %cst_68 = arith.constant dense<0.000000e+00> : vector<8x16xf32>
    %177 = vector.multi_reduction <add>, %176, %cst_68 [2] : vector<8x16x128xf32> to vector<8x16xf32>
    %178 = tpu.concatenate %177, %125 in 1 : vector<8x16xf32>, vector<8x32xf32> -> vector<8x48xf32>
    %179 = arith.truncf %178 : vector<8x48xf32> to vector<8x48xbf16>
    %c0_69 = arith.constant 0 : index
    %c0_70 = arith.constant 0 : index
    %180 = vector.load %arg3[%c0_69, %c0_70] : memref<48x128xbf16, #tpu.memory_space<vmem>>, vector<48x128xbf16>
    %cst_71 = arith.constant dense<0.000000e+00> : vector<8x128xf32>
    %181 = tpu.matmul %179, %180, %cst_71 {dimension_numbers = #tpu.dot_dimension_numbers<[1], [0], [0], [1], [0, 0, 1, 1], [], []>} : vector<8x48xbf16>, vector<48x128xbf16>, vector<8x128xf32> -> vector<8x128xf32>
    %c0_72 = arith.constant 0 : index
    %c0_73 = arith.constant 0 : index
    %182 = vector.load %arg4[%c0_72, %c0_73] : memref<1x128xf32, #tpu.memory_space<vmem>>, vector<1x128xf32>
    %183 = vector.broadcast %182 : vector<1x128xf32> to vector<8x128xf32>
    %184 = arith.addf %181, %183 : vector<8x128xf32>
    %185 = arith.negf %184 : vector<8x128xf32>
    %186 = math.exp %185 : vector<8x128xf32>
    %cst_74 = arith.constant 1.000000e+00 : f32
    %187 = vector.broadcast %cst_74 : f32 to vector<8x128xf32>
    %188 = arith.addf %187, %186 : vector<8x128xf32>
    %189 = arith.divf %187, %188 : vector<8x128xf32>
    %190 = vector.extract_strided_slice %189 {offsets = [0, 0], sizes = [8, 32], strides = [1, 1]} : vector<8x128xf32> to vector<8x32xf32>
    %191 = vector.extract_strided_slice %189 {offsets = [0, 32], sizes = [8, 32], strides = [1, 1]} : vector<8x128xf32> to vector<8x32xf32>
    %192 = vector.extract_strided_slice %189 {offsets = [0, 96], sizes = [8, 32], strides = [1, 1]} : vector<8x128xf32> to vector<8x32xf32>
    %193 = vector.extract_strided_slice %184 {offsets = [0, 64], sizes = [8, 32], strides = [1, 1]} : vector<8x128xf32> to vector<8x32xf32>
    %194 = math.tanh %193 : vector<8x32xf32>
    %195 = arith.mulf %191, %123 : vector<8x32xf32>
    %196 = arith.mulf %190, %194 : vector<8x32xf32>
    %197 = arith.addf %195, %196 : vector<8x32xf32>
    %198 = math.tanh %197 : vector<8x32xf32>
    %199 = arith.mulf %192, %198 : vector<8x32xf32>
    %200 = tpu.concatenate %199, %147 in 1 : vector<8x32xf32>, vector<8x32xf32> -> vector<8x64xf32>
    %201 = arith.truncf %200 : vector<8x64xf32> to vector<8x64xbf16>
    %c0_75 = arith.constant 0 : index
    %c0_76 = arith.constant 0 : index
    %202 = vector.load %arg5[%c0_75, %c0_76] : memref<64x128xbf16, #tpu.memory_space<vmem>>, vector<64x128xbf16>
    %cst_77 = arith.constant dense<0.000000e+00> : vector<8x128xf32>
    %203 = tpu.matmul %201, %202, %cst_77 {dimension_numbers = #tpu.dot_dimension_numbers<[1], [0], [0], [1], [0, 0, 1, 1], [], []>} : vector<8x64xbf16>, vector<64x128xbf16>, vector<8x128xf32> -> vector<8x128xf32>
    %c0_78 = arith.constant 0 : index
    %c0_79 = arith.constant 0 : index
    %204 = vector.load %arg6[%c0_78, %c0_79] : memref<1x128xf32, #tpu.memory_space<vmem>>, vector<1x128xf32>
    %205 = vector.broadcast %204 : vector<1x128xf32> to vector<8x128xf32>
    %206 = arith.addf %203, %205 : vector<8x128xf32>
    %207 = arith.negf %206 : vector<8x128xf32>
    %208 = math.exp %207 : vector<8x128xf32>
    %cst_80 = arith.constant 1.000000e+00 : f32
    %209 = vector.broadcast %cst_80 : f32 to vector<8x128xf32>
    %210 = arith.addf %209, %208 : vector<8x128xf32>
    %211 = arith.divf %209, %210 : vector<8x128xf32>
    %212 = vector.extract_strided_slice %211 {offsets = [0, 0], sizes = [8, 32], strides = [1, 1]} : vector<8x128xf32> to vector<8x32xf32>
    %213 = vector.extract_strided_slice %211 {offsets = [0, 32], sizes = [8, 32], strides = [1, 1]} : vector<8x128xf32> to vector<8x32xf32>
    %214 = vector.extract_strided_slice %211 {offsets = [0, 96], sizes = [8, 32], strides = [1, 1]} : vector<8x128xf32> to vector<8x32xf32>
    %215 = vector.extract_strided_slice %206 {offsets = [0, 64], sizes = [8, 32], strides = [1, 1]} : vector<8x128xf32> to vector<8x32xf32>
    %216 = math.tanh %215 : vector<8x32xf32>
    %217 = arith.mulf %213, %145 : vector<8x32xf32>
    %218 = arith.mulf %212, %216 : vector<8x32xf32>
    %219 = arith.addf %217, %218 : vector<8x32xf32>
    %220 = math.tanh %219 : vector<8x32xf32>
    %221 = arith.mulf %214, %220 : vector<8x32xf32>
    %222 = arith.truncf %221 : vector<8x32xf32> to vector<8x32xbf16>
    %c0_81 = arith.constant 0 : index
    %c0_82 = arith.constant 0 : index
    %223 = vector.load %arg7[%c0_81, %c0_82] : memref<32x256xbf16, #tpu.memory_space<vmem>>, vector<32x256xbf16>
    %cst_83 = arith.constant dense<0.000000e+00> : vector<8x256xf32>
    %224 = tpu.matmul %222, %223, %cst_83 {dimension_numbers = #tpu.dot_dimension_numbers<[1], [0], [0], [1], [0, 0, 1, 1], [], []>} : vector<8x32xbf16>, vector<32x256xbf16>, vector<8x256xf32> -> vector<8x256xf32>
    %c0_84 = arith.constant 0 : index
    %c0_85 = arith.constant 0 : index
    %225 = vector.load %arg8[%c0_84, %c0_85] : memref<1x256xf32, #tpu.memory_space<vmem>>, vector<1x256xf32>
    %226 = vector.broadcast %225 : vector<1x256xf32> to vector<8x256xf32>
    %227 = arith.addf %224, %226 : vector<8x256xf32>
    %228 = vector.extract_strided_slice %227 {offsets = [0, 128], sizes = [8, 128], strides = [1, 1]} : vector<8x256xf32> to vector<8x128xf32>
    %229 = arith.index_cast %c2_i32 : i32 to index
    %c0_86 = arith.constant 0 : index
    %c0_87 = arith.constant 0 : index
    %230 = vector.load %arg9[%229, %c0_86, %c0_87] : memref<8x8x128xf32, #tpu.memory_space<vmem>>, vector<1x8x128xf32>
    %231 = vector.shape_cast %230 : vector<1x8x128xf32> to vector<8x128xf32>
    %232 = vector.shape_cast %228 : vector<8x128xf32> to vector<1x8x128xf32>
    tpu.vector_store %arg9[%229, %c0_86, %c0_87], %232 {strides = array<i32>} : memref<8x8x128xf32, #tpu.memory_space<vmem>>, vector<1x8x128xf32>,
    %233 = vector.extract_strided_slice %227 {offsets = [0, 0], sizes = [8, 128], strides = [1, 1]} : vector<8x256xf32> to vector<8x128xf32>
    %c3_i32 = arith.constant 3 : i32
    %cst_88 = arith.constant dense<0xFF800000> : vector<8xf32>
    %234 = vector.multi_reduction <maximumf>, %233, %cst_88 [1] : vector<8x128xf32> to vector<8xf32>
    %235 = vector.shape_cast %234 : vector<8xf32> to vector<8x1xf32>
    %236 = vector.broadcast %235 : vector<8x1xf32> to vector<8x128xf32>
    %237 = arith.subf %233, %236 : vector<8x128xf32>
    %238 = math.exp %237 : vector<8x128xf32>
    %cst_89 = arith.constant dense<0.000000e+00> : vector<8xf32>
    %239 = vector.multi_reduction <add>, %238, %cst_89 [1] : vector<8x128xf32> to vector<8xf32>
    %240 = vector.shape_cast %239 : vector<8xf32> to vector<8x1xf32>
    %241 = tpu.reciprocal %240 {approx = true} : vector<8x1xf32> -> vector<8x1xf32>
    %242 = vector.broadcast %241 : vector<8x1xf32> to vector<8x128xf32>
    %243 = arith.mulf %238, %242 : vector<8x128xf32>
    %244 = arith.index_cast %c3_i32 : i32 to index
    %c0_90 = arith.constant 0 : index
    %c0_91 = arith.constant 0 : index
    %c0_92 = arith.constant 0 : index
    %245 = vector.load %arg2[%244, %c0_90, %c0_91, %c0_92] : memref<8x8x16x128xbf16, #tpu.memory_space<vmem>>, vector<1x8x16x128xbf16>
    %246 = vector.shape_cast %245 : vector<1x8x16x128xbf16> to vector<8x16x128xbf16>
    %247 = vector.shape_cast %243 : vector<8x128xf32> to vector<8x1x128xf32>
    %248 = arith.extf %246 : vector<8x16x128xbf16> to vector<8x16x128xf32>
    %249 = vector.broadcast %247 : vector<8x1x128xf32> to vector<8x16x128xf32>
    %250 = arith.mulf %249, %248 : vector<8x16x128xf32>
    %cst_93 = arith.constant dense<0.000000e+00> : vector<8x16xf32>
    %251 = vector.multi_reduction <add>, %250, %cst_93 [2] : vector<8x16x128xf32> to vector<8x16xf32>
    %252 = tpu.concatenate %251, %199 in 1 : vector<8x16xf32>, vector<8x32xf32> -> vector<8x48xf32>
    %253 = arith.truncf %252 : vector<8x48xf32> to vector<8x48xbf16>
    %c0_94 = arith.constant 0 : index
    %c0_95 = arith.constant 0 : index
    %254 = vector.load %arg3[%c0_94, %c0_95] : memref<48x128xbf16, #tpu.memory_space<vmem>>, vector<48x128xbf16>
    %cst_96 = arith.constant dense<0.000000e+00> : vector<8x128xf32>
    %255 = tpu.matmul %253, %254, %cst_96 {dimension_numbers = #tpu.dot_dimension_numbers<[1], [0], [0], [1], [0, 0, 1, 1], [], []>} : vector<8x48xbf16>, vector<48x128xbf16>, vector<8x128xf32> -> vector<8x128xf32>
    %c0_97 = arith.constant 0 : index
    %c0_98 = arith.constant 0 : index
    %256 = vector.load %arg4[%c0_97, %c0_98] : memref<1x128xf32, #tpu.memory_space<vmem>>, vector<1x128xf32>
    %257 = vector.broadcast %256 : vector<1x128xf32> to vector<8x128xf32>
    %258 = arith.addf %255, %257 : vector<8x128xf32>
    %259 = arith.negf %258 : vector<8x128xf32>
    %260 = math.exp %259 : vector<8x128xf32>
    %cst_99 = arith.constant 1.000000e+00 : f32
    %261 = vector.broadcast %cst_99 : f32 to vector<8x128xf32>
    %262 = arith.addf %261, %260 : vector<8x128xf32>
    %263 = arith.divf %261, %262 : vector<8x128xf32>
    %264 = vector.extract_strided_slice %263 {offsets = [0, 0], sizes = [8, 32], strides = [1, 1]} : vector<8x128xf32> to vector<8x32xf32>
    %265 = vector.extract_strided_slice %263 {offsets = [0, 32], sizes = [8, 32], strides = [1, 1]} : vector<8x128xf32> to vector<8x32xf32>
    %266 = vector.extract_strided_slice %263 {offsets = [0, 96], sizes = [8, 32], strides = [1, 1]} : vector<8x128xf32> to vector<8x32xf32>
    %267 = vector.extract_strided_slice %258 {offsets = [0, 64], sizes = [8, 32], strides = [1, 1]} : vector<8x128xf32> to vector<8x32xf32>
    %268 = math.tanh %267 : vector<8x32xf32>
    %269 = arith.mulf %265, %197 : vector<8x32xf32>
    %270 = arith.mulf %264, %268 : vector<8x32xf32>
    %271 = arith.addf %269, %270 : vector<8x32xf32>
    %272 = math.tanh %271 : vector<8x32xf32>
    %273 = arith.mulf %266, %272 : vector<8x32xf32>
    %274 = tpu.concatenate %273, %221 in 1 : vector<8x32xf32>, vector<8x32xf32> -> vector<8x64xf32>
    %275 = arith.truncf %274 : vector<8x64xf32> to vector<8x64xbf16>
    %c0_100 = arith.constant 0 : index
    %c0_101 = arith.constant 0 : index
    %276 = vector.load %arg5[%c0_100, %c0_101] : memref<64x128xbf16, #tpu.memory_space<vmem>>, vector<64x128xbf16>
    %cst_102 = arith.constant dense<0.000000e+00> : vector<8x128xf32>
    %277 = tpu.matmul %275, %276, %cst_102 {dimension_numbers = #tpu.dot_dimension_numbers<[1], [0], [0], [1], [0, 0, 1, 1], [], []>} : vector<8x64xbf16>, vector<64x128xbf16>, vector<8x128xf32> -> vector<8x128xf32>
    %c0_103 = arith.constant 0 : index
    %c0_104 = arith.constant 0 : index
    %278 = vector.load %arg6[%c0_103, %c0_104] : memref<1x128xf32, #tpu.memory_space<vmem>>, vector<1x128xf32>
    %279 = vector.broadcast %278 : vector<1x128xf32> to vector<8x128xf32>
    %280 = arith.addf %277, %279 : vector<8x128xf32>
    %281 = arith.negf %280 : vector<8x128xf32>
    %282 = math.exp %281 : vector<8x128xf32>
    %cst_105 = arith.constant 1.000000e+00 : f32
    %283 = vector.broadcast %cst_105 : f32 to vector<8x128xf32>
    %284 = arith.addf %283, %282 : vector<8x128xf32>
    %285 = arith.divf %283, %284 : vector<8x128xf32>
    %286 = vector.extract_strided_slice %285 {offsets = [0, 0], sizes = [8, 32], strides = [1, 1]} : vector<8x128xf32> to vector<8x32xf32>
    %287 = vector.extract_strided_slice %285 {offsets = [0, 32], sizes = [8, 32], strides = [1, 1]} : vector<8x128xf32> to vector<8x32xf32>
    %288 = vector.extract_strided_slice %285 {offsets = [0, 96], sizes = [8, 32], strides = [1, 1]} : vector<8x128xf32> to vector<8x32xf32>
    %289 = vector.extract_strided_slice %280 {offsets = [0, 64], sizes = [8, 32], strides = [1, 1]} : vector<8x128xf32> to vector<8x32xf32>
    %290 = math.tanh %289 : vector<8x32xf32>
    %291 = arith.mulf %287, %219 : vector<8x32xf32>
    %292 = arith.mulf %286, %290 : vector<8x32xf32>
    %293 = arith.addf %291, %292 : vector<8x32xf32>
    %294 = math.tanh %293 : vector<8x32xf32>
    %295 = arith.mulf %288, %294 : vector<8x32xf32>
    %296 = arith.truncf %295 : vector<8x32xf32> to vector<8x32xbf16>
    %c0_106 = arith.constant 0 : index
    %c0_107 = arith.constant 0 : index
    %297 = vector.load %arg7[%c0_106, %c0_107] : memref<32x256xbf16, #tpu.memory_space<vmem>>, vector<32x256xbf16>
    %cst_108 = arith.constant dense<0.000000e+00> : vector<8x256xf32>
    %298 = tpu.matmul %296, %297, %cst_108 {dimension_numbers = #tpu.dot_dimension_numbers<[1], [0], [0], [1], [0, 0, 1, 1], [], []>} : vector<8x32xbf16>, vector<32x256xbf16>, vector<8x256xf32> -> vector<8x256xf32>
    %c0_109 = arith.constant 0 : index
    %c0_110 = arith.constant 0 : index
    %299 = vector.load %arg8[%c0_109, %c0_110] : memref<1x256xf32, #tpu.memory_space<vmem>>, vector<1x256xf32>
    %300 = vector.broadcast %299 : vector<1x256xf32> to vector<8x256xf32>
    %301 = arith.addf %298, %300 : vector<8x256xf32>
    %302 = vector.extract_strided_slice %301 {offsets = [0, 128], sizes = [8, 128], strides = [1, 1]} : vector<8x256xf32> to vector<8x128xf32>
    %303 = arith.index_cast %c3_i32 : i32 to index
    %c0_111 = arith.constant 0 : index
    %c0_112 = arith.constant 0 : index
    %304 = vector.load %arg9[%303, %c0_111, %c0_112] : memref<8x8x128xf32, #tpu.memory_space<vmem>>, vector<1x8x128xf32>
    %305 = vector.shape_cast %304 : vector<1x8x128xf32> to vector<8x128xf32>
    %306 = vector.shape_cast %302 : vector<8x128xf32> to vector<1x8x128xf32>
    tpu.vector_store %arg9[%303, %c0_111, %c0_112], %306 {strides = array<i32>} : memref<8x8x128xf32, #tpu.memory_space<vmem>>, vector<1x8x128xf32>,
    %307 = vector.extract_strided_slice %301 {offsets = [0, 0], sizes = [8, 128], strides = [1, 1]} : vector<8x256xf32> to vector<8x128xf32>
    %c4_i32 = arith.constant 4 : i32
    %cst_113 = arith.constant dense<0xFF800000> : vector<8xf32>
    %308 = vector.multi_reduction <maximumf>, %307, %cst_113 [1] : vector<8x128xf32> to vector<8xf32>
    %309 = vector.shape_cast %308 : vector<8xf32> to vector<8x1xf32>
    %310 = vector.broadcast %309 : vector<8x1xf32> to vector<8x128xf32>
    %311 = arith.subf %307, %310 : vector<8x128xf32>
    %312 = math.exp %311 : vector<8x128xf32>
    %cst_114 = arith.constant dense<0.000000e+00> : vector<8xf32>
    %313 = vector.multi_reduction <add>, %312, %cst_114 [1] : vector<8x128xf32> to vector<8xf32>
    %314 = vector.shape_cast %313 : vector<8xf32> to vector<8x1xf32>
    %315 = tpu.reciprocal %314 {approx = true} : vector<8x1xf32> -> vector<8x1xf32>
    %316 = vector.broadcast %315 : vector<8x1xf32> to vector<8x128xf32>
    %317 = arith.mulf %312, %316 : vector<8x128xf32>
    %318 = arith.index_cast %c4_i32 : i32 to index
    %c0_115 = arith.constant 0 : index
    %c0_116 = arith.constant 0 : index
    %c0_117 = arith.constant 0 : index
    %319 = vector.load %arg2[%318, %c0_115, %c0_116, %c0_117] : memref<8x8x16x128xbf16, #tpu.memory_space<vmem>>, vector<1x8x16x128xbf16>
    %320 = vector.shape_cast %319 : vector<1x8x16x128xbf16> to vector<8x16x128xbf16>
    %321 = vector.shape_cast %317 : vector<8x128xf32> to vector<8x1x128xf32>
    %322 = arith.extf %320 : vector<8x16x128xbf16> to vector<8x16x128xf32>
    %323 = vector.broadcast %321 : vector<8x1x128xf32> to vector<8x16x128xf32>
    %324 = arith.mulf %323, %322 : vector<8x16x128xf32>
    %cst_118 = arith.constant dense<0.000000e+00> : vector<8x16xf32>
    %325 = vector.multi_reduction <add>, %324, %cst_118 [2] : vector<8x16x128xf32> to vector<8x16xf32>
    %326 = tpu.concatenate %325, %273 in 1 : vector<8x16xf32>, vector<8x32xf32> -> vector<8x48xf32>
    %327 = arith.truncf %326 : vector<8x48xf32> to vector<8x48xbf16>
    %c0_119 = arith.constant 0 : index
    %c0_120 = arith.constant 0 : index
    %328 = vector.load %arg3[%c0_119, %c0_120] : memref<48x128xbf16, #tpu.memory_space<vmem>>, vector<48x128xbf16>
    %cst_121 = arith.constant dense<0.000000e+00> : vector<8x128xf32>
    %329 = tpu.matmul %327, %328, %cst_121 {dimension_numbers = #tpu.dot_dimension_numbers<[1], [0], [0], [1], [0, 0, 1, 1], [], []>} : vector<8x48xbf16>, vector<48x128xbf16>, vector<8x128xf32> -> vector<8x128xf32>
    %c0_122 = arith.constant 0 : index
    %c0_123 = arith.constant 0 : index
    %330 = vector.load %arg4[%c0_122, %c0_123] : memref<1x128xf32, #tpu.memory_space<vmem>>, vector<1x128xf32>
    %331 = vector.broadcast %330 : vector<1x128xf32> to vector<8x128xf32>
    %332 = arith.addf %329, %331 : vector<8x128xf32>
    %333 = arith.negf %332 : vector<8x128xf32>
    %334 = math.exp %333 : vector<8x128xf32>
    %cst_124 = arith.constant 1.000000e+00 : f32
    %335 = vector.broadcast %cst_124 : f32 to vector<8x128xf32>
    %336 = arith.addf %335, %334 : vector<8x128xf32>
    %337 = arith.divf %335, %336 : vector<8x128xf32>
    %338 = vector.extract_strided_slice %337 {offsets = [0, 0], sizes = [8, 32], strides = [1, 1]} : vector<8x128xf32> to vector<8x32xf32>
    %339 = vector.extract_strided_slice %337 {offsets = [0, 32], sizes = [8, 32], strides = [1, 1]} : vector<8x128xf32> to vector<8x32xf32>
    %340 = vector.extract_strided_slice %337 {offsets = [0, 96], sizes = [8, 32], strides = [1, 1]} : vector<8x128xf32> to vector<8x32xf32>
    %341 = vector.extract_strided_slice %332 {offsets = [0, 64], sizes = [8, 32], strides = [1, 1]} : vector<8x128xf32> to vector<8x32xf32>
    %342 = math.tanh %341 : vector<8x32xf32>
    %343 = arith.mulf %339, %271 : vector<8x32xf32>
    %344 = arith.mulf %338, %342 : vector<8x32xf32>
    %345 = arith.addf %343, %344 : vector<8x32xf32>
    %346 = math.tanh %345 : vector<8x32xf32>
    %347 = arith.mulf %340, %346 : vector<8x32xf32>
    %348 = tpu.concatenate %347, %295 in 1 : vector<8x32xf32>, vector<8x32xf32> -> vector<8x64xf32>
    %349 = arith.truncf %348 : vector<8x64xf32> to vector<8x64xbf16>
    %c0_125 = arith.constant 0 : index
    %c0_126 = arith.constant 0 : index
    %350 = vector.load %arg5[%c0_125, %c0_126] : memref<64x128xbf16, #tpu.memory_space<vmem>>, vector<64x128xbf16>
    %cst_127 = arith.constant dense<0.000000e+00> : vector<8x128xf32>
    %351 = tpu.matmul %349, %350, %cst_127 {dimension_numbers = #tpu.dot_dimension_numbers<[1], [0], [0], [1], [0, 0, 1, 1], [], []>} : vector<8x64xbf16>, vector<64x128xbf16>, vector<8x128xf32> -> vector<8x128xf32>
    %c0_128 = arith.constant 0 : index
    %c0_129 = arith.constant 0 : index
    %352 = vector.load %arg6[%c0_128, %c0_129] : memref<1x128xf32, #tpu.memory_space<vmem>>, vector<1x128xf32>
    %353 = vector.broadcast %352 : vector<1x128xf32> to vector<8x128xf32>
    %354 = arith.addf %351, %353 : vector<8x128xf32>
    %355 = arith.negf %354 : vector<8x128xf32>
    %356 = math.exp %355 : vector<8x128xf32>
    %cst_130 = arith.constant 1.000000e+00 : f32
    %357 = vector.broadcast %cst_130 : f32 to vector<8x128xf32>
    %358 = arith.addf %357, %356 : vector<8x128xf32>
    %359 = arith.divf %357, %358 : vector<8x128xf32>
    %360 = vector.extract_strided_slice %359 {offsets = [0, 0], sizes = [8, 32], strides = [1, 1]} : vector<8x128xf32> to vector<8x32xf32>
    %361 = vector.extract_strided_slice %359 {offsets = [0, 32], sizes = [8, 32], strides = [1, 1]} : vector<8x128xf32> to vector<8x32xf32>
    %362 = vector.extract_strided_slice %359 {offsets = [0, 96], sizes = [8, 32], strides = [1, 1]} : vector<8x128xf32> to vector<8x32xf32>
    %363 = vector.extract_strided_slice %354 {offsets = [0, 64], sizes = [8, 32], strides = [1, 1]} : vector<8x128xf32> to vector<8x32xf32>
    %364 = math.tanh %363 : vector<8x32xf32>
    %365 = arith.mulf %361, %293 : vector<8x32xf32>
    %366 = arith.mulf %360, %364 : vector<8x32xf32>
    %367 = arith.addf %365, %366 : vector<8x32xf32>
    %368 = math.tanh %367 : vector<8x32xf32>
    %369 = arith.mulf %362, %368 : vector<8x32xf32>
    %370 = arith.truncf %369 : vector<8x32xf32> to vector<8x32xbf16>
    %c0_131 = arith.constant 0 : index
    %c0_132 = arith.constant 0 : index
    %371 = vector.load %arg7[%c0_131, %c0_132] : memref<32x256xbf16, #tpu.memory_space<vmem>>, vector<32x256xbf16>
    %cst_133 = arith.constant dense<0.000000e+00> : vector<8x256xf32>
    %372 = tpu.matmul %370, %371, %cst_133 {dimension_numbers = #tpu.dot_dimension_numbers<[1], [0], [0], [1], [0, 0, 1, 1], [], []>} : vector<8x32xbf16>, vector<32x256xbf16>, vector<8x256xf32> -> vector<8x256xf32>
    %c0_134 = arith.constant 0 : index
    %c0_135 = arith.constant 0 : index
    %373 = vector.load %arg8[%c0_134, %c0_135] : memref<1x256xf32, #tpu.memory_space<vmem>>, vector<1x256xf32>
    %374 = vector.broadcast %373 : vector<1x256xf32> to vector<8x256xf32>
    %375 = arith.addf %372, %374 : vector<8x256xf32>
    %376 = vector.extract_strided_slice %375 {offsets = [0, 128], sizes = [8, 128], strides = [1, 1]} : vector<8x256xf32> to vector<8x128xf32>
    %377 = arith.index_cast %c4_i32 : i32 to index
    %c0_136 = arith.constant 0 : index
    %c0_137 = arith.constant 0 : index
    %378 = vector.load %arg9[%377, %c0_136, %c0_137] : memref<8x8x128xf32, #tpu.memory_space<vmem>>, vector<1x8x128xf32>
    %379 = vector.shape_cast %378 : vector<1x8x128xf32> to vector<8x128xf32>
    %380 = vector.shape_cast %376 : vector<8x128xf32> to vector<1x8x128xf32>
    tpu.vector_store %arg9[%377, %c0_136, %c0_137], %380 {strides = array<i32>} : memref<8x8x128xf32, #tpu.memory_space<vmem>>, vector<1x8x128xf32>,
    %381 = vector.extract_strided_slice %375 {offsets = [0, 0], sizes = [8, 128], strides = [1, 1]} : vector<8x256xf32> to vector<8x128xf32>
    %c5_i32 = arith.constant 5 : i32
    %cst_138 = arith.constant dense<0xFF800000> : vector<8xf32>
    %382 = vector.multi_reduction <maximumf>, %381, %cst_138 [1] : vector<8x128xf32> to vector<8xf32>
    %383 = vector.shape_cast %382 : vector<8xf32> to vector<8x1xf32>
    %384 = vector.broadcast %383 : vector<8x1xf32> to vector<8x128xf32>
    %385 = arith.subf %381, %384 : vector<8x128xf32>
    %386 = math.exp %385 : vector<8x128xf32>
    %cst_139 = arith.constant dense<0.000000e+00> : vector<8xf32>
    %387 = vector.multi_reduction <add>, %386, %cst_139 [1] : vector<8x128xf32> to vector<8xf32>
    %388 = vector.shape_cast %387 : vector<8xf32> to vector<8x1xf32>
    %389 = tpu.reciprocal %388 {approx = true} : vector<8x1xf32> -> vector<8x1xf32>
    %390 = vector.broadcast %389 : vector<8x1xf32> to vector<8x128xf32>
    %391 = arith.mulf %386, %390 : vector<8x128xf32>
    %392 = arith.index_cast %c5_i32 : i32 to index
    %c0_140 = arith.constant 0 : index
    %c0_141 = arith.constant 0 : index
    %c0_142 = arith.constant 0 : index
    %393 = vector.load %arg2[%392, %c0_140, %c0_141, %c0_142] : memref<8x8x16x128xbf16, #tpu.memory_space<vmem>>, vector<1x8x16x128xbf16>
    %394 = vector.shape_cast %393 : vector<1x8x16x128xbf16> to vector<8x16x128xbf16>
    %395 = vector.shape_cast %391 : vector<8x128xf32> to vector<8x1x128xf32>
    %396 = arith.extf %394 : vector<8x16x128xbf16> to vector<8x16x128xf32>
    %397 = vector.broadcast %395 : vector<8x1x128xf32> to vector<8x16x128xf32>
    %398 = arith.mulf %397, %396 : vector<8x16x128xf32>
    %cst_143 = arith.constant dense<0.000000e+00> : vector<8x16xf32>
    %399 = vector.multi_reduction <add>, %398, %cst_143 [2] : vector<8x16x128xf32> to vector<8x16xf32>
    %400 = tpu.concatenate %399, %347 in 1 : vector<8x16xf32>, vector<8x32xf32> -> vector<8x48xf32>
    %401 = arith.truncf %400 : vector<8x48xf32> to vector<8x48xbf16>
    %c0_144 = arith.constant 0 : index
    %c0_145 = arith.constant 0 : index
    %402 = vector.load %arg3[%c0_144, %c0_145] : memref<48x128xbf16, #tpu.memory_space<vmem>>, vector<48x128xbf16>
    %cst_146 = arith.constant dense<0.000000e+00> : vector<8x128xf32>
    %403 = tpu.matmul %401, %402, %cst_146 {dimension_numbers = #tpu.dot_dimension_numbers<[1], [0], [0], [1], [0, 0, 1, 1], [], []>} : vector<8x48xbf16>, vector<48x128xbf16>, vector<8x128xf32> -> vector<8x128xf32>
    %c0_147 = arith.constant 0 : index
    %c0_148 = arith.constant 0 : index
    %404 = vector.load %arg4[%c0_147, %c0_148] : memref<1x128xf32, #tpu.memory_space<vmem>>, vector<1x128xf32>
    %405 = vector.broadcast %404 : vector<1x128xf32> to vector<8x128xf32>
    %406 = arith.addf %403, %405 : vector<8x128xf32>
    %407 = arith.negf %406 : vector<8x128xf32>
    %408 = math.exp %407 : vector<8x128xf32>
    %cst_149 = arith.constant 1.000000e+00 : f32
    %409 = vector.broadcast %cst_149 : f32 to vector<8x128xf32>
    %410 = arith.addf %409, %408 : vector<8x128xf32>
    %411 = arith.divf %409, %410 : vector<8x128xf32>
    %412 = vector.extract_strided_slice %411 {offsets = [0, 0], sizes = [8, 32], strides = [1, 1]} : vector<8x128xf32> to vector<8x32xf32>
    %413 = vector.extract_strided_slice %411 {offsets = [0, 32], sizes = [8, 32], strides = [1, 1]} : vector<8x128xf32> to vector<8x32xf32>
    %414 = vector.extract_strided_slice %411 {offsets = [0, 96], sizes = [8, 32], strides = [1, 1]} : vector<8x128xf32> to vector<8x32xf32>
    %415 = vector.extract_strided_slice %406 {offsets = [0, 64], sizes = [8, 32], strides = [1, 1]} : vector<8x128xf32> to vector<8x32xf32>
    %416 = math.tanh %415 : vector<8x32xf32>
    %417 = arith.mulf %413, %345 : vector<8x32xf32>
    %418 = arith.mulf %412, %416 : vector<8x32xf32>
    %419 = arith.addf %417, %418 : vector<8x32xf32>
    %420 = math.tanh %419 : vector<8x32xf32>
    %421 = arith.mulf %414, %420 : vector<8x32xf32>
    %422 = tpu.concatenate %421, %369 in 1 : vector<8x32xf32>, vector<8x32xf32> -> vector<8x64xf32>
    %423 = arith.truncf %422 : vector<8x64xf32> to vector<8x64xbf16>
    %c0_150 = arith.constant 0 : index
    %c0_151 = arith.constant 0 : index
    %424 = vector.load %arg5[%c0_150, %c0_151] : memref<64x128xbf16, #tpu.memory_space<vmem>>, vector<64x128xbf16>
    %cst_152 = arith.constant dense<0.000000e+00> : vector<8x128xf32>
    %425 = tpu.matmul %423, %424, %cst_152 {dimension_numbers = #tpu.dot_dimension_numbers<[1], [0], [0], [1], [0, 0, 1, 1], [], []>} : vector<8x64xbf16>, vector<64x128xbf16>, vector<8x128xf32> -> vector<8x128xf32>
    %c0_153 = arith.constant 0 : index
    %c0_154 = arith.constant 0 : index
    %426 = vector.load %arg6[%c0_153, %c0_154] : memref<1x128xf32, #tpu.memory_space<vmem>>, vector<1x128xf32>
    %427 = vector.broadcast %426 : vector<1x128xf32> to vector<8x128xf32>
    %428 = arith.addf %425, %427 : vector<8x128xf32>
    %429 = arith.negf %428 : vector<8x128xf32>
    %430 = math.exp %429 : vector<8x128xf32>
    %cst_155 = arith.constant 1.000000e+00 : f32
    %431 = vector.broadcast %cst_155 : f32 to vector<8x128xf32>
    %432 = arith.addf %431, %430 : vector<8x128xf32>
    %433 = arith.divf %431, %432 : vector<8x128xf32>
    %434 = vector.extract_strided_slice %433 {offsets = [0, 0], sizes = [8, 32], strides = [1, 1]} : vector<8x128xf32> to vector<8x32xf32>
    %435 = vector.extract_strided_slice %433 {offsets = [0, 32], sizes = [8, 32], strides = [1, 1]} : vector<8x128xf32> to vector<8x32xf32>
    %436 = vector.extract_strided_slice %433 {offsets = [0, 96], sizes = [8, 32], strides = [1, 1]} : vector<8x128xf32> to vector<8x32xf32>
    %437 = vector.extract_strided_slice %428 {offsets = [0, 64], sizes = [8, 32], strides = [1, 1]} : vector<8x128xf32> to vector<8x32xf32>
    %438 = math.tanh %437 : vector<8x32xf32>
    %439 = arith.mulf %435, %367 : vector<8x32xf32>
    %440 = arith.mulf %434, %438 : vector<8x32xf32>
    %441 = arith.addf %439, %440 : vector<8x32xf32>
    %442 = math.tanh %441 : vector<8x32xf32>
    %443 = arith.mulf %436, %442 : vector<8x32xf32>
    %444 = arith.truncf %443 : vector<8x32xf32> to vector<8x32xbf16>
    %c0_156 = arith.constant 0 : index
    %c0_157 = arith.constant 0 : index
    %445 = vector.load %arg7[%c0_156, %c0_157] : memref<32x256xbf16, #tpu.memory_space<vmem>>, vector<32x256xbf16>
    %cst_158 = arith.constant dense<0.000000e+00> : vector<8x256xf32>
    %446 = tpu.matmul %444, %445, %cst_158 {dimension_numbers = #tpu.dot_dimension_numbers<[1], [0], [0], [1], [0, 0, 1, 1], [], []>} : vector<8x32xbf16>, vector<32x256xbf16>, vector<8x256xf32> -> vector<8x256xf32>
    %c0_159 = arith.constant 0 : index
    %c0_160 = arith.constant 0 : index
    %447 = vector.load %arg8[%c0_159, %c0_160] : memref<1x256xf32, #tpu.memory_space<vmem>>, vector<1x256xf32>
    %448 = vector.broadcast %447 : vector<1x256xf32> to vector<8x256xf32>
    %449 = arith.addf %446, %448 : vector<8x256xf32>
    %450 = vector.extract_strided_slice %449 {offsets = [0, 128], sizes = [8, 128], strides = [1, 1]} : vector<8x256xf32> to vector<8x128xf32>
    %451 = arith.index_cast %c5_i32 : i32 to index
    %c0_161 = arith.constant 0 : index
    %c0_162 = arith.constant 0 : index
    %452 = vector.load %arg9[%451, %c0_161, %c0_162] : memref<8x8x128xf32, #tpu.memory_space<vmem>>, vector<1x8x128xf32>
    %453 = vector.shape_cast %452 : vector<1x8x128xf32> to vector<8x128xf32>
    %454 = vector.shape_cast %450 : vector<8x128xf32> to vector<1x8x128xf32>
    tpu.vector_store %arg9[%451, %c0_161, %c0_162], %454 {strides = array<i32>} : memref<8x8x128xf32, #tpu.memory_space<vmem>>, vector<1x8x128xf32>,
    %455 = vector.extract_strided_slice %449 {offsets = [0, 0], sizes = [8, 128], strides = [1, 1]} : vector<8x256xf32> to vector<8x128xf32>
    %c6_i32 = arith.constant 6 : i32
    %cst_163 = arith.constant dense<0xFF800000> : vector<8xf32>
    %456 = vector.multi_reduction <maximumf>, %455, %cst_163 [1] : vector<8x128xf32> to vector<8xf32>
    %457 = vector.shape_cast %456 : vector<8xf32> to vector<8x1xf32>
    %458 = vector.broadcast %457 : vector<8x1xf32> to vector<8x128xf32>
    %459 = arith.subf %455, %458 : vector<8x128xf32>
    %460 = math.exp %459 : vector<8x128xf32>
    %cst_164 = arith.constant dense<0.000000e+00> : vector<8xf32>
    %461 = vector.multi_reduction <add>, %460, %cst_164 [1] : vector<8x128xf32> to vector<8xf32>
    %462 = vector.shape_cast %461 : vector<8xf32> to vector<8x1xf32>
    %463 = tpu.reciprocal %462 {approx = true} : vector<8x1xf32> -> vector<8x1xf32>
    %464 = vector.broadcast %463 : vector<8x1xf32> to vector<8x128xf32>
    %465 = arith.mulf %460, %464 : vector<8x128xf32>
    %466 = arith.index_cast %c6_i32 : i32 to index
    %c0_165 = arith.constant 0 : index
    %c0_166 = arith.constant 0 : index
    %c0_167 = arith.constant 0 : index
    %467 = vector.load %arg2[%466, %c0_165, %c0_166, %c0_167] : memref<8x8x16x128xbf16, #tpu.memory_space<vmem>>, vector<1x8x16x128xbf16>
    %468 = vector.shape_cast %467 : vector<1x8x16x128xbf16> to vector<8x16x128xbf16>
    %469 = vector.shape_cast %465 : vector<8x128xf32> to vector<8x1x128xf32>
    %470 = arith.extf %468 : vector<8x16x128xbf16> to vector<8x16x128xf32>
    %471 = vector.broadcast %469 : vector<8x1x128xf32> to vector<8x16x128xf32>
    %472 = arith.mulf %471, %470 : vector<8x16x128xf32>
    %cst_168 = arith.constant dense<0.000000e+00> : vector<8x16xf32>
    %473 = vector.multi_reduction <add>, %472, %cst_168 [2] : vector<8x16x128xf32> to vector<8x16xf32>
    %474 = tpu.concatenate %473, %421 in 1 : vector<8x16xf32>, vector<8x32xf32> -> vector<8x48xf32>
    %475 = arith.truncf %474 : vector<8x48xf32> to vector<8x48xbf16>
    %c0_169 = arith.constant 0 : index
    %c0_170 = arith.constant 0 : index
    %476 = vector.load %arg3[%c0_169, %c0_170] : memref<48x128xbf16, #tpu.memory_space<vmem>>, vector<48x128xbf16>
    %cst_171 = arith.constant dense<0.000000e+00> : vector<8x128xf32>
    %477 = tpu.matmul %475, %476, %cst_171 {dimension_numbers = #tpu.dot_dimension_numbers<[1], [0], [0], [1], [0, 0, 1, 1], [], []>} : vector<8x48xbf16>, vector<48x128xbf16>, vector<8x128xf32> -> vector<8x128xf32>
    %c0_172 = arith.constant 0 : index
    %c0_173 = arith.constant 0 : index
    %478 = vector.load %arg4[%c0_172, %c0_173] : memref<1x128xf32, #tpu.memory_space<vmem>>, vector<1x128xf32>
    %479 = vector.broadcast %478 : vector<1x128xf32> to vector<8x128xf32>
    %480 = arith.addf %477, %479 : vector<8x128xf32>
    %481 = arith.negf %480 : vector<8x128xf32>
    %482 = math.exp %481 : vector<8x128xf32>
    %cst_174 = arith.constant 1.000000e+00 : f32
    %483 = vector.broadcast %cst_174 : f32 to vector<8x128xf32>
    %484 = arith.addf %483, %482 : vector<8x128xf32>
    %485 = arith.divf %483, %484 : vector<8x128xf32>
    %486 = vector.extract_strided_slice %485 {offsets = [0, 0], sizes = [8, 32], strides = [1, 1]} : vector<8x128xf32> to vector<8x32xf32>
    %487 = vector.extract_strided_slice %485 {offsets = [0, 32], sizes = [8, 32], strides = [1, 1]} : vector<8x128xf32> to vector<8x32xf32>
    %488 = vector.extract_strided_slice %485 {offsets = [0, 96], sizes = [8, 32], strides = [1, 1]} : vector<8x128xf32> to vector<8x32xf32>
    %489 = vector.extract_strided_slice %480 {offsets = [0, 64], sizes = [8, 32], strides = [1, 1]} : vector<8x128xf32> to vector<8x32xf32>
    %490 = math.tanh %489 : vector<8x32xf32>
    %491 = arith.mulf %487, %419 : vector<8x32xf32>
    %492 = arith.mulf %486, %490 : vector<8x32xf32>
    %493 = arith.addf %491, %492 : vector<8x32xf32>
    %494 = math.tanh %493 : vector<8x32xf32>
    %495 = arith.mulf %488, %494 : vector<8x32xf32>
    %496 = tpu.concatenate %495, %443 in 1 : vector<8x32xf32>, vector<8x32xf32> -> vector<8x64xf32>
    %497 = arith.truncf %496 : vector<8x64xf32> to vector<8x64xbf16>
    %c0_175 = arith.constant 0 : index
    %c0_176 = arith.constant 0 : index
    %498 = vector.load %arg5[%c0_175, %c0_176] : memref<64x128xbf16, #tpu.memory_space<vmem>>, vector<64x128xbf16>
    %cst_177 = arith.constant dense<0.000000e+00> : vector<8x128xf32>
    %499 = tpu.matmul %497, %498, %cst_177 {dimension_numbers = #tpu.dot_dimension_numbers<[1], [0], [0], [1], [0, 0, 1, 1], [], []>} : vector<8x64xbf16>, vector<64x128xbf16>, vector<8x128xf32> -> vector<8x128xf32>
    %c0_178 = arith.constant 0 : index
    %c0_179 = arith.constant 0 : index
    %500 = vector.load %arg6[%c0_178, %c0_179] : memref<1x128xf32, #tpu.memory_space<vmem>>, vector<1x128xf32>
    %501 = vector.broadcast %500 : vector<1x128xf32> to vector<8x128xf32>
    %502 = arith.addf %499, %501 : vector<8x128xf32>
    %503 = arith.negf %502 : vector<8x128xf32>
    %504 = math.exp %503 : vector<8x128xf32>
    %cst_180 = arith.constant 1.000000e+00 : f32
    %505 = vector.broadcast %cst_180 : f32 to vector<8x128xf32>
    %506 = arith.addf %505, %504 : vector<8x128xf32>
    %507 = arith.divf %505, %506 : vector<8x128xf32>
    %508 = vector.extract_strided_slice %507 {offsets = [0, 0], sizes = [8, 32], strides = [1, 1]} : vector<8x128xf32> to vector<8x32xf32>
    %509 = vector.extract_strided_slice %507 {offsets = [0, 32], sizes = [8, 32], strides = [1, 1]} : vector<8x128xf32> to vector<8x32xf32>
    %510 = vector.extract_strided_slice %507 {offsets = [0, 96], sizes = [8, 32], strides = [1, 1]} : vector<8x128xf32> to vector<8x32xf32>
    %511 = vector.extract_strided_slice %502 {offsets = [0, 64], sizes = [8, 32], strides = [1, 1]} : vector<8x128xf32> to vector<8x32xf32>
    %512 = math.tanh %511 : vector<8x32xf32>
    %513 = arith.mulf %509, %441 : vector<8x32xf32>
    %514 = arith.mulf %508, %512 : vector<8x32xf32>
    %515 = arith.addf %513, %514 : vector<8x32xf32>
    %516 = math.tanh %515 : vector<8x32xf32>
    %517 = arith.mulf %510, %516 : vector<8x32xf32>
    %518 = arith.truncf %517 : vector<8x32xf32> to vector<8x32xbf16>
    %c0_181 = arith.constant 0 : index
    %c0_182 = arith.constant 0 : index
    %519 = vector.load %arg7[%c0_181, %c0_182] : memref<32x256xbf16, #tpu.memory_space<vmem>>, vector<32x256xbf16>
    %cst_183 = arith.constant dense<0.000000e+00> : vector<8x256xf32>
    %520 = tpu.matmul %518, %519, %cst_183 {dimension_numbers = #tpu.dot_dimension_numbers<[1], [0], [0], [1], [0, 0, 1, 1], [], []>} : vector<8x32xbf16>, vector<32x256xbf16>, vector<8x256xf32> -> vector<8x256xf32>
    %c0_184 = arith.constant 0 : index
    %c0_185 = arith.constant 0 : index
    %521 = vector.load %arg8[%c0_184, %c0_185] : memref<1x256xf32, #tpu.memory_space<vmem>>, vector<1x256xf32>
    %522 = vector.broadcast %521 : vector<1x256xf32> to vector<8x256xf32>
    %523 = arith.addf %520, %522 : vector<8x256xf32>
    %524 = vector.extract_strided_slice %523 {offsets = [0, 128], sizes = [8, 128], strides = [1, 1]} : vector<8x256xf32> to vector<8x128xf32>
    %525 = arith.index_cast %c6_i32 : i32 to index
    %c0_186 = arith.constant 0 : index
    %c0_187 = arith.constant 0 : index
    %526 = vector.load %arg9[%525, %c0_186, %c0_187] : memref<8x8x128xf32, #tpu.memory_space<vmem>>, vector<1x8x128xf32>
    %527 = vector.shape_cast %526 : vector<1x8x128xf32> to vector<8x128xf32>
    %528 = vector.shape_cast %524 : vector<8x128xf32> to vector<1x8x128xf32>
    tpu.vector_store %arg9[%525, %c0_186, %c0_187], %528 {strides = array<i32>} : memref<8x8x128xf32, #tpu.memory_space<vmem>>, vector<1x8x128xf32>,
    %529 = vector.extract_strided_slice %523 {offsets = [0, 0], sizes = [8, 128], strides = [1, 1]} : vector<8x256xf32> to vector<8x128xf32>
    %c7_i32 = arith.constant 7 : i32
    %cst_188 = arith.constant dense<0xFF800000> : vector<8xf32>
    %530 = vector.multi_reduction <maximumf>, %529, %cst_188 [1] : vector<8x128xf32> to vector<8xf32>
    %531 = vector.shape_cast %530 : vector<8xf32> to vector<8x1xf32>
    %532 = vector.broadcast %531 : vector<8x1xf32> to vector<8x128xf32>
    %533 = arith.subf %529, %532 : vector<8x128xf32>
    %534 = math.exp %533 : vector<8x128xf32>
    %cst_189 = arith.constant dense<0.000000e+00> : vector<8xf32>
    %535 = vector.multi_reduction <add>, %534, %cst_189 [1] : vector<8x128xf32> to vector<8xf32>
    %536 = vector.shape_cast %535 : vector<8xf32> to vector<8x1xf32>
    %537 = tpu.reciprocal %536 {approx = true} : vector<8x1xf32> -> vector<8x1xf32>
    %538 = vector.broadcast %537 : vector<8x1xf32> to vector<8x128xf32>
    %539 = arith.mulf %534, %538 : vector<8x128xf32>
    %540 = arith.index_cast %c7_i32 : i32 to index
    %c0_190 = arith.constant 0 : index
    %c0_191 = arith.constant 0 : index
    %c0_192 = arith.constant 0 : index
    %541 = vector.load %arg2[%540, %c0_190, %c0_191, %c0_192] : memref<8x8x16x128xbf16, #tpu.memory_space<vmem>>, vector<1x8x16x128xbf16>
    %542 = vector.shape_cast %541 : vector<1x8x16x128xbf16> to vector<8x16x128xbf16>
    %543 = vector.shape_cast %539 : vector<8x128xf32> to vector<8x1x128xf32>
    %544 = arith.extf %542 : vector<8x16x128xbf16> to vector<8x16x128xf32>
    %545 = vector.broadcast %543 : vector<8x1x128xf32> to vector<8x16x128xf32>
    %546 = arith.mulf %545, %544 : vector<8x16x128xf32>
    %cst_193 = arith.constant dense<0.000000e+00> : vector<8x16xf32>
    %547 = vector.multi_reduction <add>, %546, %cst_193 [2] : vector<8x16x128xf32> to vector<8x16xf32>
    %548 = tpu.concatenate %547, %495 in 1 : vector<8x16xf32>, vector<8x32xf32> -> vector<8x48xf32>
    %549 = arith.truncf %548 : vector<8x48xf32> to vector<8x48xbf16>
    %c0_194 = arith.constant 0 : index
    %c0_195 = arith.constant 0 : index
    %550 = vector.load %arg3[%c0_194, %c0_195] : memref<48x128xbf16, #tpu.memory_space<vmem>>, vector<48x128xbf16>
    %cst_196 = arith.constant dense<0.000000e+00> : vector<8x128xf32>
    %551 = tpu.matmul %549, %550, %cst_196 {dimension_numbers = #tpu.dot_dimension_numbers<[1], [0], [0], [1], [0, 0, 1, 1], [], []>} : vector<8x48xbf16>, vector<48x128xbf16>, vector<8x128xf32> -> vector<8x128xf32>
    %c0_197 = arith.constant 0 : index
    %c0_198 = arith.constant 0 : index
    %552 = vector.load %arg4[%c0_197, %c0_198] : memref<1x128xf32, #tpu.memory_space<vmem>>, vector<1x128xf32>
    %553 = vector.broadcast %552 : vector<1x128xf32> to vector<8x128xf32>
    %554 = arith.addf %551, %553 : vector<8x128xf32>
    %555 = arith.negf %554 : vector<8x128xf32>
    %556 = math.exp %555 : vector<8x128xf32>
    %cst_199 = arith.constant 1.000000e+00 : f32
    %557 = vector.broadcast %cst_199 : f32 to vector<8x128xf32>
    %558 = arith.addf %557, %556 : vector<8x128xf32>
    %559 = arith.divf %557, %558 : vector<8x128xf32>
    %560 = vector.extract_strided_slice %559 {offsets = [0, 0], sizes = [8, 32], strides = [1, 1]} : vector<8x128xf32> to vector<8x32xf32>
    %561 = vector.extract_strided_slice %559 {offsets = [0, 32], sizes = [8, 32], strides = [1, 1]} : vector<8x128xf32> to vector<8x32xf32>
    %562 = vector.extract_strided_slice %559 {offsets = [0, 96], sizes = [8, 32], strides = [1, 1]} : vector<8x128xf32> to vector<8x32xf32>
    %563 = vector.extract_strided_slice %554 {offsets = [0, 64], sizes = [8, 32], strides = [1, 1]} : vector<8x128xf32> to vector<8x32xf32>
    %564 = math.tanh %563 : vector<8x32xf32>
    %565 = arith.mulf %561, %493 : vector<8x32xf32>
    %566 = arith.mulf %560, %564 : vector<8x32xf32>
    %567 = arith.addf %565, %566 : vector<8x32xf32>
    %568 = math.tanh %567 : vector<8x32xf32>
    %569 = arith.mulf %562, %568 : vector<8x32xf32>
    %570 = tpu.concatenate %569, %517 in 1 : vector<8x32xf32>, vector<8x32xf32> -> vector<8x64xf32>
    %571 = arith.truncf %570 : vector<8x64xf32> to vector<8x64xbf16>
    %c0_200 = arith.constant 0 : index
    %c0_201 = arith.constant 0 : index
    %572 = vector.load %arg5[%c0_200, %c0_201] : memref<64x128xbf16, #tpu.memory_space<vmem>>, vector<64x128xbf16>
    %cst_202 = arith.constant dense<0.000000e+00> : vector<8x128xf32>
    %573 = tpu.matmul %571, %572, %cst_202 {dimension_numbers = #tpu.dot_dimension_numbers<[1], [0], [0], [1], [0, 0, 1, 1], [], []>} : vector<8x64xbf16>, vector<64x128xbf16>, vector<8x128xf32> -> vector<8x128xf32>
    %c0_203 = arith.constant 0 : index
    %c0_204 = arith.constant 0 : index
    %574 = vector.load %arg6[%c0_203, %c0_204] : memref<1x128xf32, #tpu.memory_space<vmem>>, vector<1x128xf32>
    %575 = vector.broadcast %574 : vector<1x128xf32> to vector<8x128xf32>
    %576 = arith.addf %573, %575 : vector<8x128xf32>
    %577 = arith.negf %576 : vector<8x128xf32>
    %578 = math.exp %577 : vector<8x128xf32>
    %cst_205 = arith.constant 1.000000e+00 : f32
    %579 = vector.broadcast %cst_205 : f32 to vector<8x128xf32>
    %580 = arith.addf %579, %578 : vector<8x128xf32>
    %581 = arith.divf %579, %580 : vector<8x128xf32>
    %582 = vector.extract_strided_slice %581 {offsets = [0, 0], sizes = [8, 32], strides = [1, 1]} : vector<8x128xf32> to vector<8x32xf32>
    %583 = vector.extract_strided_slice %581 {offsets = [0, 32], sizes = [8, 32], strides = [1, 1]} : vector<8x128xf32> to vector<8x32xf32>
    %584 = vector.extract_strided_slice %581 {offsets = [0, 96], sizes = [8, 32], strides = [1, 1]} : vector<8x128xf32> to vector<8x32xf32>
    %585 = vector.extract_strided_slice %576 {offsets = [0, 64], sizes = [8, 32], strides = [1, 1]} : vector<8x128xf32> to vector<8x32xf32>
    %586 = math.tanh %585 : vector<8x32xf32>
    %587 = arith.mulf %583, %515 : vector<8x32xf32>
    %588 = arith.mulf %582, %586 : vector<8x32xf32>
    %589 = arith.addf %587, %588 : vector<8x32xf32>
    %590 = math.tanh %589 : vector<8x32xf32>
    %591 = arith.mulf %584, %590 : vector<8x32xf32>
    %592 = arith.truncf %591 : vector<8x32xf32> to vector<8x32xbf16>
    %c0_206 = arith.constant 0 : index
    %c0_207 = arith.constant 0 : index
    %593 = vector.load %arg7[%c0_206, %c0_207] : memref<32x256xbf16, #tpu.memory_space<vmem>>, vector<32x256xbf16>
    %cst_208 = arith.constant dense<0.000000e+00> : vector<8x256xf32>
    %594 = tpu.matmul %592, %593, %cst_208 {dimension_numbers = #tpu.dot_dimension_numbers<[1], [0], [0], [1], [0, 0, 1, 1], [], []>} : vector<8x32xbf16>, vector<32x256xbf16>, vector<8x256xf32> -> vector<8x256xf32>
    %c0_209 = arith.constant 0 : index
    %c0_210 = arith.constant 0 : index
    %595 = vector.load %arg8[%c0_209, %c0_210] : memref<1x256xf32, #tpu.memory_space<vmem>>, vector<1x256xf32>
    %596 = vector.broadcast %595 : vector<1x256xf32> to vector<8x256xf32>
    %597 = arith.addf %594, %596 : vector<8x256xf32>
    %598 = vector.extract_strided_slice %597 {offsets = [0, 128], sizes = [8, 128], strides = [1, 1]} : vector<8x256xf32> to vector<8x128xf32>
    %599 = arith.index_cast %c7_i32 : i32 to index
    %c0_211 = arith.constant 0 : index
    %c0_212 = arith.constant 0 : index
    %600 = vector.load %arg9[%599, %c0_211, %c0_212] : memref<8x8x128xf32, #tpu.memory_space<vmem>>, vector<1x8x128xf32>
    %601 = vector.shape_cast %600 : vector<1x8x128xf32> to vector<8x128xf32>
    %602 = vector.shape_cast %598 : vector<8x128xf32> to vector<1x8x128xf32>
    tpu.vector_store %arg9[%599, %c0_211, %c0_212], %602 {strides = array<i32>} : memref<8x8x128xf32, #tpu.memory_space<vmem>>, vector<1x8x128xf32>,
    %603 = vector.extract_strided_slice %597 {offsets = [0, 0], sizes = [8, 128], strides = [1, 1]} : vector<8x256xf32> to vector<8x128xf32>
    %c8_i32 = arith.constant 8 : i32
    %c0_213 = arith.constant 0 : index
    %c0_214 = arith.constant 0 : index
    %c0_215 = arith.constant 0 : index
    %604 = vector.load %arg10[%c0_213, %c0_214, %c0_215] : memref<2x8x32xf32, #tpu.memory_space<vmem>>, vector<1x8x32xf32>
    %605 = vector.shape_cast %604 : vector<1x8x32xf32> to vector<8x32xf32>
    %606 = vector.shape_cast %569 : vector<8x32xf32> to vector<1x8x32xf32>
    tpu.vector_store %arg10[%c0_213, %c0_214, %c0_215], %606 {strides = array<i32>} : memref<2x8x32xf32, #tpu.memory_space<vmem>>, vector<1x8x32xf32>,
    %c0_216 = arith.constant 0 : index
    %c0_217 = arith.constant 0 : index
    %c0_218 = arith.constant 0 : index
    %607 = vector.load %arg11[%c0_216, %c0_217, %c0_218] : memref<2x8x32xf32, #tpu.memory_space<vmem>>, vector<1x8x32xf32>
    %608 = vector.shape_cast %607 : vector<1x8x32xf32> to vector<8x32xf32>
    %609 = vector.shape_cast %567 : vector<8x32xf32> to vector<1x8x32xf32>
    tpu.vector_store %arg11[%c0_216, %c0_217, %c0_218], %609 {strides = array<i32>} : memref<2x8x32xf32, #tpu.memory_space<vmem>>, vector<1x8x32xf32>,
    %c1_219 = arith.constant 1 : index
    %c0_220 = arith.constant 0 : index
    %c0_221 = arith.constant 0 : index
    %610 = vector.load %arg10[%c1_219, %c0_220, %c0_221] : memref<2x8x32xf32, #tpu.memory_space<vmem>>, vector<1x8x32xf32>
    %611 = vector.shape_cast %610 : vector<1x8x32xf32> to vector<8x32xf32>
    %612 = vector.shape_cast %591 : vector<8x32xf32> to vector<1x8x32xf32>
    tpu.vector_store %arg10[%c1_219, %c0_220, %c0_221], %612 {strides = array<i32>} : memref<2x8x32xf32, #tpu.memory_space<vmem>>, vector<1x8x32xf32>,
    %c1_222 = arith.constant 1 : index
    %c0_223 = arith.constant 0 : index
    %c0_224 = arith.constant 0 : index
    %613 = vector.load %arg11[%c1_222, %c0_223, %c0_224] : memref<2x8x32xf32, #tpu.memory_space<vmem>>, vector<1x8x32xf32>
    %614 = vector.shape_cast %613 : vector<1x8x32xf32> to vector<8x32xf32>
    %615 = vector.shape_cast %589 : vector<8x32xf32> to vector<1x8x32xf32>
    tpu.vector_store %arg11[%c1_222, %c0_223, %c0_224], %615 {strides = array<i32>} : memref<2x8x32xf32, #tpu.memory_space<vmem>>, vector<1x8x32xf32>,
    %c0_225 = arith.constant 0 : index
    %c0_226 = arith.constant 0 : index
    %616 = vector.load %arg12[%c0_225, %c0_226] : memref<8x128xf32, #tpu.memory_space<vmem>>, vector<8x128xf32>
    tpu.vector_store %arg12[%c0_225, %c0_226], %603 {strides = array<i32>} : memref<8x128xf32, #tpu.memory_space<vmem>>, vector<8x128xf32>,
    return
  }
  func.func @transform_0(%arg0: i32, %arg1: i32) -> (i32, i32, i32, i32) {
    %c0_i32 = arith.constant 0 : i32
    %c0_i32_0 = arith.constant 0 : i32
    %c0_i32_1 = arith.constant 0 : i32
    return %arg1, %arg0, %c0_i32, %c0_i32_0 : i32, i32, i32, i32
  }
  func.func @transform_1(%arg0: i32, %arg1: i32) -> (i32, i32) {
    %c0_i32 = arith.constant 0 : i32
    %c0_i32_0 = arith.constant 0 : i32
    %c0_i32_1 = arith.constant 0 : i32
    return %c0_i32, %c0_i32_0 : i32, i32
  }
  func.func @transform_2(%arg0: i32, %arg1: i32) -> (i32, i32) {
    %c0_i32 = arith.constant 0 : i32
    %c0_i32_0 = arith.constant 0 : i32
    %c0_i32_1 = arith.constant 0 : i32
    return %c0_i32, %c0_i32_0 : i32, i32
  }
  func.func @transform_3(%arg0: i32, %arg1: i32) -> (i32, i32) {
    %c0_i32 = arith.constant 0 : i32
    %c0_i32_0 = arith.constant 0 : i32
    %c0_i32_1 = arith.constant 0 : i32
    return %c0_i32, %c0_i32_0 : i32, i32
  }
  func.func @transform_4(%arg0: i32, %arg1: i32) -> (i32, i32) {
    %c0_i32 = arith.constant 0 : i32
    %c0_i32_0 = arith.constant 0 : i32
    %c0_i32_1 = arith.constant 0 : i32
    return %c0_i32, %c0_i32_0 : i32, i32
  }
  func.func @transform_5(%arg0: i32, %arg1: i32) -> (i32, i32) {
    %c0_i32 = arith.constant 0 : i32
    %c0_i32_0 = arith.constant 0 : i32
    %c0_i32_1 = arith.constant 0 : i32
    return %c0_i32, %c0_i32_0 : i32, i32
  }
  func.func @transform_6(%arg0: i32, %arg1: i32) -> (i32, i32) {
    %c0_i32 = arith.constant 0 : i32
    %c0_i32_0 = arith.constant 0 : i32
    %c0_i32_1 = arith.constant 0 : i32
    return %c0_i32, %c0_i32_0 : i32, i32
  }
  func.func @transform_7(%arg0: i32, %arg1: i32) -> (i32, i32, i32) {
    %c0_i32 = arith.constant 0 : i32
    %c0_i32_0 = arith.constant 0 : i32
    return %arg1, %arg0, %c0_i32 : i32, i32, i32
  }
}

module attributes {stable_mosaic.version = 11 : i64} {
  func.func @kernel(%arg0: i32, %arg1: i32, %arg2: memref<8x8x16x128xbf16, #tpu.memory_space<vmem>>, %arg3: memref<48x128xbf16, #tpu.memory_space<vmem>>, %arg4: memref<1x128xf32, #tpu.memory_space<vmem>>, %arg5: memref<64x128xbf16, #tpu.memory_space<vmem>>, %arg6: memref<1x128xf32, #tpu.memory_space<vmem>>, %arg7: memref<32x256xbf16, #tpu.memory_space<vmem>>, %arg8: memref<1x256xf32, #tpu.memory_space<vmem>>, %arg9: memref<8x8x128xf32, #tpu.memory_space<vmem>>, %arg10: memref<2x8x32xf32, #tpu.memory_space<vmem>>, %arg11: memref<2x8x32xf32, #tpu.memory_space<vmem>>, %arg12: memref<8x128xf32, #tpu.memory_space<vmem>>) attributes {dimension_semantics = [#tpu.dimension_semantics<parallel>, #tpu.dimension_semantics<arbitrary>], iteration_bounds = array<i64: 1, 1>, scalar_prefetch = 0 : i64, scratch_operands = 3 : i64, tpu.core_type = #tpu.core_type<tc>, window_params = [{transform_indices = @transform_0, window_bounds = array<i64: 8, 8, 16, 128>}, {pipeline_mode = #tpu.pipeline_mode<synchronous>, transform_indices = @transform_1, window_bounds = array<i64: 48, 128>}, {pipeline_mode = #tpu.pipeline_mode<synchronous>, transform_indices = @transform_2, window_bounds = array<i64: 1, 128>}, {pipeline_mode = #tpu.pipeline_mode<synchronous>, transform_indices = @transform_3, window_bounds = array<i64: 64, 128>}, {pipeline_mode = #tpu.pipeline_mode<synchronous>, transform_indices = @transform_4, window_bounds = array<i64: 1, 128>}, {pipeline_mode = #tpu.pipeline_mode<synchronous>, transform_indices = @transform_5, window_bounds = array<i64: 32, 256>}, {pipeline_mode = #tpu.pipeline_mode<synchronous>, transform_indices = @transform_6, window_bounds = array<i64: 1, 256>}, {transform_indices = @transform_7, window_bounds = array<i64: 8, 8, 128>}]} {
    %c0_i32 = arith.constant 0 : i32
    %0 = arith.cmpi eq, %arg1, %c0_i32 : i32
    %1 = arith.extui %0 : i1 to i32
    %c0_i32_0 = arith.constant 0 : i32
    %2 = arith.cmpi ne, %1, %c0_i32_0 : i32
    scf.if %2 {
      %cst_227 = arith.constant 0.000000e+00 : f32
      %617 = vector.broadcast %cst_227 : f32 to vector<2x8x32xf32>
      %c0_228 = arith.constant 0 : index
      %c0_229 = arith.constant 0 : index
      %c0_230 = arith.constant 0 : index
      %618 = vector.load %arg10[%c0_228, %c0_229, %c0_230] : memref<2x8x32xf32, #tpu.memory_space<vmem>>, vector<2x8x32xf32>
      tpu.vector_store %arg10[%c0_228, %c0_229, %c0_230], %617 {strides = array<i32>} : memref<2x8x32xf32, #tpu.memory_space<vmem>>, vector<2x8x32xf32>,
      %cst_231 = arith.constant 0.000000e+00 : f32
      %619 = vector.broadcast %cst_231 : f32 to vector<2x8x32xf32>
      %c0_232 = arith.constant 0 : index
      %c0_233 = arith.constant 0 : index
      %c0_234 = arith.constant 0 : index
      %620 = vector.load %arg11[%c0_232, %c0_233, %c0_234] : memref<2x8x32xf32, #tpu.memory_space<vmem>>, vector<2x8x32xf32>
      tpu.vector_store %arg11[%c0_232, %c0_233, %c0_234], %619 {strides = array<i32>} : memref<2x8x32xf32, #tpu.memory_space<vmem>>, vector<2x8x32xf32>,
      %c0_235 = arith.constant 0 : index
      %c0_236 = arith.constant 0 : index
      %621 = vector.load %arg8[%c0_235, %c0_236] : memref<1x256xf32, #tpu.memory_space<vmem>>, vector<1x128xf32>
      %622 = vector.shape_cast %621 : vector<1x128xf32> to vector<1x128xf32>
      %623 = vector.broadcast %622 : vector<1x128xf32> to vector<8x128xf32>
      %c0_237 = arith.constant 0 : index
      %c0_238 = arith.constant 0 : index
      %624 = vector.load %arg12[%c0_237, %c0_238] : memref<8x128xf32, #tpu.memory_space<vmem>>, vector<8x128xf32>
      tpu.vector_store %arg12[%c0_237, %c0_238], %623 {strides = array<i32>} : memref<8x128xf32, #tpu.memory_space<vmem>>, vector<8x128xf32>,
    } else {
    }
    %c0 = arith.constant 0 : index
    %c0_1 = arith.constant 0 : index
    %c0_2 = arith.constant 0 : index
    %3 = vector.load %arg10[%c0, %c0_1, %c0_2] : memref<2x8x32xf32, #tpu.memory_space<vmem>>, vector<1x8x32xf32>
    %4 = vector.shape_cast %3 : vector<1x8x32xf32> to vector<8x32xf32>
    %c1 = arith.constant 1 : index
    %c0_3 = arith.constant 0 : index
    %c0_4 = arith.constant 0 : index
    %5 = vector.load %arg10[%c1, %c0_3, %c0_4] : memref<2x8x32xf32, #tpu.memory_space<vmem>>, vector<1x8x32xf32>
    %6 = vector.shape_cast %5 : vector<1x8x32xf32> to vector<8x32xf32>
    %c0_5 = arith.constant 0 : index
    %c0_6 = arith.constant 0 : index
    %c0_7 = arith.constant 0 : index
    %7 = vector.load %arg11[%c0_5, %c0_6, %c0_7] : memref<2x8x32xf32, #tpu.memory_space<vmem>>, vector<1x8x32xf32>
    %8 = vector.shape_cast %7 : vector<1x8x32xf32> to vector<8x32xf32>
    %c1_8 = arith.constant 1 : index
    %c0_9 = arith.constant 0 : index
    %c0_10 = arith.constant 0 : index
    %9 = vector.load %arg11[%c1_8, %c0_9, %c0_10] : memref<2x8x32xf32, #tpu.memory_space<vmem>>, vector<1x8x32xf32>
    %10 = vector.shape_cast %9 : vector<1x8x32xf32> to vector<8x32xf32>
    %c0_11 = arith.constant 0 : index
    %c0_12 = arith.constant 0 : index
    %11 = vector.load %arg12[%c0_11, %c0_12] : memref<8x128xf32, #tpu.memory_space<vmem>>, vector<8x128xf32>
    %c0_i32_13 = arith.constant 0 : i32
    %cst = arith.constant dense<0xFF800000> : vector<8xf32>
    %12 = vector.multi_reduction <maximumf>, %11, %cst [1] : vector<8x128xf32> to vector<8xf32>
    %13 = vector.shape_cast %12 : vector<8xf32> to vector<8x1xf32>
    %14 = vector.broadcast %13 : vector<8x1xf32> to vector<8x128xf32>
    %15 = arith.subf %11, %14 : vector<8x128xf32>
    %16 = math.exp %15 : vector<8x128xf32>
    %cst_14 = arith.constant dense<0.000000e+00> : vector<8xf32>
    %17 = vector.multi_reduction <add>, %16, %cst_14 [1] : vector<8x128xf32> to vector<8xf32>
    %18 = vector.shape_cast %17 : vector<8xf32> to vector<8x1xf32>
    %19 = tpu.reciprocal %18 {approx = true} : vector<8x1xf32> -> vector<8x1xf32>
    %20 = vector.broadcast %19 : vector<8x1xf32> to vector<8x128xf32>
    %21 = arith.mulf %16, %20 : vector<8x128xf32>
    %22 = arith.index_cast %c0_i32_13 : i32 to index
    %c0_15 = arith.constant 0 : index
    %c0_16 = arith.constant 0 : index
    %c0_17 = arith.constant 0 : index
    %23 = vector.load %arg2[%22, %c0_15, %c0_16, %c0_17] : memref<8x8x16x128xbf16, #tpu.memory_space<vmem>>, vector<1x8x16x128xbf16>
    %24 = vector.shape_cast %23 : vector<1x8x16x128xbf16> to vector<8x16x128xbf16>
    %25 = vector.shape_cast %21 : vector<8x128xf32> to vector<8x1x128xf32>
    %26 = arith.extf %24 : vector<8x16x128xbf16> to vector<8x16x128xf32>
    %27 = vector.broadcast %25 : vector<8x1x128xf32> to vector<8x16x128xf32>
    %28 = arith.mulf %27, %26 : vector<8x16x128xf32>
    %cst_18 = arith.constant dense<0.000000e+00> : vector<8x16xf32>
    %29 = vector.multi_reduction <add>, %28, %cst_18 [2] : vector<8x16x128xf32> to vector<8x16xf32>
    %30 = tpu.concatenate %29, %4 in 1 : vector<8x16xf32>, vector<8x32xf32> -> vector<8x48xf32>
    %31 = arith.truncf %30 : vector<8x48xf32> to vector<8x48xbf16>
    %c0_19 = arith.constant 0 : index
    %c0_20 = arith.constant 0 : index
    %32 = vector.load %arg3[%c0_19, %c0_20] : memref<48x128xbf16, #tpu.memory_space<vmem>>, vector<48x128xbf16>
    %cst_21 = arith.constant dense<0.000000e+00> : vector<8x128xf32>
    %33 = tpu.matmul %31, %32, %cst_21 {dimension_numbers = #tpu.dot_dimension_numbers<[1], [0], [0], [1], [0, 0, 1, 1], [], []>} : vector<8x48xbf16>, vector<48x128xbf16>, vector<8x128xf32> -> vector<8x128xf32>
    %c0_22 = arith.constant 0 : index
    %c0_23 = arith.constant 0 : index
    %34 = vector.load %arg4[%c0_22, %c0_23] : memref<1x128xf32, #tpu.memory_space<vmem>>, vector<1x128xf32>
    %35 = vector.broadcast %34 : vector<1x128xf32> to vector<8x128xf32>
    %36 = arith.addf %33, %35 : vector<8x128xf32>
    %37 = arith.negf %36 : vector<8x128xf32>
    %38 = math.exp %37 : vector<8x128xf32>
    %cst_24 = arith.constant 1.000000e+00 : f32
    %39 = vector.broadcast %cst_24 : f32 to vector<8x128xf32>
    %40 = arith.addf %39, %38 : vector<8x128xf32>
    %41 = arith.divf %39, %40 : vector<8x128xf32>
    %42 = vector.extract_strided_slice %41 {offsets = [0, 0], sizes = [8, 32], strides = [1, 1]} : vector<8x128xf32> to vector<8x32xf32>
    %43 = vector.extract_strided_slice %41 {offsets = [0, 32], sizes = [8, 32], strides = [1, 1]} : vector<8x128xf32> to vector<8x32xf32>
    %44 = vector.extract_strided_slice %41 {offsets = [0, 96], sizes = [8, 32], strides = [1, 1]} : vector<8x128xf32> to vector<8x32xf32>
    %45 = vector.extract_strided_slice %36 {offsets = [0, 64], sizes = [8, 32], strides = [1, 1]} : vector<8x128xf32> to vector<8x32xf32>
    %46 = math.tanh %45 : vector<8x32xf32>
    %47 = arith.mulf %43, %8 : vector<8x32xf32>
    %48 = arith.mulf %42, %46 : vector<8x32xf32>
    %49 = arith.addf %47, %48 : vector<8x32xf32>
    %50 = math.tanh %49 : vector<8x32xf32>
    %51 = arith.mulf %44, %50 : vector<8x32xf32>
    %52 = tpu.concatenate %51, %6 in 1 : vector<8x32xf32>, vector<8x32xf32> -> vector<8x64xf32>
    %53 = arith.truncf %52 : vector<8x64xf32> to vector<8x64xbf16>
    %c0_25 = arith.constant 0 : index
    %c0_26 = arith.constant 0 : index
    %54 = vector.load %arg5[%c0_25, %c0_26] : memref<64x128xbf16, #tpu.memory_space<vmem>>, vector<64x128xbf16>
    %cst_27 = arith.constant dense<0.000000e+00> : vector<8x128xf32>
    %55 = tpu.matmul %53, %54, %cst_27 {dimension_numbers = #tpu.dot_dimension_numbers<[1], [0], [0], [1], [0, 0, 1, 1], [], []>} : vector<8x64xbf16>, vector<64x128xbf16>, vector<8x128xf32> -> vector<8x128xf32>
    %c0_28 = arith.constant 0 : index
    %c0_29 = arith.constant 0 : index
    %56 = vector.load %arg6[%c0_28, %c0_29] : memref<1x128xf32, #tpu.memory_space<vmem>>, vector<1x128xf32>
    %57 = vector.broadcast %56 : vector<1x128xf32> to vector<8x128xf32>
    %58 = arith.addf %55, %57 : vector<8x128xf32>
    %59 = arith.negf %58 : vector<8x128xf32>
    %60 = math.exp %59 : vector<8x128xf32>
    %cst_30 = arith.constant 1.000000e+00 : f32
    %61 = vector.broadcast %cst_30 : f32 to vector<8x128xf32>
    %62 = arith.addf %61, %60 : vector<8x128xf32>
    %63 = arith.divf %61, %62 : vector<8x128xf32>
    %64 = vector.extract_strided_slice %63 {offsets = [0, 0], sizes = [8, 32], strides = [1, 1]} : vector<8x128xf32> to vector<8x32xf32>
    %65 = vector.extract_strided_slice %63 {offsets = [0, 32], sizes = [8, 32], strides = [1, 1]} : vector<8x128xf32> to vector<8x32xf32>
    %66 = vector.extract_strided_slice %63 {offsets = [0, 96], sizes = [8, 32], strides = [1, 1]} : vector<8x128xf32> to vector<8x32xf32>
    %67 = vector.extract_strided_slice %58 {offsets = [0, 64], sizes = [8, 32], strides = [1, 1]} : vector<8x128xf32> to vector<8x32xf32>
    %68 = math.tanh %67 : vector<8x32xf32>
    %69 = arith.mulf %65, %10 : vector<8x32xf32>
    %70 = arith.mulf %64, %68 : vector<8x32xf32>
    %71 = arith.addf %69, %70 : vector<8x32xf32>
    %72 = math.tanh %71 : vector<8x32xf32>
    %73 = arith.mulf %66, %72 : vector<8x32xf32>
    %74 = arith.truncf %73 : vector<8x32xf32> to vector<8x32xbf16>
    %c0_31 = arith.constant 0 : index
    %c0_32 = arith.constant 0 : index
    %75 = vector.load %arg7[%c0_31, %c0_32] : memref<32x256xbf16, #tpu.memory_space<vmem>>, vector<32x256xbf16>
    %cst_33 = arith.constant dense<0.000000e+00> : vector<8x256xf32>
    %76 = tpu.matmul %74, %75, %cst_33 {dimension_numbers = #tpu.dot_dimension_numbers<[1], [0], [0], [1], [0, 0, 1, 1], [], []>} : vector<8x32xbf16>, vector<32x256xbf16>, vector<8x256xf32> -> vector<8x256xf32>
    %c0_34 = arith.constant 0 : index
    %c0_35 = arith.constant 0 : index
    %77 = vector.load %arg8[%c0_34, %c0_35] : memref<1x256xf32, #tpu.memory_space<vmem>>, vector<1x256xf32>
    %78 = vector.broadcast %77 : vector<1x256xf32> to vector<8x256xf32>
    %79 = arith.addf %76, %78 : vector<8x256xf32>
    %80 = vector.extract_strided_slice %79 {offsets = [0, 128], sizes = [8, 128], strides = [1, 1]} : vector<8x256xf32> to vector<8x128xf32>
    %81 = arith.index_cast %c0_i32_13 : i32 to index
    %c0_36 = arith.constant 0 : index
    %c0_37 = arith.constant 0 : index
    %82 = vector.load %arg9[%81, %c0_36, %c0_37] : memref<8x8x128xf32, #tpu.memory_space<vmem>>, vector<1x8x128xf32>
    %83 = vector.shape_cast %82 : vector<1x8x128xf32> to vector<8x128xf32>
    %84 = vector.shape_cast %80 : vector<8x128xf32> to vector<1x8x128xf32>
    tpu.vector_store %arg9[%81, %c0_36, %c0_37], %84 {strides = array<i32>} : memref<8x8x128xf32, #tpu.memory_space<vmem>>, vector<1x8x128xf32>,
    %85 = vector.extract_strided_slice %79 {offsets = [0, 0], sizes = [8, 128], strides = [1, 1]} : vector<8x256xf32> to vector<8x128xf32>
    %c1_i32 = arith.constant 1 : i32
    %cst_38 = arith.constant dense<0xFF800000> : vector<8xf32>
    %86 = vector.multi_reduction <maximumf>, %85, %cst_38 [1] : vector<8x128xf32> to vector<8xf32>
    %87 = vector.shape_cast %86 : vector<8xf32> to vector<8x1xf32>
    %88 = vector.broadcast %87 : vector<8x1xf32> to vector<8x128xf32>
    %89 = arith.subf %85, %88 : vector<8x128xf32>
    %90 = math.exp %89 : vector<8x128xf32>
    %cst_39 = arith.constant dense<0.000000e+00> : vector<8xf32>
    %91 = vector.multi_reduction <add>, %90, %cst_39 [1] : vector<8x128xf32> to vector<8xf32>
    %92 = vector.shape_cast %91 : vector<8xf32> to vector<8x1xf32>
    %93 = tpu.reciprocal %92 {approx = true} : vector<8x1xf32> -> vector<8x1xf32>
    %94 = vector.broadcast %93 : vector<8x1xf32> to vector<8x128xf32>
    %95 = arith.mulf %90, %94 : vector<8x128xf32>
    %96 = arith.index_cast %c1_i32 : i32 to index
    %c0_40 = arith.constant 0 : index
    %c0_41 = arith.constant 0 : index
    %c0_42 = arith.constant 0 : index
    %97 = vector.load %arg2[%96, %c0_40, %c0_41, %c0_42] : memref<8x8x16x128xbf16, #tpu.memory_space<vmem>>, vector<1x8x16x128xbf16>
    %98 = vector.shape_cast %97 : vector<1x8x16x128xbf16> to vector<8x16x128xbf16>
    %99 = vector.shape_cast %95 : vector<8x128xf32> to vector<8x1x128xf32>
    %100 = arith.extf %98 : vector<8x16x128xbf16> to vector<8x16x128xf32>
    %101 = vector.broadcast %99 : vector<8x1x128xf32> to vector<8x16x128xf32>
    %102 = arith.mulf %101, %100 : vector<8x16x128xf32>
    %cst_43 = arith.constant dense<0.000000e+00> : vector<8x16xf32>
    %103 = vector.multi_reduction <add>, %102, %cst_43 [2] : vector<8x16x128xf32> to vector<8x16xf32>
    %104 = tpu.concatenate %103, %51 in 1 : vector<8x16xf32>, vector<8x32xf32> -> vector<8x48xf32>
    %105 = arith.truncf %104 : vector<8x48xf32> to vector<8x48xbf16>
    %c0_44 = arith.constant 0 : index
    %c0_45 = arith.constant 0 : index
    %106 = vector.load %arg3[%c0_44, %c0_45] : memref<48x128xbf16, #tpu.memory_space<vmem>>, vector<48x128xbf16>
    %cst_46 = arith.constant dense<0.000000e+00> : vector<8x128xf32>
    %107 = tpu.matmul %105, %106, %cst_46 {dimension_numbers = #tpu.dot_dimension_numbers<[1], [0], [0], [1], [0, 0, 1, 1], [], []>} : vector<8x48xbf16>, vector<48x128xbf16>, vector<8x128xf32> -> vector<8x128xf32>
    %c0_47 = arith.constant 0 : index
    %c0_48 = arith.constant 0 : index
    %108 = vector.load %arg4[%c0_47, %c0_48] : memref<1x128xf32, #tpu.memory_space<vmem>>, vector<1x128xf32>
    %109 = vector.broadcast %108 : vector<1x128xf32> to vector<8x128xf32>
    %110 = arith.addf %107, %109 : vector<8x128xf32>
    %111 = arith.negf %110 : vector<8x128xf32>
    %112 = math.exp %111 : vector<8x128xf32>
    %cst_49 = arith.constant 1.000000e+00 : f32
    %113 = vector.broadcast %cst_49 : f32 to vector<8x128xf32>
    %114 = arith.addf %113, %112 : vector<8x128xf32>
    %115 = arith.divf %113, %114 : vector<8x128xf32>
    %116 = vector.extract_strided_slice %115 {offsets = [0, 0], sizes = [8, 32], strides = [1, 1]} : vector<8x128xf32> to vector<8x32xf32>
    %117 = vector.extract_strided_slice %115 {offsets = [0, 32], sizes = [8, 32], strides = [1, 1]} : vector<8x128xf32> to vector<8x32xf32>
    %118 = vector.extract_strided_slice %115 {offsets = [0, 96], sizes = [8, 32], strides = [1, 1]} : vector<8x128xf32> to vector<8x32xf32>
    %119 = vector.extract_strided_slice %110 {offsets = [0, 64], sizes = [8, 32], strides = [1, 1]} : vector<8x128xf32> to vector<8x32xf32>
    %120 = math.tanh %119 : vector<8x32xf32>
    %121 = arith.mulf %117, %49 : vector<8x32xf32>
    %122 = arith.mulf %116, %120 : vector<8x32xf32>
    %123 = arith.addf %121, %122 : vector<8x32xf32>
    %124 = math.tanh %123 : vector<8x32xf32>
    %125 = arith.mulf %118, %124 : vector<8x32xf32>
    %126 = tpu.concatenate %125, %73 in 1 : vector<8x32xf32>, vector<8x32xf32> -> vector<8x64xf32>
    %127 = arith.truncf %126 : vector<8x64xf32> to vector<8x64xbf16>
    %c0_50 = arith.constant 0 : index
    %c0_51 = arith.constant 0 : index
    %128 = vector.load %arg5[%c0_50, %c0_51] : memref<64x128xbf16, #tpu.memory_space<vmem>>, vector<64x128xbf16>
    %cst_52 = arith.constant dense<0.000000e+00> : vector<8x128xf32>
    %129 = tpu.matmul %127, %128, %cst_52 {dimension_numbers = #tpu.dot_dimension_numbers<[1], [0], [0], [1], [0, 0, 1, 1], [], []>} : vector<8x64xbf16>, vector<64x128xbf16>, vector<8x128xf32> -> vector<8x128xf32>
    %c0_53 = arith.constant 0 : index
    %c0_54 = arith.constant 0 : index
    %130 = vector.load %arg6[%c0_53, %c0_54] : memref<1x128xf32, #tpu.memory_space<vmem>>, vector<1x128xf32>
    %131 = vector.broadcast %130 : vector<1x128xf32> to vector<8x128xf32>
    %132 = arith.addf %129, %131 : vector<8x128xf32>
    %133 = arith.negf %132 : vector<8x128xf32>
    %134 = math.exp %133 : vector<8x128xf32>
    %cst_55 = arith.constant 1.000000e+00 : f32
    %135 = vector.broadcast %cst_55 : f32 to vector<8x128xf32>
    %136 = arith.addf %135, %134 : vector<8x128xf32>
    %137 = arith.divf %135, %136 : vector<8x128xf32>
    %138 = vector.extract_strided_slice %137 {offsets = [0, 0], sizes = [8, 32], strides = [1, 1]} : vector<8x128xf32> to vector<8x32xf32>
    %139 = vector.extract_strided_slice %137 {offsets = [0, 32], sizes = [8, 32], strides = [1, 1]} : vector<8x128xf32> to vector<8x32xf32>
    %140 = vector.extract_strided_slice %137 {offsets = [0, 96], sizes = [8, 32], strides = [1, 1]} : vector<8x128xf32> to vector<8x32xf32>
    %141 = vector.extract_strided_slice %132 {offsets = [0, 64], sizes = [8, 32], strides = [1, 1]} : vector<8x128xf32> to vector<8x32xf32>
    %142 = math.tanh %141 : vector<8x32xf32>
    %143 = arith.mulf %139, %71 : vector<8x32xf32>
    %144 = arith.mulf %138, %142 : vector<8x32xf32>
    %145 = arith.addf %143, %144 : vector<8x32xf32>
    %146 = math.tanh %145 : vector<8x32xf32>
    %147 = arith.mulf %140, %146 : vector<8x32xf32>
    %148 = arith.truncf %147 : vector<8x32xf32> to vector<8x32xbf16>
    %c0_56 = arith.constant 0 : index
    %c0_57 = arith.constant 0 : index
    %149 = vector.load %arg7[%c0_56, %c0_57] : memref<32x256xbf16, #tpu.memory_space<vmem>>, vector<32x256xbf16>
    %cst_58 = arith.constant dense<0.000000e+00> : vector<8x256xf32>
    %150 = tpu.matmul %148, %149, %cst_58 {dimension_numbers = #tpu.dot_dimension_numbers<[1], [0], [0], [1], [0, 0, 1, 1], [], []>} : vector<8x32xbf16>, vector<32x256xbf16>, vector<8x256xf32> -> vector<8x256xf32>
    %c0_59 = arith.constant 0 : index
    %c0_60 = arith.constant 0 : index
    %151 = vector.load %arg8[%c0_59, %c0_60] : memref<1x256xf32, #tpu.memory_space<vmem>>, vector<1x256xf32>
    %152 = vector.broadcast %151 : vector<1x256xf32> to vector<8x256xf32>
    %153 = arith.addf %150, %152 : vector<8x256xf32>
    %154 = vector.extract_strided_slice %153 {offsets = [0, 128], sizes = [8, 128], strides = [1, 1]} : vector<8x256xf32> to vector<8x128xf32>
    %155 = arith.index_cast %c1_i32 : i32 to index
    %c0_61 = arith.constant 0 : index
    %c0_62 = arith.constant 0 : index
    %156 = vector.load %arg9[%155, %c0_61, %c0_62] : memref<8x8x128xf32, #tpu.memory_space<vmem>>, vector<1x8x128xf32>
    %157 = vector.shape_cast %156 : vector<1x8x128xf32> to vector<8x128xf32>
    %158 = vector.shape_cast %154 : vector<8x128xf32> to vector<1x8x128xf32>
    tpu.vector_store %arg9[%155, %c0_61, %c0_62], %158 {strides = array<i32>} : memref<8x8x128xf32, #tpu.memory_space<vmem>>, vector<1x8x128xf32>,
    %159 = vector.extract_strided_slice %153 {offsets = [0, 0], sizes = [8, 128], strides = [1, 1]} : vector<8x256xf32> to vector<8x128xf32>
    %c2_i32 = arith.constant 2 : i32
    %cst_63 = arith.constant dense<0xFF800000> : vector<8xf32>
    %160 = vector.multi_reduction <maximumf>, %159, %cst_63 [1] : vector<8x128xf32> to vector<8xf32>
    %161 = vector.shape_cast %160 : vector<8xf32> to vector<8x1xf32>
    %162 = vector.broadcast %161 : vector<8x1xf32> to vector<8x128xf32>
    %163 = arith.subf %159, %162 : vector<8x128xf32>
    %164 = math.exp %163 : vector<8x128xf32>
    %cst_64 = arith.constant dense<0.000000e+00> : vector<8xf32>
    %165 = vector.multi_reduction <add>, %164, %cst_64 [1] : vector<8x128xf32> to vector<8xf32>
    %166 = vector.shape_cast %165 : vector<8xf32> to vector<8x1xf32>
    %167 = tpu.reciprocal %166 {approx = true} : vector<8x1xf32> -> vector<8x1xf32>
    %168 = vector.broadcast %167 : vector<8x1xf32> to vector<8x128xf32>
    %169 = arith.mulf %164, %168 : vector<8x128xf32>
    %170 = arith.index_cast %c2_i32 : i32 to index
    %c0_65 = arith.constant 0 : index
    %c0_66 = arith.constant 0 : index
    %c0_67 = arith.constant 0 : index
    %171 = vector.load %arg2[%170, %c0_65, %c0_66, %c0_67] : memref<8x8x16x128xbf16, #tpu.memory_space<vmem>>, vector<1x8x16x128xbf16>
    %172 = vector.shape_cast %171 : vector<1x8x16x128xbf16> to vector<8x16x128xbf16>
    %173 = vector.shape_cast %169 : vector<8x128xf32> to vector<8x1x128xf32>
    %174 = arith.extf %172 : vector<8x16x128xbf16> to vector<8x16x128xf32>
    %175 = vector.broadcast %173 : vector<8x1x128xf32> to vector<8x16x128xf32>
    %176 = arith.mulf %175, %174 : vector<8x16x128xf32>
    %cst_68 = arith.constant dense<0.000000e+00> : vector<8x16xf32>
    %177 = vector.multi_reduction <add>, %176, %cst_68 [2] : vector<8x16x128xf32> to vector<8x16xf32>
    %178 = tpu.concatenate %177, %125 in 1 : vector<8x16xf32>, vector<8x32xf32> -> vector<8x48xf32>
    %179 = arith.truncf %178 : vector<8x48xf32> to vector<8x48xbf16>
    %c0_69 = arith.constant 0 : index
    %c0_70 = arith.constant 0 : index
    %180 = vector.load %arg3[%c0_69, %c0_70] : memref<48x128xbf16, #tpu.memory_space<vmem>>, vector<48x128xbf16>
    %cst_71 = arith.constant dense<0.000000e+00> : vector<8x128xf32>
    %181 = tpu.matmul %179, %180, %cst_71 {dimension_numbers = #tpu.dot_dimension_numbers<[1], [0], [0], [1], [0, 0, 1, 1], [], []>} : vector<8x48xbf16>, vector<48x128xbf16>, vector<8x128xf32> -> vector<8x128xf32>
    %c0_72 = arith.constant 0 : index
    %c0_73 = arith.constant 0 : index
    %182 = vector.load %arg4[%c0_72, %c0_73] : memref<1x128xf32, #tpu.memory_space<vmem>>, vector<1x128xf32>
    %183 = vector.broadcast %182 : vector<1x128xf32> to vector<8x128xf32>
    %184 = arith.addf %181, %183 : vector<8x128xf32>
    %185 = arith.negf %184 : vector<8x128xf32>
    %186 = math.exp %185 : vector<8x128xf32>
    %cst_74 = arith.constant 1.000000e+00 : f32
    %187 = vector.broadcast %cst_74 : f32 to vector<8x128xf32>
    %188 = arith.addf %187, %186 : vector<8x128xf32>
    %189 = arith.divf %187, %188 : vector<8x128xf32>
    %190 = vector.extract_strided_slice %189 {offsets = [0, 0], sizes = [8, 32], strides = [1, 1]} : vector<8x128xf32> to vector<8x32xf32>
    %191 = vector.extract_strided_slice %189 {offsets = [0, 32], sizes = [8, 32], strides = [1, 1]} : vector<8x128xf32> to vector<8x32xf32>
    %192 = vector.extract_strided_slice %189 {offsets = [0, 96], sizes = [8, 32], strides = [1, 1]} : vector<8x128xf32> to vector<8x32xf32>
    %193 = vector.extract_strided_slice %184 {offsets = [0, 64], sizes = [8, 32], strides = [1, 1]} : vector<8x128xf32> to vector<8x32xf32>
    %194 = math.tanh %193 : vector<8x32xf32>
    %195 = arith.mulf %191, %123 : vector<8x32xf32>
    %196 = arith.mulf %190, %194 : vector<8x32xf32>
    %197 = arith.addf %195, %196 : vector<8x32xf32>
    %198 = math.tanh %197 : vector<8x32xf32>
    %199 = arith.mulf %192, %198 : vector<8x32xf32>
    %200 = tpu.concatenate %199, %147 in 1 : vector<8x32xf32>, vector<8x32xf32> -> vector<8x64xf32>
    %201 = arith.truncf %200 : vector<8x64xf32> to vector<8x64xbf16>
    %c0_75 = arith.constant 0 : index
    %c0_76 = arith.constant 0 : index
    %202 = vector.load %arg5[%c0_75, %c0_76] : memref<64x128xbf16, #tpu.memory_space<vmem>>, vector<64x128xbf16>
    %cst_77 = arith.constant dense<0.000000e+00> : vector<8x128xf32>
    %203 = tpu.matmul %201, %202, %cst_77 {dimension_numbers = #tpu.dot_dimension_numbers<[1], [0], [0], [1], [0, 0, 1, 1], [], []>} : vector<8x64xbf16>, vector<64x128xbf16>, vector<8x128xf32> -> vector<8x128xf32>
    %c0_78 = arith.constant 0 : index
    %c0_79 = arith.constant 0 : index
    %204 = vector.load %arg6[%c0_78, %c0_79] : memref<1x128xf32, #tpu.memory_space<vmem>>, vector<1x128xf32>
    %205 = vector.broadcast %204 : vector<1x128xf32> to vector<8x128xf32>
    %206 = arith.addf %203, %205 : vector<8x128xf32>
    %207 = arith.negf %206 : vector<8x128xf32>
    %208 = math.exp %207 : vector<8x128xf32>
    %cst_80 = arith.constant 1.000000e+00 : f32
    %209 = vector.broadcast %cst_80 : f32 to vector<8x128xf32>
    %210 = arith.addf %209, %208 : vector<8x128xf32>
    %211 = arith.divf %209, %210 : vector<8x128xf32>
    %212 = vector.extract_strided_slice %211 {offsets = [0, 0], sizes = [8, 32], strides = [1, 1]} : vector<8x128xf32> to vector<8x32xf32>
    %213 = vector.extract_strided_slice %211 {offsets = [0, 32], sizes = [8, 32], strides = [1, 1]} : vector<8x128xf32> to vector<8x32xf32>
    %214 = vector.extract_strided_slice %211 {offsets = [0, 96], sizes = [8, 32], strides = [1, 1]} : vector<8x128xf32> to vector<8x32xf32>
    %215 = vector.extract_strided_slice %206 {offsets = [0, 64], sizes = [8, 32], strides = [1, 1]} : vector<8x128xf32> to vector<8x32xf32>
    %216 = math.tanh %215 : vector<8x32xf32>
    %217 = arith.mulf %213, %145 : vector<8x32xf32>
    %218 = arith.mulf %212, %216 : vector<8x32xf32>
    %219 = arith.addf %217, %218 : vector<8x32xf32>
    %220 = math.tanh %219 : vector<8x32xf32>
    %221 = arith.mulf %214, %220 : vector<8x32xf32>
    %222 = arith.truncf %221 : vector<8x32xf32> to vector<8x32xbf16>
    %c0_81 = arith.constant 0 : index
    %c0_82 = arith.constant 0 : index
    %223 = vector.load %arg7[%c0_81, %c0_82] : memref<32x256xbf16, #tpu.memory_space<vmem>>, vector<32x256xbf16>
    %cst_83 = arith.constant dense<0.000000e+00> : vector<8x256xf32>
    %224 = tpu.matmul %222, %223, %cst_83 {dimension_numbers = #tpu.dot_dimension_numbers<[1], [0], [0], [1], [0, 0, 1, 1], [], []>} : vector<8x32xbf16>, vector<32x256xbf16>, vector<8x256xf32> -> vector<8x256xf32>
    %c0_84 = arith.constant 0 : index
    %c0_85 = arith.constant 0 : index
    %225 = vector.load %arg8[%c0_84, %c0_85] : memref<1x256xf32, #tpu.memory_space<vmem>>, vector<1x256xf32>
    %226 = vector.broadcast %225 : vector<1x256xf32> to vector<8x256xf32>
    %227 = arith.addf %224, %226 : vector<8x256xf32>
    %228 = vector.extract_strided_slice %227 {offsets = [0, 128], sizes = [8, 128], strides = [1, 1]} : vector<8x256xf32> to vector<8x128xf32>
    %229 = arith.index_cast %c2_i32 : i32 to index
    %c0_86 = arith.constant 0 : index
    %c0_87 = arith.constant 0 : index
    %230 = vector.load %arg9[%229, %c0_86, %c0_87] : memref<8x8x128xf32, #tpu.memory_space<vmem>>, vector<1x8x128xf32>
    %231 = vector.shape_cast %230 : vector<1x8x128xf32> to vector<8x128xf32>
    %232 = vector.shape_cast %228 : vector<8x128xf32> to vector<1x8x128xf32>
    tpu.vector_store %arg9[%229, %c0_86, %c0_87], %232 {strides = array<i32>} : memref<8x8x128xf32, #tpu.memory_space<vmem>>, vector<1x8x128xf32>,
    %233 = vector.extract_strided_slice %227 {offsets = [0, 0], sizes = [8, 128], strides = [1, 1]} : vector<8x256xf32> to vector<8x128xf32>
    %c3_i32 = arith.constant 3 : i32
    %cst_88 = arith.constant dense<0xFF800000> : vector<8xf32>
    %234 = vector.multi_reduction <maximumf>, %233, %cst_88 [1] : vector<8x128xf32> to vector<8xf32>
    %235 = vector.shape_cast %234 : vector<8xf32> to vector<8x1xf32>
    %236 = vector.broadcast %235 : vector<8x1xf32> to vector<8x128xf32>
    %237 = arith.subf %233, %236 : vector<8x128xf32>
    %238 = math.exp %237 : vector<8x128xf32>
    %cst_89 = arith.constant dense<0.000000e+00> : vector<8xf32>
    %239 = vector.multi_reduction <add>, %238, %cst_89 [1] : vector<8x128xf32> to vector<8xf32>
    %240 = vector.shape_cast %239 : vector<8xf32> to vector<8x1xf32>
    %241 = tpu.reciprocal %240 {approx = true} : vector<8x1xf32> -> vector<8x1xf32>
    %242 = vector.broadcast %241 : vector<8x1xf32> to vector<8x128xf32>
    %243 = arith.mulf %238, %242 : vector<8x128xf32>
    %244 = arith.index_cast %c3_i32 : i32 to index
    %c0_90 = arith.constant 0 : index
    %c0_91 = arith.constant 0 : index
    %c0_92 = arith.constant 0 : index
    %245 = vector.load %arg2[%244, %c0_90, %c0_91, %c0_92] : memref<8x8x16x128xbf16, #tpu.memory_space<vmem>>, vector<1x8x16x128xbf16>
    %246 = vector.shape_cast %245 : vector<1x8x16x128xbf16> to vector<8x16x128xbf16>
    %247 = vector.shape_cast %243 : vector<8x128xf32> to vector<8x1x128xf32>
    %248 = arith.extf %246 : vector<8x16x128xbf16> to vector<8x16x128xf32>
    %249 = vector.broadcast %247 : vector<8x1x128xf32> to vector<8x16x128xf32>
    %250 = arith.mulf %249, %248 : vector<8x16x128xf32>
    %cst_93 = arith.constant dense<0.000000e+00> : vector<8x16xf32>
    %251 = vector.multi_reduction <add>, %250, %cst_93 [2] : vector<8x16x128xf32> to vector<8x16xf32>
    %252 = tpu.concatenate %251, %199 in 1 : vector<8x16xf32>, vector<8x32xf32> -> vector<8x48xf32>
    %253 = arith.truncf %252 : vector<8x48xf32> to vector<8x48xbf16>
    %c0_94 = arith.constant 0 : index
    %c0_95 = arith.constant 0 : index
    %254 = vector.load %arg3[%c0_94, %c0_95] : memref<48x128xbf16, #tpu.memory_space<vmem>>, vector<48x128xbf16>
    %cst_96 = arith.constant dense<0.000000e+00> : vector<8x128xf32>
    %255 = tpu.matmul %253, %254, %cst_96 {dimension_numbers = #tpu.dot_dimension_numbers<[1], [0], [0], [1], [0, 0, 1, 1], [], []>} : vector<8x48xbf16>, vector<48x128xbf16>, vector<8x128xf32> -> vector<8x128xf32>
    %c0_97 = arith.constant 0 : index
    %c0_98 = arith.constant 0 : index
    %256 = vector.load %arg4[%c0_97, %c0_98] : memref<1x128xf32, #tpu.memory_space<vmem>>, vector<1x128xf32>
    %257 = vector.broadcast %256 : vector<1x128xf32> to vector<8x128xf32>
    %258 = arith.addf %255, %257 : vector<8x128xf32>
    %259 = arith.negf %258 : vector<8x128xf32>
    %260 = math.exp %259 : vector<8x128xf32>
    %cst_99 = arith.constant 1.000000e+00 : f32
    %261 = vector.broadcast %cst_99 : f32 to vector<8x128xf32>
    %262 = arith.addf %261, %260 : vector<8x128xf32>
    %263 = arith.divf %261, %262 : vector<8x128xf32>
    %264 = vector.extract_strided_slice %263 {offsets = [0, 0], sizes = [8, 32], strides = [1, 1]} : vector<8x128xf32> to vector<8x32xf32>
    %265 = vector.extract_strided_slice %263 {offsets = [0, 32], sizes = [8, 32], strides = [1, 1]} : vector<8x128xf32> to vector<8x32xf32>
    %266 = vector.extract_strided_slice %263 {offsets = [0, 96], sizes = [8, 32], strides = [1, 1]} : vector<8x128xf32> to vector<8x32xf32>
    %267 = vector.extract_strided_slice %258 {offsets = [0, 64], sizes = [8, 32], strides = [1, 1]} : vector<8x128xf32> to vector<8x32xf32>
    %268 = math.tanh %267 : vector<8x32xf32>
    %269 = arith.mulf %265, %197 : vector<8x32xf32>
    %270 = arith.mulf %264, %268 : vector<8x32xf32>
    %271 = arith.addf %269, %270 : vector<8x32xf32>
    %272 = math.tanh %271 : vector<8x32xf32>
    %273 = arith.mulf %266, %272 : vector<8x32xf32>
    %274 = tpu.concatenate %273, %221 in 1 : vector<8x32xf32>, vector<8x32xf32> -> vector<8x64xf32>
    %275 = arith.truncf %274 : vector<8x64xf32> to vector<8x64xbf16>
    %c0_100 = arith.constant 0 : index
    %c0_101 = arith.constant 0 : index
    %276 = vector.load %arg5[%c0_100, %c0_101] : memref<64x128xbf16, #tpu.memory_space<vmem>>, vector<64x128xbf16>
    %cst_102 = arith.constant dense<0.000000e+00> : vector<8x128xf32>
    %277 = tpu.matmul %275, %276, %cst_102 {dimension_numbers = #tpu.dot_dimension_numbers<[1], [0], [0], [1], [0, 0, 1, 1], [], []>} : vector<8x64xbf16>, vector<64x128xbf16>, vector<8x128xf32> -> vector<8x128xf32>
    %c0_103 = arith.constant 0 : index
    %c0_104 = arith.constant 0 : index
    %278 = vector.load %arg6[%c0_103, %c0_104] : memref<1x128xf32, #tpu.memory_space<vmem>>, vector<1x128xf32>
    %279 = vector.broadcast %278 : vector<1x128xf32> to vector<8x128xf32>
    %280 = arith.addf %277, %279 : vector<8x128xf32>
    %281 = arith.negf %280 : vector<8x128xf32>
    %282 = math.exp %281 : vector<8x128xf32>
    %cst_105 = arith.constant 1.000000e+00 : f32
    %283 = vector.broadcast %cst_105 : f32 to vector<8x128xf32>
    %284 = arith.addf %283, %282 : vector<8x128xf32>
    %285 = arith.divf %283, %284 : vector<8x128xf32>
    %286 = vector.extract_strided_slice %285 {offsets = [0, 0], sizes = [8, 32], strides = [1, 1]} : vector<8x128xf32> to vector<8x32xf32>
    %287 = vector.extract_strided_slice %285 {offsets = [0, 32], sizes = [8, 32], strides = [1, 1]} : vector<8x128xf32> to vector<8x32xf32>
    %288 = vector.extract_strided_slice %285 {offsets = [0, 96], sizes = [8, 32], strides = [1, 1]} : vector<8x128xf32> to vector<8x32xf32>
    %289 = vector.extract_strided_slice %280 {offsets = [0, 64], sizes = [8, 32], strides = [1, 1]} : vector<8x128xf32> to vector<8x32xf32>
    %290 = math.tanh %289 : vector<8x32xf32>
    %291 = arith.mulf %287, %219 : vector<8x32xf32>
    %292 = arith.mulf %286, %290 : vector<8x32xf32>
    %293 = arith.addf %291, %292 : vector<8x32xf32>
    %294 = math.tanh %293 : vector<8x32xf32>
    %295 = arith.mulf %288, %294 : vector<8x32xf32>
    %296 = arith.truncf %295 : vector<8x32xf32> to vector<8x32xbf16>
    %c0_106 = arith.constant 0 : index
    %c0_107 = arith.constant 0 : index
    %297 = vector.load %arg7[%c0_106, %c0_107] : memref<32x256xbf16, #tpu.memory_space<vmem>>, vector<32x256xbf16>
    %cst_108 = arith.constant dense<0.000000e+00> : vector<8x256xf32>
    %298 = tpu.matmul %296, %297, %cst_108 {dimension_numbers = #tpu.dot_dimension_numbers<[1], [0], [0], [1], [0, 0, 1, 1], [], []>} : vector<8x32xbf16>, vector<32x256xbf16>, vector<8x256xf32> -> vector<8x256xf32>
    %c0_109 = arith.constant 0 : index
    %c0_110 = arith.constant 0 : index
    %299 = vector.load %arg8[%c0_109, %c0_110] : memref<1x256xf32, #tpu.memory_space<vmem>>, vector<1x256xf32>
    %300 = vector.broadcast %299 : vector<1x256xf32> to vector<8x256xf32>
    %301 = arith.addf %298, %300 : vector<8x256xf32>
    %302 = vector.extract_strided_slice %301 {offsets = [0, 128], sizes = [8, 128], strides = [1, 1]} : vector<8x256xf32> to vector<8x128xf32>
    %303 = arith.index_cast %c3_i32 : i32 to index
    %c0_111 = arith.constant 0 : index
    %c0_112 = arith.constant 0 : index
    %304 = vector.load %arg9[%303, %c0_111, %c0_112] : memref<8x8x128xf32, #tpu.memory_space<vmem>>, vector<1x8x128xf32>
    %305 = vector.shape_cast %304 : vector<1x8x128xf32> to vector<8x128xf32>
    %306 = vector.shape_cast %302 : vector<8x128xf32> to vector<1x8x128xf32>
    tpu.vector_store %arg9[%303, %c0_111, %c0_112], %306 {strides = array<i32>} : memref<8x8x128xf32, #tpu.memory_space<vmem>>, vector<1x8x128xf32>,
    %307 = vector.extract_strided_slice %301 {offsets = [0, 0], sizes = [8, 128], strides = [1, 1]} : vector<8x256xf32> to vector<8x128xf32>
    %c4_i32 = arith.constant 4 : i32
    %cst_113 = arith.constant dense<0xFF800000> : vector<8xf32>
    %308 = vector.multi_reduction <maximumf>, %307, %cst_113 [1] : vector<8x128xf32> to vector<8xf32>
    %309 = vector.shape_cast %308 : vector<8xf32> to vector<8x1xf32>
    %310 = vector.broadcast %309 : vector<8x1xf32> to vector<8x128xf32>
    %311 = arith.subf %307, %310 : vector<8x128xf32>
    %312 = math.exp %311 : vector<8x128xf32>
    %cst_114 = arith.constant dense<0.000000e+00> : vector<8xf32>
    %313 = vector.multi_reduction <add>, %312, %cst_114 [1] : vector<8x128xf32> to vector<8xf32>
    %314 = vector.shape_cast %313 : vector<8xf32> to vector<8x1xf32>
    %315 = tpu.reciprocal %314 {approx = true} : vector<8x1xf32> -> vector<8x1xf32>
    %316 = vector.broadcast %315 : vector<8x1xf32> to vector<8x128xf32>
    %317 = arith.mulf %312, %316 : vector<8x128xf32>
    %318 = arith.index_cast %c4_i32 : i32 to index
    %c0_115 = arith.constant 0 : index
    %c0_116 = arith.constant 0 : index
    %c0_117 = arith.constant 0 : index
    %319 = vector.load %arg2[%318, %c0_115, %c0_116, %c0_117] : memref<8x8x16x128xbf16, #tpu.memory_space<vmem>>, vector<1x8x16x128xbf16>
    %320 = vector.shape_cast %319 : vector<1x8x16x128xbf16> to vector<8x16x128xbf16>
    %321 = vector.shape_cast %317 : vector<8x128xf32> to vector<8x1x128xf32>
    %322 = arith.extf %320 : vector<8x16x128xbf16> to vector<8x16x128xf32>
    %323 = vector.broadcast %321 : vector<8x1x128xf32> to vector<8x16x128xf32>
    %324 = arith.mulf %323, %322 : vector<8x16x128xf32>
    %cst_118 = arith.constant dense<0.000000e+00> : vector<8x16xf32>
    %325 = vector.multi_reduction <add>, %324, %cst_118 [2] : vector<8x16x128xf32> to vector<8x16xf32>
    %326 = tpu.concatenate %325, %273 in 1 : vector<8x16xf32>, vector<8x32xf32> -> vector<8x48xf32>
    %327 = arith.truncf %326 : vector<8x48xf32> to vector<8x48xbf16>
    %c0_119 = arith.constant 0 : index
    %c0_120 = arith.constant 0 : index
    %328 = vector.load %arg3[%c0_119, %c0_120] : memref<48x128xbf16, #tpu.memory_space<vmem>>, vector<48x128xbf16>
    %cst_121 = arith.constant dense<0.000000e+00> : vector<8x128xf32>
    %329 = tpu.matmul %327, %328, %cst_121 {dimension_numbers = #tpu.dot_dimension_numbers<[1], [0], [0], [1], [0, 0, 1, 1], [], []>} : vector<8x48xbf16>, vector<48x128xbf16>, vector<8x128xf32> -> vector<8x128xf32>
    %c0_122 = arith.constant 0 : index
    %c0_123 = arith.constant 0 : index
    %330 = vector.load %arg4[%c0_122, %c0_123] : memref<1x128xf32, #tpu.memory_space<vmem>>, vector<1x128xf32>
    %331 = vector.broadcast %330 : vector<1x128xf32> to vector<8x128xf32>
    %332 = arith.addf %329, %331 : vector<8x128xf32>
    %333 = arith.negf %332 : vector<8x128xf32>
    %334 = math.exp %333 : vector<8x128xf32>
    %cst_124 = arith.constant 1.000000e+00 : f32
    %335 = vector.broadcast %cst_124 : f32 to vector<8x128xf32>
    %336 = arith.addf %335, %334 : vector<8x128xf32>
    %337 = arith.divf %335, %336 : vector<8x128xf32>
    %338 = vector.extract_strided_slice %337 {offsets = [0, 0], sizes = [8, 32], strides = [1, 1]} : vector<8x128xf32> to vector<8x32xf32>
    %339 = vector.extract_strided_slice %337 {offsets = [0, 32], sizes = [8, 32], strides = [1, 1]} : vector<8x128xf32> to vector<8x32xf32>
    %340 = vector.extract_strided_slice %337 {offsets = [0, 96], sizes = [8, 32], strides = [1, 1]} : vector<8x128xf32> to vector<8x32xf32>
    %341 = vector.extract_strided_slice %332 {offsets = [0, 64], sizes = [8, 32], strides = [1, 1]} : vector<8x128xf32> to vector<8x32xf32>
    %342 = math.tanh %341 : vector<8x32xf32>
    %343 = arith.mulf %339, %271 : vector<8x32xf32>
    %344 = arith.mulf %338, %342 : vector<8x32xf32>
    %345 = arith.addf %343, %344 : vector<8x32xf32>
    %346 = math.tanh %345 : vector<8x32xf32>
    %347 = arith.mulf %340, %346 : vector<8x32xf32>
    %348 = tpu.concatenate %347, %295 in 1 : vector<8x32xf32>, vector<8x32xf32> -> vector<8x64xf32>
    %349 = arith.truncf %348 : vector<8x64xf32> to vector<8x64xbf16>
    %c0_125 = arith.constant 0 : index
    %c0_126 = arith.constant 0 : index
    %350 = vector.load %arg5[%c0_125, %c0_126] : memref<64x128xbf16, #tpu.memory_space<vmem>>, vector<64x128xbf16>
    %cst_127 = arith.constant dense<0.000000e+00> : vector<8x128xf32>
    %351 = tpu.matmul %349, %350, %cst_127 {dimension_numbers = #tpu.dot_dimension_numbers<[1], [0], [0], [1], [0, 0, 1, 1], [], []>} : vector<8x64xbf16>, vector<64x128xbf16>, vector<8x128xf32> -> vector<8x128xf32>
    %c0_128 = arith.constant 0 : index
    %c0_129 = arith.constant 0 : index
    %352 = vector.load %arg6[%c0_128, %c0_129] : memref<1x128xf32, #tpu.memory_space<vmem>>, vector<1x128xf32>
    %353 = vector.broadcast %352 : vector<1x128xf32> to vector<8x128xf32>
    %354 = arith.addf %351, %353 : vector<8x128xf32>
    %355 = arith.negf %354 : vector<8x128xf32>
    %356 = math.exp %355 : vector<8x128xf32>
    %cst_130 = arith.constant 1.000000e+00 : f32
    %357 = vector.broadcast %cst_130 : f32 to vector<8x128xf32>
    %358 = arith.addf %357, %356 : vector<8x128xf32>
    %359 = arith.divf %357, %358 : vector<8x128xf32>
    %360 = vector.extract_strided_slice %359 {offsets = [0, 0], sizes = [8, 32], strides = [1, 1]} : vector<8x128xf32> to vector<8x32xf32>
    %361 = vector.extract_strided_slice %359 {offsets = [0, 32], sizes = [8, 32], strides = [1, 1]} : vector<8x128xf32> to vector<8x32xf32>
    %362 = vector.extract_strided_slice %359 {offsets = [0, 96], sizes = [8, 32], strides = [1, 1]} : vector<8x128xf32> to vector<8x32xf32>
    %363 = vector.extract_strided_slice %354 {offsets = [0, 64], sizes = [8, 32], strides = [1, 1]} : vector<8x128xf32> to vector<8x32xf32>
    %364 = math.tanh %363 : vector<8x32xf32>
    %365 = arith.mulf %361, %293 : vector<8x32xf32>
    %366 = arith.mulf %360, %364 : vector<8x32xf32>
    %367 = arith.addf %365, %366 : vector<8x32xf32>
    %368 = math.tanh %367 : vector<8x32xf32>
    %369 = arith.mulf %362, %368 : vector<8x32xf32>
    %370 = arith.truncf %369 : vector<8x32xf32> to vector<8x32xbf16>
    %c0_131 = arith.constant 0 : index
    %c0_132 = arith.constant 0 : index
    %371 = vector.load %arg7[%c0_131, %c0_132] : memref<32x256xbf16, #tpu.memory_space<vmem>>, vector<32x256xbf16>
    %cst_133 = arith.constant dense<0.000000e+00> : vector<8x256xf32>
    %372 = tpu.matmul %370, %371, %cst_133 {dimension_numbers = #tpu.dot_dimension_numbers<[1], [0], [0], [1], [0, 0, 1, 1], [], []>} : vector<8x32xbf16>, vector<32x256xbf16>, vector<8x256xf32> -> vector<8x256xf32>
    %c0_134 = arith.constant 0 : index
    %c0_135 = arith.constant 0 : index
    %373 = vector.load %arg8[%c0_134, %c0_135] : memref<1x256xf32, #tpu.memory_space<vmem>>, vector<1x256xf32>
    %374 = vector.broadcast %373 : vector<1x256xf32> to vector<8x256xf32>
    %375 = arith.addf %372, %374 : vector<8x256xf32>
    %376 = vector.extract_strided_slice %375 {offsets = [0, 128], sizes = [8, 128], strides = [1, 1]} : vector<8x256xf32> to vector<8x128xf32>
    %377 = arith.index_cast %c4_i32 : i32 to index
    %c0_136 = arith.constant 0 : index
    %c0_137 = arith.constant 0 : index
    %378 = vector.load %arg9[%377, %c0_136, %c0_137] : memref<8x8x128xf32, #tpu.memory_space<vmem>>, vector<1x8x128xf32>
    %379 = vector.shape_cast %378 : vector<1x8x128xf32> to vector<8x128xf32>
    %380 = vector.shape_cast %376 : vector<8x128xf32> to vector<1x8x128xf32>
    tpu.vector_store %arg9[%377, %c0_136, %c0_137], %380 {strides = array<i32>} : memref<8x8x128xf32, #tpu.memory_space<vmem>>, vector<1x8x128xf32>,
    %381 = vector.extract_strided_slice %375 {offsets = [0, 0], sizes = [8, 128], strides = [1, 1]} : vector<8x256xf32> to vector<8x128xf32>
    %c5_i32 = arith.constant 5 : i32
    %cst_138 = arith.constant dense<0xFF800000> : vector<8xf32>
    %382 = vector.multi_reduction <maximumf>, %381, %cst_138 [1] : vector<8x128xf32> to vector<8xf32>
    %383 = vector.shape_cast %382 : vector<8xf32> to vector<8x1xf32>
    %384 = vector.broadcast %383 : vector<8x1xf32> to vector<8x128xf32>
    %385 = arith.subf %381, %384 : vector<8x128xf32>
    %386 = math.exp %385 : vector<8x128xf32>
    %cst_139 = arith.constant dense<0.000000e+00> : vector<8xf32>
    %387 = vector.multi_reduction <add>, %386, %cst_139 [1] : vector<8x128xf32> to vector<8xf32>
    %388 = vector.shape_cast %387 : vector<8xf32> to vector<8x1xf32>
    %389 = tpu.reciprocal %388 {approx = true} : vector<8x1xf32> -> vector<8x1xf32>
    %390 = vector.broadcast %389 : vector<8x1xf32> to vector<8x128xf32>
    %391 = arith.mulf %386, %390 : vector<8x128xf32>
    %392 = arith.index_cast %c5_i32 : i32 to index
    %c0_140 = arith.constant 0 : index
    %c0_141 = arith.constant 0 : index
    %c0_142 = arith.constant 0 : index
    %393 = vector.load %arg2[%392, %c0_140, %c0_141, %c0_142] : memref<8x8x16x128xbf16, #tpu.memory_space<vmem>>, vector<1x8x16x128xbf16>
    %394 = vector.shape_cast %393 : vector<1x8x16x128xbf16> to vector<8x16x128xbf16>
    %395 = vector.shape_cast %391 : vector<8x128xf32> to vector<8x1x128xf32>
    %396 = arith.extf %394 : vector<8x16x128xbf16> to vector<8x16x128xf32>
    %397 = vector.broadcast %395 : vector<8x1x128xf32> to vector<8x16x128xf32>
    %398 = arith.mulf %397, %396 : vector<8x16x128xf32>
    %cst_143 = arith.constant dense<0.000000e+00> : vector<8x16xf32>
    %399 = vector.multi_reduction <add>, %398, %cst_143 [2] : vector<8x16x128xf32> to vector<8x16xf32>
    %400 = tpu.concatenate %399, %347 in 1 : vector<8x16xf32>, vector<8x32xf32> -> vector<8x48xf32>
    %401 = arith.truncf %400 : vector<8x48xf32> to vector<8x48xbf16>
    %c0_144 = arith.constant 0 : index
    %c0_145 = arith.constant 0 : index
    %402 = vector.load %arg3[%c0_144, %c0_145] : memref<48x128xbf16, #tpu.memory_space<vmem>>, vector<48x128xbf16>
    %cst_146 = arith.constant dense<0.000000e+00> : vector<8x128xf32>
    %403 = tpu.matmul %401, %402, %cst_146 {dimension_numbers = #tpu.dot_dimension_numbers<[1], [0], [0], [1], [0, 0, 1, 1], [], []>} : vector<8x48xbf16>, vector<48x128xbf16>, vector<8x128xf32> -> vector<8x128xf32>
    %c0_147 = arith.constant 0 : index
    %c0_148 = arith.constant 0 : index
    %404 = vector.load %arg4[%c0_147, %c0_148] : memref<1x128xf32, #tpu.memory_space<vmem>>, vector<1x128xf32>
    %405 = vector.broadcast %404 : vector<1x128xf32> to vector<8x128xf32>
    %406 = arith.addf %403, %405 : vector<8x128xf32>
    %407 = arith.negf %406 : vector<8x128xf32>
    %408 = math.exp %407 : vector<8x128xf32>
    %cst_149 = arith.constant 1.000000e+00 : f32
    %409 = vector.broadcast %cst_149 : f32 to vector<8x128xf32>
    %410 = arith.addf %409, %408 : vector<8x128xf32>
    %411 = arith.divf %409, %410 : vector<8x128xf32>
    %412 = vector.extract_strided_slice %411 {offsets = [0, 0], sizes = [8, 32], strides = [1, 1]} : vector<8x128xf32> to vector<8x32xf32>
    %413 = vector.extract_strided_slice %411 {offsets = [0, 32], sizes = [8, 32], strides = [1, 1]} : vector<8x128xf32> to vector<8x32xf32>
    %414 = vector.extract_strided_slice %411 {offsets = [0, 96], sizes = [8, 32], strides = [1, 1]} : vector<8x128xf32> to vector<8x32xf32>
    %415 = vector.extract_strided_slice %406 {offsets = [0, 64], sizes = [8, 32], strides = [1, 1]} : vector<8x128xf32> to vector<8x32xf32>
    %416 = math.tanh %415 : vector<8x32xf32>
    %417 = arith.mulf %413, %345 : vector<8x32xf32>
    %418 = arith.mulf %412, %416 : vector<8x32xf32>
    %419 = arith.addf %417, %418 : vector<8x32xf32>
    %420 = math.tanh %419 : vector<8x32xf32>
    %421 = arith.mulf %414, %420 : vector<8x32xf32>
    %422 = tpu.concatenate %421, %369 in 1 : vector<8x32xf32>, vector<8x32xf32> -> vector<8x64xf32>
    %423 = arith.truncf %422 : vector<8x64xf32> to vector<8x64xbf16>
    %c0_150 = arith.constant 0 : index
    %c0_151 = arith.constant 0 : index
    %424 = vector.load %arg5[%c0_150, %c0_151] : memref<64x128xbf16, #tpu.memory_space<vmem>>, vector<64x128xbf16>
    %cst_152 = arith.constant dense<0.000000e+00> : vector<8x128xf32>
    %425 = tpu.matmul %423, %424, %cst_152 {dimension_numbers = #tpu.dot_dimension_numbers<[1], [0], [0], [1], [0, 0, 1, 1], [], []>} : vector<8x64xbf16>, vector<64x128xbf16>, vector<8x128xf32> -> vector<8x128xf32>
    %c0_153 = arith.constant 0 : index
    %c0_154 = arith.constant 0 : index
    %426 = vector.load %arg6[%c0_153, %c0_154] : memref<1x128xf32, #tpu.memory_space<vmem>>, vector<1x128xf32>
    %427 = vector.broadcast %426 : vector<1x128xf32> to vector<8x128xf32>
    %428 = arith.addf %425, %427 : vector<8x128xf32>
    %429 = arith.negf %428 : vector<8x128xf32>
    %430 = math.exp %429 : vector<8x128xf32>
    %cst_155 = arith.constant 1.000000e+00 : f32
    %431 = vector.broadcast %cst_155 : f32 to vector<8x128xf32>
    %432 = arith.addf %431, %430 : vector<8x128xf32>
    %433 = arith.divf %431, %432 : vector<8x128xf32>
    %434 = vector.extract_strided_slice %433 {offsets = [0, 0], sizes = [8, 32], strides = [1, 1]} : vector<8x128xf32> to vector<8x32xf32>
    %435 = vector.extract_strided_slice %433 {offsets = [0, 32], sizes = [8, 32], strides = [1, 1]} : vector<8x128xf32> to vector<8x32xf32>
    %436 = vector.extract_strided_slice %433 {offsets = [0, 96], sizes = [8, 32], strides = [1, 1]} : vector<8x128xf32> to vector<8x32xf32>
    %437 = vector.extract_strided_slice %428 {offsets = [0, 64], sizes = [8, 32], strides = [1, 1]} : vector<8x128xf32> to vector<8x32xf32>
    %438 = math.tanh %437 : vector<8x32xf32>
    %439 = arith.mulf %435, %367 : vector<8x32xf32>
    %440 = arith.mulf %434, %438 : vector<8x32xf32>
    %441 = arith.addf %439, %440 : vector<8x32xf32>
    %442 = math.tanh %441 : vector<8x32xf32>
    %443 = arith.mulf %436, %442 : vector<8x32xf32>
    %444 = arith.truncf %443 : vector<8x32xf32> to vector<8x32xbf16>
    %c0_156 = arith.constant 0 : index
    %c0_157 = arith.constant 0 : index
    %445 = vector.load %arg7[%c0_156, %c0_157] : memref<32x256xbf16, #tpu.memory_space<vmem>>, vector<32x256xbf16>
    %cst_158 = arith.constant dense<0.000000e+00> : vector<8x256xf32>
    %446 = tpu.matmul %444, %445, %cst_158 {dimension_numbers = #tpu.dot_dimension_numbers<[1], [0], [0], [1], [0, 0, 1, 1], [], []>} : vector<8x32xbf16>, vector<32x256xbf16>, vector<8x256xf32> -> vector<8x256xf32>
    %c0_159 = arith.constant 0 : index
    %c0_160 = arith.constant 0 : index
    %447 = vector.load %arg8[%c0_159, %c0_160] : memref<1x256xf32, #tpu.memory_space<vmem>>, vector<1x256xf32>
    %448 = vector.broadcast %447 : vector<1x256xf32> to vector<8x256xf32>
    %449 = arith.addf %446, %448 : vector<8x256xf32>
    %450 = vector.extract_strided_slice %449 {offsets = [0, 128], sizes = [8, 128], strides = [1, 1]} : vector<8x256xf32> to vector<8x128xf32>
    %451 = arith.index_cast %c5_i32 : i32 to index
    %c0_161 = arith.constant 0 : index
    %c0_162 = arith.constant 0 : index
    %452 = vector.load %arg9[%451, %c0_161, %c0_162] : memref<8x8x128xf32, #tpu.memory_space<vmem>>, vector<1x8x128xf32>
    %453 = vector.shape_cast %452 : vector<1x8x128xf32> to vector<8x128xf32>
    %454 = vector.shape_cast %450 : vector<8x128xf32> to vector<1x8x128xf32>
    tpu.vector_store %arg9[%451, %c0_161, %c0_162], %454 {strides = array<i32>} : memref<8x8x128xf32, #tpu.memory_space<vmem>>, vector<1x8x128xf32>,
    %455 = vector.extract_strided_slice %449 {offsets = [0, 0], sizes = [8, 128], strides = [1, 1]} : vector<8x256xf32> to vector<8x128xf32>
    %c6_i32 = arith.constant 6 : i32
    %cst_163 = arith.constant dense<0xFF800000> : vector<8xf32>
    %456 = vector.multi_reduction <maximumf>, %455, %cst_163 [1] : vector<8x128xf32> to vector<8xf32>
    %457 = vector.shape_cast %456 : vector<8xf32> to vector<8x1xf32>
    %458 = vector.broadcast %457 : vector<8x1xf32> to vector<8x128xf32>
    %459 = arith.subf %455, %458 : vector<8x128xf32>
    %460 = math.exp %459 : vector<8x128xf32>
    %cst_164 = arith.constant dense<0.000000e+00> : vector<8xf32>
    %461 = vector.multi_reduction <add>, %460, %cst_164 [1] : vector<8x128xf32> to vector<8xf32>
    %462 = vector.shape_cast %461 : vector<8xf32> to vector<8x1xf32>
    %463 = tpu.reciprocal %462 {approx = true} : vector<8x1xf32> -> vector<8x1xf32>
    %464 = vector.broadcast %463 : vector<8x1xf32> to vector<8x128xf32>
    %465 = arith.mulf %460, %464 : vector<8x128xf32>
    %466 = arith.index_cast %c6_i32 : i32 to index
    %c0_165 = arith.constant 0 : index
    %c0_166 = arith.constant 0 : index
    %c0_167 = arith.constant 0 : index
    %467 = vector.load %arg2[%466, %c0_165, %c0_166, %c0_167] : memref<8x8x16x128xbf16, #tpu.memory_space<vmem>>, vector<1x8x16x128xbf16>
    %468 = vector.shape_cast %467 : vector<1x8x16x128xbf16> to vector<8x16x128xbf16>
    %469 = vector.shape_cast %465 : vector<8x128xf32> to vector<8x1x128xf32>
    %470 = arith.extf %468 : vector<8x16x128xbf16> to vector<8x16x128xf32>
    %471 = vector.broadcast %469 : vector<8x1x128xf32> to vector<8x16x128xf32>
    %472 = arith.mulf %471, %470 : vector<8x16x128xf32>
    %cst_168 = arith.constant dense<0.000000e+00> : vector<8x16xf32>
    %473 = vector.multi_reduction <add>, %472, %cst_168 [2] : vector<8x16x128xf32> to vector<8x16xf32>
    %474 = tpu.concatenate %473, %421 in 1 : vector<8x16xf32>, vector<8x32xf32> -> vector<8x48xf32>
    %475 = arith.truncf %474 : vector<8x48xf32> to vector<8x48xbf16>
    %c0_169 = arith.constant 0 : index
    %c0_170 = arith.constant 0 : index
    %476 = vector.load %arg3[%c0_169, %c0_170] : memref<48x128xbf16, #tpu.memory_space<vmem>>, vector<48x128xbf16>
    %cst_171 = arith.constant dense<0.000000e+00> : vector<8x128xf32>
    %477 = tpu.matmul %475, %476, %cst_171 {dimension_numbers = #tpu.dot_dimension_numbers<[1], [0], [0], [1], [0, 0, 1, 1], [], []>} : vector<8x48xbf16>, vector<48x128xbf16>, vector<8x128xf32> -> vector<8x128xf32>
    %c0_172 = arith.constant 0 : index
    %c0_173 = arith.constant 0 : index
    %478 = vector.load %arg4[%c0_172, %c0_173] : memref<1x128xf32, #tpu.memory_space<vmem>>, vector<1x128xf32>
    %479 = vector.broadcast %478 : vector<1x128xf32> to vector<8x128xf32>
    %480 = arith.addf %477, %479 : vector<8x128xf32>
    %481 = arith.negf %480 : vector<8x128xf32>
    %482 = math.exp %481 : vector<8x128xf32>
    %cst_174 = arith.constant 1.000000e+00 : f32
    %483 = vector.broadcast %cst_174 : f32 to vector<8x128xf32>
    %484 = arith.addf %483, %482 : vector<8x128xf32>
    %485 = arith.divf %483, %484 : vector<8x128xf32>
    %486 = vector.extract_strided_slice %485 {offsets = [0, 0], sizes = [8, 32], strides = [1, 1]} : vector<8x128xf32> to vector<8x32xf32>
    %487 = vector.extract_strided_slice %485 {offsets = [0, 32], sizes = [8, 32], strides = [1, 1]} : vector<8x128xf32> to vector<8x32xf32>
    %488 = vector.extract_strided_slice %485 {offsets = [0, 96], sizes = [8, 32], strides = [1, 1]} : vector<8x128xf32> to vector<8x32xf32>
    %489 = vector.extract_strided_slice %480 {offsets = [0, 64], sizes = [8, 32], strides = [1, 1]} : vector<8x128xf32> to vector<8x32xf32>
    %490 = math.tanh %489 : vector<8x32xf32>
    %491 = arith.mulf %487, %419 : vector<8x32xf32>
    %492 = arith.mulf %486, %490 : vector<8x32xf32>
    %493 = arith.addf %491, %492 : vector<8x32xf32>
    %494 = math.tanh %493 : vector<8x32xf32>
    %495 = arith.mulf %488, %494 : vector<8x32xf32>
    %496 = tpu.concatenate %495, %443 in 1 : vector<8x32xf32>, vector<8x32xf32> -> vector<8x64xf32>
    %497 = arith.truncf %496 : vector<8x64xf32> to vector<8x64xbf16>
    %c0_175 = arith.constant 0 : index
    %c0_176 = arith.constant 0 : index
    %498 = vector.load %arg5[%c0_175, %c0_176] : memref<64x128xbf16, #tpu.memory_space<vmem>>, vector<64x128xbf16>
    %cst_177 = arith.constant dense<0.000000e+00> : vector<8x128xf32>
    %499 = tpu.matmul %497, %498, %cst_177 {dimension_numbers = #tpu.dot_dimension_numbers<[1], [0], [0], [1], [0, 0, 1, 1], [], []>} : vector<8x64xbf16>, vector<64x128xbf16>, vector<8x128xf32> -> vector<8x128xf32>
    %c0_178 = arith.constant 0 : index
    %c0_179 = arith.constant 0 : index
    %500 = vector.load %arg6[%c0_178, %c0_179] : memref<1x128xf32, #tpu.memory_space<vmem>>, vector<1x128xf32>
    %501 = vector.broadcast %500 : vector<1x128xf32> to vector<8x128xf32>
    %502 = arith.addf %499, %501 : vector<8x128xf32>
    %503 = arith.negf %502 : vector<8x128xf32>
    %504 = math.exp %503 : vector<8x128xf32>
    %cst_180 = arith.constant 1.000000e+00 : f32
    %505 = vector.broadcast %cst_180 : f32 to vector<8x128xf32>
    %506 = arith.addf %505, %504 : vector<8x128xf32>
    %507 = arith.divf %505, %506 : vector<8x128xf32>
    %508 = vector.extract_strided_slice %507 {offsets = [0, 0], sizes = [8, 32], strides = [1, 1]} : vector<8x128xf32> to vector<8x32xf32>
    %509 = vector.extract_strided_slice %507 {offsets = [0, 32], sizes = [8, 32], strides = [1, 1]} : vector<8x128xf32> to vector<8x32xf32>
    %510 = vector.extract_strided_slice %507 {offsets = [0, 96], sizes = [8, 32], strides = [1, 1]} : vector<8x128xf32> to vector<8x32xf32>
    %511 = vector.extract_strided_slice %502 {offsets = [0, 64], sizes = [8, 32], strides = [1, 1]} : vector<8x128xf32> to vector<8x32xf32>
    %512 = math.tanh %511 : vector<8x32xf32>
    %513 = arith.mulf %509, %441 : vector<8x32xf32>
    %514 = arith.mulf %508, %512 : vector<8x32xf32>
    %515 = arith.addf %513, %514 : vector<8x32xf32>
    %516 = math.tanh %515 : vector<8x32xf32>
    %517 = arith.mulf %510, %516 : vector<8x32xf32>
    %518 = arith.truncf %517 : vector<8x32xf32> to vector<8x32xbf16>
    %c0_181 = arith.constant 0 : index
    %c0_182 = arith.constant 0 : index
    %519 = vector.load %arg7[%c0_181, %c0_182] : memref<32x256xbf16, #tpu.memory_space<vmem>>, vector<32x256xbf16>
    %cst_183 = arith.constant dense<0.000000e+00> : vector<8x256xf32>
    %520 = tpu.matmul %518, %519, %cst_183 {dimension_numbers = #tpu.dot_dimension_numbers<[1], [0], [0], [1], [0, 0, 1, 1], [], []>} : vector<8x32xbf16>, vector<32x256xbf16>, vector<8x256xf32> -> vector<8x256xf32>
    %c0_184 = arith.constant 0 : index
    %c0_185 = arith.constant 0 : index
    %521 = vector.load %arg8[%c0_184, %c0_185] : memref<1x256xf32, #tpu.memory_space<vmem>>, vector<1x256xf32>
    %522 = vector.broadcast %521 : vector<1x256xf32> to vector<8x256xf32>
    %523 = arith.addf %520, %522 : vector<8x256xf32>
    %524 = vector.extract_strided_slice %523 {offsets = [0, 128], sizes = [8, 128], strides = [1, 1]} : vector<8x256xf32> to vector<8x128xf32>
    %525 = arith.index_cast %c6_i32 : i32 to index
    %c0_186 = arith.constant 0 : index
    %c0_187 = arith.constant 0 : index
    %526 = vector.load %arg9[%525, %c0_186, %c0_187] : memref<8x8x128xf32, #tpu.memory_space<vmem>>, vector<1x8x128xf32>
    %527 = vector.shape_cast %526 : vector<1x8x128xf32> to vector<8x128xf32>
    %528 = vector.shape_cast %524 : vector<8x128xf32> to vector<1x8x128xf32>
    tpu.vector_store %arg9[%525, %c0_186, %c0_187], %528 {strides = array<i32>} : memref<8x8x128xf32, #tpu.memory_space<vmem>>, vector<1x8x128xf32>,
    %529 = vector.extract_strided_slice %523 {offsets = [0, 0], sizes = [8, 128], strides = [1, 1]} : vector<8x256xf32> to vector<8x128xf32>
    %c7_i32 = arith.constant 7 : i32
    %cst_188 = arith.constant dense<0xFF800000> : vector<8xf32>
    %530 = vector.multi_reduction <maximumf>, %529, %cst_188 [1] : vector<8x128xf32> to vector<8xf32>
    %531 = vector.shape_cast %530 : vector<8xf32> to vector<8x1xf32>
    %532 = vector.broadcast %531 : vector<8x1xf32> to vector<8x128xf32>
    %533 = arith.subf %529, %532 : vector<8x128xf32>
    %534 = math.exp %533 : vector<8x128xf32>
    %cst_189 = arith.constant dense<0.000000e+00> : vector<8xf32>
    %535 = vector.multi_reduction <add>, %534, %cst_189 [1] : vector<8x128xf32> to vector<8xf32>
    %536 = vector.shape_cast %535 : vector<8xf32> to vector<8x1xf32>
    %537 = tpu.reciprocal %536 {approx = true} : vector<8x1xf32> -> vector<8x1xf32>
    %538 = vector.broadcast %537 : vector<8x1xf32> to vector<8x128xf32>
    %539 = arith.mulf %534, %538 : vector<8x128xf32>
    %540 = arith.index_cast %c7_i32 : i32 to index
    %c0_190 = arith.constant 0 : index
    %c0_191 = arith.constant 0 : index
    %c0_192 = arith.constant 0 : index
    %541 = vector.load %arg2[%540, %c0_190, %c0_191, %c0_192] : memref<8x8x16x128xbf16, #tpu.memory_space<vmem>>, vector<1x8x16x128xbf16>
    %542 = vector.shape_cast %541 : vector<1x8x16x128xbf16> to vector<8x16x128xbf16>
    %543 = vector.shape_cast %539 : vector<8x128xf32> to vector<8x1x128xf32>
    %544 = arith.extf %542 : vector<8x16x128xbf16> to vector<8x16x128xf32>
    %545 = vector.broadcast %543 : vector<8x1x128xf32> to vector<8x16x128xf32>
    %546 = arith.mulf %545, %544 : vector<8x16x128xf32>
    %cst_193 = arith.constant dense<0.000000e+00> : vector<8x16xf32>
    %547 = vector.multi_reduction <add>, %546, %cst_193 [2] : vector<8x16x128xf32> to vector<8x16xf32>
    %548 = tpu.concatenate %547, %495 in 1 : vector<8x16xf32>, vector<8x32xf32> -> vector<8x48xf32>
    %549 = arith.truncf %548 : vector<8x48xf32> to vector<8x48xbf16>
    %c0_194 = arith.constant 0 : index
    %c0_195 = arith.constant 0 : index
    %550 = vector.load %arg3[%c0_194, %c0_195] : memref<48x128xbf16, #tpu.memory_space<vmem>>, vector<48x128xbf16>
    %cst_196 = arith.constant dense<0.000000e+00> : vector<8x128xf32>
    %551 = tpu.matmul %549, %550, %cst_196 {dimension_numbers = #tpu.dot_dimension_numbers<[1], [0], [0], [1], [0, 0, 1, 1], [], []>} : vector<8x48xbf16>, vector<48x128xbf16>, vector<8x128xf32> -> vector<8x128xf32>
    %c0_197 = arith.constant 0 : index
    %c0_198 = arith.constant 0 : index
    %552 = vector.load %arg4[%c0_197, %c0_198] : memref<1x128xf32, #tpu.memory_space<vmem>>, vector<1x128xf32>
    %553 = vector.broadcast %552 : vector<1x128xf32> to vector<8x128xf32>
    %554 = arith.addf %551, %553 : vector<8x128xf32>
    %555 = arith.negf %554 : vector<8x128xf32>
    %556 = math.exp %555 : vector<8x128xf32>
    %cst_199 = arith.constant 1.000000e+00 : f32
    %557 = vector.broadcast %cst_199 : f32 to vector<8x128xf32>
    %558 = arith.addf %557, %556 : vector<8x128xf32>
    %559 = arith.divf %557, %558 : vector<8x128xf32>
    %560 = vector.extract_strided_slice %559 {offsets = [0, 0], sizes = [8, 32], strides = [1, 1]} : vector<8x128xf32> to vector<8x32xf32>
    %561 = vector.extract_strided_slice %559 {offsets = [0, 32], sizes = [8, 32], strides = [1, 1]} : vector<8x128xf32> to vector<8x32xf32>
    %562 = vector.extract_strided_slice %559 {offsets = [0, 96], sizes = [8, 32], strides = [1, 1]} : vector<8x128xf32> to vector<8x32xf32>
    %563 = vector.extract_strided_slice %554 {offsets = [0, 64], sizes = [8, 32], strides = [1, 1]} : vector<8x128xf32> to vector<8x32xf32>
    %564 = math.tanh %563 : vector<8x32xf32>
    %565 = arith.mulf %561, %493 : vector<8x32xf32>
    %566 = arith.mulf %560, %564 : vector<8x32xf32>
    %567 = arith.addf %565, %566 : vector<8x32xf32>
    %568 = math.tanh %567 : vector<8x32xf32>
    %569 = arith.mulf %562, %568 : vector<8x32xf32>
    %570 = tpu.concatenate %569, %517 in 1 : vector<8x32xf32>, vector<8x32xf32> -> vector<8x64xf32>
    %571 = arith.truncf %570 : vector<8x64xf32> to vector<8x64xbf16>
    %c0_200 = arith.constant 0 : index
    %c0_201 = arith.constant 0 : index
    %572 = vector.load %arg5[%c0_200, %c0_201] : memref<64x128xbf16, #tpu.memory_space<vmem>>, vector<64x128xbf16>
    %cst_202 = arith.constant dense<0.000000e+00> : vector<8x128xf32>
    %573 = tpu.matmul %571, %572, %cst_202 {dimension_numbers = #tpu.dot_dimension_numbers<[1], [0], [0], [1], [0, 0, 1, 1], [], []>} : vector<8x64xbf16>, vector<64x128xbf16>, vector<8x128xf32> -> vector<8x128xf32>
    %c0_203 = arith.constant 0 : index
    %c0_204 = arith.constant 0 : index
    %574 = vector.load %arg6[%c0_203, %c0_204] : memref<1x128xf32, #tpu.memory_space<vmem>>, vector<1x128xf32>
    %575 = vector.broadcast %574 : vector<1x128xf32> to vector<8x128xf32>
    %576 = arith.addf %573, %575 : vector<8x128xf32>
    %577 = arith.negf %576 : vector<8x128xf32>
    %578 = math.exp %577 : vector<8x128xf32>
    %cst_205 = arith.constant 1.000000e+00 : f32
    %579 = vector.broadcast %cst_205 : f32 to vector<8x128xf32>
    %580 = arith.addf %579, %578 : vector<8x128xf32>
    %581 = arith.divf %579, %580 : vector<8x128xf32>
    %582 = vector.extract_strided_slice %581 {offsets = [0, 0], sizes = [8, 32], strides = [1, 1]} : vector<8x128xf32> to vector<8x32xf32>
    %583 = vector.extract_strided_slice %581 {offsets = [0, 32], sizes = [8, 32], strides = [1, 1]} : vector<8x128xf32> to vector<8x32xf32>
    %584 = vector.extract_strided_slice %581 {offsets = [0, 96], sizes = [8, 32], strides = [1, 1]} : vector<8x128xf32> to vector<8x32xf32>
    %585 = vector.extract_strided_slice %576 {offsets = [0, 64], sizes = [8, 32], strides = [1, 1]} : vector<8x128xf32> to vector<8x32xf32>
    %586 = math.tanh %585 : vector<8x32xf32>
    %587 = arith.mulf %583, %515 : vector<8x32xf32>
    %588 = arith.mulf %582, %586 : vector<8x32xf32>
    %589 = arith.addf %587, %588 : vector<8x32xf32>
    %590 = math.tanh %589 : vector<8x32xf32>
    %591 = arith.mulf %584, %590 : vector<8x32xf32>
    %592 = arith.truncf %591 : vector<8x32xf32> to vector<8x32xbf16>
    %c0_206 = arith.constant 0 : index
    %c0_207 = arith.constant 0 : index
    %593 = vector.load %arg7[%c0_206, %c0_207] : memref<32x256xbf16, #tpu.memory_space<vmem>>, vector<32x256xbf16>
    %cst_208 = arith.constant dense<0.000000e+00> : vector<8x256xf32>
    %594 = tpu.matmul %592, %593, %cst_208 {dimension_numbers = #tpu.dot_dimension_numbers<[1], [0], [0], [1], [0, 0, 1, 1], [], []>} : vector<8x32xbf16>, vector<32x256xbf16>, vector<8x256xf32> -> vector<8x256xf32>
    %c0_209 = arith.constant 0 : index
    %c0_210 = arith.constant 0 : index
    %595 = vector.load %arg8[%c0_209, %c0_210] : memref<1x256xf32, #tpu.memory_space<vmem>>, vector<1x256xf32>
    %596 = vector.broadcast %595 : vector<1x256xf32> to vector<8x256xf32>
    %597 = arith.addf %594, %596 : vector<8x256xf32>
    %598 = vector.extract_strided_slice %597 {offsets = [0, 128], sizes = [8, 128], strides = [1, 1]} : vector<8x256xf32> to vector<8x128xf32>
    %599 = arith.index_cast %c7_i32 : i32 to index
    %c0_211 = arith.constant 0 : index
    %c0_212 = arith.constant 0 : index
    %600 = vector.load %arg9[%599, %c0_211, %c0_212] : memref<8x8x128xf32, #tpu.memory_space<vmem>>, vector<1x8x128xf32>
    %601 = vector.shape_cast %600 : vector<1x8x128xf32> to vector<8x128xf32>
    %602 = vector.shape_cast %598 : vector<8x128xf32> to vector<1x8x128xf32>
    tpu.vector_store %arg9[%599, %c0_211, %c0_212], %602 {strides = array<i32>} : memref<8x8x128xf32, #tpu.memory_space<vmem>>, vector<1x8x128xf32>,
    %603 = vector.extract_strided_slice %597 {offsets = [0, 0], sizes = [8, 128], strides = [1, 1]} : vector<8x256xf32> to vector<8x128xf32>
    %c8_i32 = arith.constant 8 : i32
    %c0_213 = arith.constant 0 : index
    %c0_214 = arith.constant 0 : index
    %c0_215 = arith.constant 0 : index
    %604 = vector.load %arg10[%c0_213, %c0_214, %c0_215] : memref<2x8x32xf32, #tpu.memory_space<vmem>>, vector<1x8x32xf32>
    %605 = vector.shape_cast %604 : vector<1x8x32xf32> to vector<8x32xf32>
    %606 = vector.shape_cast %569 : vector<8x32xf32> to vector<1x8x32xf32>
    tpu.vector_store %arg10[%c0_213, %c0_214, %c0_215], %606 {strides = array<i32>} : memref<2x8x32xf32, #tpu.memory_space<vmem>>, vector<1x8x32xf32>,
    %c0_216 = arith.constant 0 : index
    %c0_217 = arith.constant 0 : index
    %c0_218 = arith.constant 0 : index
    %607 = vector.load %arg11[%c0_216, %c0_217, %c0_218] : memref<2x8x32xf32, #tpu.memory_space<vmem>>, vector<1x8x32xf32>
    %608 = vector.shape_cast %607 : vector<1x8x32xf32> to vector<8x32xf32>
    %609 = vector.shape_cast %567 : vector<8x32xf32> to vector<1x8x32xf32>
    tpu.vector_store %arg11[%c0_216, %c0_217, %c0_218], %609 {strides = array<i32>} : memref<2x8x32xf32, #tpu.memory_space<vmem>>, vector<1x8x32xf32>,
    %c1_219 = arith.constant 1 : index
    %c0_220 = arith.constant 0 : index
    %c0_221 = arith.constant 0 : index
    %610 = vector.load %arg10[%c1_219, %c0_220, %c0_221] : memref<2x8x32xf32, #tpu.memory_space<vmem>>, vector<1x8x32xf32>
    %611 = vector.shape_cast %610 : vector<1x8x32xf32> to vector<8x32xf32>
    %612 = vector.shape_cast %591 : vector<8x32xf32> to vector<1x8x32xf32>
    tpu.vector_store %arg10[%c1_219, %c0_220, %c0_221], %612 {strides = array<i32>} : memref<2x8x32xf32, #tpu.memory_space<vmem>>, vector<1x8x32xf32>,
    %c1_222 = arith.constant 1 : index
    %c0_223 = arith.constant 0 : index
    %c0_224 = arith.constant 0 : index
    %613 = vector.load %arg11[%c1_222, %c0_223, %c0_224] : memref<2x8x32xf32, #tpu.memory_space<vmem>>, vector<1x8x32xf32>
    %614 = vector.shape_cast %613 : vector<1x8x32xf32> to vector<8x32xf32>
    %615 = vector.shape_cast %589 : vector<8x32xf32> to vector<1x8x32xf32>
    tpu.vector_store %arg11[%c1_222, %c0_223, %c0_224], %615 {strides = array<i32>} : memref<2x8x32xf32, #tpu.memory_space<vmem>>, vector<1x8x32xf32>,
    %c0_225 = arith.constant 0 : index
    %c0_226 = arith.constant 0 : index
    %616 = vector.load %arg12[%c0_225, %c0_226] : memref<8x128xf32, #tpu.memory_space<vmem>>, vector<8x128xf32>
    tpu.vector_store %arg12[%c0_225, %c0_226], %603 {strides = array<i32>} : memref<8x128xf32, #tpu.memory_space<vmem>>, vector<8x128xf32>,
    return
  }
  func.func @transform_0(%arg0: i32, %arg1: i32) -> (i32, i32, i32, i32) {
    %c0_i32 = arith.constant 0 : i32
    %c0_i32_0 = arith.constant 0 : i32
    %c0_i32_1 = arith.constant 0 : i32
    return %arg1, %arg0, %c0_i32, %c0_i32_0 : i32, i32, i32, i32
  }
  func.func @transform_1(%arg0: i32, %arg1: i32) -> (i32, i32) {
    %c0_i32 = arith.constant 0 : i32
    %c0_i32_0 = arith.constant 0 : i32
    %c0_i32_1 = arith.constant 0 : i32
    return %c0_i32, %c0_i32_0 : i32, i32
  }
  func.func @transform_2(%arg0: i32, %arg1: i32) -> (i32, i32) {
    %c0_i32 = arith.constant 0 : i32
    %c0_i32_0 = arith.constant 0 : i32
    %c0_i32_1 = arith.constant 0 : i32
    return %c0_i32, %c0_i32_0 : i32, i32
  }
  func.func @transform_3(%arg0: i32, %arg1: i32) -> (i32, i32) {
    %c0_i32 = arith.constant 0 : i32
    %c0_i32_0 = arith.constant 0 : i32
    %c0_i32_1 = arith.constant 0 : i32
    return %c0_i32, %c0_i32_0 : i32, i32
  }
  func.func @transform_4(%arg0: i32, %arg1: i32) -> (i32, i32) {
    %c0_i32 = arith.constant 0 : i32
    %c0_i32_0 = arith.constant 0 : i32
    %c0_i32_1 = arith.constant 0 : i32
    return %c0_i32, %c0_i32_0 : i32, i32
  }
  func.func @transform_5(%arg0: i32, %arg1: i32) -> (i32, i32) {
    %c0_i32 = arith.constant 0 : i32
    %c0_i32_0 = arith.constant 0 : i32
    %c0_i32_1 = arith.constant 0 : i32
    return %c0_i32, %c0_i32_0 : i32, i32
  }
  func.func @transform_6(%arg0: i32, %arg1: i32) -> (i32, i32) {
    %c0_i32 = arith.constant 0 : i32
    %c0_i32_0 = arith.constant 0 : i32
    %c0_i32_1 = arith.constant 0 : i32
    return %c0_i32, %c0_i32_0 : i32, i32
  }
  func.func @transform_7(%arg0: i32, %arg1: i32) -> (i32, i32, i32) {
    %c0_i32 = arith.constant 0 : i32
    %c0_i32_0 = arith.constant 0 : i32
    return %arg1, %arg0, %c0_i32 : i32, i32, i32
  }
}

</mosaic_0001>

<bundles_post_ra>
// kernel: tpu_custom_call.1
= control target key start
LH: loop header
LB: loop body
LE: loop exit
PB: predicated region body
PF: predicated region fallthrough
CT: control target
= control target key end

     0   :  { %12 = vsyncpa [#allocation6], 0  ;;  %s6909_s0 = inlined_call_operand.hbm [shape: bf16[8,8,16,128], index: 0, kind: input, shape index: {}]   ;;  %s6910_s1 = inlined_call_operand.hbm [shape: bf16[48,128], index: 1, kind: input, shape index: {}]   ;;  %s6911_s2 = inlined_call_operand.vmem [shape: f32[1,128], index: 2, kind: input, shape index: {}]   ;;  %s6912_s3 = inlined_call_operand.hbm [shape: bf16[64,128], index: 3, kind: input, shape index: {}]   ;;  %s6913_s4 = inlined_call_operand.vmem [shape: f32[1,128], index: 4, kind: input, shape index: {}]   ;;  %s6914_s5 = inlined_call_operand.hbm [shape: bf16[32,256], index: 5, kind: input, shape index: {}]   ;;  %s6915_s6 = inlined_call_operand.vmem [shape: f32[1,256], index: 6, kind: input, shape index: {}]   ;;  %s6916_s7 = inlined_call_operand.hbm [shape: f32[8,8,128], index: 7, kind: output, shape index: {}]  }
   0x1   :  { %13 = vsyncpa [#allocation9], 0 }
   0x2   :  { %14 = vsyncpa [#allocation12], 0 }
   0x3   :  { %15 = vsyncpa [#allocation7], 0  ;;  %s5892_s24 = smov [#allocation8]   ;;  %s5893_s26 = smov [#allocation5]  }
   0x4   :  { %s33_s25 = sshll.u32 %s5892_s24, 4  ;;  %s21_s27 = sshll.u32 %s5893_s26, 4  ;;  %s34_s25 = int_to_ptr.vmem [resolvable:$true] %s33_s25  ;;  %s5949_s27 = int_to_ptr.vmem [resolvable:$true] %s21_s27 }
   0x5   :  { %s5774_s30 = scalar_lea.hbm %s6910_s1, 384 }
   0x6   :  { %p5775_p0 = scmp.ne.s32.totalorder %s6910_s1, %s5774_s30  ;;  %p5778_p1 = scmp.lt.u32.totalorder %s5774_s30, %s6910_s1 }
   0x8   :  { %p5780_p2 = pnand %p5778_p1, %p5775_p0 }
   0xa   :  { %5783 = shalt.err (!%p5780_p2)
}
   0xb   :  { %s5784_s12 = scalar_lea.vmem %s34_s25, 384  ;;  %p5789_p4 = scmp.lt.s32.totalorder %s34_s25, %s34_s25 }
   0xc   :  { %p5785_p3 = scmp.ne.s32.totalorder %s34_s25, %s5784_s12  ;;  %p5790_p5 = scmp.lt.s32.totalorder %s5784_s12, %s5784_s12 }
   0xe   :  { %p5791_p6 = por %p5790_p5, %p5789_p4 }
  0x10   :  { %p5792_p7 = pnand %p5791_p6, %p5785_p3 }
  0x12   :  { %5795 = shalt.err (!%p5792_p7)
}
  0x13   :  { %s5894_s13 = smov 64   ;;  %s5895_s14 = smov 4  }
  0x14   :  { %39 = dma.hbm_to_vmem [thread:$0]  %s6910_s1, 384, %s34_s25, [#allocation9], %s5894_s13, %s5894_s13, %s5895_s14  }
  0x15   :  { %s5796_s19 = scalar_lea.hbm %s6909_s0, 8192 }
  0x16   :  { %p5797_p8 = scmp.ne.s32.totalorder %s6909_s0, %s5796_s19  ;;  %p5800_p9 = scmp.lt.u32.totalorder %s5796_s19, %s6909_s0 }
  0x18   :  { %p5802_p10 = pnand %p5800_p9, %p5797_p8 }
  0x1a   :  { %5805 = shalt.err (!%p5802_p10)
}
  0x1b   :  { %s5806_s24 = scalar_lea.vmem %s5949_s27, 8192  ;;  %p5811_p12 = scmp.lt.s32.totalorder %s5949_s27, %s5949_s27 }
  0x1c   :  { %p5807_p11 = scmp.ne.s32.totalorder %s5949_s27, %s5806_s24  ;;  %p5812_p13 = scmp.lt.s32.totalorder %s5806_s24, %s5806_s24 }
  0x1e   :  { %p5813_p0 = por %p5812_p13, %p5811_p12 }
  0x20   :  { %p5814_p1 = pnand %p5813_p0, %p5807_p11 }
  0x22   :  { %5817 = shalt.err (!%p5814_p1)
}
  0x23   :  { %27 = dma.hbm_to_vmem [thread:$0]  %s6909_s0, 8192, %s5949_s27, [#allocation6], %s5894_s13, %s5894_s13, %s5895_s14  }
  0x24   :  { %s5896_s26 = smov [#allocation10]   ;;  %s5897_s29 = smov [#allocation11]  }
  0x25   :  { %s47_s28 = sshll.u32 %s5896_s26, 4  ;;  %s61_s30 = sshll.u32 %s5897_s29, 4  ;;  %s48_s28 = int_to_ptr.vmem [resolvable:$true] %s47_s28  ;;  %s5986_s30 = int_to_ptr.vmem [resolvable:$true] %s61_s30 }
  0x26   :  { %s5818_s10 = scalar_lea.hbm %s6912_s3, 512 }
  0x27   :  { %p5819_p2 = scmp.ne.s32.totalorder %s6912_s3, %s5818_s10  ;;  %p5822_p3 = scmp.lt.u32.totalorder %s5818_s10, %s6912_s3 }
  0x29   :  { %p5824_p4 = pnand %p5822_p3, %p5819_p2 }
  0x2b   :  { %5827 = shalt.err (!%p5824_p4)
}
  0x2c   :  { %s5828_s0 = scalar_lea.vmem %s48_s28, 512  ;;  %p5833_p6 = scmp.lt.s32.totalorder %s48_s28, %s48_s28 }
  0x2d   :  { %p5829_p5 = scmp.ne.s32.totalorder %s48_s28, %s5828_s0  ;;  %p5834_p7 = scmp.lt.s32.totalorder %s5828_s0, %s5828_s0 }
  0x2f   :  { %p5835_p8 = por %p5834_p7, %p5833_p6 }
  0x31   :  { %p5836_p9 = pnand %p5835_p8, %p5829_p5 }
  0x33   :  { %5839 = shalt.err (!%p5836_p9)
}
  0x34   :  { %53 = dma.hbm_to_vmem [thread:$0]  %s6912_s3, 512, %s48_s28, [#allocation9], %s5894_s13, %s5894_s13, %s5895_s14  }
  0x35   :  { %s5840_s20 = scalar_lea.hbm %s6914_s5, 512 }
  0x36   :  { %p5841_p10 = scmp.ne.s32.totalorder %s6914_s5, %s5840_s20  ;;  %p5844_p11 = scmp.lt.u32.totalorder %s5840_s20, %s6914_s5 }
  0x38   :  { %p5846_p12 = pnand %p5844_p11, %p5841_p10 }
  0x3a   :  { %5849 = shalt.err (!%p5846_p12)
}
  0x3b   :  { %s5850_s1 = scalar_lea.vmem %s5986_s30, 512  ;;  %p5855_p0 = scmp.lt.s32.totalorder %s5986_s30, %s5986_s30 }
  0x3c   :  { %p5851_p13 = scmp.ne.s32.totalorder %s5986_s30, %s5850_s1  ;;  %p5856_p1 = scmp.lt.s32.totalorder %s5850_s1, %s5850_s1 }
  0x3e   :  { %p5857_p2 = por %p5856_p1, %p5855_p0 }
  0x40   :  { %p5858_p3 = pnand %p5857_p2, %p5851_p13 }
  0x42   :  { %5861 = shalt.err (!%p5858_p3)
}
  0x43   :  { %s5898_s3 = smov 128   ;;  %s5899_s14 = smov 8  }
  0x44   :  { %67 = dma.hbm_to_vmem [thread:$0]  %s6914_s5, 512, %s5986_s30, [#allocation12], %s5898_s3, %s5898_s3, %s5899_s14  }
  0x45   :  { %5884 = dma.done.wait [#allocation6], 8192  }
  0x46   :  { %5885 = vsyncadd [#allocation6], 4294959104 }
  0x47   :  { %5886 = dma.done.wait [#allocation9], 896  }
  0x48   :  { %5887 = vsyncadd [#allocation9], 4294966400 }
  0x49   :  { %5888 = dma.done.wait [#allocation12], 512  }
  0x4a   :  { %5889 = vsyncadd [#allocation12], 4294966784  ;;  %v4813_v0 = vld [vmem:[%s6915_s6] ss:$0 sm:$0xff]  ;;  %vm87_vm0 = vcmask 261120   ;;  %v5900_v5 = vmov 0.0   ;;  %v137_v9 = vlaneseq }
  0x4b   :  { %107 = vmax.xlane.f32.xlu0 %v4813_v0  ;;  %88 = vst.msk [vmem:[#allocation2] sm:$0xff] %vm87_vm0, %v5900_v5  ;;  %89 = vst.msk [vmem:[#allocation2 + $0x8] sm:$0xff] %vm87_vm0, %v5900_v5  ;;  %5342 = vmatprep.subr.bf16.mxu0 %v5900_v5  ;;  %v5901_v7 = vmov 1966171168   ;;  %v4959_v15 = vld [vmem:[#allocation5] sm:$0xff]   ;;  %v5214_v18 = vld [vmem:[#allocation5 + $0x8] sm:$0xff]  }
  0x4c   :  { %90 = vst.msk [vmem:[#allocation3] sm:$0xff] %vm87_vm0, %v5900_v5  ;;  %91 = vst.msk [vmem:[#allocation3 + $0x8] sm:$0xff] %vm87_vm0, %v5900_v5  ;;  %5352 = vmatprep.subr.bf16.mxu1 %v5900_v5  ;;  %v135_v8 = vunpack.c.l.s4 %v5901_v7  ;;  %v6037_v11 = vshrl.u32 %v137_v9, 7  ;;  %v4960_v20 = vunpack.c.l.bf16 %v4959_v15  ;;  %v4964_v23 = vunpack.c.l.bf16 %v5214_v18  ;;  %v5215_v28 = vld [vmem:[#allocation5 + $0x10] sm:$0xff]   ;;  %v5217_v35 = vld [vmem:[#allocation5 + $0x20] sm:$0xff]   ;;  %s5902_s5 = smov 16  }
  0x4d   :  { %v4961_v31 = vunpack.c.h.bf16 %v4959_v15  ;;  %v4968_v33 = vunpack.c.l.bf16 %v5215_v28  ;;  %v4965_v38 = vunpack.c.h.bf16 %v5214_v18  ;;  %v4976_v39 = vunpack.c.l.bf16 %v5217_v35  ;;  %v5216_v44 = vld [vmem:[#allocation5 + $0x18] sm:$0xff]   ;;  %v5218_v51 = vld [vmem:[#allocation5 + $0x28] sm:$0xff]   ;;  %v5219_v58 = vld [vmem:[#allocation5 + $0x30] sm:$0xff]   ;;  %s5904_s9 = smov 32   ;;  %s5906_s16 = smov 48  }
  0x4e   :  { %v136_v10 = vunpack.c.0.s8 %v135_v8  ;;  %v6044_v17 = vsub.s32 0, %v6037_v11  ;;  %v4969_v46 = vunpack.c.h.bf16 %v5215_v28  ;;  %v4972_v48 = vunpack.c.l.bf16 %v5216_v44  ;;  %v5540_v18 = vld [vmem:[#allocation8] sm:$0xff]   ;;  %s5907_s10 = smov 96   ;;  %s5908_s12 = smov [#allocation13]  }
  0x4f   :  { %v4977_v53 = vunpack.c.h.bf16 %v5217_v35  ;;  %v4980_v55 = vunpack.c.l.bf16 %v5218_v51  ;;  %v4973_v60 = vunpack.c.h.bf16 %v5216_v44  ;;  %v4984_v62 = vunpack.c.l.bf16 %v5219_v58  ;;  %5343 = vmatpush3.bf16.msra.mxu0 %v5540_v18  ;;  %s4799_s15 = sshll.u32 %s5908_s12, 4  ;;  %s4800_s15 = int_to_ptr.vmem [resolvable:$true] %s4799_s15 }
  0x50   :  { %v6040_v12 = vsub.s32 %v136_v10, %v6037_v11  ;;  %v4985_v10 = vunpack.c.h.bf16 %v5219_v58  ;;  %5344 = vmatprep.subr.bf16.mxu0 %v5900_v5  ;;  %vm5903_vm1 = vmmov 0   ;;  %vm313_vm2 = vcmask 130112   ;;  %p5867_p5 = scmp.lt.s32.totalorder %s4800_s15, %s4800_s15 }
  0x51   :  { %5348 = vmatprep.mubr.msk.bf16.mxu0 %vm5903_vm1, %v5900_v5  ;;  %5360 = vmatprep.mubr.msk.bf16.mxu1 %vm5903_vm1, %v5900_v5  ;;  %vm378_vm3 = vcmask 1041409   ;;  %vm380_vm4 = vcmask 1042434   ;;  %vm382_vm5 = vcmask 1043459   ;;  %vm384_vm6 = vcmask 1044484  }
  0x52   :  { %vm386_vm7 = vcmask 1045509   ;;  %vm388_vm8 = vcmask 1046534   ;;  %vm390_vm9 = vcmask 1047559   ;;  %vm397_vm10 = vcmask 130048  }
  0x53   :  { %vm431_vm11 = vcmask 392192   ;;  %vm553_vm12 = vcmask 523264  }
  0xd8   :  { %v108_v1 = vpop.xlane.xlu0 %107 }
  0xd9   :  { %v109_v2 = vsub.f32 %v4813_v0, %v108_v1  ;;  %v5220_v1 = vld [vmem:[#allocation5 + $0x38] sm:$0xff]  }
  0xda   :  { %v4989_v15 = vunpack.c.h.bf16 %v5220_v1 }
  0xdb   :  { %v110_v3 = vmul.f32 1.442695, %v109_v2 }
  0xdd   :  { %5614 = vpow2.f32 %v110_v3  ;;  %v4981_v3 = vunpack.c.h.bf16 %v5218_v51 }
  0xe7   :  { %v5615_v4 = vpop.eup %5614 }
  0xe8   :  { %112 = vadd.xlane.f32.xlu0 %v5615_v4 }
 0x175   :  { %v113_v6 = vpop.xlane.xlu0 %112 }
 0x176   :  { %5616 = vrcp.f32 %v113_v6  ;;  %v4988_v6 = vunpack.c.l.bf16 %v5220_v1 }
 0x180   :  { %v5617_v13 = vpop.eup %5616 }
 0x181   :  { %v115_v14 = vmul.f32 %v5617_v13, %v5615_v4 }
 0x183   :  { %v140_v16 = vrot.slane %v115_v14, %v6040_v12  ;;  %v133_v19 = vcombine.high %v115_v14, %v115_v14 }
 0x185   :  { %v156_v21 = vrot.slane %v140_v16, %v6040_v12  ;;  %v148_v22 = vcombine.high %v140_v16, %v140_v16  ;;  %v147_v27 = vrot.slane %v133_v19, %v6040_v12  ;;  %v100_v19 = vld [vmem:[#allocation2] sm:$0xff] }
 0x187   :  { %v201_v24 = vrot.slane %v156_v21, %v6044_v17  ;;  %v170_v25 = vrot.slane %v148_v22, %v6040_v12  ;;  %v178_v26 = vcombine.high %v156_v21, %v156_v21  ;;  %v163_v36 = vrot.slane %v147_v27, %v6040_v12  ;;  %v5542_v21 = vld [vmem:[#allocation8 + $0x10] sm:$0xff]  }
 0x188   :  { %v149_v43 = vcombine.high %v147_v27, %v147_v27 }
 0x189   :  { %v238_v29 = vmul.f32 %v4960_v20, %v201_v24  ;;  %v205_v30 = vrot.slane %v170_v25, %v6044_v17  ;;  %v209_v34 = vrot.slane %v178_v26, %v6044_v17  ;;  %v239_v37 = vmul.f32 %v4961_v31, %v201_v24  ;;  %v5541_v20 = vld [vmem:[#allocation8 + $0x8] sm:$0xff]  }
 0x18a   :  { %v217_v41 = vrot.slane %v163_v36, %v6044_v17  ;;  %v180_v42 = vcombine.high %v170_v25, %v170_v25  ;;  %v177_v50 = vrot.slane %v149_v43, %v6040_v12  ;;  %v179_v57 = vcombine.high %v163_v36, %v163_v36  ;;  %5345 = vmatpush3.bf16.msra.mxu0 %v5541_v20 }
 0x18b   :  { %254 = vadd.xlane.f32.xlu1 %v238_v29  ;;  %v240_v32 = vmul.f32 %v4964_v23, %v205_v30  ;;  %v242_v40 = vmul.f32 %v4968_v33, %v209_v34  ;;  %v241_v45 = vmul.f32 %v4965_v38, %v205_v30  ;;  %v243_v52 = vmul.f32 %v4969_v46, %v209_v34 }
 0x18c   :  { %v246_v47 = vmul.f32 %v4976_v39, %v217_v41  ;;  %v213_v49 = vrot.slane %v180_v42, %v6044_v17  ;;  %v221_v56 = vrot.slane %v177_v50, %v6044_v17  ;;  %v247_v59 = vmul.f32 %v4977_v53, %v217_v41  ;;  %5346 = vmatprep.subr.bf16.mxu0 %v5900_v5 }
 0x18d   :  { %258 = vadd.xlane.f32.xlu0 %v240_v32  ;;  %v225_v63 = vrot.slane %v179_v57, %v6044_v17  ;;  %v181_v0 = vcombine.high %v177_v50, %v177_v50  ;;  %v303_v29 = vand.u32 127, %v137_v9 }
 0x18e   :  { %v244_v54 = vmul.f32 %v4972_v48, %v213_v49  ;;  %v248_v61 = vmul.f32 %v4980_v55, %v221_v56  ;;  %v245_v2 = vmul.f32 %v4973_v60, %v213_v49  ;;  %v249_v8 = vmul.f32 %v4981_v3, %v221_v56  ;;  %5347 = vmatpush3.bf16.msra.mxu0 %v5542_v21 }
 0x18f   :  { %256 = vadd.xlane.f32.xlu1 %v239_v37  ;;  %v250_v4 = vmul.f32 %v4984_v62, %v225_v63  ;;  %v229_v7 = vrot.slane %v181_v0, %v6044_v17  ;;  %v251_v14 = vmul.f32 %v4985_v10, %v225_v63  ;;  %v308_v31 = vadd.s32 4294967288, %v303_v29 }
 0x190   :  { %v6070_v36 = vsub.s32 %v303_v29, %v6037_v11 }
 0x191   :  { %262 = vadd.xlane.f32.xlu0 %v242_v40  ;;  %v252_v13 = vmul.f32 %v4988_v6, %v229_v7  ;;  %v253_v16 = vmul.f32 %v4989_v15, %v229_v7  ;;  %v6067_v34 = vsub.s32 %v308_v31, %v6037_v11  ;;  %v6108_v15 = vld [vmem:[%s6911_s2] ss:$0 sm:$0xff] }
 0x193   :  { %260 = vadd.xlane.f32.xlu1 %v241_v45 }
 0x195   :  { %270 = vadd.xlane.f32.xlu0 %v246_v47 }
 0x197   :  { %264 = vadd.xlane.f32.xlu1 %v243_v52 }
 0x199   :  { %266 = vadd.xlane.f32.xlu0 %v244_v54 }
 0x19b   :  { %272 = vadd.xlane.f32.xlu1 %v247_v59 }
 0x19d   :  { %274 = vadd.xlane.f32.xlu0 %v248_v61 }
 0x19f   :  { %268 = vadd.xlane.f32.xlu1 %v245_v2 }
 0x1a1   :  { %278 = vadd.xlane.f32.xlu0 %v250_v4 }
 0x1a3   :  { %276 = vadd.xlane.f32.xlu1 %v249_v8 }
 0x1a5   :  { %282 = vadd.xlane.f32.xlu0 %v252_v13 }
 0x1a7   :  { %280 = vadd.xlane.f32.xlu1 %v251_v14 }
 0x1ab   :  { %284 = vadd.xlane.f32.xlu1 %v253_v16 }
 0x1bb   :  { %394 = vrot.lane.b32.xlu0 %v100_v19, %s5902_s5 }
 0x218   :  { %v255_v22 = vpop.xlane.xlu1 %254 }
 0x219   :  { %v307_v44 = vrot.slane %v255_v22, %v6070_v36 }
 0x21a   :  { %v259_v23 = vpop.xlane.xlu0 %258 }
 0x21b   :  { %v318_v39 = vrot.slane %v259_v23, %v6070_v36  ;;  %v103_v23 = vld [vmem:[#allocation3] sm:$0xff] }
 0x21c   :  { %v257_v24 = vpop.xlane.xlu1 %256 }
 0x21d   :  { %v312_v40 = vrot.slane %v257_v24, %v6067_v34 }
 0x21e   :  { %v263_v25 = vpop.xlane.xlu0 %262 }
 0x21f   :  { %v327_v41 = vrot.slane %v263_v25, %v6070_v36  ;;  %v314_v48 = vsel %vm313_vm2, %v312_v40, %v307_v44  ;;  %v5546_v40 = vld [vmem:[#allocation10 + $0x18] sm:$0xff]   ;;  %v105_v44 = vld [vmem:[#allocation3 + $0x8] sm:$0xff] }
 0x220   :  { %v261_v26 = vpop.xlane.xlu1 %260 }
 0x221   :  { %v322_v37 = vrot.slane %v261_v26, %v6067_v34 }
 0x222   :  { %v271_v27 = vpop.xlane.xlu0 %270 }
 0x223   :  { %v323_v45 = vsel %vm313_vm2, %v322_v37, %v318_v39  ;;  %v345_v57 = vrot.slane %v271_v27, %v6070_v36  ;;  %v5544_v37 = vld [vmem:[#allocation10 + $0x8] sm:$0xff]  }
 0x224   :  { %v265_v28 = vpop.xlane.xlu1 %264  ;;  %v379_v51 = vsel %vm378_vm3, %v323_v45, %v314_v48 }
 0x225   :  { %v331_v38 = vrot.slane %v265_v28, %v6067_v34 }
 0x226   :  { %v267_v30 = vpop.xlane.xlu0 %266 }
 0x227   :  { %v336_v46 = vrot.slane %v267_v30, %v6070_v36  ;;  %v332_v47 = vsel %vm313_vm2, %v331_v38, %v327_v41  ;;  %v5545_v38 = vld [vmem:[#allocation10 + $0x10] sm:$0xff]  }
 0x228   :  { %v273_v32 = vpop.xlane.xlu1 %272  ;;  %v381_v54 = vsel %vm380_vm4, %v332_v47, %v379_v51 }
 0x229   :  { %v349_v52 = vrot.slane %v273_v32, %v6067_v34 }
 0x22a   :  { %v275_v33 = vpop.xlane.xlu0 %274 }
 0x22b   :  { %v354_v55 = vrot.slane %v275_v33, %v6070_v36  ;;  %v350_v62 = vsel %vm313_vm2, %v349_v52, %v345_v57 }
 0x22c   :  { %v269_v35 = vpop.xlane.xlu1 %268 }
 0x22d   :  { %v340_v9 = vrot.slane %v269_v35, %v6067_v34  ;;  %v5543_v35 = vld [vmem:[#allocation10] sm:$0xff]  }
 0x22e   :  { %v279_v42 = vpop.xlane.xlu0 %278  ;;  %5353 = vmatpush3.bf16.msra.mxu1 %v5543_v35 }
 0x22f   :  { %v341_v49 = vsel %vm313_vm2, %v340_v9, %v336_v46  ;;  %v363_v59 = vrot.slane %v279_v42, %v6070_v36  ;;  %5354 = vmatprep.subr.bf16.mxu1 %v5900_v5  ;;  %v102_v9 = vld [vmem:[#allocation2 + $0x8] sm:$0xff] }
 0x230   :  { %v277_v43 = vpop.xlane.xlu1 %276  ;;  %v383_v58 = vsel %vm382_vm5, %v341_v49, %v381_v54 }
 0x231   :  { %v358_v50 = vrot.slane %v277_v43, %v6067_v34  ;;  %v385_v3 = vsel %vm384_vm6, %v350_v62, %v383_v58 }
 0x232   :  { %v283_v60 = vpop.xlane.xlu0 %282  ;;  %5355 = vmatpush3.bf16.msra.mxu1 %v5544_v37 }
 0x233   :  { %v359_v61 = vsel %vm313_vm2, %v358_v50, %v354_v55  ;;  %v372_v1 = vrot.slane %v283_v60, %v6070_v36  ;;  %5356 = vmatprep.subr.bf16.mxu1 %v5900_v5  ;;  %v6134_v50 = vld [vmem:[%s6913_s4] ss:$0 sm:$0xff] }
 0x234   :  { %v281_v53 = vpop.xlane.xlu1 %280  ;;  %v387_v4 = vsel %vm386_vm7, %v359_v61, %v385_v3  ;;  %v6142_v3 = vld [vmem:[#allocation11] ss:$8 sps:$4 sm:$0xff]  }
 0x235   :  { %v367_v56 = vrot.slane %v281_v53, %v6067_v34 }
 0x236   :  { %v395_v6 = vpop.permute.xlu0 %394  ;;  %5357 = vmatpush3.bf16.msra.mxu1 %v5545_v38  ;;  %v4991_v38 = vld [vmem:[#allocation5 + $0x40] sm:$0xff]  }
 0x237   :  { %v368_v63 = vsel %vm313_vm2, %v367_v56, %v363_v59  ;;  %5358 = vmatprep.subr.bf16.mxu1 %v5900_v5 }
 0x238   :  { %v285_v0 = vpop.xlane.xlu1 %284  ;;  %v389_v8 = vsel %vm388_vm8, %v368_v63, %v387_v4  ;;  %v6144_v4 = vld [vmem:[#allocation11 + $0x4] ss:$8 sps:$4 sm:$0xff]  }
 0x239   :  { %v376_v2 = vrot.slane %v285_v0, %v6067_v34  ;;  %668 = vmatprep.subr.bf16.mxu0 %v6144_v4 }
 0x23a   :  { %5359 = vmatpush3.bf16.msra.mxu1 %v5546_v40  ;;  %v5221_v40 = vld [vmem:[#allocation5 + $0x48] sm:$0xff]  }
 0x23b   :  { %v377_v7 = vsel %vm313_vm2, %v376_v2, %v372_v1  ;;  %5364 = vmatprep.subr.bf16.mxu1 %v5900_v5 }
 0x23c   :  { %v391_v10 = vsel %vm390_vm9, %v377_v7, %v389_v8  ;;  %v5905_v7 = vmov 0   ;;  %v6151_v8 = vld [vmem:[#allocation11 + $0x10] ss:$8 sps:$4 sm:$0xff]  }
 0x23d   :  { %v398_v13 = vsel %vm397_vm10, %v391_v10, %v395_v6  ;;  %v6146_v6 = vld [vmem:[#allocation11 + $0x14] ss:$8 sps:$4 sm:$0xff]  }
 0x23e   :  { %v399_v14 = vpack.c.bf16 %v398_v13, %v398_v13 }
 0x240   :  { %5349 = vmatmul.mubr.msk.bf16.vlgmr.msra.gmra.mrb[0].mxu0 %vm431_vm11, %v399_v14 }
 0x241   :  { %700 = vmatprep.mubr.bf16.mxu0 %v5905_v7  ;;  %669 = vmatpush1.bf16.msra.mxu0 %v6142_v3 }
 0x242   :  { %670 = vmatprep.subr.bf16.mxu0 %v6146_v6 }
 0x245   :  { %671 = vmatpush1.bf16.msra.mxu0 %v6151_v8 }
 0x246   :  { %5374 = vmatprep.subr.bf16.mxu0 %v5900_v5 }
 0x313   :  { %v469_v16 = vpop.f32.mrb[0].mxu0 }
 0x314   :  { %v470_v18 = vadd.f32 %v6108_v15, %v469_v16  ;;  %v5350_v19 = vpop.f32.mrb[1].mxu0 }
 0x315   :  { %v472_v20 = vpop.f32.mrb[2].mxu0  ;;  %v630_v19 = vld [vmem:[%s6915_s6] sm:$0x3] }
 0x316   :  { %5618 = vtanh.f32 %v470_v18  ;;  %v5351_v21 = vpop.f32.mrb[3].mxu0  ;;  %v4819_v24 = vmul.f32 -1.442695, %v470_v18  ;;  %v6169_v20 = vsub.s32 1, %v6037_v11 }
 0x317   :  { %v635_v21 = vrot.slane %v630_v19, %v6044_v17 }
 0x318   :  { %5620 = vpow2.f32 %v4819_v24 }
 0x320   :  { %v5619_v22 = vpop.eup %5618 }
 0x321   :  { %488 = vrot.lane.b32.xlu1 %v5619_v22, %s5894_s13  ;;  %v639_v22 = vrot.slane %v630_v19, %v6169_v20 }
 0x322   :  { %v5621_v25 = vpop.eup %5620 }
 0x323   :  { %v478_v26 = vadd.f32 1.0, %v5621_v25 }
 0x325   :  { %483 = vrot.lane.b32.xlu1 %v103_v23, %s5904_s9  ;;  %5622 = vrcp.f32 %v478_v26 }
 0x32f   :  { %v5623_v27 = vpop.eup %5622 }
 0x393   :  { %v489_v28 = vpop.permute.xlu1 %488 }
 0x394   :  { %v491_v29 = vmul.f32 %v5623_v27, %v489_v28 }
 0x396   :  { %493 = vrot.lane.b32.xlu1 %v491_v29, %s5904_s9 }
 0x397   :  { %v484_v30 = vpop.permute.xlu1 %483 }
 0x398   :  { %v486_v31 = vmul.f32 %v5623_v27, %v484_v30 }
 0x408   :  { %v494_v32 = vpop.permute.xlu1 %493 }
 0x409   :  { %v6114_v33 = vadd.f32 %v494_v32, %v486_v31 }
 0x40b   :  { %5624 = vtanh.f32 %v6114_v33 }
 0x415   :  { %v5625_v39 = vpop.eup %5624 }
 0x416   :  { %499 = vrot.lane.b32.xlu0 %v5625_v39, %s5894_s13 }
 0x488   :  { %v500_v41 = vpop.permute.xlu0 %499 }
 0x489   :  { %v6122_v42 = vmul.f32 %v5623_v27, %v500_v41  ;;  %v4992_v41 = vunpack.c.l.bf16 %v4991_v38 }
 0x48b   :  { %v5535_v43 = vpack.i.bf16 %v102_v9, %v6122_v42 }
 0x48d   :  { %5536 = vrot.lane.b32.xlu1 %v5535_v43, %s5904_s9 }
 0x491   :  { %605 = vrot.lane.b32.xlu1 %v105_v44, %s5904_s9 }
 0x4ff   :  { %v5537_v45 = vpop.permute.xlu1 %5536 }
 0x500   :  { %v5539_v46 = vunpack.i.h.bf16 %v5537_v45  ;;  %v5538_v47 = vunpack.i.l.bf16 %v5537_v45  ;;  %v4996_v45 = vunpack.c.l.bf16 %v5221_v40 }
 0x502   :  { %v512_v48 = vsel %vm87_vm0, %v5538_v47, %v5539_v46 }
 0x503   :  { %v513_v49 = vpack.c.bf16 %v512_v48, %v512_v48  ;;  %v606_v63 = vpop.permute.xlu1 %605 }
 0x505   :  { %5361 = vmatmul.mubr.msk.bf16.vlgmr.msra.gmra.mrb[0].mxu1 %vm553_vm12, %v513_v49 }
 0x506   :  { %5370 = vmatprep.mubr.msk.bf16.mxu1 %vm5903_vm1, %v5900_v5 }
 0x5d8   :  { %v591_v51 = vpop.f32.mrb[0].mxu1 }
 0x5d9   :  { %v592_v52 = vadd.f32 %v6134_v50, %v591_v51  ;;  %v5362_v53 = vpop.f32.mrb[1].mxu1  ;;  %v5222_v51 = vld [vmem:[#allocation5 + $0x50] sm:$0xff]  }
 0x5da   :  { %v594_v54 = vpop.f32.mrb[2].mxu1 }
 0x5db   :  { %5626 = vtanh.f32 %v592_v52  ;;  %v5363_v55 = vpop.f32.mrb[3].mxu1  ;;  %v4826_v57 = vmul.f32 -1.442695, %v592_v52  ;;  %v4993_v54 = vunpack.c.h.bf16 %v4991_v38 }
 0x5dd   :  { %5628 = vpow2.f32 %v4826_v57 }
 0x5e5   :  { %v5627_v56 = vpop.eup %5626 }
 0x5e6   :  { %610 = vrot.lane.b32.xlu0 %v5627_v56, %s5894_s13  ;;  %v5000_v56 = vunpack.c.l.bf16 %v5222_v51 }
 0x5e7   :  { %v5629_v58 = vpop.eup %5628 }
 0x5e8   :  { %v600_v59 = vadd.f32 1.0, %v5629_v58  ;;  %v5224_v58 = vld [vmem:[#allocation5 + $0x60] sm:$0xff]  }
 0x5ea   :  { %5630 = vrcp.f32 %v600_v59 }
 0x5f4   :  { %v5631_v60 = vpop.eup %5630 }
 0x5f5   :  { %v608_v0 = vmul.f32 %v5631_v60, %v606_v63 }
 0x658   :  { %v611_v61 = vpop.permute.xlu0 %610 }
 0x659   :  { %v613_v62 = vmul.f32 %v5631_v60, %v611_v61  ;;  %v4997_v61 = vunpack.c.h.bf16 %v5221_v40  ;;  %v5227_v40 = vld [vmem:[#allocation5 + $0x78] sm:$0xff]  }
 0x65b   :  { %615 = vrot.lane.b32.xlu0 %v613_v62, %s5904_s9  ;;  %v5008_v62 = vunpack.c.l.bf16 %v5224_v58 }
 0x6cd   :  { %v616_v1 = vpop.permute.xlu0 %615 }
 0x6ce   :  { %v6139_v2 = vadd.f32 %v616_v1, %v608_v0 }
 0x6d0   :  { %5632 = vtanh.f32 %v6139_v2 }
 0x6da   :  { %v5633_v10 = vpop.eup %5632 }
 0x6db   :  { %621 = vrot.lane.b32.xlu1 %v5633_v10, %s5894_s13 }
 0x74d   :  { %v622_v13 = vpop.permute.xlu1 %621 }
 0x74e   :  { %v6157_v14 = vmul.f32 %v5631_v60, %v622_v13  ;;  %v5223_v13 = vld [vmem:[#allocation5 + $0x58] sm:$0xff]  }
 0x750   :  { %v625_v16 = vpack.c.bf16 %v6157_v14, %v6157_v14 }
 0x752   :  { %643 = vrot.lane.b32.xlu0 %v625_v16, %s5904_s9 }
 0x7c4   :  { %v644_v18 = vpop.permute.xlu0 %643 }
 0x7c5   :  { %4831 = vmatmul.mubr.msk.bf16.vlgmr.msra.gmra.mrb[4].mxu0 %vm87_vm0, %v644_v18  ;;  %v5001_v18 = vunpack.c.h.bf16 %v5222_v51  ;;  %v5021_v51 = vunpack.c.h.bf16 %v5227_v40 }
 0x7c6   :  { %5382 = vmatprep.mubr.msk.bf16.mxu0 %vm5903_vm1, %v5900_v5 }
 0x898   :  { %v702_v23 = vpop.f32.mrb[4].mxu0 }
 0x899   :  { %v703_v24 = vadd.f32 %v702_v23, %v635_v21  ;;  %v704_v25 = vpop.f32.mrb[5].mxu0  ;;  %v5004_v21 = vunpack.c.l.bf16 %v5223_v13 }
 0x89a   :  { %v705_v26 = vadd.f32 %v704_v25, %v639_v22  ;;  %v706_v27 = vpop.f32.mrb[6].mxu0 }
 0x89b   :  { %v707_v28 = vpop.f32.mrb[7].mxu0  ;;  %710 = vmax.xlane.f32.xlu1 %v703_v24 }
 0x89c   :  { %709 = vst [vmem:[#allocation13] sm:$0xff] %v705_v26  ;;  %v5009_v26 = vunpack.c.h.bf16 %v5224_v58 }
 0x928   :  { %v711_v29 = vpop.xlane.xlu1 %710 }
 0x929   :  { %v712_v30 = vsub.f32 %v703_v24, %v711_v29  ;;  %v5225_v24 = vld [vmem:[#allocation5 + $0x68] sm:$0xff]  }
 0x92a   :  { %v5012_v28 = vunpack.c.l.bf16 %v5225_v24 }
 0x92b   :  { %v713_v31 = vmul.f32 1.442695, %v712_v30 }
 0x92d   :  { %5634 = vpow2.f32 %v713_v31  ;;  %v5226_v31 = vld [vmem:[#allocation5 + $0x70] sm:$0xff]  }
 0x937   :  { %v5635_v32 = vpop.eup %5634 }
 0x938   :  { %715 = vadd.xlane.f32.xlu0 %v5635_v32 }
 0x9c5   :  { %v716_v11 = vpop.xlane.xlu0 %715 }
 0x9c6   :  { %5636 = vrcp.f32 %v716_v11  ;;  %v5005_v11 = vunpack.c.h.bf16 %v5223_v13 }
 0x9d0   :  { %v5637_v35 = vpop.eup %5636 }
 0x9d1   :  { %v718_v37 = vmul.f32 %v5637_v35, %v5635_v32 }
 0x9d3   :  { %v744_v39 = vrot.slane %v718_v37, %v6040_v12  ;;  %v737_v9 = vcombine.high %v718_v37, %v718_v37  ;;  %v5016_v37 = vunpack.c.l.bf16 %v5226_v31 }
 0x9d5   :  { %v760_v43 = vrot.slane %v744_v39, %v6040_v12  ;;  %v752_v44 = vcombine.high %v744_v39, %v744_v39  ;;  %v751_v49 = vrot.slane %v737_v9, %v6040_v12 }
 0x9d7   :  { %v805_v46 = vrot.slane %v760_v43, %v6044_v17  ;;  %v774_v47 = vrot.slane %v752_v44, %v6040_v12  ;;  %v782_v48 = vcombine.high %v760_v43, %v760_v43  ;;  %v767_v59 = vrot.slane %v751_v49, %v6040_v12 }
 0x9d8   :  { %v753_v10 = vcombine.high %v751_v49, %v751_v49  ;;  %v5020_v44 = vunpack.c.l.bf16 %v5227_v40 }
 0x9d9   :  { %v842_v52 = vmul.f32 %v4992_v41, %v805_v46  ;;  %v809_v53 = vrot.slane %v774_v47, %v6044_v17  ;;  %v813_v57 = vrot.slane %v782_v48, %v6044_v17  ;;  %v843_v60 = vmul.f32 %v4993_v54, %v805_v46  ;;  %v5554_v54 = vld [vmem:[#allocation8 + $0x8] sm:$0xff]  }
 0x9da   :  { %v821_v0 = vrot.slane %v767_v59, %v6044_v17  ;;  %v784_v1 = vcombine.high %v774_v47, %v774_v47  ;;  %v781_v23 = vrot.slane %v753_v10, %v6040_v12  ;;  %v783_v30 = vcombine.high %v767_v59, %v767_v59 }
 0x9db   :  { %858 = vadd.xlane.f32.xlu0 %v842_v52  ;;  %v844_v55 = vmul.f32 %v4996_v45, %v809_v53  ;;  %v846_v63 = vmul.f32 %v5000_v56, %v813_v57  ;;  %v845_v16 = vmul.f32 %v4997_v61, %v809_v53  ;;  %v847_v25 = vmul.f32 %v5001_v18, %v813_v57  ;;  %v5553_v53 = vld [vmem:[#allocation8] sm:$0xff]  }
 0x9dc   :  { %v850_v19 = vmul.f32 %v5008_v62, %v821_v0  ;;  %v817_v22 = vrot.slane %v784_v1, %v6044_v17  ;;  %v825_v29 = vrot.slane %v781_v23, %v6044_v17  ;;  %v851_v32 = vmul.f32 %v5009_v26, %v821_v0  ;;  %5365 = vmatpush3.bf16.msra.mxu1 %v5553_v53 }
 0x9dd   :  { %862 = vadd.xlane.f32.xlu1 %v844_v55  ;;  %v829_v38 = vrot.slane %v783_v30, %v6044_v17  ;;  %v785_v39 = vcombine.high %v781_v23, %v781_v23  ;;  %v5013_v41 = vunpack.c.h.bf16 %v5225_v24  ;;  %v5017_v47 = vunpack.c.h.bf16 %v5226_v31  ;;  %5366 = vmatprep.subr.bf16.mxu1 %v5900_v5  ;;  %v5555_v55 = vld [vmem:[#allocation8 + $0x10] sm:$0xff]  }
 0x9de   :  { %v848_v27 = vmul.f32 %v5004_v21, %v817_v22  ;;  %v852_v35 = vmul.f32 %v5012_v28, %v825_v29  ;;  %v849_v9 = vmul.f32 %v5005_v11, %v817_v22 }
 0x9df   :  { %860 = vadd.xlane.f32.xlu0 %v843_v60  ;;  %v854_v43 = vmul.f32 %v5016_v37, %v829_v38  ;;  %v833_v45 = vrot.slane %v785_v39, %v6044_v17  ;;  %v853_v46 = vmul.f32 %v5013_v41, %v825_v29  ;;  %v855_v49 = vmul.f32 %v5017_v47, %v829_v38 }
 0x9e0   :  { %5367 = vmatpush3.bf16.msra.mxu1 %v5554_v54 }
 0x9e1   :  { %866 = vadd.xlane.f32.xlu1 %v846_v63  ;;  %v856_v48 = vmul.f32 %v5020_v44, %v833_v45  ;;  %v857_v52 = vmul.f32 %v5021_v51, %v833_v45  ;;  %5368 = vmatprep.subr.bf16.mxu1 %v5900_v5 }
 0x9e3   :  { %864 = vadd.xlane.f32.xlu0 %v845_v16 }
 0x9e4   :  { %5369 = vmatpush3.bf16.msra.mxu1 %v5555_v55 }
 0x9e5   :  { %874 = vadd.xlane.f32.xlu1 %v850_v19  ;;  %1248 = vmatprep.subr.bf16.mxu1 %v6144_v4 }
 0x9e7   :  { %868 = vadd.xlane.f32.xlu0 %v847_v25 }
 0x9e9   :  { %870 = vadd.xlane.f32.xlu1 %v848_v27 }
 0x9eb   :  { %876 = vadd.xlane.f32.xlu0 %v851_v32 }
 0x9ed   :  { %878 = vadd.xlane.f32.xlu1 %v852_v35 }
 0x9ef   :  { %872 = vadd.xlane.f32.xlu0 %v849_v9 }
 0x9f1   :  { %882 = vadd.xlane.f32.xlu1 %v854_v43 }
 0x9f3   :  { %880 = vadd.xlane.f32.xlu0 %v853_v46 }
 0x9f5   :  { %886 = vadd.xlane.f32.xlu1 %v856_v48 }
 0x9f7   :  { %884 = vadd.xlane.f32.xlu0 %v855_v49 }
 0x9fb   :  { %888 = vadd.xlane.f32.xlu0 %v857_v52 }
 0xa06   :  { %986 = vrot.lane.b32.xlu1 %v6122_v42, %s5906_s16 }
 0xa68   :  { %v859_v56 = vpop.xlane.xlu0 %858 }
 0xa69   :  { %v909_v24 = vrot.slane %v859_v56, %v6070_v36 }
 0xa6a   :  { %v863_v57 = vpop.xlane.xlu1 %862 }
 0xa6b   :  { %v918_v16 = vrot.slane %v863_v57, %v6070_v36 }
 0xa6c   :  { %v861_v58 = vpop.xlane.xlu0 %860 }
 0xa6d   :  { %v913_v18 = vrot.slane %v861_v58, %v6067_v34 }
 0xa6e   :  { %v867_v59 = vpop.xlane.xlu1 %866 }
 0xa6f   :  { %v927_v21 = vrot.slane %v867_v59, %v6070_v36  ;;  %v914_v28 = vsel %vm313_vm2, %v913_v18, %v909_v24 }
 0xa70   :  { %v865_v60 = vpop.xlane.xlu0 %864 }
 0xa71   :  { %v922_v10 = vrot.slane %v865_v60, %v6067_v34 }
 0xa72   :  { %v875_v61 = vpop.xlane.xlu1 %874 }
 0xa73   :  { %v923_v25 = vsel %vm313_vm2, %v922_v10, %v918_v16  ;;  %v945_v39 = vrot.slane %v875_v61, %v6070_v36 }
 0xa74   :  { %v869_v62 = vpop.xlane.xlu0 %868  ;;  %v978_v31 = vsel %vm378_vm3, %v923_v25, %v914_v28 }
 0xa75   :  { %v931_v13 = vrot.slane %v869_v62, %v6067_v34 }
 0xa76   :  { %v871_v63 = vpop.xlane.xlu1 %870 }
 0xa77   :  { %v936_v26 = vrot.slane %v871_v63, %v6070_v36  ;;  %v932_v27 = vsel %vm313_vm2, %v931_v13, %v927_v21  ;;  %v5556_v21 = vld [vmem:[#allocation10] sm:$0xff]  }
 0xa78   :  { %v877_v42 = vpop.xlane.xlu0 %876  ;;  %v979_v35 = vsel %vm380_vm4, %v932_v27, %v978_v31  ;;  %5375 = vmatpush3.bf16.msra.mxu0 %v5556_v21 }
 0xa79   :  { %v949_v32 = vrot.slane %v877_v42, %v6067_v34  ;;  %5376 = vmatprep.subr.bf16.mxu0 %v5900_v5 }
 0xa7a   :  { %v879_v0 = vpop.xlane.xlu1 %878 }
 0xa7b   :  { %v954_v37 = vrot.slane %v879_v0, %v6070_v36  ;;  %v950_v44 = vsel %vm313_vm2, %v949_v32, %v945_v39 }
 0xa7c   :  { %v873_v1 = vpop.xlane.xlu0 %872 }
 0xa7d   :  { %v940_v19 = vrot.slane %v873_v1, %v6067_v34 }
 0xa7e   :  { %v883_v22 = vpop.xlane.xlu1 %882 }
 0xa7f   :  { %v941_v29 = vsel %vm313_vm2, %v940_v19, %v936_v26  ;;  %v963_v9 = vrot.slane %v883_v22, %v6070_v36  ;;  %v5558_v22 = vld [vmem:[#allocation10 + $0x10] sm:$0xff]  }
 0xa80   :  { %v881_v23 = vpop.xlane.xlu0 %880  ;;  %v980_v40 = vsel %vm382_vm5, %v941_v29, %v979_v35 }
 0xa81   :  { %v958_v30 = vrot.slane %v881_v23, %v6067_v34  ;;  %v981_v47 = vsel %vm384_vm6, %v950_v44, %v980_v40 }
 0xa82   :  { %v887_v41 = vpop.xlane.xlu1 %886 }
 0xa83   :  { %v959_v43 = vsel %vm313_vm2, %v958_v30, %v954_v37  ;;  %v972_v48 = vrot.slane %v887_v41, %v6070_v36 }
 0xa84   :  { %v885_v11 = vpop.xlane.xlu0 %884  ;;  %v982_v51 = vsel %vm386_vm7, %v959_v43, %v981_v47 }
 0xa85   :  { %v967_v38 = vrot.slane %v885_v11, %v6067_v34 }
 0xa86   :  { %v987_v54 = vpop.permute.xlu1 %986 }
 0xa87   :  { %v968_v45 = vsel %vm313_vm2, %v967_v38, %v963_v9 }
 0xa88   :  { %v889_v46 = vpop.xlane.xlu0 %888  ;;  %v983_v52 = vsel %vm388_vm8, %v968_v45, %v982_v51 }
 0xa89   :  { %v976_v49 = vrot.slane %v889_v46, %v6067_v34 }
 0xa8b   :  { %v977_v53 = vsel %vm313_vm2, %v976_v49, %v972_v48 }
 0xa8c   :  { %v984_v55 = vsel %vm390_vm9, %v977_v53, %v983_v52 }
 0xa8d   :  { %v989_v56 = vsel %vm397_vm10, %v984_v55, %v987_v54 }
 0xa8e   :  { %v990_v57 = vpack.c.bf16 %v989_v56, %v989_v56 }
 0xa90   :  { %5371 = vmatmul.mubr.msk.bf16.vlgmr.msra.gmra.mrb[4].mxu1 %vm431_vm11, %v990_v57 }
 0xa91   :  { %1249 = vmatpush1.bf16.msra.mxu1 %v6142_v3  ;;  %1280 = vmatprep.mubr.bf16.mxu1 %v5905_v7 }
 0xa92   :  { %1250 = vmatprep.subr.bf16.mxu1 %v6146_v6 }
 0xa95   :  { %1251 = vmatpush1.bf16.msra.mxu1 %v6151_v8 }
 0xa96   :  { %5396 = vmatprep.subr.bf16.mxu1 %v5900_v5 }
 0xb63   :  { %v1059_v58 = vpop.f32.mrb[4].mxu1 }
 0xb64   :  { %v1060_v59 = vadd.f32 %v6108_v15, %v1059_v58  ;;  %v5372_v60 = vpop.f32.mrb[5].mxu1 }
 0xb65   :  { %v1062_v61 = vpop.f32.mrb[6].mxu1 }
 0xb66   :  { %5638 = vtanh.f32 %v1060_v59  ;;  %v5373_v62 = vpop.f32.mrb[7].mxu1  ;;  %v4837_v42 = vmul.f32 -1.442695, %v1060_v59 }
 0xb68   :  { %5640 = vpow2.f32 %v4837_v42 }
 0xb70   :  { %v5639_v63 = vpop.eup %5638 }
 0xb71   :  { %1074 = vrot.lane.b32.xlu0 %v5639_v63, %s5894_s13 }
 0xb72   :  { %v5641_v0 = vpop.eup %5640 }
 0xb73   :  { %v1068_v1 = vadd.f32 1.0, %v5641_v0 }
 0xb75   :  { %1094 = vrot.lane.b32.xlu0 %v6157_v14, %s5894_s13  ;;  %5642 = vrcp.f32 %v1068_v1  ;;  %v5557_v14 = vld [vmem:[#allocation10 + $0x8] sm:$0xff]  }
 0xb76   :  { %5377 = vmatpush3.bf16.msra.mxu0 %v5557_v14 }
 0xb77   :  { %5378 = vmatprep.subr.bf16.mxu0 %v5900_v5 }
 0xb7a   :  { %5379 = vmatpush3.bf16.msra.mxu0 %v5558_v22 }
 0xb7b   :  { %5380 = vmatprep.subr.bf16.mxu0 %v5900_v5 }
 0xb7f   :  { %v5643_v10 = vpop.eup %5642 }
 0xb80   :  { %v1072_v15 = vmul.f32 %v5643_v10, %v6114_v33  ;;  %v5559_v33 = vld [vmem:[#allocation10 + $0x18] sm:$0xff]  }
 0xb81   :  { %5381 = vmatpush3.bf16.msra.mxu0 %v5559_v33 }
 0xb82   :  { %5386 = vmatprep.subr.bf16.mxu0 %v5900_v5 }
 0xbe3   :  { %v1075_v13 = vpop.permute.xlu0 %1074 }
 0xbe4   :  { %v1077_v16 = vmul.f32 %v5643_v10, %v1075_v13  ;;  %v5023_v13 = vld [vmem:[#allocation5 + $0x80] sm:$0xff]  }
 0xbe5   :  { %v5024_v21 = vunpack.c.l.bf16 %v5023_v13 }
 0xbe6   :  { %1079 = vrot.lane.b32.xlu1 %v1077_v16, %s5904_s9 }
 0xbe7   :  { %v1095_v26 = vpop.permute.xlu0 %1094 }
 0xc58   :  { %v1080_v18 = vpop.permute.xlu1 %1079 }
 0xc59   :  { %v6236_v19 = vadd.f32 %v1080_v18, %v1072_v15  ;;  %v5228_v15 = vld [vmem:[#allocation5 + $0x88] sm:$0xff]  }
 0xc5b   :  { %5644 = vtanh.f32 %v6236_v19 }
 0xc65   :  { %v5645_v23 = vpop.eup %5644 }
 0xc66   :  { %1085 = vrot.lane.b32.xlu1 %v5645_v23, %s5894_s13  ;;  %v5028_v23 = vunpack.c.l.bf16 %v5228_v15 }
 0xcd8   :  { %v1086_v24 = vpop.permute.xlu1 %1085 }
 0xcd9   :  { %v6244_v25 = vmul.f32 %v5643_v10, %v1086_v24 }
 0xcdb   :  { %1090 = vrot.lane.b32.xlu1 %v6244_v25, %s5904_s9 }
 0xd4d   :  { %v1091_v27 = vpop.permute.xlu1 %1090 }
 0xd4e   :  { %v1097_v28 = vsel %vm87_vm0, %v1091_v27, %v1095_v26 }
 0xd4f   :  { %v1098_v29 = vpack.c.bf16 %v1097_v28, %v1097_v28  ;;  %v5229_v28 = vld [vmem:[#allocation5 + $0x90] sm:$0xff]  }
 0xd51   :  { %5383 = vmatmul.mubr.msk.bf16.vlgmr.msra.gmra.mrb[8].mxu0 %vm553_vm12, %v1098_v29 }
 0xd52   :  { %5392 = vmatprep.mubr.msk.bf16.mxu0 %vm5903_vm1, %v5900_v5 }
 0xe24   :  { %v1175_v30 = vpop.f32.mrb[8].mxu0 }
 0xe25   :  { %v1176_v31 = vadd.f32 %v6134_v50, %v1175_v30  ;;  %v5384_v32 = vpop.f32.mrb[9].mxu0 }
 0xe26   :  { %v1178_v11 = vpop.f32.mrb[10].mxu0 }
 0xe27   :  { %5646 = vtanh.f32 %v1176_v31  ;;  %v5385_v35 = vpop.f32.mrb[11].mxu0  ;;  %v4844_v38 = vmul.f32 -1.442695, %v1176_v31  ;;  %v5025_v31 = vunpack.c.h.bf16 %v5023_v13  ;;  %v5032_v11 = vunpack.c.l.bf16 %v5229_v28 }
 0xe29   :  { %5648 = vpow2.f32 %v4844_v38 }
 0xe31   :  { %v5647_v37 = vpop.eup %5646 }
 0xe32   :  { %1190 = vrot.lane.b32.xlu1 %v5647_v37, %s5894_s13  ;;  %v5231_v37 = vld [vmem:[#allocation5 + $0xa0] sm:$0xff]  }
 0xe33   :  { %v5649_v39 = vpop.eup %5648 }
 0xe34   :  { %v1184_v40 = vadd.f32 1.0, %v5649_v39 }
 0xe36   :  { %5650 = vrcp.f32 %v1184_v40  ;;  %v5029_v40 = vunpack.c.h.bf16 %v5228_v15 }
 0xe40   :  { %v5651_v9 = vpop.eup %5650 }
 0xe41   :  { %v1188_v44 = vmul.f32 %v5651_v9, %v6139_v2  ;;  %v1210_v2 = vld [vmem:[%s6915_s6] sm:$0x3] }
 0xe42   :  { %v1215_v53 = vrot.slane %v1210_v2, %v6044_v17  ;;  %v1219_v54 = vrot.slane %v1210_v2, %v6169_v20 }
 0xea4   :  { %v1191_v41 = vpop.permute.xlu1 %1190 }
 0xea5   :  { %v1193_v43 = vmul.f32 %v5651_v9, %v1191_v41 }
 0xea7   :  { %1195 = vrot.lane.b32.xlu0 %v1193_v43, %s5904_s9 }
 0xf19   :  { %v1196_v45 = vpop.permute.xlu0 %1195 }
 0xf1a   :  { %v6256_v46 = vadd.f32 %v1196_v45, %v1188_v44 }
 0xf1c   :  { %5652 = vtanh.f32 %v6256_v46 }
 0xf26   :  { %v5653_v47 = vpop.eup %5652 }
 0xf27   :  { %1201 = vrot.lane.b32.xlu1 %v5653_v47, %s5894_s13  ;;  %v5230_v47 = vld [vmem:[#allocation5 + $0x98] sm:$0xff]  }
 0xf28   :  { %v5036_v2 = vunpack.c.l.bf16 %v5230_v47 }
 0xf99   :  { %v1202_v48 = vpop.permute.xlu1 %1201 }
 0xf9a   :  { %v6260_v49 = vmul.f32 %v5651_v9, %v1202_v48  ;;  %v5040_v9 = vunpack.c.l.bf16 %v5231_v37 }
 0xf9c   :  { %v1205_v51 = vpack.c.bf16 %v6260_v49, %v6260_v49 }
 0xf9e   :  { %1223 = vrot.lane.b32.xlu0 %v1205_v51, %s5904_s9  ;;  %v5033_v51 = vunpack.c.h.bf16 %v5229_v28 }
0x1010   :  { %v1224_v52 = vpop.permute.xlu0 %1223 }
0x1011   :  { %4849 = vmatmul.mubr.msk.bf16.vlgmr.msra.gmra.mrb[8].mxu1 %vm87_vm0, %v1224_v52 }
0x1012   :  { %5404 = vmatprep.mubr.msk.bf16.mxu1 %vm5903_vm1, %v5900_v5 }
0x10e4   :  { %v1282_v55 = vpop.f32.mrb[8].mxu1 }
0x10e5   :  { %v1283_v56 = vadd.f32 %v1282_v55, %v1215_v53  ;;  %v1284_v57 = vpop.f32.mrb[9].mxu1  ;;  %v5232_v55 = vld [vmem:[#allocation5 + $0xa8] sm:$0xff]  }
0x10e6   :  { %v1285_v58 = vadd.f32 %v1284_v57, %v1219_v54  ;;  %v1286_v59 = vpop.f32.mrb[10].mxu1  ;;  %v5041_v57 = vunpack.c.h.bf16 %v5231_v37 }
0x10e7   :  { %v1287_v60 = vpop.f32.mrb[11].mxu1  ;;  %1291 = vmax.xlane.f32.xlu1 %v1283_v56  ;;  %v5044_v59 = vunpack.c.l.bf16 %v5232_v55 }
0x10e8   :  { %1290 = vst [vmem:[#allocation13 + $0x8] sm:$0xff] %v1285_v58 }
0x1174   :  { %v1292_v61 = vpop.xlane.xlu1 %1291 }
0x1175   :  { %v1293_v62 = vsub.f32 %v1283_v56, %v1292_v61 }
0x1177   :  { %v1294_v63 = vmul.f32 1.442695, %v1293_v62  ;;  %v5233_v62 = vld [vmem:[#allocation5 + $0xb0] sm:$0xff]  }
0x1179   :  { %5654 = vpow2.f32 %v1294_v63 }
0x1183   :  { %v5655_v42 = vpop.eup %5654 }
0x1184   :  { %1296 = vadd.xlane.f32.xlu0 %v5655_v42 }
0x1211   :  { %v1297_v0 = vpop.xlane.xlu0 %1296 }
0x1212   :  { %5656 = vrcp.f32 %v1297_v0 }
0x121c   :  { %v5657_v1 = vpop.eup %5656 }
0x121d   :  { %v1299_v10 = vmul.f32 %v5657_v1, %v5655_v42  ;;  %v5037_v42 = vunpack.c.h.bf16 %v5230_v47  ;;  %v5048_v1 = vunpack.c.l.bf16 %v5233_v62 }
0x121f   :  { %v1325_v16 = vrot.slane %v1299_v10, %v6040_v12  ;;  %v1318_v18 = vcombine.high %v1299_v10, %v1299_v10 }
0x1221   :  { %v1341_v14 = vrot.slane %v1325_v16, %v6040_v12  ;;  %v1333_v22 = vcombine.high %v1325_v16, %v1325_v16  ;;  %v1332_v27 = vrot.slane %v1318_v18, %v6040_v12  ;;  %v5234_v16 = vld [vmem:[#allocation5 + $0xb8] sm:$0xff]   ;;  %v5045_v18 = vunpack.c.h.bf16 %v5232_v55 }
0x1223   :  { %v1386_v33 = vrot.slane %v1341_v14, %v6044_v17  ;;  %v1355_v24 = vrot.slane %v1333_v22, %v6040_v12  ;;  %v1363_v26 = vcombine.high %v1341_v14, %v1341_v14  ;;  %v1348_v38 = vrot.slane %v1332_v27, %v6040_v12 }
0x1224   :  { %v1334_v45 = vcombine.high %v1332_v27, %v1332_v27  ;;  %v5052_v14 = vunpack.c.l.bf16 %v5234_v16  ;;  %v5053_v27 = vunpack.c.h.bf16 %v5234_v16 }
0x1225   :  { %v1423_v29 = vmul.f32 %v5024_v21, %v1386_v33  ;;  %v1390_v30 = vrot.slane %v1355_v24, %v6044_v17  ;;  %v1394_v35 = vrot.slane %v1363_v26, %v6044_v17  ;;  %v1424_v39 = vmul.f32 %v5025_v31, %v1386_v33  ;;  %v5562_v31 = vld [vmem:[#allocation8 + $0x10] sm:$0xff]  }
0x1226   :  { %v1402_v43 = vrot.slane %v1348_v38, %v6044_v17  ;;  %v1365_v44 = vcombine.high %v1355_v24, %v1355_v24  ;;  %v1362_v54 = vrot.slane %v1334_v45, %v6040_v12  ;;  %v1364_v61 = vcombine.high %v1348_v38, %v1348_v38 }
0x1227   :  { %1439 = vadd.xlane.f32.xlu0 %v1423_v29  ;;  %v1425_v32 = vmul.f32 %v5028_v23, %v1390_v30  ;;  %v1427_v41 = vmul.f32 %v5032_v11, %v1394_v35  ;;  %v1426_v48 = vmul.f32 %v5029_v40, %v1390_v30  ;;  %v1428_v56 = vmul.f32 %v5033_v51, %v1394_v35  ;;  %v5560_v29 = vld [vmem:[#allocation8] sm:$0xff]   ;;  %v5561_v30 = vld [vmem:[#allocation8 + $0x8] sm:$0xff]  }
0x1228   :  { %v1431_v52 = vmul.f32 %v5040_v9, %v1402_v43  ;;  %v1398_v53 = vrot.slane %v1365_v44, %v6044_v17  ;;  %v1406_v60 = vrot.slane %v1362_v54, %v6044_v17  ;;  %v1432_v63 = vmul.f32 %v5041_v57, %v1402_v43  ;;  %5387 = vmatpush3.bf16.msra.mxu0 %v5560_v29 }
0x1229   :  { %1443 = vadd.xlane.f32.xlu1 %v1425_v32  ;;  %v1410_v10 = vrot.slane %v1364_v61, %v6044_v17  ;;  %v1366_v13 = vcombine.high %v1362_v54, %v1362_v54  ;;  %v5049_v33 = vunpack.c.h.bf16 %v5233_v62  ;;  %5388 = vmatprep.subr.bf16.mxu0 %v5900_v5 }
0x122a   :  { %v1429_v58 = vmul.f32 %v5036_v2, %v1398_v53  ;;  %v1433_v0 = vmul.f32 %v5044_v59, %v1406_v60  ;;  %v1430_v15 = vmul.f32 %v5037_v42, %v1398_v53  ;;  %v1434_v23 = vmul.f32 %v5045_v18, %v1406_v60 }
0x122b   :  { %1441 = vadd.xlane.f32.xlu0 %v1424_v39  ;;  %v1435_v21 = vmul.f32 %v5048_v1, %v1410_v10  ;;  %v1414_v22 = vrot.slane %v1366_v13, %v6044_v17  ;;  %v1436_v26 = vmul.f32 %v5049_v33, %v1410_v10 }
0x122c   :  { %5389 = vmatpush3.bf16.msra.mxu0 %v5561_v30 }
0x122d   :  { %1447 = vadd.xlane.f32.xlu1 %v1427_v41  ;;  %v1437_v24 = vmul.f32 %v5052_v14, %v1414_v22  ;;  %v1438_v28 = vmul.f32 %v5053_v27, %v1414_v22  ;;  %5390 = vmatprep.subr.bf16.mxu0 %v5900_v5 }
0x122f   :  { %1445 = vadd.xlane.f32.xlu0 %v1426_v48 }
0x1230   :  { %5391 = vmatpush3.bf16.msra.mxu0 %v5562_v31 }
0x1231   :  { %1455 = vadd.xlane.f32.xlu1 %v1431_v52  ;;  %1829 = vmatprep.subr.bf16.mxu0 %v6144_v4 }
0x1233   :  { %1449 = vadd.xlane.f32.xlu0 %v1428_v56 }
0x1235   :  { %1451 = vadd.xlane.f32.xlu1 %v1429_v58 }
0x1237   :  { %1457 = vadd.xlane.f32.xlu0 %v1432_v63 }
0x1239   :  { %1459 = vadd.xlane.f32.xlu1 %v1433_v0 }
0x123b   :  { %1453 = vadd.xlane.f32.xlu0 %v1430_v15 }
0x123d   :  { %1463 = vadd.xlane.f32.xlu1 %v1435_v21 }
0x123f   :  { %1461 = vadd.xlane.f32.xlu0 %v1434_v23 }
0x1241   :  { %1467 = vadd.xlane.f32.xlu1 %v1437_v24 }
0x1243   :  { %1465 = vadd.xlane.f32.xlu0 %v1436_v26 }
0x1247   :  { %1469 = vadd.xlane.f32.xlu0 %v1438_v28 }
0x1252   :  { %1567 = vrot.lane.b32.xlu1 %v6244_v25, %s5906_s16 }
0x12b4   :  { %v1440_v32 = vpop.xlane.xlu0 %1439 }
0x12b5   :  { %v1490_v53 = vrot.slane %v1440_v32, %v6070_v36  ;;  %v6333_v32 = vld [vmem:[%s6911_s2] ss:$0 sm:$0xff] }
0x12b6   :  { %v1444_v11 = vpop.xlane.xlu1 %1443 }
0x12b7   :  { %v1499_v47 = vrot.slane %v1444_v11, %v6070_v36 }
0x12b8   :  { %v1442_v35 = vpop.xlane.xlu0 %1441 }
0x12b9   :  { %v1494_v48 = vrot.slane %v1442_v35, %v6067_v34 }
0x12ba   :  { %v1448_v37 = vpop.xlane.xlu1 %1447 }
0x12bb   :  { %v1508_v51 = vrot.slane %v1448_v37, %v6070_v36  ;;  %v1495_v57 = vsel %vm313_vm2, %v1494_v48, %v1490_v53  ;;  %v5565_v48 = vld [vmem:[#allocation10 + $0x10] sm:$0xff]  }
0x12bc   :  { %v1446_v38 = vpop.xlane.xlu0 %1445 }
0x12bd   :  { %v1503_v44 = vrot.slane %v1446_v38, %v6067_v34 }
0x12be   :  { %v1456_v39 = vpop.xlane.xlu1 %1455 }
0x12bf   :  { %v1504_v54 = vsel %vm313_vm2, %v1503_v44, %v1499_v47  ;;  %v1526_v1 = vrot.slane %v1456_v39, %v6070_v36  ;;  %v5563_v47 = vld [vmem:[#allocation10] sm:$0xff]  }
0x12c0   :  { %v1450_v40 = vpop.xlane.xlu0 %1449  ;;  %v1559_v60 = vsel %vm378_vm3, %v1504_v54, %v1495_v57  ;;  %5397 = vmatpush3.bf16.msra.mxu1 %v5563_v47 }
0x12c1   :  { %v1512_v45 = vrot.slane %v1450_v40, %v6067_v34  ;;  %5398 = vmatprep.subr.bf16.mxu1 %v5900_v5 }
0x12c2   :  { %v1452_v9 = vpop.xlane.xlu1 %1451 }
0x12c3   :  { %v1517_v55 = vrot.slane %v1452_v9, %v6070_v36  ;;  %v1513_v56 = vsel %vm313_vm2, %v1512_v45, %v1508_v51 }
0x12c4   :  { %v1458_v25 = vpop.xlane.xlu0 %1457  ;;  %v1560_v63 = vsel %vm380_vm4, %v1513_v56, %v1559_v60 }
0x12c5   :  { %v1530_v61 = vrot.slane %v1458_v25, %v6067_v34 }
0x12c6   :  { %v1460_v41 = vpop.xlane.xlu1 %1459 }
0x12c7   :  { %v1535_v42 = vrot.slane %v1460_v41, %v6070_v36  ;;  %v1531_v18 = vsel %vm313_vm2, %v1530_v61, %v1526_v1 }
0x12c8   :  { %v1454_v43 = vpop.xlane.xlu0 %1453 }
0x12c9   :  { %v1521_v4 = vrot.slane %v1454_v43, %v6067_v34 }
0x12ca   :  { %v1464_v52 = vpop.xlane.xlu1 %1463 }
0x12cb   :  { %v1522_v58 = vsel %vm313_vm2, %v1521_v4, %v1517_v55  ;;  %v1544_v13 = vrot.slane %v1464_v52, %v6070_v36 }
0x12cc   :  { %v1462_v2 = vpop.xlane.xlu0 %1461  ;;  %v1561_v10 = vsel %vm382_vm5, %v1522_v58, %v1560_v63 }
0x12cd   :  { %v1539_v59 = vrot.slane %v1462_v2, %v6067_v34  ;;  %v1562_v22 = vsel %vm384_vm6, %v1531_v18, %v1561_v10 }
0x12ce   :  { %v1468_v16 = vpop.xlane.xlu1 %1467 }
0x12cf   :  { %v1540_v15 = vsel %vm313_vm2, %v1539_v59, %v1535_v42  ;;  %v1553_v23 = vrot.slane %v1468_v16, %v6070_v36 }
0x12d0   :  { %v1466_v62 = vpop.xlane.xlu0 %1465  ;;  %v1563_v24 = vsel %vm386_vm7, %v1540_v15, %v1562_v22 }
0x12d1   :  { %v1548_v0 = vrot.slane %v1466_v62, %v6067_v34 }
0x12d2   :  { %v1568_v28 = vpop.permute.xlu1 %1567 }
0x12d3   :  { %v1549_v21 = vsel %vm313_vm2, %v1548_v0, %v1544_v13 }
0x12d4   :  { %v1470_v14 = vpop.xlane.xlu0 %1469  ;;  %v1564_v26 = vsel %vm388_vm8, %v1549_v21, %v1563_v24 }
0x12d5   :  { %v1557_v33 = vrot.slane %v1470_v14, %v6067_v34 }
0x12d7   :  { %v1558_v27 = vsel %vm313_vm2, %v1557_v33, %v1553_v23 }
0x12d8   :  { %v1565_v29 = vsel %vm390_vm9, %v1558_v27, %v1564_v26 }
0x12d9   :  { %v1570_v30 = vsel %vm397_vm10, %v1565_v29, %v1568_v28 }
0x12da   :  { %v1571_v31 = vpack.c.bf16 %v1570_v30, %v1570_v30 }
0x12dc   :  { %5393 = vmatmul.mubr.msk.bf16.vlgmr.msra.gmra.mrb[12].mxu0 %vm431_vm11, %v1571_v31 }
0x12dd   :  { %1830 = vmatpush1.bf16.msra.mxu0 %v6142_v3  ;;  %1861 = vmatprep.mubr.bf16.mxu0 %v5905_v7 }
0x12de   :  { %1831 = vmatprep.subr.bf16.mxu0 %v6146_v6 }
0x12e1   :  { %1832 = vmatpush1.bf16.msra.mxu0 %v6151_v8 }
0x12e2   :  { %5418 = vmatprep.subr.bf16.mxu0 %v5900_v5 }
0x13af   :  { %v1640_v11 = vpop.f32.mrb[12].mxu0 }
0x13b0   :  { %v1641_v35 = vadd.f32 %v6333_v32, %v1640_v11  ;;  %v5394_v37 = vpop.f32.mrb[13].mxu0 }
0x13b1   :  { %v1643_v38 = vpop.f32.mrb[14].mxu0 }
0x13b2   :  { %5658 = vtanh.f32 %v1641_v35  ;;  %v5395_v3 = vpop.f32.mrb[15].mxu0  ;;  %v4855_v6 = vmul.f32 -1.442695, %v1641_v35 }
0x13b4   :  { %5660 = vpow2.f32 %v4855_v6  ;;  %v5055_v6 = vld [vmem:[#allocation5 + $0xc0] sm:$0xff]  }
0x13bc   :  { %v5659_v39 = vpop.eup %5658 }
0x13bd   :  { %1655 = vrot.lane.b32.xlu0 %v5659_v39, %s5894_s13 }
0x13be   :  { %v5661_v8 = vpop.eup %5660 }
0x13bf   :  { %v1649_v40 = vadd.f32 1.0, %v5661_v8 }
0x13c1   :  { %1675 = vrot.lane.b32.xlu0 %v6260_v49, %s5894_s13  ;;  %5662 = vrcp.f32 %v1649_v40  ;;  %v5564_v49 = vld [vmem:[#allocation10 + $0x8] sm:$0xff]   ;;  %v5235_v40 = vld [vmem:[#allocation5 + $0xc8] sm:$0xff]  }
0x13c2   :  { %5399 = vmatpush3.bf16.msra.mxu1 %v5564_v49 }
0x13c3   :  { %5400 = vmatprep.subr.bf16.mxu1 %v5900_v5 }
0x13c6   :  { %5401 = vmatpush3.bf16.msra.mxu1 %v5565_v48 }
0x13c7   :  { %5402 = vmatprep.subr.bf16.mxu1 %v5900_v5 }
0x13cb   :  { %v5663_v9 = vpop.eup %5662 }
0x13cc   :  { %v1653_v43 = vmul.f32 %v5663_v9, %v6236_v19  ;;  %v5566_v19 = vld [vmem:[#allocation10 + $0x18] sm:$0xff]  }
0x13cd   :  { %5403 = vmatpush3.bf16.msra.mxu1 %v5566_v19  ;;  %v5236_v19 = vld [vmem:[#allocation5 + $0xd0] sm:$0xff]  }
0x13ce   :  { %5408 = vmatprep.subr.bf16.mxu1 %v5900_v5 }
0x142f   :  { %v1656_v25 = vpop.permute.xlu0 %1655 }
0x1430   :  { %v1658_v41 = vmul.f32 %v5663_v9, %v1656_v25  ;;  %v5056_v25 = vunpack.c.l.bf16 %v5055_v6 }
0x1432   :  { %1660 = vrot.lane.b32.xlu1 %v1658_v41, %s5904_s9 }
0x1433   :  { %v1676_v2 = vpop.permute.xlu0 %1675 }
0x14a4   :  { %v1661_v44 = vpop.permute.xlu1 %1660 }
0x14a5   :  { %v6341_v45 = vadd.f32 %v1661_v44, %v1653_v43  ;;  %v5060_v44 = vunpack.c.l.bf16 %v5235_v40 }
0x14a7   :  { %5664 = vtanh.f32 %v6341_v45 }
0x14b1   :  { %v5665_v4 = vpop.eup %5664 }
0x14b2   :  { %1666 = vrot.lane.b32.xlu1 %v5665_v4, %s5894_s13 }
0x1524   :  { %v1667_v51 = vpop.permute.xlu1 %1666 }
0x1525   :  { %v6349_v52 = vmul.f32 %v5663_v9, %v1667_v51 }
0x1527   :  { %1671 = vrot.lane.b32.xlu1 %v6349_v52, %s5904_s9 }
0x1599   :  { %v1672_v53 = vpop.permute.xlu1 %1671 }
0x159a   :  { %v1678_v54 = vsel %vm87_vm0, %v1672_v53, %v1676_v2  ;;  %v5057_v53 = vunpack.c.h.bf16 %v5055_v6 }
0x159b   :  { %v1679_v55 = vpack.c.bf16 %v1678_v54, %v1678_v54 }
0x159d   :  { %5405 = vmatmul.mubr.msk.bf16.vlgmr.msra.gmra.mrb[12].mxu1 %vm553_vm12, %v1679_v55  ;;  %v5064_v55 = vunpack.c.l.bf16 %v5236_v19 }
0x159e   :  { %5414 = vmatprep.mubr.msk.bf16.mxu1 %vm5903_vm1, %v5900_v5 }
0x1670   :  { %v1756_v56 = vpop.f32.mrb[12].mxu1 }
0x1671   :  { %v1757_v57 = vadd.f32 %v6134_v50, %v1756_v56  ;;  %v5406_v58 = vpop.f32.mrb[13].mxu1 }
0x1672   :  { %v1759_v59 = vpop.f32.mrb[14].mxu1 }
0x1673   :  { %5666 = vtanh.f32 %v1757_v57  ;;  %v5407_v60 = vpop.f32.mrb[15].mxu1  ;;  %v4862_v62 = vmul.f32 -1.442695, %v1757_v57  ;;  %v5238_v57 = vld [vmem:[#allocation5 + $0xe0] sm:$0xff]  }
0x1674   :  { %v5061_v60 = vunpack.c.h.bf16 %v5235_v40 }
0x1675   :  { %5668 = vpow2.f32 %v4862_v62 }
0x167d   :  { %v5667_v61 = vpop.eup %5666 }
0x167e   :  { %1771 = vrot.lane.b32.xlu1 %v5667_v61, %s5894_s13  ;;  %v5072_v61 = vunpack.c.l.bf16 %v5238_v57 }
0x167f   :  { %v5669_v63 = vpop.eup %5668 }
0x1680   :  { %v1765_v42 = vadd.f32 1.0, %v5669_v63 }
0x1682   :  { %5670 = vrcp.f32 %v1765_v42 }
0x168c   :  { %v5671_v0 = vpop.eup %5670 }
0x168d   :  { %v1769_v13 = vmul.f32 %v5671_v0, %v6256_v46  ;;  %v1791_v46 = vld [vmem:[%s6915_s6] sm:$0x3] }
0x168e   :  { %v1796_v23 = vrot.slane %v1791_v46, %v6044_v17  ;;  %v1800_v33 = vrot.slane %v1791_v46, %v6169_v20 }
0x16f0   :  { %v1772_v1 = vpop.permute.xlu1 %1771 }
0x16f1   :  { %v1774_v10 = vmul.f32 %v5671_v0, %v1772_v1  ;;  %v5237_v1 = vld [vmem:[#allocation5 + $0xd8] sm:$0xff]  }
0x16f3   :  { %1776 = vrot.lane.b32.xlu0 %v1774_v10, %s5904_s9 }
0x1765   :  { %v1777_v50 = vpop.permute.xlu0 %1776 }
0x1766   :  { %v6361_v16 = vadd.f32 %v1777_v50, %v1769_v13  ;;  %v5065_v13 = vunpack.c.h.bf16 %v5236_v19 }
0x1768   :  { %5672 = vtanh.f32 %v6361_v16 }
0x1772   :  { %v5673_v15 = vpop.eup %5672 }
0x1773   :  { %1782 = vrot.lane.b32.xlu1 %v5673_v15, %s5894_s13  ;;  %v5068_v15 = vunpack.c.l.bf16 %v5237_v1 }
0x17e5   :  { %v1783_v18 = vpop.permute.xlu1 %1782 }
0x17e6   :  { %v6365_v21 = vmul.f32 %v5671_v0, %v1783_v18 }
0x17e8   :  { %v1786_v14 = vpack.c.bf16 %v6365_v21, %v6365_v21 }
0x17ea   :  { %1804 = vrot.lane.b32.xlu0 %v1786_v14, %s5904_s9 }
0x185c   :  { %v1805_v22 = vpop.permute.xlu0 %1804 }
0x185d   :  { %4867 = vmatmul.mubr.msk.bf16.vlgmr.msra.gmra.mrb[16].mxu0 %vm87_vm0, %v1805_v22  ;;  %v5239_v22 = vld [vmem:[#allocation5 + $0xe8] sm:$0xff]  }
0x185e   :  { %5426 = vmatprep.mubr.msk.bf16.mxu0 %vm5903_vm1, %v5900_v5 }
0x1930   :  { %v1863_v24 = vpop.f32.mrb[16].mxu0 }
0x1931   :  { %v1864_v26 = vadd.f32 %v1863_v24, %v1796_v23  ;;  %v1865_v27 = vpop.f32.mrb[17].mxu0  ;;  %v5073_v23 = vunpack.c.h.bf16 %v5238_v57 }
0x1932   :  { %v1866_v28 = vadd.f32 %v1865_v27, %v1800_v33  ;;  %v1867_v29 = vpop.f32.mrb[18].mxu0 }
0x1933   :  { %v1868_v30 = vpop.f32.mrb[19].mxu0  ;;  %1872 = vmax.xlane.f32.xlu1 %v1864_v26 }
0x1934   :  { %1871 = vst [vmem:[#allocation13 + $0x10] sm:$0xff] %v1866_v28  ;;  %v5240_v28 = vld [vmem:[#allocation5 + $0xf0] sm:$0xff]   ;;  %v5069_v30 = vunpack.c.h.bf16 %v5237_v1 }
0x19c0   :  { %v1873_v31 = vpop.xlane.xlu1 %1872 }
0x19c1   :  { %v1874_v11 = vsub.f32 %v1864_v26, %v1873_v31  ;;  %v5076_v26 = vunpack.c.l.bf16 %v5239_v22 }
0x19c3   :  { %v1875_v35 = vmul.f32 1.442695, %v1874_v11 }
0x19c5   :  { %5674 = vpow2.f32 %v1875_v35  ;;  %v5080_v35 = vunpack.c.l.bf16 %v5240_v28 }
0x19cf   :  { %v5675_v37 = vpop.eup %5674 }
0x19d0   :  { %1877 = vadd.xlane.f32.xlu0 %v5675_v37 }
0x1a5d   :  { %v1878_v38 = vpop.xlane.xlu0 %1877 }
0x1a5e   :  { %5676 = vrcp.f32 %v1878_v38  ;;  %v5241_v38 = vld [vmem:[#allocation5 + $0xf8] sm:$0xff]  }
0x1a68   :  { %v5677_v3 = vpop.eup %5676 }
0x1a69   :  { %v1880_v39 = vmul.f32 %v5677_v3, %v5675_v37  ;;  %v5077_v3 = vunpack.c.h.bf16 %v5239_v22 }
0x1a6b   :  { %v1906_v8 = vrot.slane %v1880_v39, %v6040_v12  ;;  %v1899_v9 = vcombine.high %v1880_v39, %v1880_v39 }
0x1a6d   :  { %v1922_v41 = vrot.slane %v1906_v8, %v6040_v12  ;;  %v1914_v43 = vcombine.high %v1906_v8, %v1906_v8  ;;  %v1913_v4 = vrot.slane %v1899_v9, %v6040_v12  ;;  %v5084_v8 = vunpack.c.l.bf16 %v5241_v38 }
0x1a6f   :  { %v1967_v47 = vrot.slane %v1922_v41, %v6044_v17  ;;  %v1936_v49 = vrot.slane %v1914_v43, %v6040_v12  ;;  %v1944_v48 = vcombine.high %v1922_v41, %v1922_v41  ;;  %v1929_v58 = vrot.slane %v1913_v4, %v6040_v12 }
0x1a70   :  { %v1915_v0 = vcombine.high %v1913_v4, %v1913_v4  ;;  %v5569_v4 = vld [vmem:[#allocation8 + $0x10] sm:$0xff]  }
0x1a71   :  { %v2004_v51 = vmul.f32 %v5056_v25, %v1967_v47  ;;  %v1971_v2 = vrot.slane %v1936_v49, %v6044_v17  ;;  %v1975_v56 = vrot.slane %v1944_v48, %v6044_v17  ;;  %v2005_v59 = vmul.f32 %v5057_v53, %v1967_v47  ;;  %v5568_v48 = vld [vmem:[#allocation8 + $0x8] sm:$0xff]  }
0x1a72   :  { %v1983_v63 = vrot.slane %v1929_v58, %v6044_v17  ;;  %v1946_v42 = vcombine.high %v1936_v49, %v1936_v49  ;;  %v1943_v14 = vrot.slane %v1915_v0, %v6040_v12  ;;  %v1945_v33 = vcombine.high %v1929_v58, %v1929_v58  ;;  %v5567_v49 = vld [vmem:[#allocation8] sm:$0xff]  }
0x1a73   :  { %2020 = vadd.xlane.f32.xlu0 %v2004_v51  ;;  %v2006_v54 = vmul.f32 %v5060_v44, %v1971_v2  ;;  %v2008_v62 = vmul.f32 %v5064_v55, %v1975_v56  ;;  %v2007_v10 = vmul.f32 %v5061_v60, %v1971_v2  ;;  %v2009_v46 = vmul.f32 %v5065_v13, %v1975_v56 }
0x1a74   :  { %v2012_v50 = vmul.f32 %v5072_v61, %v1983_v63  ;;  %v1979_v18 = vrot.slane %v1946_v42, %v6044_v17  ;;  %v1987_v27 = vrot.slane %v1943_v14, %v6044_v17  ;;  %v2013_v29 = vmul.f32 %v5073_v23, %v1983_v63  ;;  %5409 = vmatpush3.bf16.msra.mxu1 %v5567_v49 }
0x1a75   :  { %2024 = vadd.xlane.f32.xlu1 %v2006_v54  ;;  %v1947_v11 = vcombine.high %v1943_v14, %v1943_v14  ;;  %v1991_v37 = vrot.slane %v1945_v33, %v6044_v17  ;;  %v5081_v25 = vunpack.c.h.bf16 %v5240_v28  ;;  %v5085_v44 = vunpack.c.h.bf16 %v5241_v38  ;;  %5410 = vmatprep.subr.bf16.mxu1 %v5900_v5 }
0x1a76   :  { %v2010_v24 = vmul.f32 %v5068_v15, %v1979_v18  ;;  %v2014_v31 = vmul.f32 %v5076_v26, %v1987_v27  ;;  %v2011_v39 = vmul.f32 %v5069_v30, %v1979_v18  ;;  %v2015_v9 = vmul.f32 %v5077_v3, %v1987_v27 }
0x1a77   :  { %2022 = vadd.xlane.f32.xlu0 %v2005_v59  ;;  %v2016_v6 = vmul.f32 %v5080_v35, %v1991_v37  ;;  %v1995_v40 = vrot.slane %v1947_v11, %v6044_v17  ;;  %v2017_v43 = vmul.f32 %v5081_v25, %v1991_v37 }
0x1a78   :  { %5411 = vmatpush3.bf16.msra.mxu1 %v5568_v48 }
0x1a79   :  { %2028 = vadd.xlane.f32.xlu1 %v2008_v62  ;;  %v2018_v41 = vmul.f32 %v5084_v8, %v1995_v40  ;;  %v2019_v47 = vmul.f32 %v5085_v44, %v1995_v40  ;;  %5412 = vmatprep.subr.bf16.mxu1 %v5900_v5 }
0x1a7b   :  { %2026 = vadd.xlane.f32.xlu0 %v2007_v10 }
0x1a7c   :  { %5413 = vmatpush3.bf16.msra.mxu1 %v5569_v4 }
0x1a7d   :  { %2036 = vadd.xlane.f32.xlu1 %v2012_v50 }
0x1a7f   :  { %2030 = vadd.xlane.f32.xlu0 %v2009_v46 }
0x1a81   :  { %2032 = vadd.xlane.f32.xlu1 %v2010_v24 }
0x1a83   :  { %2038 = vadd.xlane.f32.xlu0 %v2013_v29 }
0x1a85   :  { %2040 = vadd.xlane.f32.xlu1 %v2014_v31 }
0x1a87   :  { %2034 = vadd.xlane.f32.xlu0 %v2011_v39 }
0x1a89   :  { %2044 = vadd.xlane.f32.xlu1 %v2016_v6 }
0x1a8b   :  { %2042 = vadd.xlane.f32.xlu0 %v2015_v9 }
0x1a8d   :  { %2048 = vadd.xlane.f32.xlu1 %v2018_v41 }
0x1a8f   :  { %2046 = vadd.xlane.f32.xlu0 %v2017_v43 }
0x1a93   :  { %2050 = vadd.xlane.f32.xlu0 %v2019_v47 }
0x1a9e   :  { %2148 = vrot.lane.b32.xlu1 %v6349_v52, %s5906_s16 }
0x1b00   :  { %v2021_v19 = vpop.xlane.xlu0 %2020 }
0x1b01   :  { %v2071_v13 = vrot.slane %v2021_v19, %v6070_v36 }
0x1b02   :  { %v2025_v51 = vpop.xlane.xlu1 %2024 }
0x1b03   :  { %v2080_v62 = vrot.slane %v2025_v51, %v6070_v36 }
0x1b04   :  { %v2023_v2 = vpop.xlane.xlu0 %2022 }
0x1b05   :  { %v2075_v63 = vrot.slane %v2023_v2, %v6067_v34 }
0x1b06   :  { %v2029_v53 = vpop.xlane.xlu1 %2028 }
0x1b07   :  { %v2089_v0 = vrot.slane %v2029_v53, %v6070_v36  ;;  %v2076_v14 = vsel %vm313_vm2, %v2075_v63, %v2071_v13 }
0x1b08   :  { %v2027_v54 = vpop.xlane.xlu0 %2026 }
0x1b09   :  { %v2084_v60 = vrot.slane %v2027_v54, %v6067_v34 }
0x1b0a   :  { %v2037_v55 = vpop.xlane.xlu1 %2036 }
0x1b0b   :  { %v2085_v50 = vsel %vm313_vm2, %v2084_v60, %v2080_v62  ;;  %v2107_v29 = vrot.slane %v2037_v55, %v6070_v36  ;;  %v5572_v62 = vld [vmem:[#allocation10 + $0x10] sm:$0xff]  }
0x1b0c   :  { %v2031_v56 = vpop.xlane.xlu0 %2030  ;;  %v2140_v23 = vsel %vm378_vm3, %v2085_v50, %v2076_v14 }
0x1b0d   :  { %v2093_v61 = vrot.slane %v2031_v56, %v6067_v34 }
0x1b0e   :  { %v2033_v57 = vpop.xlane.xlu1 %2032 }
0x1b0f   :  { %v2098_v15 = vrot.slane %v2033_v57, %v6070_v36  ;;  %v2094_v18 = vsel %vm313_vm2, %v2093_v61, %v2089_v0  ;;  %v5570_v61 = vld [vmem:[#allocation10] sm:$0xff]  }
0x1b10   :  { %v2039_v58 = vpop.xlane.xlu0 %2038  ;;  %v2141_v26 = vsel %vm380_vm4, %v2094_v18, %v2140_v23  ;;  %5419 = vmatpush3.bf16.msra.mxu0 %v5570_v61 }
0x1b11   :  { %v2111_v33 = vrot.slane %v2039_v58, %v6067_v34  ;;  %5420 = vmatprep.subr.bf16.mxu0 %v5900_v5 }
0x1b12   :  { %v2041_v59 = vpop.xlane.xlu1 %2040 }
0x1b13   :  { %v2116_v27 = vrot.slane %v2041_v59, %v6070_v36  ;;  %v2112_v37 = vsel %vm313_vm2, %v2111_v33, %v2107_v29 }
0x1b14   :  { %v2035_v52 = vpop.xlane.xlu0 %2034 }
0x1b15   :  { %v2102_v42 = vrot.slane %v2035_v52, %v6067_v34 }
0x1b16   :  { %v2045_v1 = vpop.xlane.xlu1 %2044 }
0x1b17   :  { %v2103_v22 = vsel %vm313_vm2, %v2102_v42, %v2098_v15  ;;  %v2125_v31 = vrot.slane %v2045_v1, %v6070_v36  ;;  %v6455_v15 = vld [vmem:[%s6913_s4] ss:$0 sm:$0xff] }
0x1b18   :  { %v2043_v10 = vpop.xlane.xlu0 %2042  ;;  %v2142_v30 = vsel %vm382_vm5, %v2103_v22, %v2141_v26 }
0x1b19   :  { %v2120_v46 = vrot.slane %v2043_v10, %v6067_v34  ;;  %v2143_v39 = vsel %vm384_vm6, %v2112_v37, %v2142_v30  ;;  %v6464_v37 = vld [vmem:[#allocation11] ss:$8 sps:$4 sm:$0xff]  }
0x1b1a   :  { %v2049_v11 = vpop.xlane.xlu1 %2048 }
0x1b1b   :  { %v2121_v35 = vsel %vm313_vm2, %v2120_v46, %v2116_v27  ;;  %v2134_v6 = vrot.slane %v2049_v11, %v6070_v36 }
0x1b1c   :  { %v2047_v24 = vpop.xlane.xlu0 %2046  ;;  %v2144_v40 = vsel %vm386_vm7, %v2121_v35, %v2143_v39  ;;  %v6472_v39 = vld [vmem:[#allocation11 + $0x10] ss:$8 sps:$4 sm:$0xff]  }
0x1b1d   :  { %v2129_v28 = vrot.slane %v2047_v24, %v6067_v34 }
0x1b1e   :  { %v2149_v41 = vpop.permute.xlu1 %2148 }
0x1b1f   :  { %v2130_v38 = vsel %vm313_vm2, %v2129_v28, %v2125_v31 }
0x1b20   :  { %v2051_v3 = vpop.xlane.xlu0 %2050  ;;  %v2145_v9 = vsel %vm388_vm8, %v2130_v38, %v2144_v40  ;;  %v6466_v38 = vld [vmem:[#allocation11 + $0x4] ss:$8 sps:$4 sm:$0xff]  }
0x1b21   :  { %v2138_v8 = vrot.slane %v2051_v3, %v6067_v34  ;;  %v6468_v3 = vld [vmem:[#allocation11 + $0x14] ss:$8 sps:$4 sm:$0xff]   ;;  %2410 = vmatprep.subr.bf16.mxu1 %v6466_v38 }
0x1b23   :  { %v2139_v25 = vsel %vm313_vm2, %v2138_v8, %v2134_v6 }
0x1b24   :  { %v2146_v43 = vsel %vm390_vm9, %v2139_v25, %v2145_v9  ;;  %v2372_v25 = vld [vmem:[%s6915_s6] sm:$0x3] }
0x1b25   :  { %v2151_v44 = vsel %vm397_vm10, %v2146_v43, %v2149_v41  ;;  %v2377_v41 = vrot.slane %v2372_v25, %v6044_v17  ;;  %v2381_v43 = vrot.slane %v2372_v25, %v6169_v20 }
0x1b26   :  { %v2152_v47 = vpack.c.bf16 %v2151_v44, %v2151_v44 }
0x1b28   :  { %5415 = vmatmul.mubr.msk.bf16.vlgmr.msra.gmra.mrb[16].mxu1 %vm431_vm11, %v2152_v47 }
0x1b29   :  { %2442 = vmatprep.mubr.bf16.mxu1 %v5905_v7  ;;  %2411 = vmatpush1.bf16.msra.mxu1 %v6464_v37 }
0x1b2a   :  { %2412 = vmatprep.subr.bf16.mxu1 %v6468_v3 }
0x1b2d   :  { %2413 = vmatpush1.bf16.msra.mxu1 %v6472_v39 }
0x1b2e   :  { %5440 = vmatprep.subr.bf16.mxu1 %v5900_v5 }
0x1bfb   :  { %v2221_v49 = vpop.f32.mrb[16].mxu1 }
0x1bfc   :  { %v2222_v48 = vadd.f32 %v6333_v32, %v2221_v49  ;;  %v5416_v4 = vpop.f32.mrb[17].mxu1 }
0x1bfd   :  { %v2224_v19 = vpop.f32.mrb[18].mxu1 }
0x1bfe   :  { %5678 = vtanh.f32 %v2222_v48  ;;  %v5417_v51 = vpop.f32.mrb[19].mxu1  ;;  %v4873_v53 = vmul.f32 -1.442695, %v2222_v48 }
0x1c00   :  { %5680 = vpow2.f32 %v4873_v53 }
0x1c08   :  { %v5679_v2 = vpop.eup %5678 }
0x1c09   :  { %2236 = vrot.lane.b32.xlu0 %v5679_v2, %s5894_s13 }
0x1c0a   :  { %v5681_v54 = vpop.eup %5680 }
0x1c0b   :  { %v2230_v55 = vadd.f32 1.0, %v5681_v54 }
0x1c0d   :  { %2256 = vrot.lane.b32.xlu0 %v6365_v21, %s5894_s13  ;;  %5682 = vrcp.f32 %v2230_v55  ;;  %v5571_v21 = vld [vmem:[#allocation10 + $0x8] sm:$0xff]  }
0x1c0e   :  { %5421 = vmatpush3.bf16.msra.mxu0 %v5571_v21 }
0x1c0f   :  { %5422 = vmatprep.subr.bf16.mxu0 %v5900_v5 }
0x1c12   :  { %5423 = vmatpush3.bf16.msra.mxu0 %v5572_v62 }
0x1c13   :  { %5424 = vmatprep.subr.bf16.mxu0 %v5900_v5 }
0x1c17   :  { %v5683_v56 = vpop.eup %5682 }
0x1c18   :  { %v2234_v59 = vmul.f32 %v5683_v56, %v6341_v45  ;;  %v5573_v45 = vld [vmem:[#allocation10 + $0x18] sm:$0xff]  }
0x1c19   :  { %5425 = vmatpush3.bf16.msra.mxu0 %v5573_v45 }
0x1c1a   :  { %5430 = vmatprep.subr.bf16.mxu0 %v5900_v5 }
0x1c7b   :  { %v2237_v57 = vpop.permute.xlu0 %2236 }
0x1c7c   :  { %v2239_v58 = vmul.f32 %v5683_v56, %v2237_v57 }
0x1c7e   :  { %2241 = vrot.lane.b32.xlu1 %v2239_v58, %s5904_s9  ;;  %v5087_v58 = vld [vmem:[#allocation5 + $0x100] sm:$0xff]  }
0x1c7f   :  { %v2257_v1 = vpop.permute.xlu0 %2256  ;;  %v5088_v21 = vunpack.c.l.bf16 %v5087_v58 }
0x1cf0   :  { %v2242_v52 = vpop.permute.xlu1 %2241 }
0x1cf1   :  { %v6436_v60 = vadd.f32 %v2242_v52, %v2234_v59  ;;  %v5242_v52 = vld [vmem:[#allocation5 + $0x108] sm:$0xff]  }
0x1cf2   :  { %v5092_v45 = vunpack.c.l.bf16 %v5242_v52 }
0x1cf3   :  { %5684 = vtanh.f32 %v6436_v60 }
0x1cfd   :  { %v5685_v63 = vpop.eup %5684 }
0x1cfe   :  { %2247 = vrot.lane.b32.xlu1 %v5685_v63, %s5894_s13 }
0x1d70   :  { %v2248_v42 = vpop.permute.xlu1 %2247 }
0x1d71   :  { %v6444_v0 = vmul.f32 %v5683_v56, %v2248_v42 }
0x1d73   :  { %2252 = vrot.lane.b32.xlu1 %v6444_v0, %s5904_s9 }
0x1de5   :  { %v2253_v10 = vpop.permute.xlu1 %2252 }
0x1de6   :  { %v2259_v13 = vsel %vm87_vm0, %v2253_v10, %v2257_v1 }
0x1de7   :  { %v2260_v50 = vpack.c.bf16 %v2259_v13, %v2259_v13 }
0x1de9   :  { %5427 = vmatmul.mubr.msk.bf16.vlgmr.msra.gmra.mrb[20].mxu0 %vm553_vm12, %v2260_v50  ;;  %v5243_v50 = vld [vmem:[#allocation5 + $0x110] sm:$0xff]  }
0x1dea   :  { %5436 = vmatprep.mubr.msk.bf16.mxu0 %vm5903_vm1, %v5900_v5 }
0x1ebc   :  { %v2337_v18 = vpop.f32.mrb[20].mxu0 }
0x1ebd   :  { %v2338_v14 = vadd.f32 %v6455_v15, %v2337_v18  ;;  %v5428_v22 = vpop.f32.mrb[21].mxu0 }
0x1ebe   :  { %v2340_v46 = vpop.f32.mrb[22].mxu0  ;;  %v5089_v22 = vunpack.c.h.bf16 %v5087_v58 }
0x1ebf   :  { %5686 = vtanh.f32 %v2338_v14  ;;  %v5429_v23 = vpop.f32.mrb[23].mxu0  ;;  %v4880_v24 = vmul.f32 -1.442695, %v2338_v14 }
0x1ec0   :  { %v5096_v23 = vunpack.c.l.bf16 %v5243_v50 }
0x1ec1   :  { %5688 = vpow2.f32 %v4880_v24  ;;  %v5245_v24 = vld [vmem:[#allocation5 + $0x120] sm:$0xff]  }
0x1ec9   :  { %v5687_v33 = vpop.eup %5686 }
0x1eca   :  { %2352 = vrot.lane.b32.xlu1 %v5687_v33, %s5894_s13 }
0x1ecb   :  { %v5689_v26 = vpop.eup %5688 }
0x1ecc   :  { %v2346_v27 = vadd.f32 1.0, %v5689_v26 }
0x1ece   :  { %5690 = vrcp.f32 %v2346_v27 }
0x1ed8   :  { %v5691_v28 = vpop.eup %5690 }
0x1ed9   :  { %v2350_v31 = vmul.f32 %v5691_v28, %v6361_v16 }
0x1f3c   :  { %v2353_v29 = vpop.permute.xlu1 %2352 }
0x1f3d   :  { %v2355_v30 = vmul.f32 %v5691_v28, %v2353_v29  ;;  %v5104_v29 = vunpack.c.l.bf16 %v5245_v24 }
0x1f3f   :  { %2357 = vrot.lane.b32.xlu0 %v2355_v30, %s5904_s9 }
0x1fb1   :  { %v2358_v11 = vpop.permute.xlu0 %2357 }
0x1fb2   :  { %v6461_v35 = vadd.f32 %v2358_v11, %v2350_v31 }
0x1fb4   :  { %5692 = vtanh.f32 %v6461_v35 }
0x1fbe   :  { %v5693_v16 = vpop.eup %5692 }
0x1fbf   :  { %2363 = vrot.lane.b32.xlu1 %v5693_v16, %s5894_s13 }
0x2031   :  { %v2364_v6 = vpop.permute.xlu1 %2363 }
0x2032   :  { %v6478_v8 = vmul.f32 %v5691_v28, %v2364_v6  ;;  %v5093_v28 = vunpack.c.h.bf16 %v5242_v52  ;;  %v5244_v6 = vld [vmem:[#allocation5 + $0x118] sm:$0xff]  }
0x2033   :  { %v5248_v52 = vld [vmem:[#allocation5 + $0x138] sm:$0xff]  }
0x2034   :  { %v2367_v40 = vpack.c.bf16 %v6478_v8, %v6478_v8 }
0x2036   :  { %2385 = vrot.lane.b32.xlu0 %v2367_v40, %s5904_s9 }
0x20a8   :  { %v2386_v9 = vpop.permute.xlu0 %2385 }
0x20a9   :  { %4885 = vmatmul.mubr.msk.bf16.vlgmr.msra.gmra.mrb[20].mxu1 %vm87_vm0, %v2386_v9  ;;  %v5097_v9 = vunpack.c.h.bf16 %v5243_v50  ;;  %v5117_v50 = vunpack.c.h.bf16 %v5248_v52 }
0x20aa   :  { %5448 = vmatprep.mubr.msk.bf16.mxu1 %vm5903_vm1, %v5900_v5 }
0x217c   :  { %v2444_v44 = vpop.f32.mrb[20].mxu1 }
0x217d   :  { %v2445_v47 = vadd.f32 %v2444_v44, %v2377_v41  ;;  %v2446_v49 = vpop.f32.mrb[21].mxu1  ;;  %v5100_v41 = vunpack.c.l.bf16 %v5244_v6 }
0x217e   :  { %v2447_v48 = vadd.f32 %v2446_v49, %v2381_v43  ;;  %v2448_v4 = vpop.f32.mrb[22].mxu1 }
0x217f   :  { %v2449_v19 = vpop.f32.mrb[23].mxu1  ;;  %2453 = vmax.xlane.f32.xlu1 %v2445_v47 }
0x2180   :  { %2452 = vst [vmem:[#allocation13 + $0x18] sm:$0xff] %v2447_v48  ;;  %v5105_v48 = vunpack.c.h.bf16 %v5245_v24 }
0x220c   :  { %v2454_v51 = vpop.xlane.xlu1 %2453 }
0x220d   :  { %v2455_v2 = vsub.f32 %v2445_v47, %v2454_v51  ;;  %v5246_v47 = vld [vmem:[#allocation5 + $0x128] sm:$0xff]  }
0x220e   :  { %v5108_v19 = vunpack.c.l.bf16 %v5246_v47 }
0x220f   :  { %v2456_v53 = vmul.f32 1.442695, %v2455_v2 }
0x2211   :  { %5694 = vpow2.f32 %v2456_v53  ;;  %v5247_v53 = vld [vmem:[#allocation5 + $0x130] sm:$0xff]  }
0x221b   :  { %v5695_v54 = vpop.eup %5694 }
0x221c   :  { %2458 = vadd.xlane.f32.xlu0 %v5695_v54 }
0x22a9   :  { %v2459_v55 = vpop.xlane.xlu0 %2458 }
0x22aa   :  { %5696 = vrcp.f32 %v2459_v55  ;;  %v5101_v55 = vunpack.c.h.bf16 %v5244_v6 }
0x22b4   :  { %v5697_v56 = vpop.eup %5696 }
0x22b5   :  { %v2461_v57 = vmul.f32 %v5697_v56, %v5695_v54 }
0x22b7   :  { %v2487_v59 = vrot.slane %v2461_v57, %v6040_v12  ;;  %v2480_v61 = vcombine.high %v2461_v57, %v2461_v57  ;;  %v5112_v57 = vunpack.c.l.bf16 %v5247_v53 }
0x22b9   :  { %v2503_v62 = vrot.slane %v2487_v59, %v6040_v12  ;;  %v2495_v63 = vcombine.high %v2487_v59, %v2487_v59  ;;  %v2494_v13 = vrot.slane %v2480_v61, %v6040_v12 }
0x22bb   :  { %v2548_v42 = vrot.slane %v2503_v62, %v6044_v17  ;;  %v2517_v1 = vrot.slane %v2495_v63, %v6040_v12  ;;  %v2525_v10 = vcombine.high %v2503_v62, %v2503_v62  ;;  %v2510_v26 = vrot.slane %v2494_v13, %v6040_v12 }
0x22bc   :  { %v2496_v16 = vcombine.high %v2494_v13, %v2494_v13  ;;  %v5116_v63 = vunpack.c.l.bf16 %v5248_v52 }
0x22bd   :  { %v2585_v18 = vmul.f32 %v5088_v21, %v2548_v42  ;;  %v2552_v14 = vrot.slane %v2517_v1, %v6044_v17  ;;  %v2556_v33 = vrot.slane %v2525_v10, %v6044_v17  ;;  %v2586_v27 = vmul.f32 %v5089_v22, %v2548_v42  ;;  %v5581_v22 = vld [vmem:[#allocation8 + $0x8] sm:$0xff]  }
0x22be   :  { %v2564_v31 = vrot.slane %v2510_v26, %v6044_v17  ;;  %v2527_v11 = vcombine.high %v2517_v1, %v2517_v1  ;;  %v2524_v44 = vrot.slane %v2496_v16, %v6040_v12  ;;  %v2526_v2 = vcombine.high %v2510_v26, %v2510_v26 }
0x22bf   :  { %2601 = vadd.xlane.f32.xlu0 %v2585_v18  ;;  %v2587_v46 = vmul.f32 %v5092_v45, %v2552_v14  ;;  %v2589_v30 = vmul.f32 %v5096_v23, %v2556_v33  ;;  %v2588_v40 = vmul.f32 %v5093_v28, %v2552_v14  ;;  %v2590_v49 = vmul.f32 %v5097_v9, %v2556_v33  ;;  %v5580_v14 = vld [vmem:[#allocation8] sm:$0xff]  }
0x22c0   :  { %v2593_v25 = vmul.f32 %v5104_v29, %v2564_v31  ;;  %v2560_v43 = vrot.slane %v2527_v11, %v6044_v17  ;;  %v2568_v51 = vrot.slane %v2524_v44, %v6044_v17  ;;  %v2594_v54 = vmul.f32 %v5105_v48, %v2564_v31  ;;  %5431 = vmatpush3.bf16.msra.mxu0 %v5580_v14 }
0x22c1   :  { %2605 = vadd.xlane.f32.xlu1 %v2587_v46  ;;  %v2572_v58 = vrot.slane %v2526_v2, %v6044_v17  ;;  %v2528_v59 = vcombine.high %v2524_v44, %v2524_v44  ;;  %v5109_v21 = vunpack.c.h.bf16 %v5246_v47  ;;  %v5113_v1 = vunpack.c.h.bf16 %v5247_v53  ;;  %5432 = vmatprep.subr.bf16.mxu0 %v5900_v5  ;;  %v5582_v46 = vld [vmem:[#allocation8 + $0x10] sm:$0xff]  }
0x22c2   :  { %v2591_v4 = vmul.f32 %v5100_v41, %v2560_v43  ;;  %v2595_v56 = vmul.f32 %v5108_v19, %v2568_v51  ;;  %v2592_v61 = vmul.f32 %v5101_v55, %v2560_v43 }
0x22c3   :  { %2603 = vadd.xlane.f32.xlu0 %v2586_v27  ;;  %v2597_v62 = vmul.f32 %v5112_v57, %v2572_v58  ;;  %v2576_v45 = vrot.slane %v2528_v59, %v6044_v17  ;;  %v2596_v42 = vmul.f32 %v5109_v21, %v2568_v51  ;;  %v2598_v13 = vmul.f32 %v5113_v1, %v2572_v58 }
0x22c4   :  { %5433 = vmatpush3.bf16.msra.mxu0 %v5581_v22 }
0x22c5   :  { %2609 = vadd.xlane.f32.xlu1 %v2589_v30  ;;  %v2599_v10 = vmul.f32 %v5116_v63, %v2576_v45  ;;  %v2600_v18 = vmul.f32 %v5117_v50, %v2576_v45  ;;  %5434 = vmatprep.subr.bf16.mxu0 %v5900_v5 }
0x22c7   :  { %2607 = vadd.xlane.f32.xlu0 %v2588_v40 }
0x22c8   :  { %5435 = vmatpush3.bf16.msra.mxu0 %v5582_v46 }
0x22c9   :  { %2617 = vadd.xlane.f32.xlu1 %v2593_v25  ;;  %2991 = vmatprep.subr.bf16.mxu0 %v6466_v38 }
0x22cb   :  { %2611 = vadd.xlane.f32.xlu0 %v2590_v49 }
0x22cd   :  { %2613 = vadd.xlane.f32.xlu1 %v2591_v4 }
0x22cf   :  { %2619 = vadd.xlane.f32.xlu0 %v2594_v54 }
0x22d1   :  { %2621 = vadd.xlane.f32.xlu1 %v2595_v56 }
0x22d3   :  { %2615 = vadd.xlane.f32.xlu0 %v2592_v61 }
0x22d5   :  { %2625 = vadd.xlane.f32.xlu1 %v2597_v62 }
0x22d7   :  { %2623 = vadd.xlane.f32.xlu0 %v2596_v42 }
0x22d9   :  { %2629 = vadd.xlane.f32.xlu1 %v2599_v10 }
0x22db   :  { %2627 = vadd.xlane.f32.xlu0 %v2598_v13 }
0x22df   :  { %2631 = vadd.xlane.f32.xlu0 %v2600_v18 }
0x22ea   :  { %2729 = vrot.lane.b32.xlu1 %v6444_v0, %s5906_s16 }
0x234c   :  { %v2602_v23 = vpop.xlane.xlu0 %2601 }
0x234d   :  { %v2652_v47 = vrot.slane %v2602_v23, %v6070_v36 }
0x234e   :  { %v2606_v33 = vpop.xlane.xlu1 %2605 }
0x234f   :  { %v2661_v40 = vrot.slane %v2606_v33, %v6070_v36 }
0x2350   :  { %v2604_v24 = vpop.xlane.xlu0 %2603 }
0x2351   :  { %v2656_v9 = vrot.slane %v2604_v24, %v6067_v34 }
0x2352   :  { %v2610_v26 = vpop.xlane.xlu1 %2609 }
0x2353   :  { %v2670_v41 = vrot.slane %v2610_v26, %v6070_v36  ;;  %v2657_v19 = vsel %vm313_vm2, %v2656_v9, %v2652_v47 }
0x2354   :  { %v2608_v27 = vpop.xlane.xlu0 %2607 }
0x2355   :  { %v2665_v16 = vrot.slane %v2608_v27, %v6067_v34 }
0x2356   :  { %v2618_v28 = vpop.xlane.xlu1 %2617 }
0x2357   :  { %v2666_v49 = vsel %vm313_vm2, %v2665_v16, %v2661_v40  ;;  %v2688_v59 = vrot.slane %v2618_v28, %v6070_v36 }
0x2358   :  { %v2612_v29 = vpop.xlane.xlu0 %2611  ;;  %v2721_v53 = vsel %vm378_vm3, %v2666_v49, %v2657_v19 }
0x2359   :  { %v2674_v6 = vrot.slane %v2612_v29, %v6067_v34 }
0x235a   :  { %v2614_v30 = vpop.xlane.xlu1 %2613 }
0x235b   :  { %v2679_v48 = vrot.slane %v2614_v30, %v6070_v36  ;;  %v2675_v4 = vsel %vm313_vm2, %v2674_v6, %v2670_v41  ;;  %v5583_v41 = vld [vmem:[#allocation10] sm:$0xff]  }
0x235c   :  { %v2620_v0 = vpop.xlane.xlu0 %2619  ;;  %v2722_v56 = vsel %vm380_vm4, %v2675_v4, %v2721_v53  ;;  %5441 = vmatpush3.bf16.msra.mxu1 %v5583_v41 }
0x235d   :  { %v2692_v54 = vrot.slane %v2620_v0, %v6067_v34  ;;  %5442 = vmatprep.subr.bf16.mxu1 %v5900_v5 }
0x235e   :  { %v2622_v31 = vpop.xlane.xlu1 %2621 }
0x235f   :  { %v2697_v57 = vrot.slane %v2622_v31, %v6070_v36  ;;  %v2693_v63 = vsel %vm313_vm2, %v2692_v54, %v2688_v59 }
0x2360   :  { %v2616_v11 = vpop.xlane.xlu0 %2615 }
0x2361   :  { %v2683_v25 = vrot.slane %v2616_v11, %v6067_v34 }
0x2362   :  { %v2626_v43 = vpop.xlane.xlu1 %2625 }
0x2363   :  { %v2684_v51 = vsel %vm313_vm2, %v2683_v25, %v2679_v48  ;;  %v2706_v61 = vrot.slane %v2626_v43, %v6070_v36  ;;  %v5585_v43 = vld [vmem:[#allocation10 + $0x10] sm:$0xff]  }
0x2364   :  { %v2624_v44 = vpop.xlane.xlu0 %2623  ;;  %v2723_v52 = vsel %vm382_vm5, %v2684_v51, %v2722_v56 }
0x2365   :  { %v2701_v2 = vrot.slane %v2624_v44, %v6067_v34  ;;  %v2724_v1 = vsel %vm384_vm6, %v2693_v63, %v2723_v52 }
0x2366   :  { %v2630_v21 = vpop.xlane.xlu1 %2629 }
0x2367   :  { %v2702_v62 = vsel %vm313_vm2, %v2701_v2, %v2697_v57  ;;  %v2715_v10 = vrot.slane %v2630_v21, %v6070_v36 }
0x2368   :  { %v2628_v55 = vpop.xlane.xlu0 %2627  ;;  %v2725_v50 = vsel %vm386_vm7, %v2702_v62, %v2724_v1 }
0x2369   :  { %v2710_v58 = vrot.slane %v2628_v55, %v6067_v34 }
0x236a   :  { %v2730_v22 = vpop.permute.xlu1 %2729 }
0x236b   :  { %v2711_v45 = vsel %vm313_vm2, %v2710_v58, %v2706_v61 }
0x236c   :  { %v2632_v42 = vpop.xlane.xlu0 %2631  ;;  %v2726_v18 = vsel %vm388_vm8, %v2711_v45, %v2725_v50 }
0x236d   :  { %v2719_v13 = vrot.slane %v2632_v42, %v6067_v34 }
0x236f   :  { %v2720_v14 = vsel %vm313_vm2, %v2719_v13, %v2715_v10 }
0x2370   :  { %v2727_v46 = vsel %vm390_vm9, %v2720_v14, %v2726_v18 }
0x2371   :  { %v2732_v23 = vsel %vm397_vm10, %v2727_v46, %v2730_v22 }
0x2372   :  { %v2733_v33 = vpack.c.bf16 %v2732_v23, %v2732_v23 }
0x2374   :  { %5437 = vmatmul.mubr.msk.bf16.vlgmr.msra.gmra.mrb[24].mxu0 %vm431_vm11, %v2733_v33 }
0x2375   :  { %2992 = vmatpush1.bf16.msra.mxu0 %v6464_v37  ;;  %3023 = vmatprep.mubr.bf16.mxu0 %v5905_v7 }
0x2376   :  { %2993 = vmatprep.subr.bf16.mxu0 %v6468_v3 }
0x2379   :  { %2994 = vmatpush1.bf16.msra.mxu0 %v6472_v39 }
0x237a   :  { %5462 = vmatprep.subr.bf16.mxu0 %v5900_v5 }
0x2447   :  { %v2802_v24 = vpop.f32.mrb[24].mxu0 }
0x2448   :  { %v2803_v26 = vadd.f32 %v6333_v32, %v2802_v24  ;;  %v5438_v27 = vpop.f32.mrb[25].mxu0 }
0x2449   :  { %v2805_v28 = vpop.f32.mrb[26].mxu0 }
0x244a   :  { %5698 = vtanh.f32 %v2803_v26  ;;  %v5439_v29 = vpop.f32.mrb[27].mxu0  ;;  %v4891_v0 = vmul.f32 -1.442695, %v2803_v26 }
0x244c   :  { %5700 = vpow2.f32 %v4891_v0 }
0x2454   :  { %v5699_v30 = vpop.eup %5698 }
0x2455   :  { %2817 = vrot.lane.b32.xlu0 %v5699_v30, %s5894_s13 }
0x2456   :  { %v5701_v31 = vpop.eup %5700 }
0x2457   :  { %v2811_v11 = vadd.f32 1.0, %v5701_v31 }
0x2459   :  { %2837 = vrot.lane.b32.xlu0 %v6478_v8, %s5894_s13  ;;  %5702 = vrcp.f32 %v2811_v11  ;;  %v5584_v8 = vld [vmem:[#allocation10 + $0x8] sm:$0xff]  }
0x245a   :  { %5443 = vmatpush3.bf16.msra.mxu1 %v5584_v8 }
0x245b   :  { %5444 = vmatprep.subr.bf16.mxu1 %v5900_v5 }
0x245e   :  { %5445 = vmatpush3.bf16.msra.mxu1 %v5585_v43 }
0x245f   :  { %5446 = vmatprep.subr.bf16.mxu1 %v5900_v5 }
0x2463   :  { %v5703_v16 = vpop.eup %5702 }
0x2464   :  { %v2815_v32 = vmul.f32 %v5703_v16, %v6436_v60  ;;  %v5586_v60 = vld [vmem:[#allocation10 + $0x18] sm:$0xff]  }
0x2465   :  { %5447 = vmatpush3.bf16.msra.mxu1 %v5586_v60 }
0x2466   :  { %5452 = vmatprep.subr.bf16.mxu1 %v5900_v5 }
0x24c7   :  { %v2818_v6 = vpop.permute.xlu0 %2817 }
0x24c8   :  { %v2820_v40 = vmul.f32 %v5703_v16, %v2818_v6  ;;  %v5119_v6 = vld [vmem:[#allocation5 + $0x140] sm:$0xff]  }
0x24c9   :  { %v5120_v41 = vunpack.c.l.bf16 %v5119_v6 }
0x24ca   :  { %2822 = vrot.lane.b32.xlu1 %v2820_v40, %s5904_s9 }
0x24cb   :  { %v2838_v48 = vpop.permute.xlu0 %2837 }
0x253c   :  { %v2823_v9 = vpop.permute.xlu1 %2822 }
0x253d   :  { %v6554_v25 = vadd.f32 %v2823_v9, %v2815_v32  ;;  %v5249_v32 = vld [vmem:[#allocation5 + $0x148] sm:$0xff]  }
0x253f   :  { %5704 = vtanh.f32 %v6554_v25 }
0x2549   :  { %v5705_v44 = vpop.eup %5704 }
0x254a   :  { %2828 = vrot.lane.b32.xlu1 %v5705_v44, %s5894_s13  ;;  %v5124_v44 = vunpack.c.l.bf16 %v5249_v32 }
0x25bc   :  { %v2829_v47 = vpop.permute.xlu1 %2828 }
0x25bd   :  { %v6562_v49 = vmul.f32 %v5703_v16, %v2829_v47 }
0x25bf   :  { %2833 = vrot.lane.b32.xlu1 %v6562_v49, %s5904_s9 }
0x2631   :  { %v2834_v4 = vpop.permute.xlu1 %2833 }
0x2632   :  { %v2840_v19 = vsel %vm87_vm0, %v2834_v4, %v2838_v48 }
0x2633   :  { %v2841_v51 = vpack.c.bf16 %v2840_v19, %v2840_v19  ;;  %v5250_v19 = vld [vmem:[#allocation5 + $0x150] sm:$0xff]  }
0x2635   :  { %5449 = vmatmul.mubr.msk.bf16.vlgmr.msra.gmra.mrb[24].mxu1 %vm553_vm12, %v2841_v51 }
0x2636   :  { %5458 = vmatprep.mubr.msk.bf16.mxu1 %vm5903_vm1, %v5900_v5 }
0x2708   :  { %v2918_v2 = vpop.f32.mrb[24].mxu1 }
0x2709   :  { %v2919_v53 = vadd.f32 %v6455_v15, %v2918_v2  ;;  %v5450_v54 = vpop.f32.mrb[25].mxu1 }
0x270a   :  { %v2921_v55 = vpop.f32.mrb[26].mxu1 }
0x270b   :  { %5706 = vtanh.f32 %v2919_v53  ;;  %v5451_v56 = vpop.f32.mrb[27].mxu1  ;;  %v4898_v58 = vmul.f32 -1.442695, %v2919_v53  ;;  %v5121_v53 = vunpack.c.h.bf16 %v5119_v6  ;;  %v5128_v55 = vunpack.c.l.bf16 %v5250_v19 }
0x270d   :  { %5708 = vpow2.f32 %v4898_v58 }
0x2715   :  { %v5707_v57 = vpop.eup %5706 }
0x2716   :  { %2933 = vrot.lane.b32.xlu1 %v5707_v57, %s5894_s13  ;;  %v5252_v57 = vld [vmem:[#allocation5 + $0x160] sm:$0xff]  }
0x2717   :  { %v5709_v59 = vpop.eup %5708 }
0x2718   :  { %v2927_v52 = vadd.f32 1.0, %v5709_v59 }
0x271a   :  { %5710 = vrcp.f32 %v2927_v52  ;;  %v5125_v52 = vunpack.c.h.bf16 %v5249_v32 }
0x2724   :  { %v5711_v61 = vpop.eup %5710 }
0x2725   :  { %v2931_v63 = vmul.f32 %v5711_v61, %v6461_v35  ;;  %v2953_v35 = vld [vmem:[%s6915_s6] sm:$0x3] }
0x2726   :  { %v2958_v14 = vrot.slane %v2953_v35, %v6044_v17  ;;  %v2962_v22 = vrot.slane %v2953_v35, %v6169_v20 }
0x2788   :  { %v2934_v21 = vpop.permute.xlu1 %2933 }
0x2789   :  { %v2936_v62 = vmul.f32 %v5711_v61, %v2934_v21 }
0x278b   :  { %2938 = vrot.lane.b32.xlu0 %v2936_v62, %s5904_s9 }
0x27fd   :  { %v2939_v45 = vpop.permute.xlu0 %2938 }
0x27fe   :  { %v6574_v42 = vadd.f32 %v2939_v45, %v2931_v63 }
0x2800   :  { %5712 = vtanh.f32 %v6574_v42 }
0x280a   :  { %v5713_v1 = vpop.eup %5712 }
0x280b   :  { %2944 = vrot.lane.b32.xlu1 %v5713_v1, %s5894_s13  ;;  %v5251_v1 = vld [vmem:[#allocation5 + $0x158] sm:$0xff]  }
0x280c   :  { %v5132_v35 = vunpack.c.l.bf16 %v5251_v1 }
0x287d   :  { %v2945_v10 = vpop.permute.xlu1 %2944 }
0x287e   :  { %v6578_v13 = vmul.f32 %v5711_v61, %v2945_v10  ;;  %v5136_v61 = vunpack.c.l.bf16 %v5252_v57 }
0x2880   :  { %v2948_v50 = vpack.c.bf16 %v6578_v13, %v6578_v13 }
0x2882   :  { %2966 = vrot.lane.b32.xlu0 %v2948_v50, %s5904_s9  ;;  %v5129_v50 = vunpack.c.h.bf16 %v5250_v19 }
0x28f4   :  { %v2967_v18 = vpop.permute.xlu0 %2966 }
0x28f5   :  { %4903 = vmatmul.mubr.msk.bf16.vlgmr.msra.gmra.mrb[28].mxu0 %vm87_vm0, %v2967_v18 }
0x28f6   :  { %5470 = vmatprep.mubr.msk.bf16.mxu0 %vm5903_vm1, %v5900_v5 }
0x29c8   :  { %v3025_v46 = vpop.f32.mrb[28].mxu0 }
0x29c9   :  { %v3026_v23 = vadd.f32 %v3025_v46, %v2958_v14  ;;  %v3027_v33 = vpop.f32.mrb[29].mxu0  ;;  %v5253_v46 = vld [vmem:[#allocation5 + $0x168] sm:$0xff]  }
0x29ca   :  { %v3028_v24 = vadd.f32 %v3027_v33, %v2962_v22  ;;  %v3029_v26 = vpop.f32.mrb[30].mxu0  ;;  %v5137_v33 = vunpack.c.h.bf16 %v5252_v57 }
0x29cb   :  { %v3030_v27 = vpop.f32.mrb[31].mxu0  ;;  %3034 = vmax.xlane.f32.xlu1 %v3026_v23  ;;  %v5140_v26 = vunpack.c.l.bf16 %v5253_v46 }
0x29cc   :  { %3033 = vst [vmem:[#allocation13 + $0x20] sm:$0xff] %v3028_v24 }
0x2a58   :  { %v3035_v28 = vpop.xlane.xlu1 %3034 }
0x2a59   :  { %v3036_v29 = vsub.f32 %v3026_v23, %v3035_v28 }
0x2a5b   :  { %v3037_v30 = vmul.f32 1.442695, %v3036_v29  ;;  %v5254_v29 = vld [vmem:[#allocation5 + $0x170] sm:$0xff]  }
0x2a5d   :  { %5714 = vpow2.f32 %v3037_v30 }
0x2a67   :  { %v5715_v0 = vpop.eup %5714 }
0x2a68   :  { %3039 = vadd.xlane.f32.xlu0 %v5715_v0 }
0x2af5   :  { %v3040_v31 = vpop.xlane.xlu0 %3039 }
0x2af6   :  { %5716 = vrcp.f32 %v3040_v31 }
0x2b00   :  { %v5717_v11 = vpop.eup %5716 }
0x2b01   :  { %v3042_v16 = vmul.f32 %v5717_v11, %v5715_v0  ;;  %v5133_v0 = vunpack.c.h.bf16 %v5251_v1  ;;  %v5144_v11 = vunpack.c.l.bf16 %v5254_v29 }
0x2b03   :  { %v3068_v40 = vrot.slane %v3042_v16, %v6040_v12  ;;  %v3061_v9 = vcombine.high %v3042_v16, %v3042_v16 }
0x2b05   :  { %v3084_v8 = vrot.slane %v3068_v40, %v6040_v12  ;;  %v3076_v43 = vcombine.high %v3068_v40, %v3068_v40  ;;  %v3075_v4 = vrot.slane %v3061_v9, %v6040_v12  ;;  %v5255_v40 = vld [vmem:[#allocation5 + $0x178] sm:$0xff]   ;;  %v5141_v9 = vunpack.c.h.bf16 %v5253_v46 }
0x2b07   :  { %v3129_v60 = vrot.slane %v3084_v8, %v6044_v17  ;;  %v3098_v47 = vrot.slane %v3076_v43, %v6040_v12  ;;  %v3106_v48 = vcombine.high %v3084_v8, %v3084_v8  ;;  %v3091_v58 = vrot.slane %v3075_v4, %v6040_v12 }
0x2b08   :  { %v3077_v45 = vcombine.high %v3075_v4, %v3075_v4  ;;  %v5148_v8 = vunpack.c.l.bf16 %v5255_v40  ;;  %v5149_v4 = vunpack.c.h.bf16 %v5255_v40 }
0x2b09   :  { %v3166_v51 = vmul.f32 %v5120_v41, %v3129_v60  ;;  %v3133_v2 = vrot.slane %v3098_v47, %v6044_v17  ;;  %v3137_v56 = vrot.slane %v3106_v48, %v6044_v17  ;;  %v3167_v59 = vmul.f32 %v5121_v53, %v3129_v60  ;;  %v5589_v53 = vld [vmem:[#allocation8 + $0x10] sm:$0xff]  }
0x2b0a   :  { %v3145_v62 = vrot.slane %v3091_v58, %v6044_v17  ;;  %v3108_v63 = vcombine.high %v3098_v47, %v3098_v47  ;;  %v3105_v22 = vrot.slane %v3077_v45, %v6040_v12  ;;  %v3107_v28 = vcombine.high %v3091_v58, %v3091_v58 }
0x2b0b   :  { %3182 = vadd.xlane.f32.xlu0 %v3166_v51  ;;  %v3168_v54 = vmul.f32 %v5124_v44, %v3133_v2  ;;  %v3170_v21 = vmul.f32 %v5128_v55, %v3137_v56  ;;  %v3169_v10 = vmul.f32 %v5125_v52, %v3133_v2  ;;  %v3171_v23 = vmul.f32 %v5129_v50, %v3137_v56  ;;  %v5587_v51 = vld [vmem:[#allocation8] sm:$0xff]   ;;  %v5588_v2 = vld [vmem:[#allocation8 + $0x8] sm:$0xff]  }
0x2b0c   :  { %v3174_v18 = vmul.f32 %v5136_v61, %v3145_v62  ;;  %v3141_v14 = vrot.slane %v3108_v63, %v6044_v17  ;;  %v3149_v27 = vrot.slane %v3105_v22, %v6044_v17  ;;  %v3175_v30 = vmul.f32 %v5137_v33, %v3145_v62  ;;  %5453 = vmatpush3.bf16.msra.mxu1 %v5587_v51 }
0x2b0d   :  { %3186 = vadd.xlane.f32.xlu1 %v3168_v54  ;;  %v3153_v16 = vrot.slane %v3107_v28, %v6044_v17  ;;  %v3109_v6 = vcombine.high %v3105_v22, %v3105_v22  ;;  %v5145_v60 = vunpack.c.h.bf16 %v5254_v29  ;;  %5454 = vmatprep.subr.bf16.mxu1 %v5900_v5 }
0x2b0e   :  { %v3172_v24 = vmul.f32 %v5132_v35, %v3141_v14  ;;  %v3176_v31 = vmul.f32 %v5140_v26, %v3149_v27  ;;  %v3173_v32 = vmul.f32 %v5133_v0, %v3141_v14  ;;  %v3177_v44 = vmul.f32 %v5141_v9, %v3149_v27 }
0x2b0f   :  { %3184 = vadd.xlane.f32.xlu0 %v3167_v59  ;;  %v3178_v41 = vmul.f32 %v5144_v11, %v3153_v16  ;;  %v3157_v43 = vrot.slane %v3109_v6, %v6044_v17  ;;  %v3179_v48 = vmul.f32 %v5145_v60, %v3153_v16 }
0x2b10   :  { %5455 = vmatpush3.bf16.msra.mxu1 %v5588_v2 }
0x2b11   :  { %3190 = vadd.xlane.f32.xlu1 %v3170_v21  ;;  %v3180_v47 = vmul.f32 %v5148_v8, %v3157_v43  ;;  %v3181_v19 = vmul.f32 %v5149_v4, %v3157_v43  ;;  %5456 = vmatprep.subr.bf16.mxu1 %v5900_v5 }
0x2b13   :  { %3188 = vadd.xlane.f32.xlu0 %v3169_v10 }
0x2b14   :  { %5457 = vmatpush3.bf16.msra.mxu1 %v5589_v53 }
0x2b15   :  { %3198 = vadd.xlane.f32.xlu1 %v3174_v18  ;;  %3572 = vmatprep.subr.bf16.mxu1 %v6466_v38 }
0x2b17   :  { %3192 = vadd.xlane.f32.xlu0 %v3171_v23 }
0x2b19   :  { %3194 = vadd.xlane.f32.xlu1 %v3172_v24 }
0x2b1b   :  { %3200 = vadd.xlane.f32.xlu0 %v3175_v30 }
0x2b1d   :  { %3202 = vadd.xlane.f32.xlu1 %v3176_v31 }
0x2b1f   :  { %3196 = vadd.xlane.f32.xlu0 %v3173_v32 }
0x2b21   :  { %3206 = vadd.xlane.f32.xlu1 %v3178_v41 }
0x2b23   :  { %3204 = vadd.xlane.f32.xlu0 %v3177_v44 }
0x2b25   :  { %3210 = vadd.xlane.f32.xlu1 %v3180_v47 }
0x2b27   :  { %3208 = vadd.xlane.f32.xlu0 %v3179_v48 }
0x2b2b   :  { %3212 = vadd.xlane.f32.xlu0 %v3181_v19 }
0x2b36   :  { %3310 = vrot.lane.b32.xlu1 %v6562_v49, %s5906_s16 }
0x2b98   :  { %v3183_v54 = vpop.xlane.xlu0 %3182 }
0x2b99   :  { %v3233_v14 = vrot.slane %v3183_v54, %v6070_v36  ;;  %v6651_v54 = vld [vmem:[%s6911_s2] ss:$0 sm:$0xff] }
0x2b9a   :  { %v3187_v55 = vpop.xlane.xlu1 %3186 }
0x2b9b   :  { %v3242_v1 = vrot.slane %v3187_v55, %v6070_v36 }
0x2b9c   :  { %v3185_v56 = vpop.xlane.xlu0 %3184 }
0x2b9d   :  { %v3237_v10 = vrot.slane %v3185_v56, %v6067_v34 }
0x2b9e   :  { %v3191_v57 = vpop.xlane.xlu1 %3190 }
0x2b9f   :  { %v3251_v50 = vrot.slane %v3191_v57, %v6070_v36  ;;  %v3238_v33 = vsel %vm313_vm2, %v3237_v10, %v3233_v14  ;;  %v5592_v10 = vld [vmem:[#allocation10 + $0x10] sm:$0xff]  }
0x2ba0   :  { %v3189_v58 = vpop.xlane.xlu0 %3188 }
0x2ba1   :  { %v3246_v63 = vrot.slane %v3189_v58, %v6067_v34 }
0x2ba2   :  { %v3199_v59 = vpop.xlane.xlu1 %3198 }
0x2ba3   :  { %v3247_v22 = vsel %vm313_vm2, %v3246_v63, %v3242_v1  ;;  %v3269_v11 = vrot.slane %v3199_v59, %v6070_v36  ;;  %v5590_v1 = vld [vmem:[#allocation10] sm:$0xff]  }
0x2ba4   :  { %v3193_v52 = vpop.xlane.xlu0 %3192  ;;  %v3302_v27 = vsel %vm378_vm3, %v3247_v22, %v3238_v33  ;;  %5463 = vmatpush3.bf16.msra.mxu0 %v5590_v1 }
0x2ba5   :  { %v3255_v45 = vrot.slane %v3193_v52, %v6067_v34  ;;  %5464 = vmatprep.subr.bf16.mxu0 %v5900_v5 }
0x2ba6   :  { %v3195_v61 = vpop.xlane.xlu1 %3194 }
0x2ba7   :  { %v3260_v46 = vrot.slane %v3195_v61, %v6070_v36  ;;  %v3256_v23 = vsel %vm313_vm2, %v3255_v45, %v3251_v50 }
0x2ba8   :  { %v3201_v49 = vpop.xlane.xlu0 %3200  ;;  %v3303_v30 = vsel %vm380_vm4, %v3256_v23, %v3302_v27 }
0x2ba9   :  { %v3273_v28 = vrot.slane %v3201_v49, %v6067_v34 }
0x2baa   :  { %v3203_v21 = vpop.xlane.xlu1 %3202 }
0x2bab   :  { %v3278_v0 = vrot.slane %v3203_v21, %v6070_v36  ;;  %v3274_v9 = vsel %vm313_vm2, %v3273_v28, %v3269_v11 }
0x2bac   :  { %v3197_v62 = vpop.xlane.xlu0 %3196 }
0x2bad   :  { %v3264_v38 = vrot.slane %v3197_v62, %v6067_v34 }
0x2bae   :  { %v3207_v18 = vpop.xlane.xlu1 %3206 }
0x2baf   :  { %v3265_v24 = vsel %vm313_vm2, %v3264_v38, %v3260_v46  ;;  %v3287_v6 = vrot.slane %v3207_v18, %v6070_v36 }
0x2bb0   :  { %v3205_v35 = vpop.xlane.xlu0 %3204  ;;  %v3304_v16 = vsel %vm382_vm5, %v3265_v24, %v3303_v30 }
0x2bb1   :  { %v3282_v26 = vrot.slane %v3205_v35, %v6067_v34  ;;  %v3305_v43 = vsel %vm384_vm6, %v3274_v9, %v3304_v16 }
0x2bb2   :  { %v3211_v40 = vpop.xlane.xlu1 %3210 }
0x2bb3   :  { %v3283_v32 = vsel %vm313_vm2, %v3282_v26, %v3278_v0  ;;  %v3296_v44 = vrot.slane %v3211_v40, %v6070_v36 }
0x2bb4   :  { %v3209_v29 = vpop.xlane.xlu0 %3208  ;;  %v3306_v47 = vsel %vm386_vm7, %v3283_v32, %v3305_v43 }
0x2bb5   :  { %v3291_v31 = vrot.slane %v3209_v29, %v6067_v34 }
0x2bb6   :  { %v3311_v19 = vpop.permute.xlu1 %3310 }
0x2bb7   :  { %v3292_v41 = vsel %vm313_vm2, %v3291_v31, %v3287_v6 }
0x2bb8   :  { %v3213_v8 = vpop.xlane.xlu0 %3212  ;;  %v3307_v48 = vsel %vm388_vm8, %v3292_v41, %v3306_v47 }
0x2bb9   :  { %v3300_v60 = vrot.slane %v3213_v8, %v6067_v34 }
0x2bbb   :  { %v3301_v4 = vsel %vm313_vm2, %v3300_v60, %v3296_v44 }
0x2bbc   :  { %v3308_v51 = vsel %vm390_vm9, %v3301_v4, %v3307_v48 }
0x2bbd   :  { %v3313_v2 = vsel %vm397_vm10, %v3308_v51, %v3311_v19 }
0x2bbe   :  { %v3314_v53 = vpack.c.bf16 %v3313_v2, %v3313_v2 }
0x2bc0   :  { %5459 = vmatmul.mubr.msk.bf16.vlgmr.msra.gmra.mrb[28].mxu1 %vm431_vm11, %v3314_v53 }
0x2bc1   :  { %3573 = vmatpush1.bf16.msra.mxu1 %v6464_v37  ;;  %3604 = vmatprep.mubr.bf16.mxu1 %v5905_v7 }
0x2bc2   :  { %3574 = vmatprep.subr.bf16.mxu1 %v6468_v3 }
0x2bc5   :  { %3575 = vmatpush1.bf16.msra.mxu1 %v6472_v39 }
0x2bc6   :  { %5484 = vmatprep.subr.bf16.mxu1 %v5900_v5 }
0x2c93   :  { %v3383_v55 = vpop.f32.mrb[28].mxu1 }
0x2c94   :  { %v3384_v56 = vadd.f32 %v6651_v54, %v3383_v55  ;;  %v5460_v57 = vpop.f32.mrb[29].mxu1 }
0x2c95   :  { %v3386_v58 = vpop.f32.mrb[30].mxu1 }
0x2c96   :  { %5718 = vtanh.f32 %v3384_v56  ;;  %v5461_v37 = vpop.f32.mrb[31].mxu1  ;;  %v4909_v3 = vmul.f32 -1.442695, %v3384_v56 }
0x2c98   :  { %5720 = vpow2.f32 %v4909_v3  ;;  %v5151_v3 = vld [vmem:[#allocation5 + $0x180] sm:$0xff]  }
0x2ca0   :  { %v5719_v59 = vpop.eup %5718 }
0x2ca1   :  { %3398 = vrot.lane.b32.xlu0 %v5719_v59, %s5894_s13 }
0x2ca2   :  { %v5721_v39 = vpop.eup %5720 }
0x2ca3   :  { %v3392_v52 = vadd.f32 1.0, %v5721_v39 }
0x2ca5   :  { %3418 = vrot.lane.b32.xlu0 %v6578_v13, %s5894_s13  ;;  %5722 = vrcp.f32 %v3392_v52  ;;  %v5591_v13 = vld [vmem:[#allocation10 + $0x8] sm:$0xff]   ;;  %v5256_v52 = vld [vmem:[#allocation5 + $0x188] sm:$0xff]  }
0x2ca6   :  { %5465 = vmatpush3.bf16.msra.mxu0 %v5591_v13 }
0x2ca7   :  { %5466 = vmatprep.subr.bf16.mxu0 %v5900_v5 }
0x2caa   :  { %5467 = vmatpush3.bf16.msra.mxu0 %v5592_v10 }
0x2cab   :  { %5468 = vmatprep.subr.bf16.mxu0 %v5900_v5 }
0x2caf   :  { %v5723_v61 = vpop.eup %5722 }
0x2cb0   :  { %v3396_v62 = vmul.f32 %v5723_v61, %v6554_v25  ;;  %v5593_v25 = vld [vmem:[#allocation10 + $0x18] sm:$0xff]  }
0x2cb1   :  { %5469 = vmatpush3.bf16.msra.mxu0 %v5593_v25  ;;  %v5257_v25 = vld [vmem:[#allocation5 + $0x190] sm:$0xff]  }
0x2cb2   :  { %5474 = vmatprep.subr.bf16.mxu0 %v5900_v5 }
0x2d13   :  { %v3399_v49 = vpop.permute.xlu0 %3398 }
0x2d14   :  { %v3401_v21 = vmul.f32 %v5723_v61, %v3399_v49  ;;  %v5152_v49 = vunpack.c.l.bf16 %v5151_v3 }
0x2d16   :  { %3403 = vrot.lane.b32.xlu1 %v3401_v21, %s5904_s9 }
0x2d17   :  { %v3419_v35 = vpop.permute.xlu0 %3418 }
0x2d88   :  { %v3404_v63 = vpop.permute.xlu1 %3403 }
0x2d89   :  { %v6659_v45 = vadd.f32 %v3404_v63, %v3396_v62  ;;  %v5156_v63 = vunpack.c.l.bf16 %v5256_v52 }
0x2d8b   :  { %5724 = vtanh.f32 %v6659_v45 }
0x2d95   :  { %v5725_v38 = vpop.eup %5724 }
0x2d96   :  { %3409 = vrot.lane.b32.xlu1 %v5725_v38, %s5894_s13 }
0x2e08   :  { %v3410_v50 = vpop.permute.xlu1 %3409 }
0x2e09   :  { %v6667_v18 = vmul.f32 %v5723_v61, %v3410_v50 }
0x2e0b   :  { %3414 = vrot.lane.b32.xlu1 %v6667_v18, %s5904_s9 }
0x2e7d   :  { %v3415_v14 = vpop.permute.xlu1 %3414 }
0x2e7e   :  { %v3421_v22 = vsel %vm87_vm0, %v3415_v14, %v3419_v35  ;;  %v5153_v14 = vunpack.c.h.bf16 %v5151_v3 }
0x2e7f   :  { %v3422_v46 = vpack.c.bf16 %v3421_v22, %v3421_v22 }
0x2e81   :  { %5471 = vmatmul.mubr.msk.bf16.vlgmr.msra.gmra.mrb[32].mxu0 %vm553_vm12, %v3422_v46  ;;  %v5160_v46 = vunpack.c.l.bf16 %v5257_v25 }
0x2e82   :  { %5480 = vmatprep.mubr.msk.bf16.mxu0 %vm5903_vm1, %v5900_v5 }
0x2f54   :  { %v3499_v23 = vpop.f32.mrb[32].mxu0 }
0x2f55   :  { %v3500_v33 = vadd.f32 %v6455_v15, %v3499_v23  ;;  %v5472_v24 = vpop.f32.mrb[33].mxu0 }
0x2f56   :  { %v3502_v26 = vpop.f32.mrb[34].mxu0 }
0x2f57   :  { %5726 = vtanh.f32 %v3500_v33  ;;  %v5473_v27 = vpop.f32.mrb[35].mxu0  ;;  %v4916_v29 = vmul.f32 -1.442695, %v3500_v33  ;;  %v5259_v33 = vld [vmem:[#allocation5 + $0x1a0] sm:$0xff]  }
0x2f58   :  { %v5157_v27 = vunpack.c.h.bf16 %v5256_v52 }
0x2f59   :  { %5728 = vpow2.f32 %v4916_v29 }
0x2f61   :  { %v5727_v28 = vpop.eup %5726 }
0x2f62   :  { %3514 = vrot.lane.b32.xlu1 %v5727_v28, %s5894_s13  ;;  %v5168_v28 = vunpack.c.l.bf16 %v5259_v33 }
0x2f63   :  { %v5729_v30 = vpop.eup %5728 }
0x2f64   :  { %v3508_v0 = vadd.f32 1.0, %v5729_v30 }
0x2f66   :  { %5730 = vrcp.f32 %v3508_v0 }
0x2f70   :  { %v5731_v31 = vpop.eup %5730 }
0x2f71   :  { %v3512_v6 = vmul.f32 %v5731_v31, %v6574_v42  ;;  %v3534_v42 = vld [vmem:[%s6915_s6] sm:$0x3] }
0x2f72   :  { %v3539_v44 = vrot.slane %v3534_v42, %v6044_v17  ;;  %v3543_v60 = vrot.slane %v3534_v42, %v6169_v20 }
0x2fd4   :  { %v3515_v11 = vpop.permute.xlu1 %3514 }
0x2fd5   :  { %v3517_v16 = vmul.f32 %v5731_v31, %v3515_v11  ;;  %v5258_v11 = vld [vmem:[#allocation5 + $0x198] sm:$0xff]  }
0x2fd7   :  { %3519 = vrot.lane.b32.xlu0 %v3517_v16, %s5904_s9 }
0x3049   :  { %v3520_v15 = vpop.permute.xlu0 %3519 }
0x304a   :  { %v6679_v40 = vadd.f32 %v3520_v15, %v3512_v6  ;;  %v5161_v6 = vunpack.c.h.bf16 %v5257_v25 }
0x304c   :  { %5732 = vtanh.f32 %v6679_v40 }
0x3056   :  { %v5733_v32 = vpop.eup %5732 }
0x3057   :  { %3525 = vrot.lane.b32.xlu1 %v5733_v32, %s5894_s13  ;;  %v5164_v32 = vunpack.c.l.bf16 %v5258_v11 }
0x30c9   :  { %v3526_v9 = vpop.permute.xlu1 %3525 }
0x30ca   :  { %v6683_v41 = vmul.f32 %v5731_v31, %v3526_v9 }
0x30cc   :  { %v3529_v8 = vpack.c.bf16 %v6683_v41, %v6683_v41 }
0x30ce   :  { %3547 = vrot.lane.b32.xlu0 %v3529_v8, %s5904_s9 }
0x3140   :  { %v3548_v43 = vpop.permute.xlu0 %3547 }
0x3141   :  { %4921 = vmatmul.mubr.msk.bf16.vlgmr.msra.gmra.mrb[32].mxu1 %vm87_vm0, %v3548_v43  ;;  %v5260_v43 = vld [vmem:[#allocation5 + $0x1a8] sm:$0xff]  }
0x3142   :  { %5492 = vmatprep.mubr.msk.bf16.mxu1 %vm5903_vm1, %v5900_v5 }
0x3214   :  { %v3606_v47 = vpop.f32.mrb[32].mxu1 }
0x3215   :  { %v3607_v48 = vadd.f32 %v3606_v47, %v3539_v44  ;;  %v3608_v4 = vpop.f32.mrb[33].mxu1  ;;  %v5169_v44 = vunpack.c.h.bf16 %v5259_v33  ;;  %v5172_v47 = vunpack.c.l.bf16 %v5260_v43 }
0x3216   :  { %v3609_v19 = vadd.f32 %v3608_v4, %v3543_v60  ;;  %v3610_v51 = vpop.f32.mrb[34].mxu1 }
0x3217   :  { %v3611_v2 = vpop.f32.mrb[35].mxu1  ;;  %3615 = vmax.xlane.f32.xlu1 %v3607_v48 }
0x3218   :  { %3614 = vst [vmem:[#allocation13 + $0x28] sm:$0xff] %v3609_v19  ;;  %v5261_v19 = vld [vmem:[#allocation5 + $0x1b0] sm:$0xff]   ;;  %v5165_v2 = vunpack.c.h.bf16 %v5258_v11 }
0x32a4   :  { %v3616_v53 = vpop.xlane.xlu1 %3615 }
0x32a5   :  { %v3617_v55 = vsub.f32 %v3607_v48, %v3616_v53 }
0x32a7   :  { %v3618_v56 = vmul.f32 1.442695, %v3617_v55  ;;  %v5176_v55 = vunpack.c.l.bf16 %v5261_v19 }
0x32a9   :  { %5734 = vpow2.f32 %v3618_v56 }
0x32b3   :  { %v5735_v57 = vpop.eup %5734 }
0x32b4   :  { %3620 = vadd.xlane.f32.xlu0 %v5735_v57 }
0x3341   :  { %v3621_v58 = vpop.xlane.xlu0 %3620 }
0x3342   :  { %5736 = vrcp.f32 %v3621_v58  ;;  %v5262_v58 = vld [vmem:[#allocation5 + $0x1b8] sm:$0xff]  }
0x334c   :  { %v5737_v37 = vpop.eup %5736 }
0x334d   :  { %v3623_v59 = vmul.f32 %v5737_v37, %v5735_v57 }
0x334f   :  { %v3649_v39 = vrot.slane %v3623_v59, %v6040_v12  ;;  %v3642_v61 = vcombine.high %v3623_v59, %v3623_v59  ;;  %v5173_v59 = vunpack.c.h.bf16 %v5260_v43 }
0x3351   :  { %v3665_v21 = vrot.slane %v3649_v39, %v6040_v12  ;;  %v3657_v62 = vcombine.high %v3649_v39, %v3649_v39  ;;  %v3656_v38 = vrot.slane %v3642_v61, %v6040_v12  ;;  %v5180_v39 = vunpack.c.l.bf16 %v5262_v58 }
0x3353   :  { %v3710_v1 = vrot.slane %v3665_v21, %v6044_v17  ;;  %v3679_v13 = vrot.slane %v3657_v62, %v6040_v12  ;;  %v3687_v10 = vcombine.high %v3665_v21, %v3665_v21  ;;  %v3672_v24 = vrot.slane %v3656_v38, %v6040_v12 }
0x3354   :  { %v3658_v31 = vcombine.high %v3656_v38, %v3656_v38  ;;  %v5596_v38 = vld [vmem:[#allocation8 + $0x10] sm:$0xff]  }
0x3355   :  { %v3747_v50 = vmul.f32 %v5152_v49, %v3710_v1  ;;  %v3714_v35 = vrot.slane %v3679_v13, %v6044_v17  ;;  %v3718_v23 = vrot.slane %v3687_v10, %v6044_v17  ;;  %v3748_v26 = vmul.f32 %v5153_v14, %v3710_v1  ;;  %v5595_v10 = vld [vmem:[#allocation8 + $0x8] sm:$0xff]  }
0x3356   :  { %v3726_v30 = vrot.slane %v3672_v24, %v6044_v17  ;;  %v3689_v0 = vcombine.high %v3679_v13, %v3679_v13  ;;  %v3686_v8 = vrot.slane %v3658_v31, %v6040_v12  ;;  %v3688_v4 = vcombine.high %v3672_v24, %v3672_v24  ;;  %v5594_v13 = vld [vmem:[#allocation8] sm:$0xff]  }
0x3357   :  { %3763 = vadd.xlane.f32.xlu0 %v3747_v50  ;;  %v3749_v22 = vmul.f32 %v5156_v63, %v3714_v35  ;;  %v3751_v29 = vmul.f32 %v5160_v46, %v3718_v23  ;;  %v3750_v16 = vmul.f32 %v5157_v27, %v3714_v35  ;;  %v3752_v42 = vmul.f32 %v5161_v6, %v3718_v23 }
0x3358   :  { %v3755_v15 = vmul.f32 %v5168_v28, %v3726_v30  ;;  %v3722_v9 = vrot.slane %v3689_v0, %v6044_v17  ;;  %v3730_v48 = vrot.slane %v3686_v8, %v6044_v17  ;;  %v3756_v51 = vmul.f32 %v5169_v44, %v3726_v30  ;;  %5475 = vmatpush3.bf16.msra.mxu0 %v5594_v13 }
0x3359   :  { %3767 = vadd.xlane.f32.xlu1 %v3749_v22  ;;  %v3734_v56 = vrot.slane %v3688_v4, %v6044_v17  ;;  %v3690_v57 = vcombine.high %v3686_v8, %v3686_v8  ;;  %v5177_v49 = vunpack.c.h.bf16 %v5261_v19  ;;  %v5181_v63 = vunpack.c.h.bf16 %v5262_v58  ;;  %5476 = vmatprep.subr.bf16.mxu0 %v5900_v5 }
0x335a   :  { %v3753_v60 = vmul.f32 %v5164_v32, %v3722_v9  ;;  %v3757_v53 = vmul.f32 %v5172_v47, %v3730_v48  ;;  %v3754_v37 = vmul.f32 %v5165_v2, %v3722_v9  ;;  %v3758_v61 = vmul.f32 %v5173_v59, %v3730_v48 }
0x335b   :  { %3765 = vadd.xlane.f32.xlu0 %v3748_v26  ;;  %v3759_v3 = vmul.f32 %v5176_v55, %v3734_v56  ;;  %v3738_v52 = vrot.slane %v3690_v57, %v6044_v17  ;;  %v3760_v62 = vmul.f32 %v5177_v49, %v3734_v56 }
0x335c   :  { %5477 = vmatpush3.bf16.msra.mxu0 %v5595_v10 }
0x335d   :  { %3771 = vadd.xlane.f32.xlu1 %v3751_v29  ;;  %v3761_v21 = vmul.f32 %v5180_v39, %v3738_v52  ;;  %v3762_v1 = vmul.f32 %v5181_v63, %v3738_v52  ;;  %5478 = vmatprep.subr.bf16.mxu0 %v5900_v5 }
0x335f   :  { %3769 = vadd.xlane.f32.xlu0 %v3750_v16 }
0x3360   :  { %5479 = vmatpush3.bf16.msra.mxu0 %v5596_v38 }
0x3361   :  { %3779 = vadd.xlane.f32.xlu1 %v3755_v15 }
0x3363   :  { %3773 = vadd.xlane.f32.xlu0 %v3752_v42 }
0x3365   :  { %3775 = vadd.xlane.f32.xlu1 %v3753_v60 }
0x3367   :  { %3781 = vadd.xlane.f32.xlu0 %v3756_v51 }
0x3369   :  { %3783 = vadd.xlane.f32.xlu1 %v3757_v53 }
0x336b   :  { %3777 = vadd.xlane.f32.xlu0 %v3754_v37 }
0x336d   :  { %3787 = vadd.xlane.f32.xlu1 %v3759_v3 }
0x336f   :  { %3785 = vadd.xlane.f32.xlu0 %v3758_v61 }
0x3371   :  { %3791 = vadd.xlane.f32.xlu1 %v3761_v21 }
0x3373   :  { %3789 = vadd.xlane.f32.xlu0 %v3760_v62 }
0x3377   :  { %3793 = vadd.xlane.f32.xlu0 %v3762_v1 }
0x3382   :  { %3891 = vrot.lane.b32.xlu1 %v6667_v18, %s5906_s16 }
0x33e4   :  { %v3764_v25 = vpop.xlane.xlu0 %3763 }
0x33e5   :  { %v3814_v6 = vrot.slane %v3764_v25, %v6070_v36 }
0x33e6   :  { %v3768_v50 = vpop.xlane.xlu1 %3767 }
0x33e7   :  { %v3823_v29 = vrot.slane %v3768_v50, %v6070_v36 }
0x33e8   :  { %v3766_v35 = vpop.xlane.xlu0 %3765 }
0x33e9   :  { %v3818_v30 = vrot.slane %v3766_v35, %v6067_v34 }
0x33ea   :  { %v3772_v14 = vpop.xlane.xlu1 %3771 }
0x33eb   :  { %v3832_v31 = vrot.slane %v3772_v14, %v6070_v36  ;;  %v3819_v8 = vsel %vm313_vm2, %v3818_v30, %v3814_v6 }
0x33ec   :  { %v3770_v22 = vpop.xlane.xlu0 %3769 }
0x33ed   :  { %v3827_v27 = vrot.slane %v3770_v22, %v6067_v34 }
0x33ee   :  { %v3780_v46 = vpop.xlane.xlu1 %3779 }
0x33ef   :  { %v3828_v15 = vsel %vm313_vm2, %v3827_v27, %v3823_v29  ;;  %v3850_v51 = vrot.slane %v3780_v46, %v6070_v36  ;;  %v5599_v29 = vld [vmem:[#allocation10 + $0x10] sm:$0xff]  }
0x33f0   :  { %v3774_v23 = vpop.xlane.xlu0 %3773  ;;  %v3883_v44 = vsel %vm378_vm3, %v3828_v15, %v3819_v8 }
0x33f1   :  { %v3836_v28 = vrot.slane %v3774_v23, %v6067_v34 }
0x33f2   :  { %v3776_v33 = vpop.xlane.xlu1 %3775 }
0x33f3   :  { %v3841_v32 = vrot.slane %v3776_v33, %v6070_v36  ;;  %v3837_v9 = vsel %vm313_vm2, %v3836_v28, %v3832_v31  ;;  %v5597_v28 = vld [vmem:[#allocation10] sm:$0xff]  }
0x33f4   :  { %v3782_v24 = vpop.xlane.xlu0 %3781  ;;  %v3884_v48 = vsel %vm380_vm4, %v3837_v9, %v3883_v44  ;;  %5485 = vmatpush3.bf16.msra.mxu1 %v5597_v28 }
0x33f5   :  { %v3854_v60 = vrot.slane %v3782_v24, %v6067_v34  ;;  %5486 = vmatprep.subr.bf16.mxu1 %v5900_v5 }
0x33f6   :  { %v3784_v26 = vpop.xlane.xlu1 %3783 }
0x33f7   :  { %v3859_v4 = vrot.slane %v3784_v26, %v6070_v36  ;;  %v3855_v57 = vsel %vm313_vm2, %v3854_v60, %v3850_v51 }
0x33f8   :  { %v3778_v18 = vpop.xlane.xlu0 %3777 }
0x33f9   :  { %v3845_v0 = vrot.slane %v3778_v18, %v6067_v34 }
0x33fa   :  { %v3788_v11 = vpop.xlane.xlu1 %3787 }
0x33fb   :  { %v3846_v43 = vsel %vm313_vm2, %v3845_v0, %v3841_v32  ;;  %v3868_v53 = vrot.slane %v3788_v11, %v6070_v36  ;;  %v6773_v32 = vld [vmem:[%s6913_s4] ss:$0 sm:$0xff] }
0x33fc   :  { %v3786_v16 = vpop.xlane.xlu0 %3785  ;;  %v3885_v2 = vsel %vm382_vm5, %v3846_v43, %v3884_v48 }
0x33fd   :  { %v3863_v42 = vrot.slane %v3786_v16, %v6067_v34  ;;  %v3886_v59 = vsel %vm384_vm6, %v3855_v57, %v3885_v2  ;;  %v6782_v57 = vld [vmem:[#allocation11] ss:$8 sps:$4 sm:$0xff]  }
0x33fe   :  { %v3792_v55 = vpop.xlane.xlu1 %3791 }
0x33ff   :  { %v3864_v56 = vsel %vm313_vm2, %v3863_v42, %v3859_v4  ;;  %v3877_v3 = vrot.slane %v3792_v55, %v6070_v36 }
0x3400   :  { %v3790_v47 = vpop.xlane.xlu0 %3789  ;;  %v3887_v52 = vsel %vm386_vm7, %v3864_v56, %v3886_v59  ;;  %v6790_v59 = vld [vmem:[#allocation11 + $0x10] ss:$8 sps:$4 sm:$0xff]  }
0x3401   :  { %v3872_v19 = vrot.slane %v3790_v47, %v6067_v34 }
0x3402   :  { %v3892_v21 = vpop.permute.xlu1 %3891 }
0x3403   :  { %v3873_v58 = vsel %vm313_vm2, %v3872_v19, %v3868_v53 }
0x3404   :  { %v3794_v37 = vpop.xlane.xlu0 %3793  ;;  %v3888_v61 = vsel %vm388_vm8, %v3873_v58, %v3887_v52  ;;  %v6784_v58 = vld [vmem:[#allocation11 + $0x4] ss:$8 sps:$4 sm:$0xff]  }
0x3405   :  { %v3881_v39 = vrot.slane %v3794_v37, %v6067_v34  ;;  %v6786_v37 = vld [vmem:[#allocation11 + $0x14] ss:$8 sps:$4 sm:$0xff]   ;;  %4153 = vmatprep.subr.bf16.mxu0 %v6784_v58 }
0x3407   :  { %v3882_v49 = vsel %vm313_vm2, %v3881_v39, %v3877_v3 }
0x3408   :  { %v3889_v62 = vsel %vm390_vm9, %v3882_v49, %v3888_v61  ;;  %v4115_v49 = vld [vmem:[%s6915_s6] sm:$0x3] }
0x3409   :  { %v3894_v63 = vsel %vm397_vm10, %v3889_v62, %v3892_v21  ;;  %v4120_v21 = vrot.slane %v4115_v49, %v6044_v17  ;;  %v4124_v62 = vrot.slane %v4115_v49, %v6169_v20 }
0x340a   :  { %v3895_v1 = vpack.c.bf16 %v3894_v63, %v3894_v63 }
0x340c   :  { %5481 = vmatmul.mubr.msk.bf16.vlgmr.msra.gmra.mrb[36].mxu0 %vm431_vm11, %v3895_v1 }
0x340d   :  { %4185 = vmatprep.mubr.bf16.mxu0 %v5905_v7  ;;  %4154 = vmatpush1.bf16.msra.mxu0 %v6782_v57 }
0x340e   :  { %4155 = vmatprep.subr.bf16.mxu0 %v6786_v37 }
0x3411   :  { %4156 = vmatpush1.bf16.msra.mxu0 %v6790_v59 }
0x3412   :  { %5506 = vmatprep.subr.bf16.mxu0 %v5900_v5 }
0x34df   :  { %v3964_v13 = vpop.f32.mrb[36].mxu0 }
0x34e0   :  { %v3965_v10 = vadd.f32 %v6651_v54, %v3964_v13  ;;  %v5482_v38 = vpop.f32.mrb[37].mxu0 }
0x34e1   :  { %v3967_v25 = vpop.f32.mrb[38].mxu0 }
0x34e2   :  { %5738 = vtanh.f32 %v3965_v10  ;;  %v5483_v50 = vpop.f32.mrb[39].mxu0  ;;  %v4927_v14 = vmul.f32 -1.442695, %v3965_v10 }
0x34e4   :  { %5740 = vpow2.f32 %v4927_v14 }
0x34ec   :  { %v5739_v35 = vpop.eup %5738 }
0x34ed   :  { %3979 = vrot.lane.b32.xlu0 %v5739_v35, %s5894_s13 }
0x34ee   :  { %v5741_v22 = vpop.eup %5740 }
0x34ef   :  { %v3973_v46 = vadd.f32 1.0, %v5741_v22 }
0x34f1   :  { %3999 = vrot.lane.b32.xlu0 %v6683_v41, %s5894_s13  ;;  %5742 = vrcp.f32 %v3973_v46  ;;  %v5598_v41 = vld [vmem:[#allocation10 + $0x8] sm:$0xff]  }
0x34f2   :  { %5487 = vmatpush3.bf16.msra.mxu1 %v5598_v41 }
0x34f3   :  { %5488 = vmatprep.subr.bf16.mxu1 %v5900_v5 }
0x34f6   :  { %5489 = vmatpush3.bf16.msra.mxu1 %v5599_v29 }
0x34f7   :  { %5490 = vmatprep.subr.bf16.mxu1 %v5900_v5 }
0x34fb   :  { %v5743_v23 = vpop.eup %5742 }
0x34fc   :  { %v3977_v26 = vmul.f32 %v5743_v23, %v6659_v45  ;;  %v5600_v45 = vld [vmem:[#allocation10 + $0x18] sm:$0xff]  }
0x34fd   :  { %5491 = vmatpush3.bf16.msra.mxu1 %v5600_v45 }
0x34fe   :  { %5496 = vmatprep.subr.bf16.mxu1 %v5900_v5 }
0x355f   :  { %v3980_v33 = vpop.permute.xlu0 %3979 }
0x3560   :  { %v3982_v24 = vmul.f32 %v5743_v23, %v3980_v33 }
0x3562   :  { %3984 = vrot.lane.b32.xlu1 %v3982_v24, %s5904_s9  ;;  %v5183_v24 = vld [vmem:[#allocation5 + $0x1c0] sm:$0xff]  }
0x3563   :  { %v4000_v11 = vpop.permute.xlu0 %3999  ;;  %v5184_v41 = vunpack.c.l.bf16 %v5183_v24 }
0x35d4   :  { %v3985_v18 = vpop.permute.xlu1 %3984 }
0x35d5   :  { %v6754_v27 = vadd.f32 %v3985_v18, %v3977_v26  ;;  %v5263_v18 = vld [vmem:[#allocation5 + $0x1c8] sm:$0xff]  }
0x35d6   :  { %v5188_v45 = vunpack.c.l.bf16 %v5263_v18 }
0x35d7   :  { %5744 = vtanh.f32 %v6754_v27 }
0x35e1   :  { %v5745_v30 = vpop.eup %5744 }
0x35e2   :  { %3990 = vrot.lane.b32.xlu1 %v5745_v30, %s5894_s13 }
0x3654   :  { %v3991_v0 = vpop.permute.xlu1 %3990 }
0x3655   :  { %v6762_v31 = vmul.f32 %v5743_v23, %v3991_v0 }
0x3657   :  { %3995 = vrot.lane.b32.xlu1 %v6762_v31, %s5904_s9 }
0x36c9   :  { %v3996_v16 = vpop.permute.xlu1 %3995 }
0x36ca   :  { %v4002_v6 = vsel %vm87_vm0, %v3996_v16, %v4000_v11 }
0x36cb   :  { %v4003_v15 = vpack.c.bf16 %v4002_v6, %v4002_v6 }
0x36cd   :  { %5493 = vmatmul.mubr.msk.bf16.vlgmr.msra.gmra.mrb[36].mxu1 %vm553_vm12, %v4003_v15  ;;  %v5264_v15 = vld [vmem:[#allocation5 + $0x1d0] sm:$0xff]  }
0x36ce   :  { %5502 = vmatprep.mubr.msk.bf16.mxu1 %vm5903_vm1, %v5900_v5 }
0x37a0   :  { %v4080_v9 = vpop.f32.mrb[36].mxu1 }
0x37a1   :  { %v4081_v8 = vadd.f32 %v6773_v32, %v4080_v9  ;;  %v5494_v43 = vpop.f32.mrb[37].mxu1 }
0x37a2   :  { %v4083_v42 = vpop.f32.mrb[38].mxu1  ;;  %v5185_v43 = vunpack.c.h.bf16 %v5183_v24 }
0x37a3   :  { %5746 = vtanh.f32 %v4081_v8  ;;  %v5495_v44 = vpop.f32.mrb[39].mxu1  ;;  %v4934_v47 = vmul.f32 -1.442695, %v4081_v8 }
0x37a4   :  { %v5192_v44 = vunpack.c.l.bf16 %v5264_v15 }
0x37a5   :  { %5748 = vpow2.f32 %v4934_v47  ;;  %v5266_v47 = vld [vmem:[#allocation5 + $0x1e0] sm:$0xff]  }
0x37ad   :  { %v5747_v60 = vpop.eup %5746 }
0x37ae   :  { %4095 = vrot.lane.b32.xlu1 %v5747_v60, %s5894_s13 }
0x37af   :  { %v5749_v48 = vpop.eup %5748 }
0x37b0   :  { %v4089_v4 = vadd.f32 1.0, %v5749_v48 }
0x37b2   :  { %5750 = vrcp.f32 %v4089_v4 }
0x37bc   :  { %v5751_v19 = vpop.eup %5750 }
0x37bd   :  { %v4093_v53 = vmul.f32 %v5751_v19, %v6679_v40 }
0x3820   :  { %v4096_v51 = vpop.permute.xlu1 %4095 }
0x3821   :  { %v4098_v2 = vmul.f32 %v5751_v19, %v4096_v51  ;;  %v5200_v51 = vunpack.c.l.bf16 %v5266_v47 }
0x3823   :  { %4100 = vrot.lane.b32.xlu0 %v4098_v2, %s5904_s9 }
0x3895   :  { %v4101_v55 = vpop.permute.xlu0 %4100 }
0x3896   :  { %v6779_v56 = vadd.f32 %v4101_v55, %v4093_v53 }
0x3898   :  { %5752 = vtanh.f32 %v6779_v56 }
0x38a2   :  { %v5753_v40 = vpop.eup %5752 }
0x38a3   :  { %4106 = vrot.lane.b32.xlu1 %v5753_v40, %s5894_s13 }
0x3915   :  { %v4107_v3 = vpop.permute.xlu1 %4106 }
0x3916   :  { %v6796_v39 = vmul.f32 %v5751_v19, %v4107_v3  ;;  %v5189_v19 = vunpack.c.h.bf16 %v5263_v18  ;;  %v5265_v3 = vld [vmem:[#allocation5 + $0x1d8] sm:$0xff]  }
0x3918   :  { %v4110_v52 = vpack.c.bf16 %v6796_v39, %v6796_v39 }
0x391a   :  { %4128 = vrot.lane.b32.xlu0 %v4110_v52, %s5904_s9 }
0x398c   :  { %v4129_v61 = vpop.permute.xlu0 %4128 }
0x398d   :  { %4939 = vmatmul.mubr.msk.bf16.vlgmr.msra.gmra.mrb[40].mxu0 %vm87_vm0, %v4129_v61  ;;  %v5193_v61 = vunpack.c.h.bf16 %v5264_v15 }
0x398e   :  { %5514 = vmatprep.mubr.msk.bf16.mxu0 %vm5903_vm1, %v5900_v5 }
0x3a60   :  { %v4187_v63 = vpop.f32.mrb[40].mxu0 }
0x3a61   :  { %v4188_v1 = vadd.f32 %v4187_v63, %v4120_v21  ;;  %v4189_v13 = vpop.f32.mrb[41].mxu0  ;;  %v5196_v21 = vunpack.c.l.bf16 %v5265_v3 }
0x3a62   :  { %v4190_v10 = vadd.f32 %v4189_v13, %v4124_v62  ;;  %v4191_v38 = vpop.f32.mrb[42].mxu0 }
0x3a63   :  { %v4192_v25 = vpop.f32.mrb[43].mxu0  ;;  %4196 = vmax.xlane.f32.xlu1 %v4188_v1 }
0x3a64   :  { %4195 = vst [vmem:[#allocation13 + $0x30] sm:$0xff] %v4190_v10  ;;  %v5201_v10 = vunpack.c.h.bf16 %v5266_v47 }
0x3af0   :  { %v4197_v50 = vpop.xlane.xlu1 %4196 }
0x3af1   :  { %v4198_v35 = vsub.f32 %v4188_v1, %v4197_v50  ;;  %v5267_v1 = vld [vmem:[#allocation5 + $0x1e8] sm:$0xff]  }
0x3af2   :  { %v5204_v25 = vunpack.c.l.bf16 %v5267_v1 }
0x3af3   :  { %v4199_v14 = vmul.f32 1.442695, %v4198_v35 }
0x3af5   :  { %5754 = vpow2.f32 %v4199_v14  ;;  %v5268_v14 = vld [vmem:[#allocation5 + $0x1f0] sm:$0xff]  }
0x3aff   :  { %v5755_v22 = vpop.eup %5754 }
0x3b00   :  { %4201 = vadd.xlane.f32.xlu0 %v5755_v22 }
0x3b8d   :  { %v4202_v46 = vpop.xlane.xlu0 %4201 }
0x3b8e   :  { %5756 = vrcp.f32 %v4202_v46  ;;  %v5197_v46 = vunpack.c.h.bf16 %v5265_v3 }
0x3b98   :  { %v5757_v23 = vpop.eup %5756 }
0x3b99   :  { %v4204_v33 = vmul.f32 %v5757_v23, %v5755_v22 }
0x3b9b   :  { %v4230_v26 = vrot.slane %v4204_v33, %v6040_v12  ;;  %v4223_v28 = vcombine.high %v4204_v33, %v4204_v33  ;;  %v5208_v33 = vunpack.c.l.bf16 %v5268_v14 }
0x3b9d   :  { %v4246_v29 = vrot.slane %v4230_v26, %v6040_v12  ;;  %v4238_v30 = vcombine.high %v4230_v26, %v4230_v26  ;;  %v4237_v6 = vrot.slane %v4223_v28, %v6040_v12  ;;  %v5269_v26 = vld [vmem:[#allocation5 + $0x1f8] sm:$0xff]   ;;  %v5205_v28 = vunpack.c.h.bf16 %v5267_v1 }
0x3b9f   :  { %v4291_v0 = vrot.slane %v4246_v29, %v6044_v17  ;;  %v4260_v11 = vrot.slane %v4238_v30, %v6040_v12  ;;  %v4268_v16 = vcombine.high %v4246_v29, %v4246_v29  ;;  %v4253_v48 = vrot.slane %v4237_v6, %v6040_v12 }
0x3ba0   :  { %v4239_v40 = vcombine.high %v4237_v6, %v4237_v6  ;;  %v5212_v29 = vunpack.c.l.bf16 %v5269_v26  ;;  %v5213_v6 = vunpack.c.h.bf16 %v5269_v26 }
0x3ba1   :  { %v4328_v9 = vmul.f32 %v5184_v41, %v4291_v0  ;;  %v4295_v8 = vrot.slane %v4260_v11, %v6044_v17  ;;  %v4299_v60 = vrot.slane %v4268_v16, %v6044_v17  ;;  %v4329_v4 = vmul.f32 %v5185_v43, %v4291_v0 }
0x3ba2   :  { %v4307_v53 = vrot.slane %v4253_v48, %v6044_v17  ;;  %v4270_v55 = vcombine.high %v4260_v11, %v4260_v11  ;;  %v4267_v63 = vrot.slane %v4239_v40, %v6040_v12  ;;  %v4269_v35 = vcombine.high %v4253_v48, %v4253_v48 }
0x3ba3   :  { %4344 = vadd.xlane.f32.xlu0 %v4328_v9  ;;  %v4330_v42 = vmul.f32 %v5188_v45, %v4295_v8  ;;  %v4332_v2 = vmul.f32 %v5192_v44, %v4299_v60  ;;  %v4331_v52 = vmul.f32 %v5189_v19, %v4295_v8  ;;  %v4333_v13 = vmul.f32 %v5193_v61, %v4299_v60  ;;  %v5607_v9 = vld [vmem:[#allocation8] sm:$0xff]   ;;  %v5608_v8 = vld [vmem:[#allocation8 + $0x8] sm:$0xff]  }
0x3ba4   :  { %v4336_v49 = vmul.f32 %v5200_v51, %v4307_v53  ;;  %v4303_v62 = vrot.slane %v4270_v55, %v6044_v17  ;;  %v4311_v50 = vrot.slane %v4267_v63, %v6044_v17  ;;  %v4337_v22 = vmul.f32 %v5201_v10, %v4307_v53  ;;  %5497 = vmatpush3.bf16.msra.mxu1 %v5607_v9 }
0x3ba5   :  { %4348 = vadd.xlane.f32.xlu1 %v4330_v42  ;;  %v4315_v24 = vrot.slane %v4269_v35, %v6044_v17  ;;  %v4271_v12 = vcombine.high %v4267_v63, %v4267_v63  ;;  %v5209_v0 = vunpack.c.h.bf16 %v5268_v14  ;;  %5498 = vmatprep.subr.bf16.mxu1 %v5900_v5 }
0x3ba6   :  { %v4334_v38 = vmul.f32 %v5196_v21, %v4303_v62  ;;  %v4338_v23 = vmul.f32 %v5204_v25, %v4311_v50  ;;  %v4335_v18 = vmul.f32 %v5197_v46, %v4303_v62  ;;  %v4339_v45 = vmul.f32 %v5205_v28, %v4311_v50 }
0x3ba7   :  { %4346 = vadd.xlane.f32.xlu0 %v4329_v4  ;;  %v4340_v41 = vmul.f32 %v5208_v33, %v4315_v24  ;;  %v4319_v30 = vrot.slane %v4271_v12, %v6044_v17  ;;  %v4341_v16 = vmul.f32 %v5209_v0, %v4315_v24  ;;  %v5609_v17 = vld [vmem:[#allocation8 + $0x10] sm:$0xff]  }
0x3ba8   :  { %5499 = vmatpush3.bf16.msra.mxu1 %v5608_v8 }
0x3ba9   :  { %4352 = vadd.xlane.f32.xlu1 %v4332_v2  ;;  %v4342_v11 = vmul.f32 %v5212_v29, %v4319_v30  ;;  %v4343_v15 = vmul.f32 %v5213_v6, %v4319_v30  ;;  %5500 = vmatprep.subr.bf16.mxu1 %v5900_v5 }
0x3bab   :  { %4350 = vadd.xlane.f32.xlu0 %v4331_v52 }
0x3bac   :  { %5501 = vmatpush3.bf16.msra.mxu1 %v5609_v17 }
0x3bad   :  { %4360 = vadd.xlane.f32.xlu1 %v4336_v49  ;;  %4734 = vmatprep.subr.bf16.mxu1 %v6784_v58 }
0x3baf   :  { %4354 = vadd.xlane.f32.xlu0 %v4333_v13 }
0x3bb1   :  { %4356 = vadd.xlane.f32.xlu1 %v4334_v38 }
0x3bb3   :  { %4362 = vadd.xlane.f32.xlu0 %v4337_v22 }
0x3bb5   :  { %4364 = vadd.xlane.f32.xlu1 %v4338_v23 }
0x3bb7   :  { %4358 = vadd.xlane.f32.xlu0 %v4335_v18 }
0x3bb9   :  { %4368 = vadd.xlane.f32.xlu1 %v4340_v41 }
0x3bbb   :  { %4366 = vadd.xlane.f32.xlu0 %v4339_v45 }
0x3bbd   :  { %4372 = vadd.xlane.f32.xlu1 %v4342_v11 }
0x3bbf   :  { %4370 = vadd.xlane.f32.xlu0 %v4341_v16 }
0x3bc3   :  { %4374 = vadd.xlane.f32.xlu0 %v4343_v15 }
0x3bce   :  { %4472 = vrot.lane.b32.xlu1 %v6762_v31, %s5906_s16 }
0x3c30   :  { %v4345_v43 = vpop.xlane.xlu0 %4344 }
0x3c31   :  { %v4395_v21 = vrot.slane %v4345_v43, %v6070_v36 }
0x3c32   :  { %v4349_v42 = vpop.xlane.xlu1 %4348 }
0x3c33   :  { %v4404_v40 = vrot.slane %v4349_v42, %v6070_v36 }
0x3c34   :  { %v4347_v44 = vpop.xlane.xlu0 %4346 }
0x3c35   :  { %v4399_v3 = vrot.slane %v4347_v44, %v6067_v34 }
0x3c36   :  { %v4353_v60 = vpop.xlane.xlu1 %4352 }
0x3c37   :  { %v4413_v52 = vrot.slane %v4353_v60, %v6070_v36  ;;  %v4400_v13 = vsel %vm313_vm2, %v4399_v3, %v4395_v21 }
0x3c38   :  { %v4351_v47 = vpop.xlane.xlu0 %4350 }
0x3c39   :  { %v4408_v53 = vrot.slane %v4351_v47, %v6067_v34 }
0x3c3a   :  { %v4361_v48 = vpop.xlane.xlu1 %4360 }
0x3c3b   :  { %v4409_v62 = vsel %vm313_vm2, %v4408_v53, %v4404_v40  ;;  %v4431_v23 = vrot.slane %v4361_v48, %v6070_v36 }
0x3c3c   :  { %v4355_v4 = vpop.xlane.xlu0 %4354  ;;  %v4464_v25 = vsel %vm378_vm3, %v4409_v62, %v4400_v13 }
0x3c3d   :  { %v4417_v55 = vrot.slane %v4355_v4, %v6067_v34 }
0x3c3e   :  { %v4357_v19 = vpop.xlane.xlu1 %4356 }
0x3c3f   :  { %v4422_v63 = vrot.slane %v4357_v19, %v6070_v36  ;;  %v4418_v1 = vsel %vm313_vm2, %v4417_v55, %v4413_v52  ;;  %v5610_v19 = vld [vmem:[#allocation10] sm:$0xff]  }
0x3c40   :  { %v4363_v31 = vpop.xlane.xlu0 %4362  ;;  %v4465_v14 = vsel %vm380_vm4, %v4418_v1, %v4464_v25  ;;  %5507 = vmatpush3.bf16.msra.mxu0 %v5610_v19 }
0x3c41   :  { %v4435_v50 = vrot.slane %v4363_v31, %v6067_v34  ;;  %v5611_v31 = vld [vmem:[#allocation10 + $0x8] sm:$0xff]   ;;  %5508 = vmatprep.subr.bf16.mxu0 %v5900_v5 }
0x3c42   :  { %v4365_v51 = vpop.xlane.xlu1 %4364 }
0x3c43   :  { %v4440_v22 = vrot.slane %v4365_v51, %v6070_v36  ;;  %v4436_v18 = vsel %vm313_vm2, %v4435_v50, %v4431_v23 }
0x3c44   :  { %v4359_v2 = vpop.xlane.xlu0 %4358  ;;  %5509 = vmatpush3.bf16.msra.mxu0 %v5611_v31 }
0x3c45   :  { %v4426_v58 = vrot.slane %v4359_v2, %v6067_v34  ;;  %5510 = vmatprep.subr.bf16.mxu0 %v5900_v5  ;;  %v5613_v2 = vld [vmem:[#allocation10 + $0x18] sm:$0xff]  }
0x3c46   :  { %v4369_v61 = vpop.xlane.xlu1 %4368 }
0x3c47   :  { %v4427_v10 = vsel %vm313_vm2, %v4426_v58, %v4422_v63  ;;  %v4449_v24 = vrot.slane %v4369_v61, %v6070_v36 }
0x3c48   :  { %v4367_v49 = vpop.xlane.xlu0 %4366  ;;  %v4466_v33 = vsel %vm382_vm5, %v4427_v10, %v4465_v14 }
0x3c49   :  { %v4444_v38 = vrot.slane %v4367_v49, %v6067_v34  ;;  %v4467_v29 = vsel %vm384_vm6, %v4436_v18, %v4466_v33 }
0x3c4a   :  { %v4373_v12 = vpop.xlane.xlu1 %4372 }
0x3c4b   :  { %v4445_v26 = vsel %vm313_vm2, %v4444_v38, %v4440_v22  ;;  %v4458_v30 = vrot.slane %v4373_v12, %v6070_v36 }
0x3c4c   :  { %v4371_v35 = vpop.xlane.xlu0 %4370  ;;  %v4468_v0 = vsel %vm386_vm7, %v4445_v26, %v4467_v29  ;;  %v4696_v26 = vld [vmem:[%s6915_s6] sm:$0x3] }
0x3c4d   :  { %v4453_v46 = vrot.slane %v4371_v35, %v6067_v34  ;;  %v4705_v18 = vrot.slane %v4696_v26, %v6169_v20 }
0x3c4e   :  { %v4473_v6 = vpop.permute.xlu1 %4472 }
0x3c4f   :  { %v4454_v28 = vsel %vm313_vm2, %v4453_v46, %v4449_v24 }
0x3c50   :  { %v4375_v41 = vpop.xlane.xlu0 %4374  ;;  %v4469_v11 = vsel %vm388_vm8, %v4454_v28, %v4468_v0 }
0x3c51   :  { %v4462_v45 = vrot.slane %v4375_v41, %v6067_v34 }
0x3c53   :  { %v4463_v16 = vsel %vm313_vm2, %v4462_v45, %v4458_v30 }
0x3c54   :  { %v4470_v15 = vsel %vm390_vm9, %v4463_v16, %v4469_v11 }
0x3c55   :  { %v4475_v9 = vsel %vm397_vm10, %v4470_v15, %v4473_v6 }
0x3c56   :  { %v4476_v8 = vpack.c.bf16 %v4475_v9, %v4475_v9 }
0x3c58   :  { %5503 = vmatmul.mubr.msk.bf16.vlgmr.msra.gmra.mrb[40].mxu1 %vm431_vm11, %v4476_v8 }
0x3c59   :  { %4735 = vmatpush1.bf16.msra.mxu1 %v6782_v57  ;;  %4766 = vmatprep.mubr.bf16.mxu1 %v5905_v7 }
0x3c5a   :  { %4736 = vmatprep.subr.bf16.mxu1 %v6786_v37 }
0x3c5d   :  { %4737 = vmatpush1.bf16.msra.mxu1 %v6790_v59 }
0x3d2b   :  { %v4545_v34 = vpop.f32.mrb[40].mxu1 }
0x3d2c   :  { %v4546_v36 = vadd.f32 %v6651_v54, %v4545_v34  ;;  %v5504_v17 = vpop.f32.mrb[41].mxu1 }
0x3d2d   :  { %v4548_v43 = vpop.f32.mrb[42].mxu1 }
0x3d2e   :  { %5758 = vtanh.f32 %v4546_v36  ;;  %v5505_v42 = vpop.f32.mrb[43].mxu1  ;;  %v4945_v57 = vmul.f32 -1.442695, %v4546_v36 }
0x3d30   :  { %5760 = vpow2.f32 %v4945_v57 }
0x3d38   :  { %v5759_v44 = vpop.eup %5758 }
0x3d39   :  { %4560 = vrot.lane.b32.xlu0 %v5759_v44, %s5894_s13 }
0x3d3a   :  { %v5761_v7 = vpop.eup %5760 }
0x3d3b   :  { %v4554_v60 = vadd.f32 1.0, %v5761_v7 }
0x3d3d   :  { %4580 = vrot.lane.b32.xlu0 %v6796_v39, %s5894_s13  ;;  %5762 = vrcp.f32 %v4554_v60  ;;  %v5612_v39 = vld [vmem:[#allocation10 + $0x10] sm:$0xff]  }
0x3d3e   :  { %5511 = vmatpush3.bf16.msra.mxu0 %v5612_v39 }
0x3d3f   :  { %5512 = vmatprep.subr.bf16.mxu0 %v5900_v5 }
0x3d42   :  { %5513 = vmatpush3.bf16.msra.mxu0 %v5613_v2 }
0x3d47   :  { %v5763_v37 = vpop.eup %5762 }
0x3d48   :  { %v4558_v54 = vmul.f32 %v5763_v37, %v6754_v27 }
0x3dab   :  { %v4561_v59 = vpop.permute.xlu0 %4560 }
0x3dac   :  { %v4563_v47 = vmul.f32 %v5763_v37, %v4561_v59 }
0x3dae   :  { %4565 = vrot.lane.b32.xlu1 %v4563_v47, %s5904_s9 }
0x3daf   :  { %v4581_v55 = vpop.permute.xlu0 %4580 }
0x3e20   :  { %v4566_v48 = vpop.permute.xlu1 %4565 }
0x3e21   :  { %v4568_v4 = vadd.f32 %v4566_v48, %v4558_v54 }
0x3e23   :  { %5764 = vtanh.f32 %v4568_v4 }
0x3e2d   :  { %v5765_v51 = vpop.eup %5764 }
0x3e2e   :  { %4571 = vrot.lane.b32.xlu1 %v5765_v51, %s5894_s13 }
0x3ea0   :  { %v4572_v27 = vpop.permute.xlu1 %4571 }
0x3ea1   :  { %v4574_v53 = vmul.f32 %v5763_v37, %v4572_v27 }
0x3ea3   :  { %4576 = vrot.lane.b32.xlu1 %v4574_v53, %s5904_s9 }
0x3f15   :  { %v4577_v40 = vpop.permute.xlu1 %4576 }
0x3f16   :  { %v4583_v3 = vsel %vm87_vm0, %v4577_v40, %v4581_v55  ;;  %4777 = vst.msk [vmem:[#allocation2] sm:$0xff] %vm87_vm0, %v4577_v40 }
0x3f17   :  { %v4584_v58 = vpack.c.bf16 %v4583_v3, %v4583_v3 }
0x3f19   :  { %5515 = vmatmul.mubr.msk.bf16.vlgmr.msra.gmra.mrb[44].mxu0 %vm553_vm12, %v4584_v58 }
0x3fec   :  { %v4661_v52 = vpop.f32.mrb[44].mxu0 }
0x3fed   :  { %v4662_v61 = vadd.f32 %v6773_v32, %v4661_v52  ;;  %v5516_v49 = vpop.f32.mrb[45].mxu0 }
0x3fee   :  { %v4664_v5 = vpop.f32.mrb[46].mxu0 }
0x3fef   :  { %5766 = vtanh.f32 %v4662_v61  ;;  %v5517_v21 = vpop.f32.mrb[47].mxu0  ;;  %v4952_v63 = vmul.f32 -1.442695, %v4662_v61 }
0x3ff1   :  { %5768 = vpow2.f32 %v4952_v63 }
0x3ff9   :  { %v5767_v62 = vpop.eup %5766 }
0x3ffa   :  { %4676 = vrot.lane.b32.xlu1 %v5767_v62, %s5894_s13 }
0x3ffb   :  { %v5769_v1 = vpop.eup %5768 }
0x3ffc   :  { %v4670_v13 = vadd.f32 1.0, %v5769_v1 }
0x3ffe   :  { %5770 = vrcp.f32 %v4670_v13 }
0x4008   :  { %v5771_v10 = vpop.eup %5770 }
0x4009   :  { %v4674_v50 = vmul.f32 %v5771_v10, %v6779_v56 }
0x406c   :  { %v4677_v38 = vpop.permute.xlu1 %4676 }
0x406d   :  { %v4679_v25 = vmul.f32 %v5771_v10, %v4677_v38 }
0x406f   :  { %4681 = vrot.lane.b32.xlu0 %v4679_v25, %s5904_s9 }
0x40e1   :  { %v4682_v32 = vpop.permute.xlu0 %4681 }
0x40e2   :  { %v4684_v35 = vadd.f32 %v4682_v32, %v4674_v50 }
0x40e4   :  { %5772 = vtanh.f32 %v4684_v35 }
0x40ee   :  { %v5773_v14 = vpop.eup %5772 }
0x40ef   :  { %4687 = vrot.lane.b32.xlu1 %v5773_v14, %s5894_s13 }
0x40f3   :  { %4779 = vrot.lane.b32.xlu1 %v4568_v4, %s5907_s10 }
0x40f7   :  { %4789 = vrot.lane.b32.xlu1 %v4684_v35, %s5907_s10 }
0x4161   :  { %v4688_v22 = vpop.permute.xlu1 %4687 }
0x4162   :  { %v4690_v46 = vmul.f32 %v5771_v10, %v4688_v22 }
0x4164   :  { %v4691_v23 = vpack.c.bf16 %v4690_v46, %v4690_v46 }
0x4165   :  { %v4780_v33 = vpop.permute.xlu1 %4779 }
0x4166   :  { %4782 = vst.msk [vmem:[#allocation3] sm:$0xff] %vm87_vm0, %v4780_v33  ;;  %4709 = vrot.lane.b32.xlu0 %v4691_v23, %s5904_s9 }
0x4169   :  { %v4790_v24 = vpop.permute.xlu1 %4789 }
0x416a   :  { %4792 = vst.msk [vmem:[#allocation3 + $0x8] sm:$0xff] %vm87_vm0, %v4790_v24  ;;  %4784 = vrot.lane.b32.xlu0 %v4690_v46, %s5904_s9  ;;  %s5862_s9 = scalar_lea.vmem %s4800_s15, 1024 }
0x416b   :  { %p5863_p4 = scmp.ne.s32.totalorder %s4800_s15, %s5862_s9  ;;  %p5868_p6 = scmp.lt.s32.totalorder %s5862_s9, %s5862_s9 }
0x416d   :  { %p5869_p7 = por %p5868_p6, %p5867_p5 }
0x416f   :  { %p5870_p8 = pnand %p5869_p7, %p5863_p4 }
0x41d8   :  { %v4710_v56 = vpop.permute.xlu0 %4709 }
0x41d9   :  { %4957 = vmatmul.mubr.msk.bf16.vlgmr.msra.gmra.mrb[44].mxu1 %vm87_vm0, %v4710_v56 }
0x41dc   :  { %v4785_v12 = vpop.permute.xlu0 %4784 }
0x41dd   :  { %4787 = vst.msk [vmem:[#allocation2 + $0x8] sm:$0xff] %vm87_vm0, %v4785_v12 }
0x42ac   :  { %v4768_v28 = vpop.f32.mrb[44].mxu1 }
0x42ad   :  { %v4770_v41 = vpop.f32.mrb[45].mxu1 }
0x42ae   :  { %v4771_v29 = vadd.f32 %v4770_v41, %v4705_v18  ;;  %v4772_v30 = vpop.f32.mrb[46].mxu1 }
0x42af   :  { %v4773_v45 = vpop.f32.mrb[47].mxu1 }
0x42b0   :  { %4776 = vst [vmem:[#allocation13 + $0x38] sm:$0xff] %v4771_v29 }
0x42b1   :  { %5873 = shalt.err (!%p5870_p8)
}
0x42b2   :  { %s5874_s0 = scalar_lea.hbm %s6916_s7, 1024 }
0x42b3   :  { %p5875_p9 = scmp.ne.s32.totalorder %s6916_s7, %s5874_s0  ;;  %p5878_p10 = scmp.lt.u32.totalorder %s5874_s0, %s6916_s7 }
0x42b5   :  { %p5880_p11 = pnand %p5878_p10, %p5875_p9 }
0x42b7   :  { %5883 = shalt.err (!%p5880_p11)
}
0x42b8   :  { %4805 = dma.vmem_to_hbm [thread:$0]  %s4800_s15, 1024, %s6916_s7, [#allocation7], %s5898_s3, %s5898_s3, %s5899_s14  }
0x42b9   :  { %5890 = dma.done.wait [#allocation7], 1024  }
0x42ba   :  { %5891 = vsyncadd [#allocation7], 4294966272 }
0x42bb   :  { %4809 = vsyncpa [#allocation6], 1 }
0x42bc   :  { %4810 = vsyncpa [#allocation9], 1 }
0x42bd   :  { %4811 = vsyncpa [#allocation12], 1 }
0x42be   :  { %4812 = vsyncpa [#allocation7], 1 }

// kernel: tpu_custom_call.1
= control target key start
LH: loop header
LB: loop body
LE: loop exit
PB: predicated region body
PF: predicated region fallthrough
CT: control target
= control target key end

     0   :  { %12 = vsyncpa [#allocation6], 0  ;;  %s6909_s0 = inlined_call_operand.hbm [shape: bf16[8,8,16,128], index: 0, kind: input, shape index: {}]   ;;  %s6910_s1 = inlined_call_operand.hbm [shape: bf16[48,128], index: 1, kind: input, shape index: {}]   ;;  %s6911_s2 = inlined_call_operand.vmem [shape: f32[1,128], index: 2, kind: input, shape index: {}]   ;;  %s6912_s3 = inlined_call_operand.hbm [shape: bf16[64,128], index: 3, kind: input, shape index: {}]   ;;  %s6913_s4 = inlined_call_operand.vmem [shape: f32[1,128], index: 4, kind: input, shape index: {}]   ;;  %s6914_s5 = inlined_call_operand.hbm [shape: bf16[32,256], index: 5, kind: input, shape index: {}]   ;;  %s6915_s6 = inlined_call_operand.vmem [shape: f32[1,256], index: 6, kind: input, shape index: {}]   ;;  %s6916_s7 = inlined_call_operand.hbm [shape: f32[8,8,128], index: 7, kind: output, shape index: {}]  }
   0x1   :  { %13 = vsyncpa [#allocation9], 0 }
   0x2   :  { %14 = vsyncpa [#allocation12], 0 }
   0x3   :  { %15 = vsyncpa [#allocation7], 0  ;;  %s5892_s24 = smov [#allocation8]   ;;  %s5893_s26 = smov [#allocation5]  }
   0x4   :  { %s33_s25 = sshll.u32 %s5892_s24, 4  ;;  %s21_s27 = sshll.u32 %s5893_s26, 4  ;;  %s34_s25 = int_to_ptr.vmem [resolvable:$true] %s33_s25  ;;  %s5949_s27 = int_to_ptr.vmem [resolvable:$true] %s21_s27 }
   0x5   :  { %s5774_s30 = scalar_lea.hbm %s6910_s1, 384 }
   0x6   :  { %p5775_p0 = scmp.ne.s32.totalorder %s6910_s1, %s5774_s30  ;;  %p5778_p1 = scmp.lt.u32.totalorder %s5774_s30, %s6910_s1 }
   0x8   :  { %p5780_p2 = pnand %p5778_p1, %p5775_p0 }
   0xa   :  { %5783 = shalt.err (!%p5780_p2)
}
   0xb   :  { %s5784_s12 = scalar_lea.vmem %s34_s25, 384  ;;  %p5789_p4 = scmp.lt.s32.totalorder %s34_s25, %s34_s25 }
   0xc   :  { %p5785_p3 = scmp.ne.s32.totalorder %s34_s25, %s5784_s12  ;;  %p5790_p5 = scmp.lt.s32.totalorder %s5784_s12, %s5784_s12 }
   0xe   :  { %p5791_p6 = por %p5790_p5, %p5789_p4 }
  0x10   :  { %p5792_p7 = pnand %p5791_p6, %p5785_p3 }
  0x12   :  { %5795 = shalt.err (!%p5792_p7)
}
  0x13   :  { %s5894_s13 = smov 64   ;;  %s5895_s14 = smov 4  }
  0x14   :  { %39 = dma.hbm_to_vmem [thread:$0]  %s6910_s1, 384, %s34_s25, [#allocation9], %s5894_s13, %s5894_s13, %s5895_s14  }
  0x15   :  { %s5796_s19 = scalar_lea.hbm %s6909_s0, 8192 }
  0x16   :  { %p5797_p8 = scmp.ne.s32.totalorder %s6909_s0, %s5796_s19  ;;  %p5800_p9 = scmp.lt.u32.totalorder %s5796_s19, %s6909_s0 }
  0x18   :  { %p5802_p10 = pnand %p5800_p9, %p5797_p8 }
  0x1a   :  { %5805 = shalt.err (!%p5802_p10)
}
  0x1b   :  { %s5806_s24 = scalar_lea.vmem %s5949_s27, 8192  ;;  %p5811_p12 = scmp.lt.s32.totalorder %s5949_s27, %s5949_s27 }
  0x1c   :  { %p5807_p11 = scmp.ne.s32.totalorder %s5949_s27, %s5806_s24  ;;  %p5812_p13 = scmp.lt.s32.totalorder %s5806_s24, %s5806_s24 }
  0x1e   :  { %p5813_p0 = por %p5812_p13, %p5811_p12 }
  0x20   :  { %p5814_p1 = pnand %p5813_p0, %p5807_p11 }
  0x22   :  { %5817 = shalt.err (!%p5814_p1)
}
  0x23   :  { %27 = dma.hbm_to_vmem [thread:$0]  %s6909_s0, 8192, %s5949_s27, [#allocation6], %s5894_s13, %s5894_s13, %s5895_s14  }
  0x24   :  { %s5896_s26 = smov [#allocation10]   ;;  %s5897_s29 = smov [#allocation11]  }
  0x25   :  { %s47_s28 = sshll.u32 %s5896_s26, 4  ;;  %s61_s30 = sshll.u32 %s5897_s29, 4  ;;  %s48_s28 = int_to_ptr.vmem [resolvable:$true] %s47_s28  ;;  %s5986_s30 = int_to_ptr.vmem [resolvable:$true] %s61_s30 }
  0x26   :  { %s5818_s10 = scalar_lea.hbm %s6912_s3, 512 }
  0x27   :  { %p5819_p2 = scmp.ne.s32.totalorder %s6912_s3, %s5818_s10  ;;  %p5822_p3 = scmp.lt.u32.totalorder %s5818_s10, %s6912_s3 }
  0x29   :  { %p5824_p4 = pnand %p5822_p3, %p5819_p2 }
  0x2b   :  { %5827 = shalt.err (!%p5824_p4)
}
  0x2c   :  { %s5828_s0 = scalar_lea.vmem %s48_s28, 512  ;;  %p5833_p6 = scmp.lt.s32.totalorder %s48_s28, %s48_s28 }
  0x2d   :  { %p5829_p5 = scmp.ne.s32.totalorder %s48_s28, %s5828_s0  ;;  %p5834_p7 = scmp.lt.s32.totalorder %s5828_s0, %s5828_s0 }
  0x2f   :  { %p5835_p8 = por %p5834_p7, %p5833_p6 }
  0x31   :  { %p5836_p9 = pnand %p5835_p8, %p5829_p5 }
  0x33   :  { %5839 = shalt.err (!%p5836_p9)
}
  0x34   :  { %53 = dma.hbm_to_vmem [thread:$0]  %s6912_s3, 512, %s48_s28, [#allocation9], %s5894_s13, %s5894_s13, %s5895_s14  }
  0x35   :  { %s5840_s20 = scalar_lea.hbm %s6914_s5, 512 }
  0x36   :  { %p5841_p10 = scmp.ne.s32.totalorder %s6914_s5, %s5840_s20  ;;  %p5844_p11 = scmp.lt.u32.totalorder %s5840_s20, %s6914_s5 }
  0x38   :  { %p5846_p12 = pnand %p5844_p11, %p5841_p10 }
  0x3a   :  { %5849 = shalt.err (!%p5846_p12)
}
  0x3b   :  { %s5850_s1 = scalar_lea.vmem %s5986_s30, 512  ;;  %p5855_p0 = scmp.lt.s32.totalorder %s5986_s30, %s5986_s30 }
  0x3c   :  { %p5851_p13 = scmp.ne.s32.totalorder %s5986_s30, %s5850_s1  ;;  %p5856_p1 = scmp.lt.s32.totalorder %s5850_s1, %s5850_s1 }
  0x3e   :  { %p5857_p2 = por %p5856_p1, %p5855_p0 }
  0x40   :  { %p5858_p3 = pnand %p5857_p2, %p5851_p13 }
  0x42   :  { %5861 = shalt.err (!%p5858_p3)
}
  0x43   :  { %s5898_s3 = smov 128   ;;  %s5899_s14 = smov 8  }
  0x44   :  { %67 = dma.hbm_to_vmem [thread:$0]  %s6914_s5, 512, %s5986_s30, [#allocation12], %s5898_s3, %s5898_s3, %s5899_s14  }
  0x45   :  { %5884 = dma.done.wait [#allocation6], 8192  }
  0x46   :  { %5885 = vsyncadd [#allocation6], 4294959104 }
  0x47   :  { %5886 = dma.done.wait [#allocation9], 896  }
  0x48   :  { %5887 = vsyncadd [#allocation9], 4294966400 }
  0x49   :  { %5888 = dma.done.wait [#allocation12], 512  }
  0x4a   :  { %5889 = vsyncadd [#allocation12], 4294966784  ;;  %v4813_v0 = vld [vmem:[%s6915_s6] ss:$0 sm:$0xff]  ;;  %vm87_vm0 = vcmask 261120   ;;  %v5900_v5 = vmov 0.0   ;;  %v137_v9 = vlaneseq }
  0x4b   :  { %107 = vmax.xlane.f32.xlu0 %v4813_v0  ;;  %88 = vst.msk [vmem:[#allocation2] sm:$0xff] %vm87_vm0, %v5900_v5  ;;  %89 = vst.msk [vmem:[#allocation2 + $0x8] sm:$0xff] %vm87_vm0, %v5900_v5  ;;  %5342 = vmatprep.subr.bf16.mxu0 %v5900_v5  ;;  %v5901_v7 = vmov 1966171168   ;;  %v4959_v15 = vld [vmem:[#allocation5] sm:$0xff]   ;;  %v5214_v18 = vld [vmem:[#allocation5 + $0x8] sm:$0xff]  }
  0x4c   :  { %90 = vst.msk [vmem:[#allocation3] sm:$0xff] %vm87_vm0, %v5900_v5  ;;  %91 = vst.msk [vmem:[#allocation3 + $0x8] sm:$0xff] %vm87_vm0, %v5900_v5  ;;  %5352 = vmatprep.subr.bf16.mxu1 %v5900_v5  ;;  %v135_v8 = vunpack.c.l.s4 %v5901_v7  ;;  %v6037_v11 = vshrl.u32 %v137_v9, 7  ;;  %v4960_v20 = vunpack.c.l.bf16 %v4959_v15  ;;  %v4964_v23 = vunpack.c.l.bf16 %v5214_v18  ;;  %v5215_v28 = vld [vmem:[#allocation5 + $0x10] sm:$0xff]   ;;  %v5217_v35 = vld [vmem:[#allocation5 + $0x20] sm:$0xff]   ;;  %s5902_s5 = smov 16  }
  0x4d   :  { %v4961_v31 = vunpack.c.h.bf16 %v4959_v15  ;;  %v4968_v33 = vunpack.c.l.bf16 %v5215_v28  ;;  %v4965_v38 = vunpack.c.h.bf16 %v5214_v18  ;;  %v4976_v39 = vunpack.c.l.bf16 %v5217_v35  ;;  %v5216_v44 = vld [vmem:[#allocation5 + $0x18] sm:$0xff]   ;;  %v5218_v51 = vld [vmem:[#allocation5 + $0x28] sm:$0xff]   ;;  %v5219_v58 = vld [vmem:[#allocation5 + $0x30] sm:$0xff]   ;;  %s5904_s9 = smov 32   ;;  %s5906_s16 = smov 48  }
  0x4e   :  { %v136_v10 = vunpack.c.0.s8 %v135_v8  ;;  %v6044_v17 = vsub.s32 0, %v6037_v11  ;;  %v4969_v46 = vunpack.c.h.bf16 %v5215_v28  ;;  %v4972_v48 = vunpack.c.l.bf16 %v5216_v44  ;;  %v5540_v18 = vld [vmem:[#allocation8] sm:$0xff]   ;;  %s5907_s10 = smov 96   ;;  %s5908_s12 = smov [#allocation13]  }
  0x4f   :  { %v4977_v53 = vunpack.c.h.bf16 %v5217_v35  ;;  %v4980_v55 = vunpack.c.l.bf16 %v5218_v51  ;;  %v4973_v60 = vunpack.c.h.bf16 %v5216_v44  ;;  %v4984_v62 = vunpack.c.l.bf16 %v5219_v58  ;;  %5343 = vmatpush3.bf16.msra.mxu0 %v5540_v18  ;;  %s4799_s15 = sshll.u32 %s5908_s12, 4  ;;  %s4800_s15 = int_to_ptr.vmem [resolvable:$true] %s4799_s15 }
  0x50   :  { %v6040_v12 = vsub.s32 %v136_v10, %v6037_v11  ;;  %v4985_v10 = vunpack.c.h.bf16 %v5219_v58  ;;  %5344 = vmatprep.subr.bf16.mxu0 %v5900_v5  ;;  %vm5903_vm1 = vmmov 0   ;;  %vm313_vm2 = vcmask 130112   ;;  %p5867_p5 = scmp.lt.s32.totalorder %s4800_s15, %s4800_s15 }
  0x51   :  { %5348 = vmatprep.mubr.msk.bf16.mxu0 %vm5903_vm1, %v5900_v5  ;;  %5360 = vmatprep.mubr.msk.bf16.mxu1 %vm5903_vm1, %v5900_v5  ;;  %vm378_vm3 = vcmask 1041409   ;;  %vm380_vm4 = vcmask 1042434   ;;  %vm382_vm5 = vcmask 1043459   ;;  %vm384_vm6 = vcmask 1044484  }
  0x52   :  { %vm386_vm7 = vcmask 1045509   ;;  %vm388_vm8 = vcmask 1046534   ;;  %vm390_vm9 = vcmask 1047559   ;;  %vm397_vm10 = vcmask 130048  }
  0x53   :  { %vm431_vm11 = vcmask 392192   ;;  %vm553_vm12 = vcmask 523264  }
  0xd8   :  { %v108_v1 = vpop.xlane.xlu0 %107 }
  0xd9   :  { %v109_v2 = vsub.f32 %v4813_v0, %v108_v1  ;;  %v5220_v1 = vld [vmem:[#allocation5 + $0x38] sm:$0xff]  }
  0xda   :  { %v4989_v15 = vunpack.c.h.bf16 %v5220_v1 }
  0xdb   :  { %v110_v3 = vmul.f32 1.442695, %v109_v2 }
  0xdd   :  { %5614 = vpow2.f32 %v110_v3  ;;  %v4981_v3 = vunpack.c.h.bf16 %v5218_v51 }
  0xe7   :  { %v5615_v4 = vpop.eup %5614 }
  0xe8   :  { %112 = vadd.xlane.f32.xlu0 %v5615_v4 }
 0x175   :  { %v113_v6 = vpop.xlane.xlu0 %112 }
 0x176   :  { %5616 = vrcp.f32 %v113_v6  ;;  %v4988_v6 = vunpack.c.l.bf16 %v5220_v1 }
 0x180   :  { %v5617_v13 = vpop.eup %5616 }
 0x181   :  { %v115_v14 = vmul.f32 %v5617_v13, %v5615_v4 }
 0x183   :  { %v140_v16 = vrot.slane %v115_v14, %v6040_v12  ;;  %v133_v19 = vcombine.high %v115_v14, %v115_v14 }
 0x185   :  { %v156_v21 = vrot.slane %v140_v16, %v6040_v12  ;;  %v148_v22 = vcombine.high %v140_v16, %v140_v16  ;;  %v147_v27 = vrot.slane %v133_v19, %v6040_v12  ;;  %v100_v19 = vld [vmem:[#allocation2] sm:$0xff] }
 0x187   :  { %v201_v24 = vrot.slane %v156_v21, %v6044_v17  ;;  %v170_v25 = vrot.slane %v148_v22, %v6040_v12  ;;  %v178_v26 = vcombine.high %v156_v21, %v156_v21  ;;  %v163_v36 = vrot.slane %v147_v27, %v6040_v12  ;;  %v5542_v21 = vld [vmem:[#allocation8 + $0x10] sm:$0xff]  }
 0x188   :  { %v149_v43 = vcombine.high %v147_v27, %v147_v27 }
 0x189   :  { %v238_v29 = vmul.f32 %v4960_v20, %v201_v24  ;;  %v205_v30 = vrot.slane %v170_v25, %v6044_v17  ;;  %v209_v34 = vrot.slane %v178_v26, %v6044_v17  ;;  %v239_v37 = vmul.f32 %v4961_v31, %v201_v24  ;;  %v5541_v20 = vld [vmem:[#allocation8 + $0x8] sm:$0xff]  }
 0x18a   :  { %v217_v41 = vrot.slane %v163_v36, %v6044_v17  ;;  %v180_v42 = vcombine.high %v170_v25, %v170_v25  ;;  %v177_v50 = vrot.slane %v149_v43, %v6040_v12  ;;  %v179_v57 = vcombine.high %v163_v36, %v163_v36  ;;  %5345 = vmatpush3.bf16.msra.mxu0 %v5541_v20 }
 0x18b   :  { %254 = vadd.xlane.f32.xlu1 %v238_v29  ;;  %v240_v32 = vmul.f32 %v4964_v23, %v205_v30  ;;  %v242_v40 = vmul.f32 %v4968_v33, %v209_v34  ;;  %v241_v45 = vmul.f32 %v4965_v38, %v205_v30  ;;  %v243_v52 = vmul.f32 %v4969_v46, %v209_v34 }
 0x18c   :  { %v246_v47 = vmul.f32 %v4976_v39, %v217_v41  ;;  %v213_v49 = vrot.slane %v180_v42, %v6044_v17  ;;  %v221_v56 = vrot.slane %v177_v50, %v6044_v17  ;;  %v247_v59 = vmul.f32 %v4977_v53, %v217_v41  ;;  %5346 = vmatprep.subr.bf16.mxu0 %v5900_v5 }
 0x18d   :  { %258 = vadd.xlane.f32.xlu0 %v240_v32  ;;  %v225_v63 = vrot.slane %v179_v57, %v6044_v17  ;;  %v181_v0 = vcombine.high %v177_v50, %v177_v50  ;;  %v303_v29 = vand.u32 127, %v137_v9 }
 0x18e   :  { %v244_v54 = vmul.f32 %v4972_v48, %v213_v49  ;;  %v248_v61 = vmul.f32 %v4980_v55, %v221_v56  ;;  %v245_v2 = vmul.f32 %v4973_v60, %v213_v49  ;;  %v249_v8 = vmul.f32 %v4981_v3, %v221_v56  ;;  %5347 = vmatpush3.bf16.msra.mxu0 %v5542_v21 }
 0x18f   :  { %256 = vadd.xlane.f32.xlu1 %v239_v37  ;;  %v250_v4 = vmul.f32 %v4984_v62, %v225_v63  ;;  %v229_v7 = vrot.slane %v181_v0, %v6044_v17  ;;  %v251_v14 = vmul.f32 %v4985_v10, %v225_v63  ;;  %v308_v31 = vadd.s32 4294967288, %v303_v29 }
 0x190   :  { %v6070_v36 = vsub.s32 %v303_v29, %v6037_v11 }
 0x191   :  { %262 = vadd.xlane.f32.xlu0 %v242_v40  ;;  %v252_v13 = vmul.f32 %v4988_v6, %v229_v7  ;;  %v253_v16 = vmul.f32 %v4989_v15, %v229_v7  ;;  %v6067_v34 = vsub.s32 %v308_v31, %v6037_v11  ;;  %v6108_v15 = vld [vmem:[%s6911_s2] ss:$0 sm:$0xff] }
 0x193   :  { %260 = vadd.xlane.f32.xlu1 %v241_v45 }
 0x195   :  { %270 = vadd.xlane.f32.xlu0 %v246_v47 }
 0x197   :  { %264 = vadd.xlane.f32.xlu1 %v243_v52 }
 0x199   :  { %266 = vadd.xlane.f32.xlu0 %v244_v54 }
 0x19b   :  { %272 = vadd.xlane.f32.xlu1 %v247_v59 }
 0x19d   :  { %274 = vadd.xlane.f32.xlu0 %v248_v61 }
 0x19f   :  { %268 = vadd.xlane.f32.xlu1 %v245_v2 }
 0x1a1   :  { %278 = vadd.xlane.f32.xlu0 %v250_v4 }
 0x1a3   :  { %276 = vadd.xlane.f32.xlu1 %v249_v8 }
 0x1a5   :  { %282 = vadd.xlane.f32.xlu0 %v252_v13 }
 0x1a7   :  { %280 = vadd.xlane.f32.xlu1 %v251_v14 }
 0x1ab   :  { %284 = vadd.xlane.f32.xlu1 %v253_v16 }
 0x1bb   :  { %394 = vrot.lane.b32.xlu0 %v100_v19, %s5902_s5 }
 0x218   :  { %v255_v22 = vpop.xlane.xlu1 %254 }
 0x219   :  { %v307_v44 = vrot.slane %v255_v22, %v6070_v36 }
 0x21a   :  { %v259_v23 = vpop.xlane.xlu0 %258 }
 0x21b   :  { %v318_v39 = vrot.slane %v259_v23, %v6070_v36  ;;  %v103_v23 = vld [vmem:[#allocation3] sm:$0xff] }
 0x21c   :  { %v257_v24 = vpop.xlane.xlu1 %256 }
 0x21d   :  { %v312_v40 = vrot.slane %v257_v24, %v6067_v34 }
 0x21e   :  { %v263_v25 = vpop.xlane.xlu0 %262 }
 0x21f   :  { %v327_v41 = vrot.slane %v263_v25, %v6070_v36  ;;  %v314_v48 = vsel %vm313_vm2, %v312_v40, %v307_v44  ;;  %v5546_v40 = vld [vmem:[#allocation10 + $0x18] sm:$0xff]   ;;  %v105_v44 = vld [vmem:[#allocation3 + $0x8] sm:$0xff] }
 0x220   :  { %v261_v26 = vpop.xlane.xlu1 %260 }
 0x221   :  { %v322_v37 = vrot.slane %v261_v26, %v6067_v34 }
 0x222   :  { %v271_v27 = vpop.xlane.xlu0 %270 }
 0x223   :  { %v323_v45 = vsel %vm313_vm2, %v322_v37, %v318_v39  ;;  %v345_v57 = vrot.slane %v271_v27, %v6070_v36  ;;  %v5544_v37 = vld [vmem:[#allocation10 + $0x8] sm:$0xff]  }
 0x224   :  { %v265_v28 = vpop.xlane.xlu1 %264  ;;  %v379_v51 = vsel %vm378_vm3, %v323_v45, %v314_v48 }
 0x225   :  { %v331_v38 = vrot.slane %v265_v28, %v6067_v34 }
 0x226   :  { %v267_v30 = vpop.xlane.xlu0 %266 }
 0x227   :  { %v336_v46 = vrot.slane %v267_v30, %v6070_v36  ;;  %v332_v47 = vsel %vm313_vm2, %v331_v38, %v327_v41  ;;  %v5545_v38 = vld [vmem:[#allocation10 + $0x10] sm:$0xff]  }
 0x228   :  { %v273_v32 = vpop.xlane.xlu1 %272  ;;  %v381_v54 = vsel %vm380_vm4, %v332_v47, %v379_v51 }
 0x229   :  { %v349_v52 = vrot.slane %v273_v32, %v6067_v34 }
 0x22a   :  { %v275_v33 = vpop.xlane.xlu0 %274 }
 0x22b   :  { %v354_v55 = vrot.slane %v275_v33, %v6070_v36  ;;  %v350_v62 = vsel %vm313_vm2, %v349_v52, %v345_v57 }
 0x22c   :  { %v269_v35 = vpop.xlane.xlu1 %268 }
 0x22d   :  { %v340_v9 = vrot.slane %v269_v35, %v6067_v34  ;;  %v5543_v35 = vld [vmem:[#allocation10] sm:$0xff]  }
 0x22e   :  { %v279_v42 = vpop.xlane.xlu0 %278  ;;  %5353 = vmatpush3.bf16.msra.mxu1 %v5543_v35 }
 0x22f   :  { %v341_v49 = vsel %vm313_vm2, %v340_v9, %v336_v46  ;;  %v363_v59 = vrot.slane %v279_v42, %v6070_v36  ;;  %5354 = vmatprep.subr.bf16.mxu1 %v5900_v5  ;;  %v102_v9 = vld [vmem:[#allocation2 + $0x8] sm:$0xff] }
 0x230   :  { %v277_v43 = vpop.xlane.xlu1 %276  ;;  %v383_v58 = vsel %vm382_vm5, %v341_v49, %v381_v54 }
 0x231   :  { %v358_v50 = vrot.slane %v277_v43, %v6067_v34  ;;  %v385_v3 = vsel %vm384_vm6, %v350_v62, %v383_v58 }
 0x232   :  { %v283_v60 = vpop.xlane.xlu0 %282  ;;  %5355 = vmatpush3.bf16.msra.mxu1 %v5544_v37 }
 0x233   :  { %v359_v61 = vsel %vm313_vm2, %v358_v50, %v354_v55  ;;  %v372_v1 = vrot.slane %v283_v60, %v6070_v36  ;;  %5356 = vmatprep.subr.bf16.mxu1 %v5900_v5  ;;  %v6134_v50 = vld [vmem:[%s6913_s4] ss:$0 sm:$0xff] }
 0x234   :  { %v281_v53 = vpop.xlane.xlu1 %280  ;;  %v387_v4 = vsel %vm386_vm7, %v359_v61, %v385_v3  ;;  %v6142_v3 = vld [vmem:[#allocation11] ss:$8 sps:$4 sm:$0xff]  }
 0x235   :  { %v367_v56 = vrot.slane %v281_v53, %v6067_v34 }
 0x236   :  { %v395_v6 = vpop.permute.xlu0 %394  ;;  %5357 = vmatpush3.bf16.msra.mxu1 %v5545_v38  ;;  %v4991_v38 = vld [vmem:[#allocation5 + $0x40] sm:$0xff]  }
 0x237   :  { %v368_v63 = vsel %vm313_vm2, %v367_v56, %v363_v59  ;;  %5358 = vmatprep.subr.bf16.mxu1 %v5900_v5 }
 0x238   :  { %v285_v0 = vpop.xlane.xlu1 %284  ;;  %v389_v8 = vsel %vm388_vm8, %v368_v63, %v387_v4  ;;  %v6144_v4 = vld [vmem:[#allocation11 + $0x4] ss:$8 sps:$4 sm:$0xff]  }
 0x239   :  { %v376_v2 = vrot.slane %v285_v0, %v6067_v34  ;;  %668 = vmatprep.subr.bf16.mxu0 %v6144_v4 }
 0x23a   :  { %5359 = vmatpush3.bf16.msra.mxu1 %v5546_v40  ;;  %v5221_v40 = vld [vmem:[#allocation5 + $0x48] sm:$0xff]  }
 0x23b   :  { %v377_v7 = vsel %vm313_vm2, %v376_v2, %v372_v1  ;;  %5364 = vmatprep.subr.bf16.mxu1 %v5900_v5 }
 0x23c   :  { %v391_v10 = vsel %vm390_vm9, %v377_v7, %v389_v8  ;;  %v5905_v7 = vmov 0   ;;  %v6151_v8 = vld [vmem:[#allocation11 + $0x10] ss:$8 sps:$4 sm:$0xff]  }
 0x23d   :  { %v398_v13 = vsel %vm397_vm10, %v391_v10, %v395_v6  ;;  %v6146_v6 = vld [vmem:[#allocation11 + $0x14] ss:$8 sps:$4 sm:$0xff]  }
 0x23e   :  { %v399_v14 = vpack.c.bf16 %v398_v13, %v398_v13 }
 0x240   :  { %5349 = vmatmul.mubr.msk.bf16.vlgmr.msra.gmra.mrb[0].mxu0 %vm431_vm11, %v399_v14 }
 0x241   :  { %700 = vmatprep.mubr.bf16.mxu0 %v5905_v7  ;;  %669 = vmatpush1.bf16.msra.mxu0 %v6142_v3 }
 0x242   :  { %670 = vmatprep.subr.bf16.mxu0 %v6146_v6 }
 0x245   :  { %671 = vmatpush1.bf16.msra.mxu0 %v6151_v8 }
 0x246   :  { %5374 = vmatprep.subr.bf16.mxu0 %v5900_v5 }
 0x313   :  { %v469_v16 = vpop.f32.mrb[0].mxu0 }
 0x314   :  { %v470_v18 = vadd.f32 %v6108_v15, %v469_v16  ;;  %v5350_v19 = vpop.f32.mrb[1].mxu0 }
 0x315   :  { %v472_v20 = vpop.f32.mrb[2].mxu0  ;;  %v630_v19 = vld [vmem:[%s6915_s6] sm:$0x3] }
 0x316   :  { %5618 = vtanh.f32 %v470_v18  ;;  %v5351_v21 = vpop.f32.mrb[3].mxu0  ;;  %v4819_v24 = vmul.f32 -1.442695, %v470_v18  ;;  %v6169_v20 = vsub.s32 1, %v6037_v11 }
 0x317   :  { %v635_v21 = vrot.slane %v630_v19, %v6044_v17 }
 0x318   :  { %5620 = vpow2.f32 %v4819_v24 }
 0x320   :  { %v5619_v22 = vpop.eup %5618 }
 0x321   :  { %488 = vrot.lane.b32.xlu1 %v5619_v22, %s5894_s13  ;;  %v639_v22 = vrot.slane %v630_v19, %v6169_v20 }
 0x322   :  { %v5621_v25 = vpop.eup %5620 }
 0x323   :  { %v478_v26 = vadd.f32 1.0, %v5621_v25 }
 0x325   :  { %483 = vrot.lane.b32.xlu1 %v103_v23, %s5904_s9  ;;  %5622 = vrcp.f32 %v478_v26 }
 0x32f   :  { %v5623_v27 = vpop.eup %5622 }
 0x393   :  { %v489_v28 = vpop.permute.xlu1 %488 }
 0x394   :  { %v491_v29 = vmul.f32 %v5623_v27, %v489_v28 }
 0x396   :  { %493 = vrot.lane.b32.xlu1 %v491_v29, %s5904_s9 }
 0x397   :  { %v484_v30 = vpop.permute.xlu1 %483 }
 0x398   :  { %v486_v31 = vmul.f32 %v5623_v27, %v484_v30 }
 0x408   :  { %v494_v32 = vpop.permute.xlu1 %493 }
 0x409   :  { %v6114_v33 = vadd.f32 %v494_v32, %v486_v31 }
 0x40b   :  { %5624 = vtanh.f32 %v6114_v33 }
 0x415   :  { %v5625_v39 = vpop.eup %5624 }
 0x416   :  { %499 = vrot.lane.b32.xlu0 %v5625_v39, %s5894_s13 }
 0x488   :  { %v500_v41 = vpop.permute.xlu0 %499 }
 0x489   :  { %v6122_v42 = vmul.f32 %v5623_v27, %v500_v41  ;;  %v4992_v41 = vunpack.c.l.bf16 %v4991_v38 }
 0x48b   :  { %v5535_v43 = vpack.i.bf16 %v102_v9, %v6122_v42 }
 0x48d   :  { %5536 = vrot.lane.b32.xlu1 %v5535_v43, %s5904_s9 }
 0x491   :  { %605 = vrot.lane.b32.xlu1 %v105_v44, %s5904_s9 }
 0x4ff   :  { %v5537_v45 = vpop.permute.xlu1 %5536 }
 0x500   :  { %v5539_v46 = vunpack.i.h.bf16 %v5537_v45  ;;  %v5538_v47 = vunpack.i.l.bf16 %v5537_v45  ;;  %v4996_v45 = vunpack.c.l.bf16 %v5221_v40 }
 0x502   :  { %v512_v48 = vsel %vm87_vm0, %v5538_v47, %v5539_v46 }
 0x503   :  { %v513_v49 = vpack.c.bf16 %v512_v48, %v512_v48  ;;  %v606_v63 = vpop.permute.xlu1 %605 }
 0x505   :  { %5361 = vmatmul.mubr.msk.bf16.vlgmr.msra.gmra.mrb[0].mxu1 %vm553_vm12, %v513_v49 }
 0x506   :  { %5370 = vmatprep.mubr.msk.bf16.mxu1 %vm5903_vm1, %v5900_v5 }
 0x5d8   :  { %v591_v51 = vpop.f32.mrb[0].mxu1 }
 0x5d9   :  { %v592_v52 = vadd.f32 %v6134_v50, %v591_v51  ;;  %v5362_v53 = vpop.f32.mrb[1].mxu1  ;;  %v5222_v51 = vld [vmem:[#allocation5 + $0x50] sm:$0xff]  }
 0x5da   :  { %v594_v54 = vpop.f32.mrb[2].mxu1 }
 0x5db   :  { %5626 = vtanh.f32 %v592_v52  ;;  %v5363_v55 = vpop.f32.mrb[3].mxu1  ;;  %v4826_v57 = vmul.f32 -1.442695, %v592_v52  ;;  %v4993_v54 = vunpack.c.h.bf16 %v4991_v38 }
 0x5dd   :  { %5628 = vpow2.f32 %v4826_v57 }
 0x5e5   :  { %v5627_v56 = vpop.eup %5626 }
 0x5e6   :  { %610 = vrot.lane.b32.xlu0 %v5627_v56, %s5894_s13  ;;  %v5000_v56 = vunpack.c.l.bf16 %v5222_v51 }
 0x5e7   :  { %v5629_v58 = vpop.eup %5628 }
 0x5e8   :  { %v600_v59 = vadd.f32 1.0, %v5629_v58  ;;  %v5224_v58 = vld [vmem:[#allocation5 + $0x60] sm:$0xff]  }
 0x5ea   :  { %5630 = vrcp.f32 %v600_v59 }
 0x5f4   :  { %v5631_v60 = vpop.eup %5630 }
 0x5f5   :  { %v608_v0 = vmul.f32 %v5631_v60, %v606_v63 }
 0x658   :  { %v611_v61 = vpop.permute.xlu0 %610 }
 0x659   :  { %v613_v62 = vmul.f32 %v5631_v60, %v611_v61  ;;  %v4997_v61 = vunpack.c.h.bf16 %v5221_v40  ;;  %v5227_v40 = vld [vmem:[#allocation5 + $0x78] sm:$0xff]  }
 0x65b   :  { %615 = vrot.lane.b32.xlu0 %v613_v62, %s5904_s9  ;;  %v5008_v62 = vunpack.c.l.bf16 %v5224_v58 }
 0x6cd   :  { %v616_v1 = vpop.permute.xlu0 %615 }
 0x6ce   :  { %v6139_v2 = vadd.f32 %v616_v1, %v608_v0 }
 0x6d0   :  { %5632 = vtanh.f32 %v6139_v2 }
 0x6da   :  { %v5633_v10 = vpop.eup %5632 }
 0x6db   :  { %621 = vrot.lane.b32.xlu1 %v5633_v10, %s5894_s13 }
 0x74d   :  { %v622_v13 = vpop.permute.xlu1 %621 }
 0x74e   :  { %v6157_v14 = vmul.f32 %v5631_v60, %v622_v13  ;;  %v5223_v13 = vld [vmem:[#allocation5 + $0x58] sm:$0xff]  }
 0x750   :  { %v625_v16 = vpack.c.bf16 %v6157_v14, %v6157_v14 }
 0x752   :  { %643 = vrot.lane.b32.xlu0 %v625_v16, %s5904_s9 }
 0x7c4   :  { %v644_v18 = vpop.permute.xlu0 %643 }
 0x7c5   :  { %4831 = vmatmul.mubr.msk.bf16.vlgmr.msra.gmra.mrb[4].mxu0 %vm87_vm0, %v644_v18  ;;  %v5001_v18 = vunpack.c.h.bf16 %v5222_v51  ;;  %v5021_v51 = vunpack.c.h.bf16 %v5227_v40 }
 0x7c6   :  { %5382 = vmatprep.mubr.msk.bf16.mxu0 %vm5903_vm1, %v5900_v5 }
 0x898   :  { %v702_v23 = vpop.f32.mrb[4].mxu0 }
 0x899   :  { %v703_v24 = vadd.f32 %v702_v23, %v635_v21  ;;  %v704_v25 = vpop.f32.mrb[5].mxu0  ;;  %v5004_v21 = vunpack.c.l.bf16 %v5223_v13 }
 0x89a   :  { %v705_v26 = vadd.f32 %v704_v25, %v639_v22  ;;  %v706_v27 = vpop.f32.mrb[6].mxu0 }
 0x89b   :  { %v707_v28 = vpop.f32.mrb[7].mxu0  ;;  %710 = vmax.xlane.f32.xlu1 %v703_v24 }
 0x89c   :  { %709 = vst [vmem:[#allocation13] sm:$0xff] %v705_v26  ;;  %v5009_v26 = vunpack.c.h.bf16 %v5224_v58 }
 0x928   :  { %v711_v29 = vpop.xlane.xlu1 %710 }
 0x929   :  { %v712_v30 = vsub.f32 %v703_v24, %v711_v29  ;;  %v5225_v24 = vld [vmem:[#allocation5 + $0x68] sm:$0xff]  }
 0x92a   :  { %v5012_v28 = vunpack.c.l.bf16 %v5225_v24 }
 0x92b   :  { %v713_v31 = vmul.f32 1.442695, %v712_v30 }
 0x92d   :  { %5634 = vpow2.f32 %v713_v31  ;;  %v5226_v31 = vld [vmem:[#allocation5 + $0x70] sm:$0xff]  }
 0x937   :  { %v5635_v32 = vpop.eup %5634 }
 0x938   :  { %715 = vadd.xlane.f32.xlu0 %v5635_v32 }
 0x9c5   :  { %v716_v11 = vpop.xlane.xlu0 %715 }
 0x9c6   :  { %5636 = vrcp.f32 %v716_v11  ;;  %v5005_v11 = vunpack.c.h.bf16 %v5223_v13 }
 0x9d0   :  { %v5637_v35 = vpop.eup %5636 }
 0x9d1   :  { %v718_v37 = vmul.f32 %v5637_v35, %v5635_v32 }
 0x9d3   :  { %v744_v39 = vrot.slane %v718_v37, %v6040_v12  ;;  %v737_v9 = vcombine.high %v718_v37, %v718_v37  ;;  %v5016_v37 = vunpack.c.l.bf16 %v5226_v31 }
 0x9d5   :  { %v760_v43 = vrot.slane %v744_v39, %v6040_v12  ;;  %v752_v44 = vcombine.high %v744_v39, %v744_v39  ;;  %v751_v49 = vrot.slane %v737_v9, %v6040_v12 }
 0x9d7   :  { %v805_v46 = vrot.slane %v760_v43, %v6044_v17  ;;  %v774_v47 = vrot.slane %v752_v44, %v6040_v12  ;;  %v782_v48 = vcombine.high %v760_v43, %v760_v43  ;;  %v767_v59 = vrot.slane %v751_v49, %v6040_v12 }
 0x9d8   :  { %v753_v10 = vcombine.high %v751_v49, %v751_v49  ;;  %v5020_v44 = vunpack.c.l.bf16 %v5227_v40 }
 0x9d9   :  { %v842_v52 = vmul.f32 %v4992_v41, %v805_v46  ;;  %v809_v53 = vrot.slane %v774_v47, %v6044_v17  ;;  %v813_v57 = vrot.slane %v782_v48, %v6044_v17  ;;  %v843_v60 = vmul.f32 %v4993_v54, %v805_v46  ;;  %v5554_v54 = vld [vmem:[#allocation8 + $0x8] sm:$0xff]  }
 0x9da   :  { %v821_v0 = vrot.slane %v767_v59, %v6044_v17  ;;  %v784_v1 = vcombine.high %v774_v47, %v774_v47  ;;  %v781_v23 = vrot.slane %v753_v10, %v6040_v12  ;;  %v783_v30 = vcombine.high %v767_v59, %v767_v59 }
 0x9db   :  { %858 = vadd.xlane.f32.xlu0 %v842_v52  ;;  %v844_v55 = vmul.f32 %v4996_v45, %v809_v53  ;;  %v846_v63 = vmul.f32 %v5000_v56, %v813_v57  ;;  %v845_v16 = vmul.f32 %v4997_v61, %v809_v53  ;;  %v847_v25 = vmul.f32 %v5001_v18, %v813_v57  ;;  %v5553_v53 = vld [vmem:[#allocation8] sm:$0xff]  }
 0x9dc   :  { %v850_v19 = vmul.f32 %v5008_v62, %v821_v0  ;;  %v817_v22 = vrot.slane %v784_v1, %v6044_v17  ;;  %v825_v29 = vrot.slane %v781_v23, %v6044_v17  ;;  %v851_v32 = vmul.f32 %v5009_v26, %v821_v0  ;;  %5365 = vmatpush3.bf16.msra.mxu1 %v5553_v53 }
 0x9dd   :  { %862 = vadd.xlane.f32.xlu1 %v844_v55  ;;  %v829_v38 = vrot.slane %v783_v30, %v6044_v17  ;;  %v785_v39 = vcombine.high %v781_v23, %v781_v23  ;;  %v5013_v41 = vunpack.c.h.bf16 %v5225_v24  ;;  %v5017_v47 = vunpack.c.h.bf16 %v5226_v31  ;;  %5366 = vmatprep.subr.bf16.mxu1 %v5900_v5  ;;  %v5555_v55 = vld [vmem:[#allocation8 + $0x10] sm:$0xff]  }
 0x9de   :  { %v848_v27 = vmul.f32 %v5004_v21, %v817_v22  ;;  %v852_v35 = vmul.f32 %v5012_v28, %v825_v29  ;;  %v849_v9 = vmul.f32 %v5005_v11, %v817_v22 }
 0x9df   :  { %860 = vadd.xlane.f32.xlu0 %v843_v60  ;;  %v854_v43 = vmul.f32 %v5016_v37, %v829_v38  ;;  %v833_v45 = vrot.slane %v785_v39, %v6044_v17  ;;  %v853_v46 = vmul.f32 %v5013_v41, %v825_v29  ;;  %v855_v49 = vmul.f32 %v5017_v47, %v829_v38 }
 0x9e0   :  { %5367 = vmatpush3.bf16.msra.mxu1 %v5554_v54 }
 0x9e1   :  { %866 = vadd.xlane.f32.xlu1 %v846_v63  ;;  %v856_v48 = vmul.f32 %v5020_v44, %v833_v45  ;;  %v857_v52 = vmul.f32 %v5021_v51, %v833_v45  ;;  %5368 = vmatprep.subr.bf16.mxu1 %v5900_v5 }
 0x9e3   :  { %864 = vadd.xlane.f32.xlu0 %v845_v16 }
 0x9e4   :  { %5369 = vmatpush3.bf16.msra.mxu1 %v5555_v55 }
 0x9e5   :  { %874 = vadd.xlane.f32.xlu1 %v850_v19  ;;  %1248 = vmatprep.subr.bf16.mxu1 %v6144_v4 }
 0x9e7   :  { %868 = vadd.xlane.f32.xlu0 %v847_v25 }
 0x9e9   :  { %870 = vadd.xlane.f32.xlu1 %v848_v27 }
 0x9eb   :  { %876 = vadd.xlane.f32.xlu0 %v851_v32 }
 0x9ed   :  { %878 = vadd.xlane.f32.xlu1 %v852_v35 }
 0x9ef   :  { %872 = vadd.xlane.f32.xlu0 %v849_v9 }
 0x9f1   :  { %882 = vadd.xlane.f32.xlu1 %v854_v43 }
 0x9f3   :  { %880 = vadd.xlane.f32.xlu0 %v853_v46 }
 0x9f5   :  { %886 = vadd.xlane.f32.xlu1 %v856_v48 }
 0x9f7   :  { %884 = vadd.xlane.f32.xlu0 %v855_v49 }
 0x9fb   :  { %888 = vadd.xlane.f32.xlu0 %v857_v52 }
 0xa06   :  { %986 = vrot.lane.b32.xlu1 %v6122_v42, %s5906_s16 }
 0xa68   :  { %v859_v56 = vpop.xlane.xlu0 %858 }
 0xa69   :  { %v909_v24 = vrot.slane %v859_v56, %v6070_v36 }
 0xa6a   :  { %v863_v57 = vpop.xlane.xlu1 %862 }
 0xa6b   :  { %v918_v16 = vrot.slane %v863_v57, %v6070_v36 }
 0xa6c   :  { %v861_v58 = vpop.xlane.xlu0 %860 }
 0xa6d   :  { %v913_v18 = vrot.slane %v861_v58, %v6067_v34 }
 0xa6e   :  { %v867_v59 = vpop.xlane.xlu1 %866 }
 0xa6f   :  { %v927_v21 = vrot.slane %v867_v59, %v6070_v36  ;;  %v914_v28 = vsel %vm313_vm2, %v913_v18, %v909_v24 }
 0xa70   :  { %v865_v60 = vpop.xlane.xlu0 %864 }
 0xa71   :  { %v922_v10 = vrot.slane %v865_v60, %v6067_v34 }
 0xa72   :  { %v875_v61 = vpop.xlane.xlu1 %874 }
 0xa73   :  { %v923_v25 = vsel %vm313_vm2, %v922_v10, %v918_v16  ;;  %v945_v39 = vrot.slane %v875_v61, %v6070_v36 }
 0xa74   :  { %v869_v62 = vpop.xlane.xlu0 %868  ;;  %v978_v31 = vsel %vm378_vm3, %v923_v25, %v914_v28 }
 0xa75   :  { %v931_v13 = vrot.slane %v869_v62, %v6067_v34 }
 0xa76   :  { %v871_v63 = vpop.xlane.xlu1 %870 }
 0xa77   :  { %v936_v26 = vrot.slane %v871_v63, %v6070_v36  ;;  %v932_v27 = vsel %vm313_vm2, %v931_v13, %v927_v21  ;;  %v5556_v21 = vld [vmem:[#allocation10] sm:$0xff]  }
 0xa78   :  { %v877_v42 = vpop.xlane.xlu0 %876  ;;  %v979_v35 = vsel %vm380_vm4, %v932_v27, %v978_v31  ;;  %5375 = vmatpush3.bf16.msra.mxu0 %v5556_v21 }
 0xa79   :  { %v949_v32 = vrot.slane %v877_v42, %v6067_v34  ;;  %5376 = vmatprep.subr.bf16.mxu0 %v5900_v5 }
 0xa7a   :  { %v879_v0 = vpop.xlane.xlu1 %878 }
 0xa7b   :  { %v954_v37 = vrot.slane %v879_v0, %v6070_v36  ;;  %v950_v44 = vsel %vm313_vm2, %v949_v32, %v945_v39 }
 0xa7c   :  { %v873_v1 = vpop.xlane.xlu0 %872 }
 0xa7d   :  { %v940_v19 = vrot.slane %v873_v1, %v6067_v34 }
 0xa7e   :  { %v883_v22 = vpop.xlane.xlu1 %882 }
 0xa7f   :  { %v941_v29 = vsel %vm313_vm2, %v940_v19, %v936_v26  ;;  %v963_v9 = vrot.slane %v883_v22, %v6070_v36  ;;  %v5558_v22 = vld [vmem:[#allocation10 + $0x10] sm:$0xff]  }
 0xa80   :  { %v881_v23 = vpop.xlane.xlu0 %880  ;;  %v980_v40 = vsel %vm382_vm5, %v941_v29, %v979_v35 }
 0xa81   :  { %v958_v30 = vrot.slane %v881_v23, %v6067_v34  ;;  %v981_v47 = vsel %vm384_vm6, %v950_v44, %v980_v40 }
 0xa82   :  { %v887_v41 = vpop.xlane.xlu1 %886 }
 0xa83   :  { %v959_v43 = vsel %vm313_vm2, %v958_v30, %v954_v37  ;;  %v972_v48 = vrot.slane %v887_v41, %v6070_v36 }
 0xa84   :  { %v885_v11 = vpop.xlane.xlu0 %884  ;;  %v982_v51 = vsel %vm386_vm7, %v959_v43, %v981_v47 }
 0xa85   :  { %v967_v38 = vrot.slane %v885_v11, %v6067_v34 }
 0xa86   :  { %v987_v54 = vpop.permute.xlu1 %986 }
 0xa87   :  { %v968_v45 = vsel %vm313_vm2, %v967_v38, %v963_v9 }
 0xa88   :  { %v889_v46 = vpop.xlane.xlu0 %888  ;;  %v983_v52 = vsel %vm388_vm8, %v968_v45, %v982_v51 }
 0xa89   :  { %v976_v49 = vrot.slane %v889_v46, %v6067_v34 }
 0xa8b   :  { %v977_v53 = vsel %vm313_vm2, %v976_v49, %v972_v48 }
 0xa8c   :  { %v984_v55 = vsel %vm390_vm9, %v977_v53, %v983_v52 }
 0xa8d   :  { %v989_v56 = vsel %vm397_vm10, %v984_v55, %v987_v54 }
 0xa8e   :  { %v990_v57 = vpack.c.bf16 %v989_v56, %v989_v56 }
 0xa90   :  { %5371 = vmatmul.mubr.msk.bf16.vlgmr.msra.gmra.mrb[4].mxu1 %vm431_vm11, %v990_v57 }
 0xa91   :  { %1249 = vmatpush1.bf16.msra.mxu1 %v6142_v3  ;;  %1280 = vmatprep.mubr.bf16.mxu1 %v5905_v7 }
 0xa92   :  { %1250 = vmatprep.subr.bf16.mxu1 %v6146_v6 }
 0xa95   :  { %1251 = vmatpush1.bf16.msra.mxu1 %v6151_v8 }
 0xa96   :  { %5396 = vmatprep.subr.bf16.mxu1 %v5900_v5 }
 0xb63   :  { %v1059_v58 = vpop.f32.mrb[4].mxu1 }
 0xb64   :  { %v1060_v59 = vadd.f32 %v6108_v15, %v1059_v58  ;;  %v5372_v60 = vpop.f32.mrb[5].mxu1 }
 0xb65   :  { %v1062_v61 = vpop.f32.mrb[6].mxu1 }
 0xb66   :  { %5638 = vtanh.f32 %v1060_v59  ;;  %v5373_v62 = vpop.f32.mrb[7].mxu1  ;;  %v4837_v42 = vmul.f32 -1.442695, %v1060_v59 }
 0xb68   :  { %5640 = vpow2.f32 %v4837_v42 }
 0xb70   :  { %v5639_v63 = vpop.eup %5638 }
 0xb71   :  { %1074 = vrot.lane.b32.xlu0 %v5639_v63, %s5894_s13 }
 0xb72   :  { %v5641_v0 = vpop.eup %5640 }
 0xb73   :  { %v1068_v1 = vadd.f32 1.0, %v5641_v0 }
 0xb75   :  { %1094 = vrot.lane.b32.xlu0 %v6157_v14, %s5894_s13  ;;  %5642 = vrcp.f32 %v1068_v1  ;;  %v5557_v14 = vld [vmem:[#allocation10 + $0x8] sm:$0xff]  }
 0xb76   :  { %5377 = vmatpush3.bf16.msra.mxu0 %v5557_v14 }
 0xb77   :  { %5378 = vmatprep.subr.bf16.mxu0 %v5900_v5 }
 0xb7a   :  { %5379 = vmatpush3.bf16.msra.mxu0 %v5558_v22 }
 0xb7b   :  { %5380 = vmatprep.subr.bf16.mxu0 %v5900_v5 }
 0xb7f   :  { %v5643_v10 = vpop.eup %5642 }
 0xb80   :  { %v1072_v15 = vmul.f32 %v5643_v10, %v6114_v33  ;;  %v5559_v33 = vld [vmem:[#allocation10 + $0x18] sm:$0xff]  }
 0xb81   :  { %5381 = vmatpush3.bf16.msra.mxu0 %v5559_v33 }
 0xb82   :  { %5386 = vmatprep.subr.bf16.mxu0 %v5900_v5 }
 0xbe3   :  { %v1075_v13 = vpop.permute.xlu0 %1074 }
 0xbe4   :  { %v1077_v16 = vmul.f32 %v5643_v10, %v1075_v13  ;;  %v5023_v13 = vld [vmem:[#allocation5 + $0x80] sm:$0xff]  }
 0xbe5   :  { %v5024_v21 = vunpack.c.l.bf16 %v5023_v13 }
 0xbe6   :  { %1079 = vrot.lane.b32.xlu1 %v1077_v16, %s5904_s9 }
 0xbe7   :  { %v1095_v26 = vpop.permute.xlu0 %1094 }
 0xc58   :  { %v1080_v18 = vpop.permute.xlu1 %1079 }
 0xc59   :  { %v6236_v19 = vadd.f32 %v1080_v18, %v1072_v15  ;;  %v5228_v15 = vld [vmem:[#allocation5 + $0x88] sm:$0xff]  }
 0xc5b   :  { %5644 = vtanh.f32 %v6236_v19 }
 0xc65   :  { %v5645_v23 = vpop.eup %5644 }
 0xc66   :  { %1085 = vrot.lane.b32.xlu1 %v5645_v23, %s5894_s13  ;;  %v5028_v23 = vunpack.c.l.bf16 %v5228_v15 }
 0xcd8   :  { %v1086_v24 = vpop.permute.xlu1 %1085 }
 0xcd9   :  { %v6244_v25 = vmul.f32 %v5643_v10, %v1086_v24 }
 0xcdb   :  { %1090 = vrot.lane.b32.xlu1 %v6244_v25, %s5904_s9 }
 0xd4d   :  { %v1091_v27 = vpop.permute.xlu1 %1090 }
 0xd4e   :  { %v1097_v28 = vsel %vm87_vm0, %v1091_v27, %v1095_v26 }
 0xd4f   :  { %v1098_v29 = vpack.c.bf16 %v1097_v28, %v1097_v28  ;;  %v5229_v28 = vld [vmem:[#allocation5 + $0x90] sm:$0xff]  }
 0xd51   :  { %5383 = vmatmul.mubr.msk.bf16.vlgmr.msra.gmra.mrb[8].mxu0 %vm553_vm12, %v1098_v29 }
 0xd52   :  { %5392 = vmatprep.mubr.msk.bf16.mxu0 %vm5903_vm1, %v5900_v5 }
 0xe24   :  { %v1175_v30 = vpop.f32.mrb[8].mxu0 }
 0xe25   :  { %v1176_v31 = vadd.f32 %v6134_v50, %v1175_v30  ;;  %v5384_v32 = vpop.f32.mrb[9].mxu0 }
 0xe26   :  { %v1178_v11 = vpop.f32.mrb[10].mxu0 }
 0xe27   :  { %5646 = vtanh.f32 %v1176_v31  ;;  %v5385_v35 = vpop.f32.mrb[11].mxu0  ;;  %v4844_v38 = vmul.f32 -1.442695, %v1176_v31  ;;  %v5025_v31 = vunpack.c.h.bf16 %v5023_v13  ;;  %v5032_v11 = vunpack.c.l.bf16 %v5229_v28 }
 0xe29   :  { %5648 = vpow2.f32 %v4844_v38 }
 0xe31   :  { %v5647_v37 = vpop.eup %5646 }
 0xe32   :  { %1190 = vrot.lane.b32.xlu1 %v5647_v37, %s5894_s13  ;;  %v5231_v37 = vld [vmem:[#allocation5 + $0xa0] sm:$0xff]  }
 0xe33   :  { %v5649_v39 = vpop.eup %5648 }
 0xe34   :  { %v1184_v40 = vadd.f32 1.0, %v5649_v39 }
 0xe36   :  { %5650 = vrcp.f32 %v1184_v40  ;;  %v5029_v40 = vunpack.c.h.bf16 %v5228_v15 }
 0xe40   :  { %v5651_v9 = vpop.eup %5650 }
 0xe41   :  { %v1188_v44 = vmul.f32 %v5651_v9, %v6139_v2  ;;  %v1210_v2 = vld [vmem:[%s6915_s6] sm:$0x3] }
 0xe42   :  { %v1215_v53 = vrot.slane %v1210_v2, %v6044_v17  ;;  %v1219_v54 = vrot.slane %v1210_v2, %v6169_v20 }
 0xea4   :  { %v1191_v41 = vpop.permute.xlu1 %1190 }
 0xea5   :  { %v1193_v43 = vmul.f32 %v5651_v9, %v1191_v41 }
 0xea7   :  { %1195 = vrot.lane.b32.xlu0 %v1193_v43, %s5904_s9 }
 0xf19   :  { %v1196_v45 = vpop.permute.xlu0 %1195 }
 0xf1a   :  { %v6256_v46 = vadd.f32 %v1196_v45, %v1188_v44 }
 0xf1c   :  { %5652 = vtanh.f32 %v6256_v46 }
 0xf26   :  { %v5653_v47 = vpop.eup %5652 }
 0xf27   :  { %1201 = vrot.lane.b32.xlu1 %v5653_v47, %s5894_s13  ;;  %v5230_v47 = vld [vmem:[#allocation5 + $0x98] sm:$0xff]  }
 0xf28   :  { %v5036_v2 = vunpack.c.l.bf16 %v5230_v47 }
 0xf99   :  { %v1202_v48 = vpop.permute.xlu1 %1201 }
 0xf9a   :  { %v6260_v49 = vmul.f32 %v5651_v9, %v1202_v48  ;;  %v5040_v9 = vunpack.c.l.bf16 %v5231_v37 }
 0xf9c   :  { %v1205_v51 = vpack.c.bf16 %v6260_v49, %v6260_v49 }
 0xf9e   :  { %1223 = vrot.lane.b32.xlu0 %v1205_v51, %s5904_s9  ;;  %v5033_v51 = vunpack.c.h.bf16 %v5229_v28 }
0x1010   :  { %v1224_v52 = vpop.permute.xlu0 %1223 }
0x1011   :  { %4849 = vmatmul.mubr.msk.bf16.vlgmr.msra.gmra.mrb[8].mxu1 %vm87_vm0, %v1224_v52 }
0x1012   :  { %5404 = vmatprep.mubr.msk.bf16.mxu1 %vm5903_vm1, %v5900_v5 }
0x10e4   :  { %v1282_v55 = vpop.f32.mrb[8].mxu1 }
0x10e5   :  { %v1283_v56 = vadd.f32 %v1282_v55, %v1215_v53  ;;  %v1284_v57 = vpop.f32.mrb[9].mxu1  ;;  %v5232_v55 = vld [vmem:[#allocation5 + $0xa8] sm:$0xff]  }
0x10e6   :  { %v1285_v58 = vadd.f32 %v1284_v57, %v1219_v54  ;;  %v1286_v59 = vpop.f32.mrb[10].mxu1  ;;  %v5041_v57 = vunpack.c.h.bf16 %v5231_v37 }
0x10e7   :  { %v1287_v60 = vpop.f32.mrb[11].mxu1  ;;  %1291 = vmax.xlane.f32.xlu1 %v1283_v56  ;;  %v5044_v59 = vunpack.c.l.bf16 %v5232_v55 }
0x10e8   :  { %1290 = vst [vmem:[#allocation13 + $0x8] sm:$0xff] %v1285_v58 }
0x1174   :  { %v1292_v61 = vpop.xlane.xlu1 %1291 }
0x1175   :  { %v1293_v62 = vsub.f32 %v1283_v56, %v1292_v61 }
0x1177   :  { %v1294_v63 = vmul.f32 1.442695, %v1293_v62  ;;  %v5233_v62 = vld [vmem:[#allocation5 + $0xb0] sm:$0xff]  }
0x1179   :  { %5654 = vpow2.f32 %v1294_v63 }
0x1183   :  { %v5655_v42 = vpop.eup %5654 }
0x1184   :  { %1296 = vadd.xlane.f32.xlu0 %v5655_v42 }
0x1211   :  { %v1297_v0 = vpop.xlane.xlu0 %1296 }
0x1212   :  { %5656 = vrcp.f32 %v1297_v0 }
0x121c   :  { %v5657_v1 = vpop.eup %5656 }
0x121d   :  { %v1299_v10 = vmul.f32 %v5657_v1, %v5655_v42  ;;  %v5037_v42 = vunpack.c.h.bf16 %v5230_v47  ;;  %v5048_v1 = vunpack.c.l.bf16 %v5233_v62 }
0x121f   :  { %v1325_v16 = vrot.slane %v1299_v10, %v6040_v12  ;;  %v1318_v18 = vcombine.high %v1299_v10, %v1299_v10 }
0x1221   :  { %v1341_v14 = vrot.slane %v1325_v16, %v6040_v12  ;;  %v1333_v22 = vcombine.high %v1325_v16, %v1325_v16  ;;  %v1332_v27 = vrot.slane %v1318_v18, %v6040_v12  ;;  %v5234_v16 = vld [vmem:[#allocation5 + $0xb8] sm:$0xff]   ;;  %v5045_v18 = vunpack.c.h.bf16 %v5232_v55 }
0x1223   :  { %v1386_v33 = vrot.slane %v1341_v14, %v6044_v17  ;;  %v1355_v24 = vrot.slane %v1333_v22, %v6040_v12  ;;  %v1363_v26 = vcombine.high %v1341_v14, %v1341_v14  ;;  %v1348_v38 = vrot.slane %v1332_v27, %v6040_v12 }
0x1224   :  { %v1334_v45 = vcombine.high %v1332_v27, %v1332_v27  ;;  %v5052_v14 = vunpack.c.l.bf16 %v5234_v16  ;;  %v5053_v27 = vunpack.c.h.bf16 %v5234_v16 }
0x1225   :  { %v1423_v29 = vmul.f32 %v5024_v21, %v1386_v33  ;;  %v1390_v30 = vrot.slane %v1355_v24, %v6044_v17  ;;  %v1394_v35 = vrot.slane %v1363_v26, %v6044_v17  ;;  %v1424_v39 = vmul.f32 %v5025_v31, %v1386_v33  ;;  %v5562_v31 = vld [vmem:[#allocation8 + $0x10] sm:$0xff]  }
0x1226   :  { %v1402_v43 = vrot.slane %v1348_v38, %v6044_v17  ;;  %v1365_v44 = vcombine.high %v1355_v24, %v1355_v24  ;;  %v1362_v54 = vrot.slane %v1334_v45, %v6040_v12  ;;  %v1364_v61 = vcombine.high %v1348_v38, %v1348_v38 }
0x1227   :  { %1439 = vadd.xlane.f32.xlu0 %v1423_v29  ;;  %v1425_v32 = vmul.f32 %v5028_v23, %v1390_v30  ;;  %v1427_v41 = vmul.f32 %v5032_v11, %v1394_v35  ;;  %v1426_v48 = vmul.f32 %v5029_v40, %v1390_v30  ;;  %v1428_v56 = vmul.f32 %v5033_v51, %v1394_v35  ;;  %v5560_v29 = vld [vmem:[#allocation8] sm:$0xff]   ;;  %v5561_v30 = vld [vmem:[#allocation8 + $0x8] sm:$0xff]  }
0x1228   :  { %v1431_v52 = vmul.f32 %v5040_v9, %v1402_v43  ;;  %v1398_v53 = vrot.slane %v1365_v44, %v6044_v17  ;;  %v1406_v60 = vrot.slane %v1362_v54, %v6044_v17  ;;  %v1432_v63 = vmul.f32 %v5041_v57, %v1402_v43  ;;  %5387 = vmatpush3.bf16.msra.mxu0 %v5560_v29 }
0x1229   :  { %1443 = vadd.xlane.f32.xlu1 %v1425_v32  ;;  %v1410_v10 = vrot.slane %v1364_v61, %v6044_v17  ;;  %v1366_v13 = vcombine.high %v1362_v54, %v1362_v54  ;;  %v5049_v33 = vunpack.c.h.bf16 %v5233_v62  ;;  %5388 = vmatprep.subr.bf16.mxu0 %v5900_v5 }
0x122a   :  { %v1429_v58 = vmul.f32 %v5036_v2, %v1398_v53  ;;  %v1433_v0 = vmul.f32 %v5044_v59, %v1406_v60  ;;  %v1430_v15 = vmul.f32 %v5037_v42, %v1398_v53  ;;  %v1434_v23 = vmul.f32 %v5045_v18, %v1406_v60 }
0x122b   :  { %1441 = vadd.xlane.f32.xlu0 %v1424_v39  ;;  %v1435_v21 = vmul.f32 %v5048_v1, %v1410_v10  ;;  %v1414_v22 = vrot.slane %v1366_v13, %v6044_v17  ;;  %v1436_v26 = vmul.f32 %v5049_v33, %v1410_v10 }
0x122c   :  { %5389 = vmatpush3.bf16.msra.mxu0 %v5561_v30 }
0x122d   :  { %1447 = vadd.xlane.f32.xlu1 %v1427_v41  ;;  %v1437_v24 = vmul.f32 %v5052_v14, %v1414_v22  ;;  %v1438_v28 = vmul.f32 %v5053_v27, %v1414_v22  ;;  %5390 = vmatprep.subr.bf16.mxu0 %v5900_v5 }
0x122f   :  { %1445 = vadd.xlane.f32.xlu0 %v1426_v48 }
0x1230   :  { %5391 = vmatpush3.bf16.msra.mxu0 %v5562_v31 }
0x1231   :  { %1455 = vadd.xlane.f32.xlu1 %v1431_v52  ;;  %1829 = vmatprep.subr.bf16.mxu0 %v6144_v4 }
0x1233   :  { %1449 = vadd.xlane.f32.xlu0 %v1428_v56 }
0x1235   :  { %1451 = vadd.xlane.f32.xlu1 %v1429_v58 }
0x1237   :  { %1457 = vadd.xlane.f32.xlu0 %v1432_v63 }
0x1239   :  { %1459 = vadd.xlane.f32.xlu1 %v1433_v0 }
0x123b   :  { %1453 = vadd.xlane.f32.xlu0 %v1430_v15 }
0x123d   :  { %1463 = vadd.xlane.f32.xlu1 %v1435_v21 }
0x123f   :  { %1461 = vadd.xlane.f32.xlu0 %v1434_v23 }
0x1241   :  { %1467 = vadd.xlane.f32.xlu1 %v1437_v24 }
0x1243   :  { %1465 = vadd.xlane.f32.xlu0 %v1436_v26 }
0x1247   :  { %1469 = vadd.xlane.f32.xlu0 %v1438_v28 }
0x1252   :  { %1567 = vrot.lane.b32.xlu1 %v6244_v25, %s5906_s16 }
0x12b4   :  { %v1440_v32 = vpop.xlane.xlu0 %1439 }
0x12b5   :  { %v1490_v53 = vrot.slane %v1440_v32, %v6070_v36  ;;  %v6333_v32 = vld [vmem:[%s6911_s2] ss:$0 sm:$0xff] }
0x12b6   :  { %v1444_v11 = vpop.xlane.xlu1 %1443 }
0x12b7   :  { %v1499_v47 = vrot.slane %v1444_v11, %v6070_v36 }
0x12b8   :  { %v1442_v35 = vpop.xlane.xlu0 %1441 }
0x12b9   :  { %v1494_v48 = vrot.slane %v1442_v35, %v6067_v34 }
0x12ba   :  { %v1448_v37 = vpop.xlane.xlu1 %1447 }
0x12bb   :  { %v1508_v51 = vrot.slane %v1448_v37, %v6070_v36  ;;  %v1495_v57 = vsel %vm313_vm2, %v1494_v48, %v1490_v53  ;;  %v5565_v48 = vld [vmem:[#allocation10 + $0x10] sm:$0xff]  }
0x12bc   :  { %v1446_v38 = vpop.xlane.xlu0 %1445 }
0x12bd   :  { %v1503_v44 = vrot.slane %v1446_v38, %v6067_v34 }
0x12be   :  { %v1456_v39 = vpop.xlane.xlu1 %1455 }
0x12bf   :  { %v1504_v54 = vsel %vm313_vm2, %v1503_v44, %v1499_v47  ;;  %v1526_v1 = vrot.slane %v1456_v39, %v6070_v36  ;;  %v5563_v47 = vld [vmem:[#allocation10] sm:$0xff]  }
0x12c0   :  { %v1450_v40 = vpop.xlane.xlu0 %1449  ;;  %v1559_v60 = vsel %vm378_vm3, %v1504_v54, %v1495_v57  ;;  %5397 = vmatpush3.bf16.msra.mxu1 %v5563_v47 }
0x12c1   :  { %v1512_v45 = vrot.slane %v1450_v40, %v6067_v34  ;;  %5398 = vmatprep.subr.bf16.mxu1 %v5900_v5 }
0x12c2   :  { %v1452_v9 = vpop.xlane.xlu1 %1451 }
0x12c3   :  { %v1517_v55 = vrot.slane %v1452_v9, %v6070_v36  ;;  %v1513_v56 = vsel %vm313_vm2, %v1512_v45, %v1508_v51 }
0x12c4   :  { %v1458_v25 = vpop.xlane.xlu0 %1457  ;;  %v1560_v63 = vsel %vm380_vm4, %v1513_v56, %v1559_v60 }
0x12c5   :  { %v1530_v61 = vrot.slane %v1458_v25, %v6067_v34 }
0x12c6   :  { %v1460_v41 = vpop.xlane.xlu1 %1459 }
0x12c7   :  { %v1535_v42 = vrot.slane %v1460_v41, %v6070_v36  ;;  %v1531_v18 = vsel %vm313_vm2, %v1530_v61, %v1526_v1 }
0x12c8   :  { %v1454_v43 = vpop.xlane.xlu0 %1453 }
0x12c9   :  { %v1521_v4 = vrot.slane %v1454_v43, %v6067_v34 }
0x12ca   :  { %v1464_v52 = vpop.xlane.xlu1 %1463 }
0x12cb   :  { %v1522_v58 = vsel %vm313_vm2, %v1521_v4, %v1517_v55  ;;  %v1544_v13 = vrot.slane %v1464_v52, %v6070_v36 }
0x12cc   :  { %v1462_v2 = vpop.xlane.xlu0 %1461  ;;  %v1561_v10 = vsel %vm382_vm5, %v1522_v58, %v1560_v63 }
0x12cd   :  { %v1539_v59 = vrot.slane %v1462_v2, %v6067_v34  ;;  %v1562_v22 = vsel %vm384_vm6, %v1531_v18, %v1561_v10 }
0x12ce   :  { %v1468_v16 = vpop.xlane.xlu1 %1467 }
0x12cf   :  { %v1540_v15 = vsel %vm313_vm2, %v1539_v59, %v1535_v42  ;;  %v1553_v23 = vrot.slane %v1468_v16, %v6070_v36 }
0x12d0   :  { %v1466_v62 = vpop.xlane.xlu0 %1465  ;;  %v1563_v24 = vsel %vm386_vm7, %v1540_v15, %v1562_v22 }
0x12d1   :  { %v1548_v0 = vrot.slane %v1466_v62, %v6067_v34 }
0x12d2   :  { %v1568_v28 = vpop.permute.xlu1 %1567 }
0x12d3   :  { %v1549_v21 = vsel %vm313_vm2, %v1548_v0, %v1544_v13 }
0x12d4   :  { %v1470_v14 = vpop.xlane.xlu0 %1469  ;;  %v1564_v26 = vsel %vm388_vm8, %v1549_v21, %v1563_v24 }
0x12d5   :  { %v1557_v33 = vrot.slane %v1470_v14, %v6067_v34 }
0x12d7   :  { %v1558_v27 = vsel %vm313_vm2, %v1557_v33, %v1553_v23 }
0x12d8   :  { %v1565_v29 = vsel %vm390_vm9, %v1558_v27, %v1564_v26 }
0x12d9   :  { %v1570_v30 = vsel %vm397_vm10, %v1565_v29, %v1568_v28 }
0x12da   :  { %v1571_v31 = vpack.c.bf16 %v1570_v30, %v1570_v30 }
0x12dc   :  { %5393 = vmatmul.mubr.msk.bf16.vlgmr.msra.gmra.mrb[12].mxu0 %vm431_vm11, %v1571_v31 }
0x12dd   :  { %1830 = vmatpush1.bf16.msra.mxu0 %v6142_v3  ;;  %1861 = vmatprep.mubr.bf16.mxu0 %v5905_v7 }
0x12de   :  { %1831 = vmatprep.subr.bf16.mxu0 %v6146_v6 }
0x12e1   :  { %1832 = vmatpush1.bf16.msra.mxu0 %v6151_v8 }
0x12e2   :  { %5418 = vmatprep.subr.bf16.mxu0 %v5900_v5 }
0x13af   :  { %v1640_v11 = vpop.f32.mrb[12].mxu0 }
0x13b0   :  { %v1641_v35 = vadd.f32 %v6333_v32, %v1640_v11  ;;  %v5394_v37 = vpop.f32.mrb[13].mxu0 }
0x13b1   :  { %v1643_v38 = vpop.f32.mrb[14].mxu0 }
0x13b2   :  { %5658 = vtanh.f32 %v1641_v35  ;;  %v5395_v3 = vpop.f32.mrb[15].mxu0  ;;  %v4855_v6 = vmul.f32 -1.442695, %v1641_v35 }
0x13b4   :  { %5660 = vpow2.f32 %v4855_v6  ;;  %v5055_v6 = vld [vmem:[#allocation5 + $0xc0] sm:$0xff]  }
0x13bc   :  { %v5659_v39 = vpop.eup %5658 }
0x13bd   :  { %1655 = vrot.lane.b32.xlu0 %v5659_v39, %s5894_s13 }
0x13be   :  { %v5661_v8 = vpop.eup %5660 }
0x13bf   :  { %v1649_v40 = vadd.f32 1.0, %v5661_v8 }
0x13c1   :  { %1675 = vrot.lane.b32.xlu0 %v6260_v49, %s5894_s13  ;;  %5662 = vrcp.f32 %v1649_v40  ;;  %v5564_v49 = vld [vmem:[#allocation10 + $0x8] sm:$0xff]   ;;  %v5235_v40 = vld [vmem:[#allocation5 + $0xc8] sm:$0xff]  }
0x13c2   :  { %5399 = vmatpush3.bf16.msra.mxu1 %v5564_v49 }
0x13c3   :  { %5400 = vmatprep.subr.bf16.mxu1 %v5900_v5 }
0x13c6   :  { %5401 = vmatpush3.bf16.msra.mxu1 %v5565_v48 }
0x13c7   :  { %5402 = vmatprep.subr.bf16.mxu1 %v5900_v5 }
0x13cb   :  { %v5663_v9 = vpop.eup %5662 }
0x13cc   :  { %v1653_v43 = vmul.f32 %v5663_v9, %v6236_v19  ;;  %v5566_v19 = vld [vmem:[#allocation10 + $0x18] sm:$0xff]  }
0x13cd   :  { %5403 = vmatpush3.bf16.msra.mxu1 %v5566_v19  ;;  %v5236_v19 = vld [vmem:[#allocation5 + $0xd0] sm:$0xff]  }
0x13ce   :  { %5408 = vmatprep.subr.bf16.mxu1 %v5900_v5 }
0x142f   :  { %v1656_v25 = vpop.permute.xlu0 %1655 }
0x1430   :  { %v1658_v41 = vmul.f32 %v5663_v9, %v1656_v25  ;;  %v5056_v25 = vunpack.c.l.bf16 %v5055_v6 }
0x1432   :  { %1660 = vrot.lane.b32.xlu1 %v1658_v41, %s5904_s9 }
0x1433   :  { %v1676_v2 = vpop.permute.xlu0 %1675 }
0x14a4   :  { %v1661_v44 = vpop.permute.xlu1 %1660 }
0x14a5   :  { %v6341_v45 = vadd.f32 %v1661_v44, %v1653_v43  ;;  %v5060_v44 = vunpack.c.l.bf16 %v5235_v40 }
0x14a7   :  { %5664 = vtanh.f32 %v6341_v45 }
0x14b1   :  { %v5665_v4 = vpop.eup %5664 }
0x14b2   :  { %1666 = vrot.lane.b32.xlu1 %v5665_v4, %s5894_s13 }
0x1524   :  { %v1667_v51 = vpop.permute.xlu1 %1666 }
0x1525   :  { %v6349_v52 = vmul.f32 %v5663_v9, %v1667_v51 }
0x1527   :  { %1671 = vrot.lane.b32.xlu1 %v6349_v52, %s5904_s9 }
0x1599   :  { %v1672_v53 = vpop.permute.xlu1 %1671 }
0x159a   :  { %v1678_v54 = vsel %vm87_vm0, %v1672_v53, %v1676_v2  ;;  %v5057_v53 = vunpack.c.h.bf16 %v5055_v6 }
0x159b   :  { %v1679_v55 = vpack.c.bf16 %v1678_v54, %v1678_v54 }
0x159d   :  { %5405 = vmatmul.mubr.msk.bf16.vlgmr.msra.gmra.mrb[12].mxu1 %vm553_vm12, %v1679_v55  ;;  %v5064_v55 = vunpack.c.l.bf16 %v5236_v19 }
0x159e   :  { %5414 = vmatprep.mubr.msk.bf16.mxu1 %vm5903_vm1, %v5900_v5 }
0x1670   :  { %v1756_v56 = vpop.f32.mrb[12].mxu1 }
0x1671   :  { %v1757_v57 = vadd.f32 %v6134_v50, %v1756_v56  ;;  %v5406_v58 = vpop.f32.mrb[13].mxu1 }
0x1672   :  { %v1759_v59 = vpop.f32.mrb[14].mxu1 }
0x1673   :  { %5666 = vtanh.f32 %v1757_v57  ;;  %v5407_v60 = vpop.f32.mrb[15].mxu1  ;;  %v4862_v62 = vmul.f32 -1.442695, %v1757_v57  ;;  %v5238_v57 = vld [vmem:[#allocation5 + $0xe0] sm:$0xff]  }
0x1674   :  { %v5061_v60 = vunpack.c.h.bf16 %v5235_v40 }
0x1675   :  { %5668 = vpow2.f32 %v4862_v62 }
0x167d   :  { %v5667_v61 = vpop.eup %5666 }
0x167e   :  { %1771 = vrot.lane.b32.xlu1 %v5667_v61, %s5894_s13  ;;  %v5072_v61 = vunpack.c.l.bf16 %v5238_v57 }
0x167f   :  { %v5669_v63 = vpop.eup %5668 }
0x1680   :  { %v1765_v42 = vadd.f32 1.0, %v5669_v63 }
0x1682   :  { %5670 = vrcp.f32 %v1765_v42 }
0x168c   :  { %v5671_v0 = vpop.eup %5670 }
0x168d   :  { %v1769_v13 = vmul.f32 %v5671_v0, %v6256_v46  ;;  %v1791_v46 = vld [vmem:[%s6915_s6] sm:$0x3] }
0x168e   :  { %v1796_v23 = vrot.slane %v1791_v46, %v6044_v17  ;;  %v1800_v33 = vrot.slane %v1791_v46, %v6169_v20 }
0x16f0   :  { %v1772_v1 = vpop.permute.xlu1 %1771 }
0x16f1   :  { %v1774_v10 = vmul.f32 %v5671_v0, %v1772_v1  ;;  %v5237_v1 = vld [vmem:[#allocation5 + $0xd8] sm:$0xff]  }
0x16f3   :  { %1776 = vrot.lane.b32.xlu0 %v1774_v10, %s5904_s9 }
0x1765   :  { %v1777_v50 = vpop.permute.xlu0 %1776 }
0x1766   :  { %v6361_v16 = vadd.f32 %v1777_v50, %v1769_v13  ;;  %v5065_v13 = vunpack.c.h.bf16 %v5236_v19 }
0x1768   :  { %5672 = vtanh.f32 %v6361_v16 }
0x1772   :  { %v5673_v15 = vpop.eup %5672 }
0x1773   :  { %1782 = vrot.lane.b32.xlu1 %v5673_v15, %s5894_s13  ;;  %v5068_v15 = vunpack.c.l.bf16 %v5237_v1 }
0x17e5   :  { %v1783_v18 = vpop.permute.xlu1 %1782 }
0x17e6   :  { %v6365_v21 = vmul.f32 %v5671_v0, %v1783_v18 }
0x17e8   :  { %v1786_v14 = vpack.c.bf16 %v6365_v21, %v6365_v21 }
0x17ea   :  { %1804 = vrot.lane.b32.xlu0 %v1786_v14, %s5904_s9 }
0x185c   :  { %v1805_v22 = vpop.permute.xlu0 %1804 }
0x185d   :  { %4867 = vmatmul.mubr.msk.bf16.vlgmr.msra.gmra.mrb[16].mxu0 %vm87_vm0, %v1805_v22  ;;  %v5239_v22 = vld [vmem:[#allocation5 + $0xe8] sm:$0xff]  }
0x185e   :  { %5426 = vmatprep.mubr.msk.bf16.mxu0 %vm5903_vm1, %v5900_v5 }
0x1930   :  { %v1863_v24 = vpop.f32.mrb[16].mxu0 }
0x1931   :  { %v1864_v26 = vadd.f32 %v1863_v24, %v1796_v23  ;;  %v1865_v27 = vpop.f32.mrb[17].mxu0  ;;  %v5073_v23 = vunpack.c.h.bf16 %v5238_v57 }
0x1932   :  { %v1866_v28 = vadd.f32 %v1865_v27, %v1800_v33  ;;  %v1867_v29 = vpop.f32.mrb[18].mxu0 }
0x1933   :  { %v1868_v30 = vpop.f32.mrb[19].mxu0  ;;  %1872 = vmax.xlane.f32.xlu1 %v1864_v26 }
0x1934   :  { %1871 = vst [vmem:[#allocation13 + $0x10] sm:$0xff] %v1866_v28  ;;  %v5240_v28 = vld [vmem:[#allocation5 + $0xf0] sm:$0xff]   ;;  %v5069_v30 = vunpack.c.h.bf16 %v5237_v1 }
0x19c0   :  { %v1873_v31 = vpop.xlane.xlu1 %1872 }
0x19c1   :  { %v1874_v11 = vsub.f32 %v1864_v26, %v1873_v31  ;;  %v5076_v26 = vunpack.c.l.bf16 %v5239_v22 }
0x19c3   :  { %v1875_v35 = vmul.f32 1.442695, %v1874_v11 }
0x19c5   :  { %5674 = vpow2.f32 %v1875_v35  ;;  %v5080_v35 = vunpack.c.l.bf16 %v5240_v28 }
0x19cf   :  { %v5675_v37 = vpop.eup %5674 }
0x19d0   :  { %1877 = vadd.xlane.f32.xlu0 %v5675_v37 }
0x1a5d   :  { %v1878_v38 = vpop.xlane.xlu0 %1877 }
0x1a5e   :  { %5676 = vrcp.f32 %v1878_v38  ;;  %v5241_v38 = vld [vmem:[#allocation5 + $0xf8] sm:$0xff]  }
0x1a68   :  { %v5677_v3 = vpop.eup %5676 }
0x1a69   :  { %v1880_v39 = vmul.f32 %v5677_v3, %v5675_v37  ;;  %v5077_v3 = vunpack.c.h.bf16 %v5239_v22 }
0x1a6b   :  { %v1906_v8 = vrot.slane %v1880_v39, %v6040_v12  ;;  %v1899_v9 = vcombine.high %v1880_v39, %v1880_v39 }
0x1a6d   :  { %v1922_v41 = vrot.slane %v1906_v8, %v6040_v12  ;;  %v1914_v43 = vcombine.high %v1906_v8, %v1906_v8  ;;  %v1913_v4 = vrot.slane %v1899_v9, %v6040_v12  ;;  %v5084_v8 = vunpack.c.l.bf16 %v5241_v38 }
0x1a6f   :  { %v1967_v47 = vrot.slane %v1922_v41, %v6044_v17  ;;  %v1936_v49 = vrot.slane %v1914_v43, %v6040_v12  ;;  %v1944_v48 = vcombine.high %v1922_v41, %v1922_v41  ;;  %v1929_v58 = vrot.slane %v1913_v4, %v6040_v12 }
0x1a70   :  { %v1915_v0 = vcombine.high %v1913_v4, %v1913_v4  ;;  %v5569_v4 = vld [vmem:[#allocation8 + $0x10] sm:$0xff]  }
0x1a71   :  { %v2004_v51 = vmul.f32 %v5056_v25, %v1967_v47  ;;  %v1971_v2 = vrot.slane %v1936_v49, %v6044_v17  ;;  %v1975_v56 = vrot.slane %v1944_v48, %v6044_v17  ;;  %v2005_v59 = vmul.f32 %v5057_v53, %v1967_v47  ;;  %v5568_v48 = vld [vmem:[#allocation8 + $0x8] sm:$0xff]  }
0x1a72   :  { %v1983_v63 = vrot.slane %v1929_v58, %v6044_v17  ;;  %v1946_v42 = vcombine.high %v1936_v49, %v1936_v49  ;;  %v1943_v14 = vrot.slane %v1915_v0, %v6040_v12  ;;  %v1945_v33 = vcombine.high %v1929_v58, %v1929_v58  ;;  %v5567_v49 = vld [vmem:[#allocation8] sm:$0xff]  }
0x1a73   :  { %2020 = vadd.xlane.f32.xlu0 %v2004_v51  ;;  %v2006_v54 = vmul.f32 %v5060_v44, %v1971_v2  ;;  %v2008_v62 = vmul.f32 %v5064_v55, %v1975_v56  ;;  %v2007_v10 = vmul.f32 %v5061_v60, %v1971_v2  ;;  %v2009_v46 = vmul.f32 %v5065_v13, %v1975_v56 }
0x1a74   :  { %v2012_v50 = vmul.f32 %v5072_v61, %v1983_v63  ;;  %v1979_v18 = vrot.slane %v1946_v42, %v6044_v17  ;;  %v1987_v27 = vrot.slane %v1943_v14, %v6044_v17  ;;  %v2013_v29 = vmul.f32 %v5073_v23, %v1983_v63  ;;  %5409 = vmatpush3.bf16.msra.mxu1 %v5567_v49 }
0x1a75   :  { %2024 = vadd.xlane.f32.xlu1 %v2006_v54  ;;  %v1947_v11 = vcombine.high %v1943_v14, %v1943_v14  ;;  %v1991_v37 = vrot.slane %v1945_v33, %v6044_v17  ;;  %v5081_v25 = vunpack.c.h.bf16 %v5240_v28  ;;  %v5085_v44 = vunpack.c.h.bf16 %v5241_v38  ;;  %5410 = vmatprep.subr.bf16.mxu1 %v5900_v5 }
0x1a76   :  { %v2010_v24 = vmul.f32 %v5068_v15, %v1979_v18  ;;  %v2014_v31 = vmul.f32 %v5076_v26, %v1987_v27  ;;  %v2011_v39 = vmul.f32 %v5069_v30, %v1979_v18  ;;  %v2015_v9 = vmul.f32 %v5077_v3, %v1987_v27 }
0x1a77   :  { %2022 = vadd.xlane.f32.xlu0 %v2005_v59  ;;  %v2016_v6 = vmul.f32 %v5080_v35, %v1991_v37  ;;  %v1995_v40 = vrot.slane %v1947_v11, %v6044_v17  ;;  %v2017_v43 = vmul.f32 %v5081_v25, %v1991_v37 }
0x1a78   :  { %5411 = vmatpush3.bf16.msra.mxu1 %v5568_v48 }
0x1a79   :  { %2028 = vadd.xlane.f32.xlu1 %v2008_v62  ;;  %v2018_v41 = vmul.f32 %v5084_v8, %v1995_v40  ;;  %v2019_v47 = vmul.f32 %v5085_v44, %v1995_v40  ;;  %5412 = vmatprep.subr.bf16.mxu1 %v5900_v5 }
0x1a7b   :  { %2026 = vadd.xlane.f32.xlu0 %v2007_v10 }
0x1a7c   :  { %5413 = vmatpush3.bf16.msra.mxu1 %v5569_v4 }
0x1a7d   :  { %2036 = vadd.xlane.f32.xlu1 %v2012_v50 }
0x1a7f   :  { %2030 = vadd.xlane.f32.xlu0 %v2009_v46 }
0x1a81   :  { %2032 = vadd.xlane.f32.xlu1 %v2010_v24 }
0x1a83   :  { %2038 = vadd.xlane.f32.xlu0 %v2013_v29 }
0x1a85   :  { %2040 = vadd.xlane.f32.xlu1 %v2014_v31 }
0x1a87   :  { %2034 = vadd.xlane.f32.xlu0 %v2011_v39 }
0x1a89   :  { %2044 = vadd.xlane.f32.xlu1 %v2016_v6 }
0x1a8b   :  { %2042 = vadd.xlane.f32.xlu0 %v2015_v9 }
0x1a8d   :  { %2048 = vadd.xlane.f32.xlu1 %v2018_v41 }
0x1a8f   :  { %2046 = vadd.xlane.f32.xlu0 %v2017_v43 }
0x1a93   :  { %2050 = vadd.xlane.f32.xlu0 %v2019_v47 }
0x1a9e   :  { %2148 = vrot.lane.b32.xlu1 %v6349_v52, %s5906_s16 }
0x1b00   :  { %v2021_v19 = vpop.xlane.xlu0 %2020 }
0x1b01   :  { %v2071_v13 = vrot.slane %v2021_v19, %v6070_v36 }
0x1b02   :  { %v2025_v51 = vpop.xlane.xlu1 %2024 }
0x1b03   :  { %v2080_v62 = vrot.slane %v2025_v51, %v6070_v36 }
0x1b04   :  { %v2023_v2 = vpop.xlane.xlu0 %2022 }
0x1b05   :  { %v2075_v63 = vrot.slane %v2023_v2, %v6067_v34 }
0x1b06   :  { %v2029_v53 = vpop.xlane.xlu1 %2028 }
0x1b07   :  { %v2089_v0 = vrot.slane %v2029_v53, %v6070_v36  ;;  %v2076_v14 = vsel %vm313_vm2, %v2075_v63, %v2071_v13 }
0x1b08   :  { %v2027_v54 = vpop.xlane.xlu0 %2026 }
0x1b09   :  { %v2084_v60 = vrot.slane %v2027_v54, %v6067_v34 }
0x1b0a   :  { %v2037_v55 = vpop.xlane.xlu1 %2036 }
0x1b0b   :  { %v2085_v50 = vsel %vm313_vm2, %v2084_v60, %v2080_v62  ;;  %v2107_v29 = vrot.slane %v2037_v55, %v6070_v36  ;;  %v5572_v62 = vld [vmem:[#allocation10 + $0x10] sm:$0xff]  }
0x1b0c   :  { %v2031_v56 = vpop.xlane.xlu0 %2030  ;;  %v2140_v23 = vsel %vm378_vm3, %v2085_v50, %v2076_v14 }
0x1b0d   :  { %v2093_v61 = vrot.slane %v2031_v56, %v6067_v34 }
0x1b0e   :  { %v2033_v57 = vpop.xlane.xlu1 %2032 }
0x1b0f   :  { %v2098_v15 = vrot.slane %v2033_v57, %v6070_v36  ;;  %v2094_v18 = vsel %vm313_vm2, %v2093_v61, %v2089_v0  ;;  %v5570_v61 = vld [vmem:[#allocation10] sm:$0xff]  }
0x1b10   :  { %v2039_v58 = vpop.xlane.xlu0 %2038  ;;  %v2141_v26 = vsel %vm380_vm4, %v2094_v18, %v2140_v23  ;;  %5419 = vmatpush3.bf16.msra.mxu0 %v5570_v61 }
0x1b11   :  { %v2111_v33 = vrot.slane %v2039_v58, %v6067_v34  ;;  %5420 = vmatprep.subr.bf16.mxu0 %v5900_v5 }
0x1b12   :  { %v2041_v59 = vpop.xlane.xlu1 %2040 }
0x1b13   :  { %v2116_v27 = vrot.slane %v2041_v59, %v6070_v36  ;;  %v2112_v37 = vsel %vm313_vm2, %v2111_v33, %v2107_v29 }
0x1b14   :  { %v2035_v52 = vpop.xlane.xlu0 %2034 }
0x1b15   :  { %v2102_v42 = vrot.slane %v2035_v52, %v6067_v34 }
0x1b16   :  { %v2045_v1 = vpop.xlane.xlu1 %2044 }
0x1b17   :  { %v2103_v22 = vsel %vm313_vm2, %v2102_v42, %v2098_v15  ;;  %v2125_v31 = vrot.slane %v2045_v1, %v6070_v36  ;;  %v6455_v15 = vld [vmem:[%s6913_s4] ss:$0 sm:$0xff] }
0x1b18   :  { %v2043_v10 = vpop.xlane.xlu0 %2042  ;;  %v2142_v30 = vsel %vm382_vm5, %v2103_v22, %v2141_v26 }
0x1b19   :  { %v2120_v46 = vrot.slane %v2043_v10, %v6067_v34  ;;  %v2143_v39 = vsel %vm384_vm6, %v2112_v37, %v2142_v30  ;;  %v6464_v37 = vld [vmem:[#allocation11] ss:$8 sps:$4 sm:$0xff]  }
0x1b1a   :  { %v2049_v11 = vpop.xlane.xlu1 %2048 }
0x1b1b   :  { %v2121_v35 = vsel %vm313_vm2, %v2120_v46, %v2116_v27  ;;  %v2134_v6 = vrot.slane %v2049_v11, %v6070_v36 }
0x1b1c   :  { %v2047_v24 = vpop.xlane.xlu0 %2046  ;;  %v2144_v40 = vsel %vm386_vm7, %v2121_v35, %v2143_v39  ;;  %v6472_v39 = vld [vmem:[#allocation11 + $0x10] ss:$8 sps:$4 sm:$0xff]  }
0x1b1d   :  { %v2129_v28 = vrot.slane %v2047_v24, %v6067_v34 }
0x1b1e   :  { %v2149_v41 = vpop.permute.xlu1 %2148 }
0x1b1f   :  { %v2130_v38 = vsel %vm313_vm2, %v2129_v28, %v2125_v31 }
0x1b20   :  { %v2051_v3 = vpop.xlane.xlu0 %2050  ;;  %v2145_v9 = vsel %vm388_vm8, %v2130_v38, %v2144_v40  ;;  %v6466_v38 = vld [vmem:[#allocation11 + $0x4] ss:$8 sps:$4 sm:$0xff]  }
0x1b21   :  { %v2138_v8 = vrot.slane %v2051_v3, %v6067_v34  ;;  %v6468_v3 = vld [vmem:[#allocation11 + $0x14] ss:$8 sps:$4 sm:$0xff]   ;;  %2410 = vmatprep.subr.bf16.mxu1 %v6466_v38 }
0x1b23   :  { %v2139_v25 = vsel %vm313_vm2, %v2138_v8, %v2134_v6 }
0x1b24   :  { %v2146_v43 = vsel %vm390_vm9, %v2139_v25, %v2145_v9  ;;  %v2372_v25 = vld [vmem:[%s6915_s6] sm:$0x3] }
0x1b25   :  { %v2151_v44 = vsel %vm397_vm10, %v2146_v43, %v2149_v41  ;;  %v2377_v41 = vrot.slane %v2372_v25, %v6044_v17  ;;  %v2381_v43 = vrot.slane %v2372_v25, %v6169_v20 }
0x1b26   :  { %v2152_v47 = vpack.c.bf16 %v2151_v44, %v2151_v44 }
0x1b28   :  { %5415 = vmatmul.mubr.msk.bf16.vlgmr.msra.gmra.mrb[16].mxu1 %vm431_vm11, %v2152_v47 }
0x1b29   :  { %2442 = vmatprep.mubr.bf16.mxu1 %v5905_v7  ;;  %2411 = vmatpush1.bf16.msra.mxu1 %v6464_v37 }
0x1b2a   :  { %2412 = vmatprep.subr.bf16.mxu1 %v6468_v3 }
0x1b2d   :  { %2413 = vmatpush1.bf16.msra.mxu1 %v6472_v39 }
0x1b2e   :  { %5440 = vmatprep.subr.bf16.mxu1 %v5900_v5 }
0x1bfb   :  { %v2221_v49 = vpop.f32.mrb[16].mxu1 }
0x1bfc   :  { %v2222_v48 = vadd.f32 %v6333_v32, %v2221_v49  ;;  %v5416_v4 = vpop.f32.mrb[17].mxu1 }
0x1bfd   :  { %v2224_v19 = vpop.f32.mrb[18].mxu1 }
0x1bfe   :  { %5678 = vtanh.f32 %v2222_v48  ;;  %v5417_v51 = vpop.f32.mrb[19].mxu1  ;;  %v4873_v53 = vmul.f32 -1.442695, %v2222_v48 }
0x1c00   :  { %5680 = vpow2.f32 %v4873_v53 }
0x1c08   :  { %v5679_v2 = vpop.eup %5678 }
0x1c09   :  { %2236 = vrot.lane.b32.xlu0 %v5679_v2, %s5894_s13 }
0x1c0a   :  { %v5681_v54 = vpop.eup %5680 }
0x1c0b   :  { %v2230_v55 = vadd.f32 1.0, %v5681_v54 }
0x1c0d   :  { %2256 = vrot.lane.b32.xlu0 %v6365_v21, %s5894_s13  ;;  %5682 = vrcp.f32 %v2230_v55  ;;  %v5571_v21 = vld [vmem:[#allocation10 + $0x8] sm:$0xff]  }
0x1c0e   :  { %5421 = vmatpush3.bf16.msra.mxu0 %v5571_v21 }
0x1c0f   :  { %5422 = vmatprep.subr.bf16.mxu0 %v5900_v5 }
0x1c12   :  { %5423 = vmatpush3.bf16.msra.mxu0 %v5572_v62 }
0x1c13   :  { %5424 = vmatprep.subr.bf16.mxu0 %v5900_v5 }
0x1c17   :  { %v5683_v56 = vpop.eup %5682 }
0x1c18   :  { %v2234_v59 = vmul.f32 %v5683_v56, %v6341_v45  ;;  %v5573_v45 = vld [vmem:[#allocation10 + $0x18] sm:$0xff]  }
0x1c19   :  { %5425 = vmatpush3.bf16.msra.mxu0 %v5573_v45 }
0x1c1a   :  { %5430 = vmatprep.subr.bf16.mxu0 %v5900_v5 }
0x1c7b   :  { %v2237_v57 = vpop.permute.xlu0 %2236 }
0x1c7c   :  { %v2239_v58 = vmul.f32 %v5683_v56, %v2237_v57 }
0x1c7e   :  { %2241 = vrot.lane.b32.xlu1 %v2239_v58, %s5904_s9  ;;  %v5087_v58 = vld [vmem:[#allocation5 + $0x100] sm:$0xff]  }
0x1c7f   :  { %v2257_v1 = vpop.permute.xlu0 %2256  ;;  %v5088_v21 = vunpack.c.l.bf16 %v5087_v58 }
0x1cf0   :  { %v2242_v52 = vpop.permute.xlu1 %2241 }
0x1cf1   :  { %v6436_v60 = vadd.f32 %v2242_v52, %v2234_v59  ;;  %v5242_v52 = vld [vmem:[#allocation5 + $0x108] sm:$0xff]  }
0x1cf2   :  { %v5092_v45 = vunpack.c.l.bf16 %v5242_v52 }
0x1cf3   :  { %5684 = vtanh.f32 %v6436_v60 }
0x1cfd   :  { %v5685_v63 = vpop.eup %5684 }
0x1cfe   :  { %2247 = vrot.lane.b32.xlu1 %v5685_v63, %s5894_s13 }
0x1d70   :  { %v2248_v42 = vpop.permute.xlu1 %2247 }
0x1d71   :  { %v6444_v0 = vmul.f32 %v5683_v56, %v2248_v42 }
0x1d73   :  { %2252 = vrot.lane.b32.xlu1 %v6444_v0, %s5904_s9 }
0x1de5   :  { %v2253_v10 = vpop.permute.xlu1 %2252 }
0x1de6   :  { %v2259_v13 = vsel %vm87_vm0, %v2253_v10, %v2257_v1 }
0x1de7   :  { %v2260_v50 = vpack.c.bf16 %v2259_v13, %v2259_v13 }
0x1de9   :  { %5427 = vmatmul.mubr.msk.bf16.vlgmr.msra.gmra.mrb[20].mxu0 %vm553_vm12, %v2260_v50  ;;  %v5243_v50 = vld [vmem:[#allocation5 + $0x110] sm:$0xff]  }
0x1dea   :  { %5436 = vmatprep.mubr.msk.bf16.mxu0 %vm5903_vm1, %v5900_v5 }
0x1ebc   :  { %v2337_v18 = vpop.f32.mrb[20].mxu0 }
0x1ebd   :  { %v2338_v14 = vadd.f32 %v6455_v15, %v2337_v18  ;;  %v5428_v22 = vpop.f32.mrb[21].mxu0 }
0x1ebe   :  { %v2340_v46 = vpop.f32.mrb[22].mxu0  ;;  %v5089_v22 = vunpack.c.h.bf16 %v5087_v58 }
0x1ebf   :  { %5686 = vtanh.f32 %v2338_v14  ;;  %v5429_v23 = vpop.f32.mrb[23].mxu0  ;;  %v4880_v24 = vmul.f32 -1.442695, %v2338_v14 }
0x1ec0   :  { %v5096_v23 = vunpack.c.l.bf16 %v5243_v50 }
0x1ec1   :  { %5688 = vpow2.f32 %v4880_v24  ;;  %v5245_v24 = vld [vmem:[#allocation5 + $0x120] sm:$0xff]  }
0x1ec9   :  { %v5687_v33 = vpop.eup %5686 }
0x1eca   :  { %2352 = vrot.lane.b32.xlu1 %v5687_v33, %s5894_s13 }
0x1ecb   :  { %v5689_v26 = vpop.eup %5688 }
0x1ecc   :  { %v2346_v27 = vadd.f32 1.0, %v5689_v26 }
0x1ece   :  { %5690 = vrcp.f32 %v2346_v27 }
0x1ed8   :  { %v5691_v28 = vpop.eup %5690 }
0x1ed9   :  { %v2350_v31 = vmul.f32 %v5691_v28, %v6361_v16 }
0x1f3c   :  { %v2353_v29 = vpop.permute.xlu1 %2352 }
0x1f3d   :  { %v2355_v30 = vmul.f32 %v5691_v28, %v2353_v29  ;;  %v5104_v29 = vunpack.c.l.bf16 %v5245_v24 }
0x1f3f   :  { %2357 = vrot.lane.b32.xlu0 %v2355_v30, %s5904_s9 }
0x1fb1   :  { %v2358_v11 = vpop.permute.xlu0 %2357 }
0x1fb2   :  { %v6461_v35 = vadd.f32 %v2358_v11, %v2350_v31 }
0x1fb4   :  { %5692 = vtanh.f32 %v6461_v35 }
0x1fbe   :  { %v5693_v16 = vpop.eup %5692 }
0x1fbf   :  { %2363 = vrot.lane.b32.xlu1 %v5693_v16, %s5894_s13 }
0x2031   :  { %v2364_v6 = vpop.permute.xlu1 %2363 }
0x2032   :  { %v6478_v8 = vmul.f32 %v5691_v28, %v2364_v6  ;;  %v5093_v28 = vunpack.c.h.bf16 %v5242_v52  ;;  %v5244_v6 = vld [vmem:[#allocation5 + $0x118] sm:$0xff]  }
0x2033   :  { %v5248_v52 = vld [vmem:[#allocation5 + $0x138] sm:$0xff]  }
0x2034   :  { %v2367_v40 = vpack.c.bf16 %v6478_v8, %v6478_v8 }
0x2036   :  { %2385 = vrot.lane.b32.xlu0 %v2367_v40, %s5904_s9 }
0x20a8   :  { %v2386_v9 = vpop.permute.xlu0 %2385 }
0x20a9   :  { %4885 = vmatmul.mubr.msk.bf16.vlgmr.msra.gmra.mrb[20].mxu1 %vm87_vm0, %v2386_v9  ;;  %v5097_v9 = vunpack.c.h.bf16 %v5243_v50  ;;  %v5117_v50 = vunpack.c.h.bf16 %v5248_v52 }
0x20aa   :  { %5448 = vmatprep.mubr.msk.bf16.mxu1 %vm5903_vm1, %v5900_v5 }
0x217c   :  { %v2444_v44 = vpop.f32.mrb[20].mxu1 }
0x217d   :  { %v2445_v47 = vadd.f32 %v2444_v44, %v2377_v41  ;;  %v2446_v49 = vpop.f32.mrb[21].mxu1  ;;  %v5100_v41 = vunpack.c.l.bf16 %v5244_v6 }
0x217e   :  { %v2447_v48 = vadd.f32 %v2446_v49, %v2381_v43  ;;  %v2448_v4 = vpop.f32.mrb[22].mxu1 }
0x217f   :  { %v2449_v19 = vpop.f32.mrb[23].mxu1  ;;  %2453 = vmax.xlane.f32.xlu1 %v2445_v47 }
0x2180   :  { %2452 = vst [vmem:[#allocation13 + $0x18] sm:$0xff] %v2447_v48  ;;  %v5105_v48 = vunpack.c.h.bf16 %v5245_v24 }
0x220c   :  { %v2454_v51 = vpop.xlane.xlu1 %2453 }
0x220d   :  { %v2455_v2 = vsub.f32 %v2445_v47, %v2454_v51  ;;  %v5246_v47 = vld [vmem:[#allocation5 + $0x128] sm:$0xff]  }
0x220e   :  { %v5108_v19 = vunpack.c.l.bf16 %v5246_v47 }
0x220f   :  { %v2456_v53 = vmul.f32 1.442695, %v2455_v2 }
0x2211   :  { %5694 = vpow2.f32 %v2456_v53  ;;  %v5247_v53 = vld [vmem:[#allocation5 + $0x130] sm:$0xff]  }
0x221b   :  { %v5695_v54 = vpop.eup %5694 }
0x221c   :  { %2458 = vadd.xlane.f32.xlu0 %v5695_v54 }
0x22a9   :  { %v2459_v55 = vpop.xlane.xlu0 %2458 }
0x22aa   :  { %5696 = vrcp.f32 %v2459_v55  ;;  %v5101_v55 = vunpack.c.h.bf16 %v5244_v6 }
0x22b4   :  { %v5697_v56 = vpop.eup %5696 }
0x22b5   :  { %v2461_v57 = vmul.f32 %v5697_v56, %v5695_v54 }
0x22b7   :  { %v2487_v59 = vrot.slane %v2461_v57, %v6040_v12  ;;  %v2480_v61 = vcombine.high %v2461_v57, %v2461_v57  ;;  %v5112_v57 = vunpack.c.l.bf16 %v5247_v53 }
0x22b9   :  { %v2503_v62 = vrot.slane %v2487_v59, %v6040_v12  ;;  %v2495_v63 = vcombine.high %v2487_v59, %v2487_v59  ;;  %v2494_v13 = vrot.slane %v2480_v61, %v6040_v12 }
0x22bb   :  { %v2548_v42 = vrot.slane %v2503_v62, %v6044_v17  ;;  %v2517_v1 = vrot.slane %v2495_v63, %v6040_v12  ;;  %v2525_v10 = vcombine.high %v2503_v62, %v2503_v62  ;;  %v2510_v26 = vrot.slane %v2494_v13, %v6040_v12 }
0x22bc   :  { %v2496_v16 = vcombine.high %v2494_v13, %v2494_v13  ;;  %v5116_v63 = vunpack.c.l.bf16 %v5248_v52 }
0x22bd   :  { %v2585_v18 = vmul.f32 %v5088_v21, %v2548_v42  ;;  %v2552_v14 = vrot.slane %v2517_v1, %v6044_v17  ;;  %v2556_v33 = vrot.slane %v2525_v10, %v6044_v17  ;;  %v2586_v27 = vmul.f32 %v5089_v22, %v2548_v42  ;;  %v5581_v22 = vld [vmem:[#allocation8 + $0x8] sm:$0xff]  }
0x22be   :  { %v2564_v31 = vrot.slane %v2510_v26, %v6044_v17  ;;  %v2527_v11 = vcombine.high %v2517_v1, %v2517_v1  ;;  %v2524_v44 = vrot.slane %v2496_v16, %v6040_v12  ;;  %v2526_v2 = vcombine.high %v2510_v26, %v2510_v26 }
0x22bf   :  { %2601 = vadd.xlane.f32.xlu0 %v2585_v18  ;;  %v2587_v46 = vmul.f32 %v5092_v45, %v2552_v14  ;;  %v2589_v30 = vmul.f32 %v5096_v23, %v2556_v33  ;;  %v2588_v40 = vmul.f32 %v5093_v28, %v2552_v14  ;;  %v2590_v49 = vmul.f32 %v5097_v9, %v2556_v33  ;;  %v5580_v14 = vld [vmem:[#allocation8] sm:$0xff]  }
0x22c0   :  { %v2593_v25 = vmul.f32 %v5104_v29, %v2564_v31  ;;  %v2560_v43 = vrot.slane %v2527_v11, %v6044_v17  ;;  %v2568_v51 = vrot.slane %v2524_v44, %v6044_v17  ;;  %v2594_v54 = vmul.f32 %v5105_v48, %v2564_v31  ;;  %5431 = vmatpush3.bf16.msra.mxu0 %v5580_v14 }
0x22c1   :  { %2605 = vadd.xlane.f32.xlu1 %v2587_v46  ;;  %v2572_v58 = vrot.slane %v2526_v2, %v6044_v17  ;;  %v2528_v59 = vcombine.high %v2524_v44, %v2524_v44  ;;  %v5109_v21 = vunpack.c.h.bf16 %v5246_v47  ;;  %v5113_v1 = vunpack.c.h.bf16 %v5247_v53  ;;  %5432 = vmatprep.subr.bf16.mxu0 %v5900_v5  ;;  %v5582_v46 = vld [vmem:[#allocation8 + $0x10] sm:$0xff]  }
0x22c2   :  { %v2591_v4 = vmul.f32 %v5100_v41, %v2560_v43  ;;  %v2595_v56 = vmul.f32 %v5108_v19, %v2568_v51  ;;  %v2592_v61 = vmul.f32 %v5101_v55, %v2560_v43 }
0x22c3   :  { %2603 = vadd.xlane.f32.xlu0 %v2586_v27  ;;  %v2597_v62 = vmul.f32 %v5112_v57, %v2572_v58  ;;  %v2576_v45 = vrot.slane %v2528_v59, %v6044_v17  ;;  %v2596_v42 = vmul.f32 %v5109_v21, %v2568_v51  ;;  %v2598_v13 = vmul.f32 %v5113_v1, %v2572_v58 }
0x22c4   :  { %5433 = vmatpush3.bf16.msra.mxu0 %v5581_v22 }
0x22c5   :  { %2609 = vadd.xlane.f32.xlu1 %v2589_v30  ;;  %v2599_v10 = vmul.f32 %v5116_v63, %v2576_v45  ;;  %v2600_v18 = vmul.f32 %v5117_v50, %v2576_v45  ;;  %5434 = vmatprep.subr.bf16.mxu0 %v5900_v5 }
0x22c7   :  { %2607 = vadd.xlane.f32.xlu0 %v2588_v40 }
0x22c8   :  { %5435 = vmatpush3.bf16.msra.mxu0 %v5582_v46 }
0x22c9   :  { %2617 = vadd.xlane.f32.xlu1 %v2593_v25  ;;  %2991 = vmatprep.subr.bf16.mxu0 %v6466_v38 }
0x22cb   :  { %2611 = vadd.xlane.f32.xlu0 %v2590_v49 }
0x22cd   :  { %2613 = vadd.xlane.f32.xlu1 %v2591_v4 }
0x22cf   :  { %2619 = vadd.xlane.f32.xlu0 %v2594_v54 }
0x22d1   :  { %2621 = vadd.xlane.f32.xlu1 %v2595_v56 }
0x22d3   :  { %2615 = vadd.xlane.f32.xlu0 %v2592_v61 }
0x22d5   :  { %2625 = vadd.xlane.f32.xlu1 %v2597_v62 }
0x22d7   :  { %2623 = vadd.xlane.f32.xlu0 %v2596_v42 }
0x22d9   :  { %2629 = vadd.xlane.f32.xlu1 %v2599_v10 }
0x22db   :  { %2627 = vadd.xlane.f32.xlu0 %v2598_v13 }
0x22df   :  { %2631 = vadd.xlane.f32.xlu0 %v2600_v18 }
0x22ea   :  { %2729 = vrot.lane.b32.xlu1 %v6444_v0, %s5906_s16 }
0x234c   :  { %v2602_v23 = vpop.xlane.xlu0 %2601 }
0x234d   :  { %v2652_v47 = vrot.slane %v2602_v23, %v6070_v36 }
0x234e   :  { %v2606_v33 = vpop.xlane.xlu1 %2605 }
0x234f   :  { %v2661_v40 = vrot.slane %v2606_v33, %v6070_v36 }
0x2350   :  { %v2604_v24 = vpop.xlane.xlu0 %2603 }
0x2351   :  { %v2656_v9 = vrot.slane %v2604_v24, %v6067_v34 }
0x2352   :  { %v2610_v26 = vpop.xlane.xlu1 %2609 }
0x2353   :  { %v2670_v41 = vrot.slane %v2610_v26, %v6070_v36  ;;  %v2657_v19 = vsel %vm313_vm2, %v2656_v9, %v2652_v47 }
0x2354   :  { %v2608_v27 = vpop.xlane.xlu0 %2607 }
0x2355   :  { %v2665_v16 = vrot.slane %v2608_v27, %v6067_v34 }
0x2356   :  { %v2618_v28 = vpop.xlane.xlu1 %2617 }
0x2357   :  { %v2666_v49 = vsel %vm313_vm2, %v2665_v16, %v2661_v40  ;;  %v2688_v59 = vrot.slane %v2618_v28, %v6070_v36 }
0x2358   :  { %v2612_v29 = vpop.xlane.xlu0 %2611  ;;  %v2721_v53 = vsel %vm378_vm3, %v2666_v49, %v2657_v19 }
0x2359   :  { %v2674_v6 = vrot.slane %v2612_v29, %v6067_v34 }
0x235a   :  { %v2614_v30 = vpop.xlane.xlu1 %2613 }
0x235b   :  { %v2679_v48 = vrot.slane %v2614_v30, %v6070_v36  ;;  %v2675_v4 = vsel %vm313_vm2, %v2674_v6, %v2670_v41  ;;  %v5583_v41 = vld [vmem:[#allocation10] sm:$0xff]  }
0x235c   :  { %v2620_v0 = vpop.xlane.xlu0 %2619  ;;  %v2722_v56 = vsel %vm380_vm4, %v2675_v4, %v2721_v53  ;;  %5441 = vmatpush3.bf16.msra.mxu1 %v5583_v41 }
0x235d   :  { %v2692_v54 = vrot.slane %v2620_v0, %v6067_v34  ;;  %5442 = vmatprep.subr.bf16.mxu1 %v5900_v5 }
0x235e   :  { %v2622_v31 = vpop.xlane.xlu1 %2621 }
0x235f   :  { %v2697_v57 = vrot.slane %v2622_v31, %v6070_v36  ;;  %v2693_v63 = vsel %vm313_vm2, %v2692_v54, %v2688_v59 }
0x2360   :  { %v2616_v11 = vpop.xlane.xlu0 %2615 }
0x2361   :  { %v2683_v25 = vrot.slane %v2616_v11, %v6067_v34 }
0x2362   :  { %v2626_v43 = vpop.xlane.xlu1 %2625 }
0x2363   :  { %v2684_v51 = vsel %vm313_vm2, %v2683_v25, %v2679_v48  ;;  %v2706_v61 = vrot.slane %v2626_v43, %v6070_v36  ;;  %v5585_v43 = vld [vmem:[#allocation10 + $0x10] sm:$0xff]  }
0x2364   :  { %v2624_v44 = vpop.xlane.xlu0 %2623  ;;  %v2723_v52 = vsel %vm382_vm5, %v2684_v51, %v2722_v56 }
0x2365   :  { %v2701_v2 = vrot.slane %v2624_v44, %v6067_v34  ;;  %v2724_v1 = vsel %vm384_vm6, %v2693_v63, %v2723_v52 }
0x2366   :  { %v2630_v21 = vpop.xlane.xlu1 %2629 }
0x2367   :  { %v2702_v62 = vsel %vm313_vm2, %v2701_v2, %v2697_v57  ;;  %v2715_v10 = vrot.slane %v2630_v21, %v6070_v36 }
0x2368   :  { %v2628_v55 = vpop.xlane.xlu0 %2627  ;;  %v2725_v50 = vsel %vm386_vm7, %v2702_v62, %v2724_v1 }
0x2369   :  { %v2710_v58 = vrot.slane %v2628_v55, %v6067_v34 }
0x236a   :  { %v2730_v22 = vpop.permute.xlu1 %2729 }
0x236b   :  { %v2711_v45 = vsel %vm313_vm2, %v2710_v58, %v2706_v61 }
0x236c   :  { %v2632_v42 = vpop.xlane.xlu0 %2631  ;;  %v2726_v18 = vsel %vm388_vm8, %v2711_v45, %v2725_v50 }
0x236d   :  { %v2719_v13 = vrot.slane %v2632_v42, %v6067_v34 }
0x236f   :  { %v2720_v14 = vsel %vm313_vm2, %v2719_v13, %v2715_v10 }
0x2370   :  { %v2727_v46 = vsel %vm390_vm9, %v2720_v14, %v2726_v18 }
0x2371   :  { %v2732_v23 = vsel %vm397_vm10, %v2727_v46, %v2730_v22 }
0x2372   :  { %v2733_v33 = vpack.c.bf16 %v2732_v23, %v2732_v23 }
0x2374   :  { %5437 = vmatmul.mubr.msk.bf16.vlgmr.msra.gmra.mrb[24].mxu0 %vm431_vm11, %v2733_v33 }
0x2375   :  { %2992 = vmatpush1.bf16.msra.mxu0 %v6464_v37  ;;  %3023 = vmatprep.mubr.bf16.mxu0 %v5905_v7 }
0x2376   :  { %2993 = vmatprep.subr.bf16.mxu0 %v6468_v3 }
0x2379   :  { %2994 = vmatpush1.bf16.msra.mxu0 %v6472_v39 }
0x237a   :  { %5462 = vmatprep.subr.bf16.mxu0 %v5900_v5 }
0x2447   :  { %v2802_v24 = vpop.f32.mrb[24].mxu0 }
0x2448   :  { %v2803_v26 = vadd.f32 %v6333_v32, %v2802_v24  ;;  %v5438_v27 = vpop.f32.mrb[25].mxu0 }
0x2449   :  { %v2805_v28 = vpop.f32.mrb[26].mxu0 }
0x244a   :  { %5698 = vtanh.f32 %v2803_v26  ;;  %v5439_v29 = vpop.f32.mrb[27].mxu0  ;;  %v4891_v0 = vmul.f32 -1.442695, %v2803_v26 }
0x244c   :  { %5700 = vpow2.f32 %v4891_v0 }
0x2454   :  { %v5699_v30 = vpop.eup %5698 }
0x2455   :  { %2817 = vrot.lane.b32.xlu0 %v5699_v30, %s5894_s13 }
0x2456   :  { %v5701_v31 = vpop.eup %5700 }
0x2457   :  { %v2811_v11 = vadd.f32 1.0, %v5701_v31 }
0x2459   :  { %2837 = vrot.lane.b32.xlu0 %v6478_v8, %s5894_s13  ;;  %5702 = vrcp.f32 %v2811_v11  ;;  %v5584_v8 = vld [vmem:[#allocation10 + $0x8] sm:$0xff]  }
0x245a   :  { %5443 = vmatpush3.bf16.msra.mxu1 %v5584_v8 }
0x245b   :  { %5444 = vmatprep.subr.bf16.mxu1 %v5900_v5 }
0x245e   :  { %5445 = vmatpush3.bf16.msra.mxu1 %v5585_v43 }
0x245f   :  { %5446 = vmatprep.subr.bf16.mxu1 %v5900_v5 }
0x2463   :  { %v5703_v16 = vpop.eup %5702 }
0x2464   :  { %v2815_v32 = vmul.f32 %v5703_v16, %v6436_v60  ;;  %v5586_v60 = vld [vmem:[#allocation10 + $0x18] sm:$0xff]  }
0x2465   :  { %5447 = vmatpush3.bf16.msra.mxu1 %v5586_v60 }
0x2466   :  { %5452 = vmatprep.subr.bf16.mxu1 %v5900_v5 }
0x24c7   :  { %v2818_v6 = vpop.permute.xlu0 %2817 }
0x24c8   :  { %v2820_v40 = vmul.f32 %v5703_v16, %v2818_v6  ;;  %v5119_v6 = vld [vmem:[#allocation5 + $0x140] sm:$0xff]  }
0x24c9   :  { %v5120_v41 = vunpack.c.l.bf16 %v5119_v6 }
0x24ca   :  { %2822 = vrot.lane.b32.xlu1 %v2820_v40, %s5904_s9 }
0x24cb   :  { %v2838_v48 = vpop.permute.xlu0 %2837 }
0x253c   :  { %v2823_v9 = vpop.permute.xlu1 %2822 }
0x253d   :  { %v6554_v25 = vadd.f32 %v2823_v9, %v2815_v32  ;;  %v5249_v32 = vld [vmem:[#allocation5 + $0x148] sm:$0xff]  }
0x253f   :  { %5704 = vtanh.f32 %v6554_v25 }
0x2549   :  { %v5705_v44 = vpop.eup %5704 }
0x254a   :  { %2828 = vrot.lane.b32.xlu1 %v5705_v44, %s5894_s13  ;;  %v5124_v44 = vunpack.c.l.bf16 %v5249_v32 }
0x25bc   :  { %v2829_v47 = vpop.permute.xlu1 %2828 }
0x25bd   :  { %v6562_v49 = vmul.f32 %v5703_v16, %v2829_v47 }
0x25bf   :  { %2833 = vrot.lane.b32.xlu1 %v6562_v49, %s5904_s9 }
0x2631   :  { %v2834_v4 = vpop.permute.xlu1 %2833 }
0x2632   :  { %v2840_v19 = vsel %vm87_vm0, %v2834_v4, %v2838_v48 }
0x2633   :  { %v2841_v51 = vpack.c.bf16 %v2840_v19, %v2840_v19  ;;  %v5250_v19 = vld [vmem:[#allocation5 + $0x150] sm:$0xff]  }
0x2635   :  { %5449 = vmatmul.mubr.msk.bf16.vlgmr.msra.gmra.mrb[24].mxu1 %vm553_vm12, %v2841_v51 }
0x2636   :  { %5458 = vmatprep.mubr.msk.bf16.mxu1 %vm5903_vm1, %v5900_v5 }
0x2708   :  { %v2918_v2 = vpop.f32.mrb[24].mxu1 }
0x2709   :  { %v2919_v53 = vadd.f32 %v6455_v15, %v2918_v2  ;;  %v5450_v54 = vpop.f32.mrb[25].mxu1 }
0x270a   :  { %v2921_v55 = vpop.f32.mrb[26].mxu1 }
0x270b   :  { %5706 = vtanh.f32 %v2919_v53  ;;  %v5451_v56 = vpop.f32.mrb[27].mxu1  ;;  %v4898_v58 = vmul.f32 -1.442695, %v2919_v53  ;;  %v5121_v53 = vunpack.c.h.bf16 %v5119_v6  ;;  %v5128_v55 = vunpack.c.l.bf16 %v5250_v19 }
0x270d   :  { %5708 = vpow2.f32 %v4898_v58 }
0x2715   :  { %v5707_v57 = vpop.eup %5706 }
0x2716   :  { %2933 = vrot.lane.b32.xlu1 %v5707_v57, %s5894_s13  ;;  %v5252_v57 = vld [vmem:[#allocation5 + $0x160] sm:$0xff]  }
0x2717   :  { %v5709_v59 = vpop.eup %5708 }
0x2718   :  { %v2927_v52 = vadd.f32 1.0, %v5709_v59 }
0x271a   :  { %5710 = vrcp.f32 %v2927_v52  ;;  %v5125_v52 = vunpack.c.h.bf16 %v5249_v32 }
0x2724   :  { %v5711_v61 = vpop.eup %5710 }
0x2725   :  { %v2931_v63 = vmul.f32 %v5711_v61, %v6461_v35  ;;  %v2953_v35 = vld [vmem:[%s6915_s6] sm:$0x3] }
0x2726   :  { %v2958_v14 = vrot.slane %v2953_v35, %v6044_v17  ;;  %v2962_v22 = vrot.slane %v2953_v35, %v6169_v20 }
0x2788   :  { %v2934_v21 = vpop.permute.xlu1 %2933 }
0x2789   :  { %v2936_v62 = vmul.f32 %v5711_v61, %v2934_v21 }
0x278b   :  { %2938 = vrot.lane.b32.xlu0 %v2936_v62, %s5904_s9 }
0x27fd   :  { %v2939_v45 = vpop.permute.xlu0 %2938 }
0x27fe   :  { %v6574_v42 = vadd.f32 %v2939_v45, %v2931_v63 }
0x2800   :  { %5712 = vtanh.f32 %v6574_v42 }
0x280a   :  { %v5713_v1 = vpop.eup %5712 }
0x280b   :  { %2944 = vrot.lane.b32.xlu1 %v5713_v1, %s5894_s13  ;;  %v5251_v1 = vld [vmem:[#allocation5 + $0x158] sm:$0xff]  }
0x280c   :  { %v5132_v35 = vunpack.c.l.bf16 %v5251_v1 }
0x287d   :  { %v2945_v10 = vpop.permute.xlu1 %2944 }
0x287e   :  { %v6578_v13 = vmul.f32 %v5711_v61, %v2945_v10  ;;  %v5136_v61 = vunpack.c.l.bf16 %v5252_v57 }
0x2880   :  { %v2948_v50 = vpack.c.bf16 %v6578_v13, %v6578_v13 }
0x2882   :  { %2966 = vrot.lane.b32.xlu0 %v2948_v50, %s5904_s9  ;;  %v5129_v50 = vunpack.c.h.bf16 %v5250_v19 }
0x28f4   :  { %v2967_v18 = vpop.permute.xlu0 %2966 }
0x28f5   :  { %4903 = vmatmul.mubr.msk.bf16.vlgmr.msra.gmra.mrb[28].mxu0 %vm87_vm0, %v2967_v18 }
0x28f6   :  { %5470 = vmatprep.mubr.msk.bf16.mxu0 %vm5903_vm1, %v5900_v5 }
0x29c8   :  { %v3025_v46 = vpop.f32.mrb[28].mxu0 }
0x29c9   :  { %v3026_v23 = vadd.f32 %v3025_v46, %v2958_v14  ;;  %v3027_v33 = vpop.f32.mrb[29].mxu0  ;;  %v5253_v46 = vld [vmem:[#allocation5 + $0x168] sm:$0xff]  }
0x29ca   :  { %v3028_v24 = vadd.f32 %v3027_v33, %v2962_v22  ;;  %v3029_v26 = vpop.f32.mrb[30].mxu0  ;;  %v5137_v33 = vunpack.c.h.bf16 %v5252_v57 }
0x29cb   :  { %v3030_v27 = vpop.f32.mrb[31].mxu0  ;;  %3034 = vmax.xlane.f32.xlu1 %v3026_v23  ;;  %v5140_v26 = vunpack.c.l.bf16 %v5253_v46 }
0x29cc   :  { %3033 = vst [vmem:[#allocation13 + $0x20] sm:$0xff] %v3028_v24 }
0x2a58   :  { %v3035_v28 = vpop.xlane.xlu1 %3034 }
0x2a59   :  { %v3036_v29 = vsub.f32 %v3026_v23, %v3035_v28 }
0x2a5b   :  { %v3037_v30 = vmul.f32 1.442695, %v3036_v29  ;;  %v5254_v29 = vld [vmem:[#allocation5 + $0x170] sm:$0xff]  }
0x2a5d   :  { %5714 = vpow2.f32 %v3037_v30 }
0x2a67   :  { %v5715_v0 = vpop.eup %5714 }
0x2a68   :  { %3039 = vadd.xlane.f32.xlu0 %v5715_v0 }
0x2af5   :  { %v3040_v31 = vpop.xlane.xlu0 %3039 }
0x2af6   :  { %5716 = vrcp.f32 %v3040_v31 }
0x2b00   :  { %v5717_v11 = vpop.eup %5716 }
0x2b01   :  { %v3042_v16 = vmul.f32 %v5717_v11, %v5715_v0  ;;  %v5133_v0 = vunpack.c.h.bf16 %v5251_v1  ;;  %v5144_v11 = vunpack.c.l.bf16 %v5254_v29 }
0x2b03   :  { %v3068_v40 = vrot.slane %v3042_v16, %v6040_v12  ;;  %v3061_v9 = vcombine.high %v3042_v16, %v3042_v16 }
0x2b05   :  { %v3084_v8 = vrot.slane %v3068_v40, %v6040_v12  ;;  %v3076_v43 = vcombine.high %v3068_v40, %v3068_v40  ;;  %v3075_v4 = vrot.slane %v3061_v9, %v6040_v12  ;;  %v5255_v40 = vld [vmem:[#allocation5 + $0x178] sm:$0xff]   ;;  %v5141_v9 = vunpack.c.h.bf16 %v5253_v46 }
0x2b07   :  { %v3129_v60 = vrot.slane %v3084_v8, %v6044_v17  ;;  %v3098_v47 = vrot.slane %v3076_v43, %v6040_v12  ;;  %v3106_v48 = vcombine.high %v3084_v8, %v3084_v8  ;;  %v3091_v58 = vrot.slane %v3075_v4, %v6040_v12 }
0x2b08   :  { %v3077_v45 = vcombine.high %v3075_v4, %v3075_v4  ;;  %v5148_v8 = vunpack.c.l.bf16 %v5255_v40  ;;  %v5149_v4 = vunpack.c.h.bf16 %v5255_v40 }
0x2b09   :  { %v3166_v51 = vmul.f32 %v5120_v41, %v3129_v60  ;;  %v3133_v2 = vrot.slane %v3098_v47, %v6044_v17  ;;  %v3137_v56 = vrot.slane %v3106_v48, %v6044_v17  ;;  %v3167_v59 = vmul.f32 %v5121_v53, %v3129_v60  ;;  %v5589_v53 = vld [vmem:[#allocation8 + $0x10] sm:$0xff]  }
0x2b0a   :  { %v3145_v62 = vrot.slane %v3091_v58, %v6044_v17  ;;  %v3108_v63 = vcombine.high %v3098_v47, %v3098_v47  ;;  %v3105_v22 = vrot.slane %v3077_v45, %v6040_v12  ;;  %v3107_v28 = vcombine.high %v3091_v58, %v3091_v58 }
0x2b0b   :  { %3182 = vadd.xlane.f32.xlu0 %v3166_v51  ;;  %v3168_v54 = vmul.f32 %v5124_v44, %v3133_v2  ;;  %v3170_v21 = vmul.f32 %v5128_v55, %v3137_v56  ;;  %v3169_v10 = vmul.f32 %v5125_v52, %v3133_v2  ;;  %v3171_v23 = vmul.f32 %v5129_v50, %v3137_v56  ;;  %v5587_v51 = vld [vmem:[#allocation8] sm:$0xff]   ;;  %v5588_v2 = vld [vmem:[#allocation8 + $0x8] sm:$0xff]  }
0x2b0c   :  { %v3174_v18 = vmul.f32 %v5136_v61, %v3145_v62  ;;  %v3141_v14 = vrot.slane %v3108_v63, %v6044_v17  ;;  %v3149_v27 = vrot.slane %v3105_v22, %v6044_v17  ;;  %v3175_v30 = vmul.f32 %v5137_v33, %v3145_v62  ;;  %5453 = vmatpush3.bf16.msra.mxu1 %v5587_v51 }
0x2b0d   :  { %3186 = vadd.xlane.f32.xlu1 %v3168_v54  ;;  %v3153_v16 = vrot.slane %v3107_v28, %v6044_v17  ;;  %v3109_v6 = vcombine.high %v3105_v22, %v3105_v22  ;;  %v5145_v60 = vunpack.c.h.bf16 %v5254_v29  ;;  %5454 = vmatprep.subr.bf16.mxu1 %v5900_v5 }
0x2b0e   :  { %v3172_v24 = vmul.f32 %v5132_v35, %v3141_v14  ;;  %v3176_v31 = vmul.f32 %v5140_v26, %v3149_v27  ;;  %v3173_v32 = vmul.f32 %v5133_v0, %v3141_v14  ;;  %v3177_v44 = vmul.f32 %v5141_v9, %v3149_v27 }
0x2b0f   :  { %3184 = vadd.xlane.f32.xlu0 %v3167_v59  ;;  %v3178_v41 = vmul.f32 %v5144_v11, %v3153_v16  ;;  %v3157_v43 = vrot.slane %v3109_v6, %v6044_v17  ;;  %v3179_v48 = vmul.f32 %v5145_v60, %v3153_v16 }
0x2b10   :  { %5455 = vmatpush3.bf16.msra.mxu1 %v5588_v2 }
0x2b11   :  { %3190 = vadd.xlane.f32.xlu1 %v3170_v21  ;;  %v3180_v47 = vmul.f32 %v5148_v8, %v3157_v43  ;;  %v3181_v19 = vmul.f32 %v5149_v4, %v3157_v43  ;;  %5456 = vmatprep.subr.bf16.mxu1 %v5900_v5 }
0x2b13   :  { %3188 = vadd.xlane.f32.xlu0 %v3169_v10 }
0x2b14   :  { %5457 = vmatpush3.bf16.msra.mxu1 %v5589_v53 }
0x2b15   :  { %3198 = vadd.xlane.f32.xlu1 %v3174_v18  ;;  %3572 = vmatprep.subr.bf16.mxu1 %v6466_v38 }
0x2b17   :  { %3192 = vadd.xlane.f32.xlu0 %v3171_v23 }
0x2b19   :  { %3194 = vadd.xlane.f32.xlu1 %v3172_v24 }
0x2b1b   :  { %3200 = vadd.xlane.f32.xlu0 %v3175_v30 }
0x2b1d   :  { %3202 = vadd.xlane.f32.xlu1 %v3176_v31 }
0x2b1f   :  { %3196 = vadd.xlane.f32.xlu0 %v3173_v32 }
0x2b21   :  { %3206 = vadd.xlane.f32.xlu1 %v3178_v41 }
0x2b23   :  { %3204 = vadd.xlane.f32.xlu0 %v3177_v44 }
0x2b25   :  { %3210 = vadd.xlane.f32.xlu1 %v3180_v47 }
0x2b27   :  { %3208 = vadd.xlane.f32.xlu0 %v3179_v48 }
0x2b2b   :  { %3212 = vadd.xlane.f32.xlu0 %v3181_v19 }
0x2b36   :  { %3310 = vrot.lane.b32.xlu1 %v6562_v49, %s5906_s16 }
0x2b98   :  { %v3183_v54 = vpop.xlane.xlu0 %3182 }
0x2b99   :  { %v3233_v14 = vrot.slane %v3183_v54, %v6070_v36  ;;  %v6651_v54 = vld [vmem:[%s6911_s2] ss:$0 sm:$0xff] }
0x2b9a   :  { %v3187_v55 = vpop.xlane.xlu1 %3186 }
0x2b9b   :  { %v3242_v1 = vrot.slane %v3187_v55, %v6070_v36 }
0x2b9c   :  { %v3185_v56 = vpop.xlane.xlu0 %3184 }
0x2b9d   :  { %v3237_v10 = vrot.slane %v3185_v56, %v6067_v34 }
0x2b9e   :  { %v3191_v57 = vpop.xlane.xlu1 %3190 }
0x2b9f   :  { %v3251_v50 = vrot.slane %v3191_v57, %v6070_v36  ;;  %v3238_v33 = vsel %vm313_vm2, %v3237_v10, %v3233_v14  ;;  %v5592_v10 = vld [vmem:[#allocation10 + $0x10] sm:$0xff]  }
0x2ba0   :  { %v3189_v58 = vpop.xlane.xlu0 %3188 }
0x2ba1   :  { %v3246_v63 = vrot.slane %v3189_v58, %v6067_v34 }
0x2ba2   :  { %v3199_v59 = vpop.xlane.xlu1 %3198 }
0x2ba3   :  { %v3247_v22 = vsel %vm313_vm2, %v3246_v63, %v3242_v1  ;;  %v3269_v11 = vrot.slane %v3199_v59, %v6070_v36  ;;  %v5590_v1 = vld [vmem:[#allocation10] sm:$0xff]  }
0x2ba4   :  { %v3193_v52 = vpop.xlane.xlu0 %3192  ;;  %v3302_v27 = vsel %vm378_vm3, %v3247_v22, %v3238_v33  ;;  %5463 = vmatpush3.bf16.msra.mxu0 %v5590_v1 }
0x2ba5   :  { %v3255_v45 = vrot.slane %v3193_v52, %v6067_v34  ;;  %5464 = vmatprep.subr.bf16.mxu0 %v5900_v5 }
0x2ba6   :  { %v3195_v61 = vpop.xlane.xlu1 %3194 }
0x2ba7   :  { %v3260_v46 = vrot.slane %v3195_v61, %v6070_v36  ;;  %v3256_v23 = vsel %vm313_vm2, %v3255_v45, %v3251_v50 }
0x2ba8   :  { %v3201_v49 = vpop.xlane.xlu0 %3200  ;;  %v3303_v30 = vsel %vm380_vm4, %v3256_v23, %v3302_v27 }
0x2ba9   :  { %v3273_v28 = vrot.slane %v3201_v49, %v6067_v34 }
0x2baa   :  { %v3203_v21 = vpop.xlane.xlu1 %3202 }
0x2bab   :  { %v3278_v0 = vrot.slane %v3203_v21, %v6070_v36  ;;  %v3274_v9 = vsel %vm313_vm2, %v3273_v28, %v3269_v11 }
0x2bac   :  { %v3197_v62 = vpop.xlane.xlu0 %3196 }
0x2bad   :  { %v3264_v38 = vrot.slane %v3197_v62, %v6067_v34 }
0x2bae   :  { %v3207_v18 = vpop.xlane.xlu1 %3206 }
0x2baf   :  { %v3265_v24 = vsel %vm313_vm2, %v3264_v38, %v3260_v46  ;;  %v3287_v6 = vrot.slane %v3207_v18, %v6070_v36 }
0x2bb0   :  { %v3205_v35 = vpop.xlane.xlu0 %3204  ;;  %v3304_v16 = vsel %vm382_vm5, %v3265_v24, %v3303_v30 }
0x2bb1   :  { %v3282_v26 = vrot.slane %v3205_v35, %v6067_v34  ;;  %v3305_v43 = vsel %vm384_vm6, %v3274_v9, %v3304_v16 }
0x2bb2   :  { %v3211_v40 = vpop.xlane.xlu1 %3210 }
0x2bb3   :  { %v3283_v32 = vsel %vm313_vm2, %v3282_v26, %v3278_v0  ;;  %v3296_v44 = vrot.slane %v3211_v40, %v6070_v36 }
0x2bb4   :  { %v3209_v29 = vpop.xlane.xlu0 %3208  ;;  %v3306_v47 = vsel %vm386_vm7, %v3283_v32, %v3305_v43 }
0x2bb5   :  { %v3291_v31 = vrot.slane %v3209_v29, %v6067_v34 }
0x2bb6   :  { %v3311_v19 = vpop.permute.xlu1 %3310 }
0x2bb7   :  { %v3292_v41 = vsel %vm313_vm2, %v3291_v31, %v3287_v6 }
0x2bb8   :  { %v3213_v8 = vpop.xlane.xlu0 %3212  ;;  %v3307_v48 = vsel %vm388_vm8, %v3292_v41, %v3306_v47 }
0x2bb9   :  { %v3300_v60 = vrot.slane %v3213_v8, %v6067_v34 }
0x2bbb   :  { %v3301_v4 = vsel %vm313_vm2, %v3300_v60, %v3296_v44 }
0x2bbc   :  { %v3308_v51 = vsel %vm390_vm9, %v3301_v4, %v3307_v48 }
0x2bbd   :  { %v3313_v2 = vsel %vm397_vm10, %v3308_v51, %v3311_v19 }
0x2bbe   :  { %v3314_v53 = vpack.c.bf16 %v3313_v2, %v3313_v2 }
0x2bc0   :  { %5459 = vmatmul.mubr.msk.bf16.vlgmr.msra.gmra.mrb[28].mxu1 %vm431_vm11, %v3314_v53 }
0x2bc1   :  { %3573 = vmatpush1.bf16.msra.mxu1 %v6464_v37  ;;  %3604 = vmatprep.mubr.bf16.mxu1 %v5905_v7 }
0x2bc2   :  { %3574 = vmatprep.subr.bf16.mxu1 %v6468_v3 }
0x2bc5   :  { %3575 = vmatpush1.bf16.msra.mxu1 %v6472_v39 }
0x2bc6   :  { %5484 = vmatprep.subr.bf16.mxu1 %v5900_v5 }
0x2c93   :  { %v3383_v55 = vpop.f32.mrb[28].mxu1 }
0x2c94   :  { %v3384_v56 = vadd.f32 %v6651_v54, %v3383_v55  ;;  %v5460_v57 = vpop.f32.mrb[29].mxu1 }
0x2c95   :  { %v3386_v58 = vpop.f32.mrb[30].mxu1 }
0x2c96   :  { %5718 = vtanh.f32 %v3384_v56  ;;  %v5461_v37 = vpop.f32.mrb[31].mxu1  ;;  %v4909_v3 = vmul.f32 -1.442695, %v3384_v56 }
0x2c98   :  { %5720 = vpow2.f32 %v4909_v3  ;;  %v5151_v3 = vld [vmem:[#allocation5 + $0x180] sm:$0xff]  }
0x2ca0   :  { %v5719_v59 = vpop.eup %5718 }
0x2ca1   :  { %3398 = vrot.lane.b32.xlu0 %v5719_v59, %s5894_s13 }
0x2ca2   :  { %v5721_v39 = vpop.eup %5720 }
0x2ca3   :  { %v3392_v52 = vadd.f32 1.0, %v5721_v39 }
0x2ca5   :  { %3418 = vrot.lane.b32.xlu0 %v6578_v13, %s5894_s13  ;;  %5722 = vrcp.f32 %v3392_v52  ;;  %v5591_v13 = vld [vmem:[#allocation10 + $0x8] sm:$0xff]   ;;  %v5256_v52 = vld [vmem:[#allocation5 + $0x188] sm:$0xff]  }
0x2ca6   :  { %5465 = vmatpush3.bf16.msra.mxu0 %v5591_v13 }
0x2ca7   :  { %5466 = vmatprep.subr.bf16.mxu0 %v5900_v5 }
0x2caa   :  { %5467 = vmatpush3.bf16.msra.mxu0 %v5592_v10 }
0x2cab   :  { %5468 = vmatprep.subr.bf16.mxu0 %v5900_v5 }
0x2caf   :  { %v5723_v61 = vpop.eup %5722 }
0x2cb0   :  { %v3396_v62 = vmul.f32 %v5723_v61, %v6554_v25  ;;  %v5593_v25 = vld [vmem:[#allocation10 + $0x18] sm:$0xff]  }
0x2cb1   :  { %5469 = vmatpush3.bf16.msra.mxu0 %v5593_v25  ;;  %v5257_v25 = vld [vmem:[#allocation5 + $0x190] sm:$0xff]  }
0x2cb2   :  { %5474 = vmatprep.subr.bf16.mxu0 %v5900_v5 }
0x2d13   :  { %v3399_v49 = vpop.permute.xlu0 %3398 }
0x2d14   :  { %v3401_v21 = vmul.f32 %v5723_v61, %v3399_v49  ;;  %v5152_v49 = vunpack.c.l.bf16 %v5151_v3 }
0x2d16   :  { %3403 = vrot.lane.b32.xlu1 %v3401_v21, %s5904_s9 }
0x2d17   :  { %v3419_v35 = vpop.permute.xlu0 %3418 }
0x2d88   :  { %v3404_v63 = vpop.permute.xlu1 %3403 }
0x2d89   :  { %v6659_v45 = vadd.f32 %v3404_v63, %v3396_v62  ;;  %v5156_v63 = vunpack.c.l.bf16 %v5256_v52 }
0x2d8b   :  { %5724 = vtanh.f32 %v6659_v45 }
0x2d95   :  { %v5725_v38 = vpop.eup %5724 }
0x2d96   :  { %3409 = vrot.lane.b32.xlu1 %v5725_v38, %s5894_s13 }
0x2e08   :  { %v3410_v50 = vpop.permute.xlu1 %3409 }
0x2e09   :  { %v6667_v18 = vmul.f32 %v5723_v61, %v3410_v50 }
0x2e0b   :  { %3414 = vrot.lane.b32.xlu1 %v6667_v18, %s5904_s9 }
0x2e7d   :  { %v3415_v14 = vpop.permute.xlu1 %3414 }
0x2e7e   :  { %v3421_v22 = vsel %vm87_vm0, %v3415_v14, %v3419_v35  ;;  %v5153_v14 = vunpack.c.h.bf16 %v5151_v3 }
0x2e7f   :  { %v3422_v46 = vpack.c.bf16 %v3421_v22, %v3421_v22 }
0x2e81   :  { %5471 = vmatmul.mubr.msk.bf16.vlgmr.msra.gmra.mrb[32].mxu0 %vm553_vm12, %v3422_v46  ;;  %v5160_v46 = vunpack.c.l.bf16 %v5257_v25 }
0x2e82   :  { %5480 = vmatprep.mubr.msk.bf16.mxu0 %vm5903_vm1, %v5900_v5 }
0x2f54   :  { %v3499_v23 = vpop.f32.mrb[32].mxu0 }
0x2f55   :  { %v3500_v33 = vadd.f32 %v6455_v15, %v3499_v23  ;;  %v5472_v24 = vpop.f32.mrb[33].mxu0 }
0x2f56   :  { %v3502_v26 = vpop.f32.mrb[34].mxu0 }
0x2f57   :  { %5726 = vtanh.f32 %v3500_v33  ;;  %v5473_v27 = vpop.f32.mrb[35].mxu0  ;;  %v4916_v29 = vmul.f32 -1.442695, %v3500_v33  ;;  %v5259_v33 = vld [vmem:[#allocation5 + $0x1a0] sm:$0xff]  }
0x2f58   :  { %v5157_v27 = vunpack.c.h.bf16 %v5256_v52 }
0x2f59   :  { %5728 = vpow2.f32 %v4916_v29 }
0x2f61   :  { %v5727_v28 = vpop.eup %5726 }
0x2f62   :  { %3514 = vrot.lane.b32.xlu1 %v5727_v28, %s5894_s13  ;;  %v5168_v28 = vunpack.c.l.bf16 %v5259_v33 }
0x2f63   :  { %v5729_v30 = vpop.eup %5728 }
0x2f64   :  { %v3508_v0 = vadd.f32 1.0, %v5729_v30 }
0x2f66   :  { %5730 = vrcp.f32 %v3508_v0 }
0x2f70   :  { %v5731_v31 = vpop.eup %5730 }
0x2f71   :  { %v3512_v6 = vmul.f32 %v5731_v31, %v6574_v42  ;;  %v3534_v42 = vld [vmem:[%s6915_s6] sm:$0x3] }
0x2f72   :  { %v3539_v44 = vrot.slane %v3534_v42, %v6044_v17  ;;  %v3543_v60 = vrot.slane %v3534_v42, %v6169_v20 }
0x2fd4   :  { %v3515_v11 = vpop.permute.xlu1 %3514 }
0x2fd5   :  { %v3517_v16 = vmul.f32 %v5731_v31, %v3515_v11  ;;  %v5258_v11 = vld [vmem:[#allocation5 + $0x198] sm:$0xff]  }
0x2fd7   :  { %3519 = vrot.lane.b32.xlu0 %v3517_v16, %s5904_s9 }
0x3049   :  { %v3520_v15 = vpop.permute.xlu0 %3519 }
0x304a   :  { %v6679_v40 = vadd.f32 %v3520_v15, %v3512_v6  ;;  %v5161_v6 = vunpack.c.h.bf16 %v5257_v25 }
0x304c   :  { %5732 = vtanh.f32 %v6679_v40 }
0x3056   :  { %v5733_v32 = vpop.eup %5732 }
0x3057   :  { %3525 = vrot.lane.b32.xlu1 %v5733_v32, %s5894_s13  ;;  %v5164_v32 = vunpack.c.l.bf16 %v5258_v11 }
0x30c9   :  { %v3526_v9 = vpop.permute.xlu1 %3525 }
0x30ca   :  { %v6683_v41 = vmul.f32 %v5731_v31, %v3526_v9 }
0x30cc   :  { %v3529_v8 = vpack.c.bf16 %v6683_v41, %v6683_v41 }
0x30ce   :  { %3547 = vrot.lane.b32.xlu0 %v3529_v8, %s5904_s9 }
0x3140   :  { %v3548_v43 = vpop.permute.xlu0 %3547 }
0x3141   :  { %4921 = vmatmul.mubr.msk.bf16.vlgmr.msra.gmra.mrb[32].mxu1 %vm87_vm0, %v3548_v43  ;;  %v5260_v43 = vld [vmem:[#allocation5 + $0x1a8] sm:$0xff]  }
0x3142   :  { %5492 = vmatprep.mubr.msk.bf16.mxu1 %vm5903_vm1, %v5900_v5 }
0x3214   :  { %v3606_v47 = vpop.f32.mrb[32].mxu1 }
0x3215   :  { %v3607_v48 = vadd.f32 %v3606_v47, %v3539_v44  ;;  %v3608_v4 = vpop.f32.mrb[33].mxu1  ;;  %v5169_v44 = vunpack.c.h.bf16 %v5259_v33  ;;  %v5172_v47 = vunpack.c.l.bf16 %v5260_v43 }
0x3216   :  { %v3609_v19 = vadd.f32 %v3608_v4, %v3543_v60  ;;  %v3610_v51 = vpop.f32.mrb[34].mxu1 }
0x3217   :  { %v3611_v2 = vpop.f32.mrb[35].mxu1  ;;  %3615 = vmax.xlane.f32.xlu1 %v3607_v48 }
0x3218   :  { %3614 = vst [vmem:[#allocation13 + $0x28] sm:$0xff] %v3609_v19  ;;  %v5261_v19 = vld [vmem:[#allocation5 + $0x1b0] sm:$0xff]   ;;  %v5165_v2 = vunpack.c.h.bf16 %v5258_v11 }
0x32a4   :  { %v3616_v53 = vpop.xlane.xlu1 %3615 }
0x32a5   :  { %v3617_v55 = vsub.f32 %v3607_v48, %v3616_v53 }
0x32a7   :  { %v3618_v56 = vmul.f32 1.442695, %v3617_v55  ;;  %v5176_v55 = vunpack.c.l.bf16 %v5261_v19 }
0x32a9   :  { %5734 = vpow2.f32 %v3618_v56 }
0x32b3   :  { %v5735_v57 = vpop.eup %5734 }
0x32b4   :  { %3620 = vadd.xlane.f32.xlu0 %v5735_v57 }
0x3341   :  { %v3621_v58 = vpop.xlane.xlu0 %3620 }
0x3342   :  { %5736 = vrcp.f32 %v3621_v58  ;;  %v5262_v58 = vld [vmem:[#allocation5 + $0x1b8] sm:$0xff]  }
0x334c   :  { %v5737_v37 = vpop.eup %5736 }
0x334d   :  { %v3623_v59 = vmul.f32 %v5737_v37, %v5735_v57 }
0x334f   :  { %v3649_v39 = vrot.slane %v3623_v59, %v6040_v12  ;;  %v3642_v61 = vcombine.high %v3623_v59, %v3623_v59  ;;  %v5173_v59 = vunpack.c.h.bf16 %v5260_v43 }
0x3351   :  { %v3665_v21 = vrot.slane %v3649_v39, %v6040_v12  ;;  %v3657_v62 = vcombine.high %v3649_v39, %v3649_v39  ;;  %v3656_v38 = vrot.slane %v3642_v61, %v6040_v12  ;;  %v5180_v39 = vunpack.c.l.bf16 %v5262_v58 }
0x3353   :  { %v3710_v1 = vrot.slane %v3665_v21, %v6044_v17  ;;  %v3679_v13 = vrot.slane %v3657_v62, %v6040_v12  ;;  %v3687_v10 = vcombine.high %v3665_v21, %v3665_v21  ;;  %v3672_v24 = vrot.slane %v3656_v38, %v6040_v12 }
0x3354   :  { %v3658_v31 = vcombine.high %v3656_v38, %v3656_v38  ;;  %v5596_v38 = vld [vmem:[#allocation8 + $0x10] sm:$0xff]  }
0x3355   :  { %v3747_v50 = vmul.f32 %v5152_v49, %v3710_v1  ;;  %v3714_v35 = vrot.slane %v3679_v13, %v6044_v17  ;;  %v3718_v23 = vrot.slane %v3687_v10, %v6044_v17  ;;  %v3748_v26 = vmul.f32 %v5153_v14, %v3710_v1  ;;  %v5595_v10 = vld [vmem:[#allocation8 + $0x8] sm:$0xff]  }
0x3356   :  { %v3726_v30 = vrot.slane %v3672_v24, %v6044_v17  ;;  %v3689_v0 = vcombine.high %v3679_v13, %v3679_v13  ;;  %v3686_v8 = vrot.slane %v3658_v31, %v6040_v12  ;;  %v3688_v4 = vcombine.high %v3672_v24, %v3672_v24  ;;  %v5594_v13 = vld [vmem:[#allocation8] sm:$0xff]  }
0x3357   :  { %3763 = vadd.xlane.f32.xlu0 %v3747_v50  ;;  %v3749_v22 = vmul.f32 %v5156_v63, %v3714_v35  ;;  %v3751_v29 = vmul.f32 %v5160_v46, %v3718_v23  ;;  %v3750_v16 = vmul.f32 %v5157_v27, %v3714_v35  ;;  %v3752_v42 = vmul.f32 %v5161_v6, %v3718_v23 }
0x3358   :  { %v3755_v15 = vmul.f32 %v5168_v28, %v3726_v30  ;;  %v3722_v9 = vrot.slane %v3689_v0, %v6044_v17  ;;  %v3730_v48 = vrot.slane %v3686_v8, %v6044_v17  ;;  %v3756_v51 = vmul.f32 %v5169_v44, %v3726_v30  ;;  %5475 = vmatpush3.bf16.msra.mxu0 %v5594_v13 }
0x3359   :  { %3767 = vadd.xlane.f32.xlu1 %v3749_v22  ;;  %v3734_v56 = vrot.slane %v3688_v4, %v6044_v17  ;;  %v3690_v57 = vcombine.high %v3686_v8, %v3686_v8  ;;  %v5177_v49 = vunpack.c.h.bf16 %v5261_v19  ;;  %v5181_v63 = vunpack.c.h.bf16 %v5262_v58  ;;  %5476 = vmatprep.subr.bf16.mxu0 %v5900_v5 }
0x335a   :  { %v3753_v60 = vmul.f32 %v5164_v32, %v3722_v9  ;;  %v3757_v53 = vmul.f32 %v5172_v47, %v3730_v48  ;;  %v3754_v37 = vmul.f32 %v5165_v2, %v3722_v9  ;;  %v3758_v61 = vmul.f32 %v5173_v59, %v3730_v48 }
0x335b   :  { %3765 = vadd.xlane.f32.xlu0 %v3748_v26  ;;  %v3759_v3 = vmul.f32 %v5176_v55, %v3734_v56  ;;  %v3738_v52 = vrot.slane %v3690_v57, %v6044_v17  ;;  %v3760_v62 = vmul.f32 %v5177_v49, %v3734_v56 }
0x335c   :  { %5477 = vmatpush3.bf16.msra.mxu0 %v5595_v10 }
0x335d   :  { %3771 = vadd.xlane.f32.xlu1 %v3751_v29  ;;  %v3761_v21 = vmul.f32 %v5180_v39, %v3738_v52  ;;  %v3762_v1 = vmul.f32 %v5181_v63, %v3738_v52  ;;  %5478 = vmatprep.subr.bf16.mxu0 %v5900_v5 }
0x335f   :  { %3769 = vadd.xlane.f32.xlu0 %v3750_v16 }
0x3360   :  { %5479 = vmatpush3.bf16.msra.mxu0 %v5596_v38 }
0x3361   :  { %3779 = vadd.xlane.f32.xlu1 %v3755_v15 }
0x3363   :  { %3773 = vadd.xlane.f32.xlu0 %v3752_v42 }
0x3365   :  { %3775 = vadd.xlane.f32.xlu1 %v3753_v60 }
0x3367   :  { %3781 = vadd.xlane.f32.xlu0 %v3756_v51 }
0x3369   :  { %3783 = vadd.xlane.f32.xlu1 %v3757_v53 }
0x336b   :  { %3777 = vadd.xlane.f32.xlu0 %v3754_v37 }
0x336d   :  { %3787 = vadd.xlane.f32.xlu1 %v3759_v3 }
0x336f   :  { %3785 = vadd.xlane.f32.xlu0 %v3758_v61 }
0x3371   :  { %3791 = vadd.xlane.f32.xlu1 %v3761_v21 }
0x3373   :  { %3789 = vadd.xlane.f32.xlu0 %v3760_v62 }
0x3377   :  { %3793 = vadd.xlane.f32.xlu0 %v3762_v1 }
0x3382   :  { %3891 = vrot.lane.b32.xlu1 %v6667_v18, %s5906_s16 }
0x33e4   :  { %v3764_v25 = vpop.xlane.xlu0 %3763 }
0x33e5   :  { %v3814_v6 = vrot.slane %v3764_v25, %v6070_v36 }
0x33e6   :  { %v3768_v50 = vpop.xlane.xlu1 %3767 }
0x33e7   :  { %v3823_v29 = vrot.slane %v3768_v50, %v6070_v36 }
0x33e8   :  { %v3766_v35 = vpop.xlane.xlu0 %3765 }
0x33e9   :  { %v3818_v30 = vrot.slane %v3766_v35, %v6067_v34 }
0x33ea   :  { %v3772_v14 = vpop.xlane.xlu1 %3771 }
0x33eb   :  { %v3832_v31 = vrot.slane %v3772_v14, %v6070_v36  ;;  %v3819_v8 = vsel %vm313_vm2, %v3818_v30, %v3814_v6 }
0x33ec   :  { %v3770_v22 = vpop.xlane.xlu0 %3769 }
0x33ed   :  { %v3827_v27 = vrot.slane %v3770_v22, %v6067_v34 }
0x33ee   :  { %v3780_v46 = vpop.xlane.xlu1 %3779 }
0x33ef   :  { %v3828_v15 = vsel %vm313_vm2, %v3827_v27, %v3823_v29  ;;  %v3850_v51 = vrot.slane %v3780_v46, %v6070_v36  ;;  %v5599_v29 = vld [vmem:[#allocation10 + $0x10] sm:$0xff]  }
0x33f0   :  { %v3774_v23 = vpop.xlane.xlu0 %3773  ;;  %v3883_v44 = vsel %vm378_vm3, %v3828_v15, %v3819_v8 }
0x33f1   :  { %v3836_v28 = vrot.slane %v3774_v23, %v6067_v34 }
0x33f2   :  { %v3776_v33 = vpop.xlane.xlu1 %3775 }
0x33f3   :  { %v3841_v32 = vrot.slane %v3776_v33, %v6070_v36  ;;  %v3837_v9 = vsel %vm313_vm2, %v3836_v28, %v3832_v31  ;;  %v5597_v28 = vld [vmem:[#allocation10] sm:$0xff]  }
0x33f4   :  { %v3782_v24 = vpop.xlane.xlu0 %3781  ;;  %v3884_v48 = vsel %vm380_vm4, %v3837_v9, %v3883_v44  ;;  %5485 = vmatpush3.bf16.msra.mxu1 %v5597_v28 }
0x33f5   :  { %v3854_v60 = vrot.slane %v3782_v24, %v6067_v34  ;;  %5486 = vmatprep.subr.bf16.mxu1 %v5900_v5 }
0x33f6   :  { %v3784_v26 = vpop.xlane.xlu1 %3783 }
0x33f7   :  { %v3859_v4 = vrot.slane %v3784_v26, %v6070_v36  ;;  %v3855_v57 = vsel %vm313_vm2, %v3854_v60, %v3850_v51 }
0x33f8   :  { %v3778_v18 = vpop.xlane.xlu0 %3777 }
0x33f9   :  { %v3845_v0 = vrot.slane %v3778_v18, %v6067_v34 }
0x33fa   :  { %v3788_v11 = vpop.xlane.xlu1 %3787 }
0x33fb   :  { %v3846_v43 = vsel %vm313_vm2, %v3845_v0, %v3841_v32  ;;  %v3868_v53 = vrot.slane %v3788_v11, %v6070_v36  ;;  %v6773_v32 = vld [vmem:[%s6913_s4] ss:$0 sm:$0xff] }
0x33fc   :  { %v3786_v16 = vpop.xlane.xlu0 %3785  ;;  %v3885_v2 = vsel %vm382_vm5, %v3846_v43, %v3884_v48 }
0x33fd   :  { %v3863_v42 = vrot.slane %v3786_v16, %v6067_v34  ;;  %v3886_v59 = vsel %vm384_vm6, %v3855_v57, %v3885_v2  ;;  %v6782_v57 = vld [vmem:[#allocation11] ss:$8 sps:$4 sm:$0xff]  }
0x33fe   :  { %v3792_v55 = vpop.xlane.xlu1 %3791 }
0x33ff   :  { %v3864_v56 = vsel %vm313_vm2, %v3863_v42, %v3859_v4  ;;  %v3877_v3 = vrot.slane %v3792_v55, %v6070_v36 }
0x3400   :  { %v3790_v47 = vpop.xlane.xlu0 %3789  ;;  %v3887_v52 = vsel %vm386_vm7, %v3864_v56, %v3886_v59  ;;  %v6790_v59 = vld [vmem:[#allocation11 + $0x10] ss:$8 sps:$4 sm:$0xff]  }
0x3401   :  { %v3872_v19 = vrot.slane %v3790_v47, %v6067_v34 }
0x3402   :  { %v3892_v21 = vpop.permute.xlu1 %3891 }
0x3403   :  { %v3873_v58 = vsel %vm313_vm2, %v3872_v19, %v3868_v53 }
0x3404   :  { %v3794_v37 = vpop.xlane.xlu0 %3793  ;;  %v3888_v61 = vsel %vm388_vm8, %v3873_v58, %v3887_v52  ;;  %v6784_v58 = vld [vmem:[#allocation11 + $0x4] ss:$8 sps:$4 sm:$0xff]  }
0x3405   :  { %v3881_v39 = vrot.slane %v3794_v37, %v6067_v34  ;;  %v6786_v37 = vld [vmem:[#allocation11 + $0x14] ss:$8 sps:$4 sm:$0xff]   ;;  %4153 = vmatprep.subr.bf16.mxu0 %v6784_v58 }
0x3407   :  { %v3882_v49 = vsel %vm313_vm2, %v3881_v39, %v3877_v3 }
0x3408   :  { %v3889_v62 = vsel %vm390_vm9, %v3882_v49, %v3888_v61  ;;  %v4115_v49 = vld [vmem:[%s6915_s6] sm:$0x3] }
0x3409   :  { %v3894_v63 = vsel %vm397_vm10, %v3889_v62, %v3892_v21  ;;  %v4120_v21 = vrot.slane %v4115_v49, %v6044_v17  ;;  %v4124_v62 = vrot.slane %v4115_v49, %v6169_v20 }
0x340a   :  { %v3895_v1 = vpack.c.bf16 %v3894_v63, %v3894_v63 }
0x340c   :  { %5481 = vmatmul.mubr.msk.bf16.vlgmr.msra.gmra.mrb[36].mxu0 %vm431_vm11, %v3895_v1 }
0x340d   :  { %4185 = vmatprep.mubr.bf16.mxu0 %v5905_v7  ;;  %4154 = vmatpush1.bf16.msra.mxu0 %v6782_v57 }
0x340e   :  { %4155 = vmatprep.subr.bf16.mxu0 %v6786_v37 }
0x3411   :  { %4156 = vmatpush1.bf16.msra.mxu0 %v6790_v59 }
0x3412   :  { %5506 = vmatprep.subr.bf16.mxu0 %v5900_v5 }
0x34df   :  { %v3964_v13 = vpop.f32.mrb[36].mxu0 }
0x34e0   :  { %v3965_v10 = vadd.f32 %v6651_v54, %v3964_v13  ;;  %v5482_v38 = vpop.f32.mrb[37].mxu0 }
0x34e1   :  { %v3967_v25 = vpop.f32.mrb[38].mxu0 }
0x34e2   :  { %5738 = vtanh.f32 %v3965_v10  ;;  %v5483_v50 = vpop.f32.mrb[39].mxu0  ;;  %v4927_v14 = vmul.f32 -1.442695, %v3965_v10 }
0x34e4   :  { %5740 = vpow2.f32 %v4927_v14 }
0x34ec   :  { %v5739_v35 = vpop.eup %5738 }
0x34ed   :  { %3979 = vrot.lane.b32.xlu0 %v5739_v35, %s5894_s13 }
0x34ee   :  { %v5741_v22 = vpop.eup %5740 }
0x34ef   :  { %v3973_v46 = vadd.f32 1.0, %v5741_v22 }
0x34f1   :  { %3999 = vrot.lane.b32.xlu0 %v6683_v41, %s5894_s13  ;;  %5742 = vrcp.f32 %v3973_v46  ;;  %v5598_v41 = vld [vmem:[#allocation10 + $0x8] sm:$0xff]  }
0x34f2   :  { %5487 = vmatpush3.bf16.msra.mxu1 %v5598_v41 }
0x34f3   :  { %5488 = vmatprep.subr.bf16.mxu1 %v5900_v5 }
0x34f6   :  { %5489 = vmatpush3.bf16.msra.mxu1 %v5599_v29 }
0x34f7   :  { %5490 = vmatprep.subr.bf16.mxu1 %v5900_v5 }
0x34fb   :  { %v5743_v23 = vpop.eup %5742 }
0x34fc   :  { %v3977_v26 = vmul.f32 %v5743_v23, %v6659_v45  ;;  %v5600_v45 = vld [vmem:[#allocation10 + $0x18] sm:$0xff]  }
0x34fd   :  { %5491 = vmatpush3.bf16.msra.mxu1 %v5600_v45 }
0x34fe   :  { %5496 = vmatprep.subr.bf16.mxu1 %v5900_v5 }
0x355f   :  { %v3980_v33 = vpop.permute.xlu0 %3979 }
0x3560   :  { %v3982_v24 = vmul.f32 %v5743_v23, %v3980_v33 }
0x3562   :  { %3984 = vrot.lane.b32.xlu1 %v3982_v24, %s5904_s9  ;;  %v5183_v24 = vld [vmem:[#allocation5 + $0x1c0] sm:$0xff]  }
0x3563   :  { %v4000_v11 = vpop.permute.xlu0 %3999  ;;  %v5184_v41 = vunpack.c.l.bf16 %v5183_v24 }
0x35d4   :  { %v3985_v18 = vpop.permute.xlu1 %3984 }
0x35d5   :  { %v6754_v27 = vadd.f32 %v3985_v18, %v3977_v26  ;;  %v5263_v18 = vld [vmem:[#allocation5 + $0x1c8] sm:$0xff]  }
0x35d6   :  { %v5188_v45 = vunpack.c.l.bf16 %v5263_v18 }
0x35d7   :  { %5744 = vtanh.f32 %v6754_v27 }
0x35e1   :  { %v5745_v30 = vpop.eup %5744 }
0x35e2   :  { %3990 = vrot.lane.b32.xlu1 %v5745_v30, %s5894_s13 }
0x3654   :  { %v3991_v0 = vpop.permute.xlu1 %3990 }
0x3655   :  { %v6762_v31 = vmul.f32 %v5743_v23, %v3991_v0 }
0x3657   :  { %3995 = vrot.lane.b32.xlu1 %v6762_v31, %s5904_s9 }
0x36c9   :  { %v3996_v16 = vpop.permute.xlu1 %3995 }
0x36ca   :  { %v4002_v6 = vsel %vm87_vm0, %v3996_v16, %v4000_v11 }
0x36cb   :  { %v4003_v15 = vpack.c.bf16 %v4002_v6, %v4002_v6 }
0x36cd   :  { %5493 = vmatmul.mubr.msk.bf16.vlgmr.msra.gmra.mrb[36].mxu1 %vm553_vm12, %v4003_v15  ;;  %v5264_v15 = vld [vmem:[#allocation5 + $0x1d0] sm:$0xff]  }
0x36ce   :  { %5502 = vmatprep.mubr.msk.bf16.mxu1 %vm5903_vm1, %v5900_v5 }
0x37a0   :  { %v4080_v9 = vpop.f32.mrb[36].mxu1 }
0x37a1   :  { %v4081_v8 = vadd.f32 %v6773_v32, %v4080_v9  ;;  %v5494_v43 = vpop.f32.mrb[37].mxu1 }
0x37a2   :  { %v4083_v42 = vpop.f32.mrb[38].mxu1  ;;  %v5185_v43 = vunpack.c.h.bf16 %v5183_v24 }
0x37a3   :  { %5746 = vtanh.f32 %v4081_v8  ;;  %v5495_v44 = vpop.f32.mrb[39].mxu1  ;;  %v4934_v47 = vmul.f32 -1.442695, %v4081_v8 }
0x37a4   :  { %v5192_v44 = vunpack.c.l.bf16 %v5264_v15 }
0x37a5   :  { %5748 = vpow2.f32 %v4934_v47  ;;  %v5266_v47 = vld [vmem:[#allocation5 + $0x1e0] sm:$0xff]  }
0x37ad   :  { %v5747_v60 = vpop.eup %5746 }
0x37ae   :  { %4095 = vrot.lane.b32.xlu1 %v5747_v60, %s5894_s13 }
0x37af   :  { %v5749_v48 = vpop.eup %5748 }
0x37b0   :  { %v4089_v4 = vadd.f32 1.0, %v5749_v48 }
0x37b2   :  { %5750 = vrcp.f32 %v4089_v4 }
0x37bc   :  { %v5751_v19 = vpop.eup %5750 }
0x37bd   :  { %v4093_v53 = vmul.f32 %v5751_v19, %v6679_v40 }
0x3820   :  { %v4096_v51 = vpop.permute.xlu1 %4095 }
0x3821   :  { %v4098_v2 = vmul.f32 %v5751_v19, %v4096_v51  ;;  %v5200_v51 = vunpack.c.l.bf16 %v5266_v47 }
0x3823   :  { %4100 = vrot.lane.b32.xlu0 %v4098_v2, %s5904_s9 }
0x3895   :  { %v4101_v55 = vpop.permute.xlu0 %4100 }
0x3896   :  { %v6779_v56 = vadd.f32 %v4101_v55, %v4093_v53 }
0x3898   :  { %5752 = vtanh.f32 %v6779_v56 }
0x38a2   :  { %v5753_v40 = vpop.eup %5752 }
0x38a3   :  { %4106 = vrot.lane.b32.xlu1 %v5753_v40, %s5894_s13 }
0x3915   :  { %v4107_v3 = vpop.permute.xlu1 %4106 }
0x3916   :  { %v6796_v39 = vmul.f32 %v5751_v19, %v4107_v3  ;;  %v5189_v19 = vunpack.c.h.bf16 %v5263_v18  ;;  %v5265_v3 = vld [vmem:[#allocation5 + $0x1d8] sm:$0xff]  }
0x3918   :  { %v4110_v52 = vpack.c.bf16 %v6796_v39, %v6796_v39 }
0x391a   :  { %4128 = vrot.lane.b32.xlu0 %v4110_v52, %s5904_s9 }
0x398c   :  { %v4129_v61 = vpop.permute.xlu0 %4128 }
0x398d   :  { %4939 = vmatmul.mubr.msk.bf16.vlgmr.msra.gmra.mrb[40].mxu0 %vm87_vm0, %v4129_v61  ;;  %v5193_v61 = vunpack.c.h.bf16 %v5264_v15 }
0x398e   :  { %5514 = vmatprep.mubr.msk.bf16.mxu0 %vm5903_vm1, %v5900_v5 }
0x3a60   :  { %v4187_v63 = vpop.f32.mrb[40].mxu0 }
0x3a61   :  { %v4188_v1 = vadd.f32 %v4187_v63, %v4120_v21  ;;  %v4189_v13 = vpop.f32.mrb[41].mxu0  ;;  %v5196_v21 = vunpack.c.l.bf16 %v5265_v3 }
0x3a62   :  { %v4190_v10 = vadd.f32 %v4189_v13, %v4124_v62  ;;  %v4191_v38 = vpop.f32.mrb[42].mxu0 }
0x3a63   :  { %v4192_v25 = vpop.f32.mrb[43].mxu0  ;;  %4196 = vmax.xlane.f32.xlu1 %v4188_v1 }
0x3a64   :  { %4195 = vst [vmem:[#allocation13 + $0x30] sm:$0xff] %v4190_v10  ;;  %v5201_v10 = vunpack.c.h.bf16 %v5266_v47 }
0x3af0   :  { %v4197_v50 = vpop.xlane.xlu1 %4196 }
0x3af1   :  { %v4198_v35 = vsub.f32 %v4188_v1, %v4197_v50  ;;  %v5267_v1 = vld [vmem:[#allocation5 + $0x1e8] sm:$0xff]  }
0x3af2   :  { %v5204_v25 = vunpack.c.l.bf16 %v5267_v1 }
0x3af3   :  { %v4199_v14 = vmul.f32 1.442695, %v4198_v35 }
0x3af5   :  { %5754 = vpow2.f32 %v4199_v14  ;;  %v5268_v14 = vld [vmem:[#allocation5 + $0x1f0] sm:$0xff]  }
0x3aff   :  { %v5755_v22 = vpop.eup %5754 }
0x3b00   :  { %4201 = vadd.xlane.f32.xlu0 %v5755_v22 }
0x3b8d   :  { %v4202_v46 = vpop.xlane.xlu0 %4201 }
0x3b8e   :  { %5756 = vrcp.f32 %v4202_v46  ;;  %v5197_v46 = vunpack.c.h.bf16 %v5265_v3 }
0x3b98   :  { %v5757_v23 = vpop.eup %5756 }
0x3b99   :  { %v4204_v33 = vmul.f32 %v5757_v23, %v5755_v22 }
0x3b9b   :  { %v4230_v26 = vrot.slane %v4204_v33, %v6040_v12  ;;  %v4223_v28 = vcombine.high %v4204_v33, %v4204_v33  ;;  %v5208_v33 = vunpack.c.l.bf16 %v5268_v14 }
0x3b9d   :  { %v4246_v29 = vrot.slane %v4230_v26, %v6040_v12  ;;  %v4238_v30 = vcombine.high %v4230_v26, %v4230_v26  ;;  %v4237_v6 = vrot.slane %v4223_v28, %v6040_v12  ;;  %v5269_v26 = vld [vmem:[#allocation5 + $0x1f8] sm:$0xff]   ;;  %v5205_v28 = vunpack.c.h.bf16 %v5267_v1 }
0x3b9f   :  { %v4291_v0 = vrot.slane %v4246_v29, %v6044_v17  ;;  %v4260_v11 = vrot.slane %v4238_v30, %v6040_v12  ;;  %v4268_v16 = vcombine.high %v4246_v29, %v4246_v29  ;;  %v4253_v48 = vrot.slane %v4237_v6, %v6040_v12 }
0x3ba0   :  { %v4239_v40 = vcombine.high %v4237_v6, %v4237_v6  ;;  %v5212_v29 = vunpack.c.l.bf16 %v5269_v26  ;;  %v5213_v6 = vunpack.c.h.bf16 %v5269_v26 }
0x3ba1   :  { %v4328_v9 = vmul.f32 %v5184_v41, %v4291_v0  ;;  %v4295_v8 = vrot.slane %v4260_v11, %v6044_v17  ;;  %v4299_v60 = vrot.slane %v4268_v16, %v6044_v17  ;;  %v4329_v4 = vmul.f32 %v5185_v43, %v4291_v0 }
0x3ba2   :  { %v4307_v53 = vrot.slane %v4253_v48, %v6044_v17  ;;  %v4270_v55 = vcombine.high %v4260_v11, %v4260_v11  ;;  %v4267_v63 = vrot.slane %v4239_v40, %v6040_v12  ;;  %v4269_v35 = vcombine.high %v4253_v48, %v4253_v48 }
0x3ba3   :  { %4344 = vadd.xlane.f32.xlu0 %v4328_v9  ;;  %v4330_v42 = vmul.f32 %v5188_v45, %v4295_v8  ;;  %v4332_v2 = vmul.f32 %v5192_v44, %v4299_v60  ;;  %v4331_v52 = vmul.f32 %v5189_v19, %v4295_v8  ;;  %v4333_v13 = vmul.f32 %v5193_v61, %v4299_v60  ;;  %v5607_v9 = vld [vmem:[#allocation8] sm:$0xff]   ;;  %v5608_v8 = vld [vmem:[#allocation8 + $0x8] sm:$0xff]  }
0x3ba4   :  { %v4336_v49 = vmul.f32 %v5200_v51, %v4307_v53  ;;  %v4303_v62 = vrot.slane %v4270_v55, %v6044_v17  ;;  %v4311_v50 = vrot.slane %v4267_v63, %v6044_v17  ;;  %v4337_v22 = vmul.f32 %v5201_v10, %v4307_v53  ;;  %5497 = vmatpush3.bf16.msra.mxu1 %v5607_v9 }
0x3ba5   :  { %4348 = vadd.xlane.f32.xlu1 %v4330_v42  ;;  %v4315_v24 = vrot.slane %v4269_v35, %v6044_v17  ;;  %v4271_v12 = vcombine.high %v4267_v63, %v4267_v63  ;;  %v5209_v0 = vunpack.c.h.bf16 %v5268_v14  ;;  %5498 = vmatprep.subr.bf16.mxu1 %v5900_v5 }
0x3ba6   :  { %v4334_v38 = vmul.f32 %v5196_v21, %v4303_v62  ;;  %v4338_v23 = vmul.f32 %v5204_v25, %v4311_v50  ;;  %v4335_v18 = vmul.f32 %v5197_v46, %v4303_v62  ;;  %v4339_v45 = vmul.f32 %v5205_v28, %v4311_v50 }
0x3ba7   :  { %4346 = vadd.xlane.f32.xlu0 %v4329_v4  ;;  %v4340_v41 = vmul.f32 %v5208_v33, %v4315_v24  ;;  %v4319_v30 = vrot.slane %v4271_v12, %v6044_v17  ;;  %v4341_v16 = vmul.f32 %v5209_v0, %v4315_v24  ;;  %v5609_v17 = vld [vmem:[#allocation8 + $0x10] sm:$0xff]  }
0x3ba8   :  { %5499 = vmatpush3.bf16.msra.mxu1 %v5608_v8 }
0x3ba9   :  { %4352 = vadd.xlane.f32.xlu1 %v4332_v2  ;;  %v4342_v11 = vmul.f32 %v5212_v29, %v4319_v30  ;;  %v4343_v15 = vmul.f32 %v5213_v6, %v4319_v30  ;;  %5500 = vmatprep.subr.bf16.mxu1 %v5900_v5 }
0x3bab   :  { %4350 = vadd.xlane.f32.xlu0 %v4331_v52 }
0x3bac   :  { %5501 = vmatpush3.bf16.msra.mxu1 %v5609_v17 }
0x3bad   :  { %4360 = vadd.xlane.f32.xlu1 %v4336_v49  ;;  %4734 = vmatprep.subr.bf16.mxu1 %v6784_v58 }
0x3baf   :  { %4354 = vadd.xlane.f32.xlu0 %v4333_v13 }
0x3bb1   :  { %4356 = vadd.xlane.f32.xlu1 %v4334_v38 }
0x3bb3   :  { %4362 = vadd.xlane.f32.xlu0 %v4337_v22 }
0x3bb5   :  { %4364 = vadd.xlane.f32.xlu1 %v4338_v23 }
0x3bb7   :  { %4358 = vadd.xlane.f32.xlu0 %v4335_v18 }
0x3bb9   :  { %4368 = vadd.xlane.f32.xlu1 %v4340_v41 }
0x3bbb   :  { %4366 = vadd.xlane.f32.xlu0 %v4339_v45 }
0x3bbd   :  { %4372 = vadd.xlane.f32.xlu1 %v4342_v11 }
0x3bbf   :  { %4370 = vadd.xlane.f32.xlu0 %v4341_v16 }
0x3bc3   :  { %4374 = vadd.xlane.f32.xlu0 %v4343_v15 }
0x3bce   :  { %4472 = vrot.lane.b32.xlu1 %v6762_v31, %s5906_s16 }
0x3c30   :  { %v4345_v43 = vpop.xlane.xlu0 %4344 }
0x3c31   :  { %v4395_v21 = vrot.slane %v4345_v43, %v6070_v36 }
0x3c32   :  { %v4349_v42 = vpop.xlane.xlu1 %4348 }
0x3c33   :  { %v4404_v40 = vrot.slane %v4349_v42, %v6070_v36 }
0x3c34   :  { %v4347_v44 = vpop.xlane.xlu0 %4346 }
0x3c35   :  { %v4399_v3 = vrot.slane %v4347_v44, %v6067_v34 }
0x3c36   :  { %v4353_v60 = vpop.xlane.xlu1 %4352 }
0x3c37   :  { %v4413_v52 = vrot.slane %v4353_v60, %v6070_v36  ;;  %v4400_v13 = vsel %vm313_vm2, %v4399_v3, %v4395_v21 }
0x3c38   :  { %v4351_v47 = vpop.xlane.xlu0 %4350 }
0x3c39   :  { %v4408_v53 = vrot.slane %v4351_v47, %v6067_v34 }
0x3c3a   :  { %v4361_v48 = vpop.xlane.xlu1 %4360 }
0x3c3b   :  { %v4409_v62 = vsel %vm313_vm2, %v4408_v53, %v4404_v40  ;;  %v4431_v23 = vrot.slane %v4361_v48, %v6070_v36 }
0x3c3c   :  { %v4355_v4 = vpop.xlane.xlu0 %4354  ;;  %v4464_v25 = vsel %vm378_vm3, %v4409_v62, %v4400_v13 }
0x3c3d   :  { %v4417_v55 = vrot.slane %v4355_v4, %v6067_v34 }
0x3c3e   :  { %v4357_v19 = vpop.xlane.xlu1 %4356 }
0x3c3f   :  { %v4422_v63 = vrot.slane %v4357_v19, %v6070_v36  ;;  %v4418_v1 = vsel %vm313_vm2, %v4417_v55, %v4413_v52  ;;  %v5610_v19 = vld [vmem:[#allocation10] sm:$0xff]  }
0x3c40   :  { %v4363_v31 = vpop.xlane.xlu0 %4362  ;;  %v4465_v14 = vsel %vm380_vm4, %v4418_v1, %v4464_v25  ;;  %5507 = vmatpush3.bf16.msra.mxu0 %v5610_v19 }
0x3c41   :  { %v4435_v50 = vrot.slane %v4363_v31, %v6067_v34  ;;  %v5611_v31 = vld [vmem:[#allocation10 + $0x8] sm:$0xff]   ;;  %5508 = vmatprep.subr.bf16.mxu0 %v5900_v5 }
0x3c42   :  { %v4365_v51 = vpop.xlane.xlu1 %4364 }
0x3c43   :  { %v4440_v22 = vrot.slane %v4365_v51, %v6070_v36  ;;  %v4436_v18 = vsel %vm313_vm2, %v4435_v50, %v4431_v23 }
0x3c44   :  { %v4359_v2 = vpop.xlane.xlu0 %4358  ;;  %5509 = vmatpush3.bf16.msra.mxu0 %v5611_v31 }
0x3c45   :  { %v4426_v58 = vrot.slane %v4359_v2, %v6067_v34  ;;  %5510 = vmatprep.subr.bf16.mxu0 %v5900_v5  ;;  %v5613_v2 = vld [vmem:[#allocation10 + $0x18] sm:$0xff]  }
0x3c46   :  { %v4369_v61 = vpop.xlane.xlu1 %4368 }
0x3c47   :  { %v4427_v10 = vsel %vm313_vm2, %v4426_v58, %v4422_v63  ;;  %v4449_v24 = vrot.slane %v4369_v61, %v6070_v36 }
0x3c48   :  { %v4367_v49 = vpop.xlane.xlu0 %4366  ;;  %v4466_v33 = vsel %vm382_vm5, %v4427_v10, %v4465_v14 }
0x3c49   :  { %v4444_v38 = vrot.slane %v4367_v49, %v6067_v34  ;;  %v4467_v29 = vsel %vm384_vm6, %v4436_v18, %v4466_v33 }
0x3c4a   :  { %v4373_v12 = vpop.xlane.xlu1 %4372 }
0x3c4b   :  { %v4445_v26 = vsel %vm313_vm2, %v4444_v38, %v4440_v22  ;;  %v4458_v30 = vrot.slane %v4373_v12, %v6070_v36 }
0x3c4c   :  { %v4371_v35 = vpop.xlane.xlu0 %4370  ;;  %v4468_v0 = vsel %vm386_vm7, %v4445_v26, %v4467_v29  ;;  %v4696_v26 = vld [vmem:[%s6915_s6] sm:$0x3] }
0x3c4d   :  { %v4453_v46 = vrot.slane %v4371_v35, %v6067_v34  ;;  %v4705_v18 = vrot.slane %v4696_v26, %v6169_v20 }
0x3c4e   :  { %v4473_v6 = vpop.permute.xlu1 %4472 }
0x3c4f   :  { %v4454_v28 = vsel %vm313_vm2, %v4453_v46, %v4449_v24 }
0x3c50   :  { %v4375_v41 = vpop.xlane.xlu0 %4374  ;;  %v4469_v11 = vsel %vm388_vm8, %v4454_v28, %v4468_v0 }
0x3c51   :  { %v4462_v45 = vrot.slane %v4375_v41, %v6067_v34 }
0x3c53   :  { %v4463_v16 = vsel %vm313_vm2, %v4462_v45, %v4458_v30 }
0x3c54   :  { %v4470_v15 = vsel %vm390_vm9, %v4463_v16, %v4469_v11 }
0x3c55   :  { %v4475_v9 = vsel %vm397_vm10, %v4470_v15, %v4473_v6 }
0x3c56   :  { %v4476_v8 = vpack.c.bf16 %v4475_v9, %v4475_v9 }
0x3c58   :  { %5503 = vmatmul.mubr.msk.bf16.vlgmr.msra.gmra.mrb[40].mxu1 %vm431_vm11, %v4476_v8 }
0x3c59   :  { %4735 = vmatpush1.bf16.msra.mxu1 %v6782_v57  ;;  %4766 = vmatprep.mubr.bf16.mxu1 %v5905_v7 }
0x3c5a   :  { %4736 = vmatprep.subr.bf16.mxu1 %v6786_v37 }
0x3c5d   :  { %4737 = vmatpush1.bf16.msra.mxu1 %v6790_v59 }
0x3d2b   :  { %v4545_v34 = vpop.f32.mrb[40].mxu1 }
0x3d2c   :  { %v4546_v36 = vadd.f32 %v6651_v54, %v4545_v34  ;;  %v5504_v17 = vpop.f32.mrb[41].mxu1 }
0x3d2d   :  { %v4548_v43 = vpop.f32.mrb[42].mxu1 }
0x3d2e   :  { %5758 = vtanh.f32 %v4546_v36  ;;  %v5505_v42 = vpop.f32.mrb[43].mxu1  ;;  %v4945_v57 = vmul.f32 -1.442695, %v4546_v36 }
0x3d30   :  { %5760 = vpow2.f32 %v4945_v57 }
0x3d38   :  { %v5759_v44 = vpop.eup %5758 }
0x3d39   :  { %4560 = vrot.lane.b32.xlu0 %v5759_v44, %s5894_s13 }
0x3d3a   :  { %v5761_v7 = vpop.eup %5760 }
0x3d3b   :  { %v4554_v60 = vadd.f32 1.0, %v5761_v7 }
0x3d3d   :  { %4580 = vrot.lane.b32.xlu0 %v6796_v39, %s5894_s13  ;;  %5762 = vrcp.f32 %v4554_v60  ;;  %v5612_v39 = vld [vmem:[#allocation10 + $0x10] sm:$0xff]  }
0x3d3e   :  { %5511 = vmatpush3.bf16.msra.mxu0 %v5612_v39 }
0x3d3f   :  { %5512 = vmatprep.subr.bf16.mxu0 %v5900_v5 }
0x3d42   :  { %5513 = vmatpush3.bf16.msra.mxu0 %v5613_v2 }
0x3d47   :  { %v5763_v37 = vpop.eup %5762 }
0x3d48   :  { %v4558_v54 = vmul.f32 %v5763_v37, %v6754_v27 }
0x3dab   :  { %v4561_v59 = vpop.permute.xlu0 %4560 }
0x3dac   :  { %v4563_v47 = vmul.f32 %v5763_v37, %v4561_v59 }
0x3dae   :  { %4565 = vrot.lane.b32.xlu1 %v4563_v47, %s5904_s9 }
0x3daf   :  { %v4581_v55 = vpop.permute.xlu0 %4580 }
0x3e20   :  { %v4566_v48 = vpop.permute.xlu1 %4565 }
0x3e21   :  { %v4568_v4 = vadd.f32 %v4566_v48, %v4558_v54 }
0x3e23   :  { %5764 = vtanh.f32 %v4568_v4 }
0x3e2d   :  { %v5765_v51 = vpop.eup %5764 }
0x3e2e   :  { %4571 = vrot.lane.b32.xlu1 %v5765_v51, %s5894_s13 }
0x3ea0   :  { %v4572_v27 = vpop.permute.xlu1 %4571 }
0x3ea1   :  { %v4574_v53 = vmul.f32 %v5763_v37, %v4572_v27 }
0x3ea3   :  { %4576 = vrot.lane.b32.xlu1 %v4574_v53, %s5904_s9 }
0x3f15   :  { %v4577_v40 = vpop.permute.xlu1 %4576 }
0x3f16   :  { %v4583_v3 = vsel %vm87_vm0, %v4577_v40, %v4581_v55  ;;  %4777 = vst.msk [vmem:[#allocation2] sm:$0xff] %vm87_vm0, %v4577_v40 }
0x3f17   :  { %v4584_v58 = vpack.c.bf16 %v4583_v3, %v4583_v3 }
0x3f19   :  { %5515 = vmatmul.mubr.msk.bf16.vlgmr.msra.gmra.mrb[44].mxu0 %vm553_vm12, %v4584_v58 }
0x3fec   :  { %v4661_v52 = vpop.f32.mrb[44].mxu0 }
0x3fed   :  { %v4662_v61 = vadd.f32 %v6773_v32, %v4661_v52  ;;  %v5516_v49 = vpop.f32.mrb[45].mxu0 }
0x3fee   :  { %v4664_v5 = vpop.f32.mrb[46].mxu0 }
0x3fef   :  { %5766 = vtanh.f32 %v4662_v61  ;;  %v5517_v21 = vpop.f32.mrb[47].mxu0  ;;  %v4952_v63 = vmul.f32 -1.442695, %v4662_v61 }
0x3ff1   :  { %5768 = vpow2.f32 %v4952_v63 }
0x3ff9   :  { %v5767_v62 = vpop.eup %5766 }
0x3ffa   :  { %4676 = vrot.lane.b32.xlu1 %v5767_v62, %s5894_s13 }
0x3ffb   :  { %v5769_v1 = vpop.eup %5768 }
0x3ffc   :  { %v4670_v13 = vadd.f32 1.0, %v5769_v1 }
0x3ffe   :  { %5770 = vrcp.f32 %v4670_v13 }
0x4008   :  { %v5771_v10 = vpop.eup %5770 }
0x4009   :  { %v4674_v50 = vmul.f32 %v5771_v10, %v6779_v56 }
0x406c   :  { %v4677_v38 = vpop.permute.xlu1 %4676 }
0x406d   :  { %v4679_v25 = vmul.f32 %v5771_v10, %v4677_v38 }
0x406f   :  { %4681 = vrot.lane.b32.xlu0 %v4679_v25, %s5904_s9 }
0x40e1   :  { %v4682_v32 = vpop.permute.xlu0 %4681 }
0x40e2   :  { %v4684_v35 = vadd.f32 %v4682_v32, %v4674_v50 }
0x40e4   :  { %5772 = vtanh.f32 %v4684_v35 }
0x40ee   :  { %v5773_v14 = vpop.eup %5772 }
0x40ef   :  { %4687 = vrot.lane.b32.xlu1 %v5773_v14, %s5894_s13 }
0x40f3   :  { %4779 = vrot.lane.b32.xlu1 %v4568_v4, %s5907_s10 }
0x40f7   :  { %4789 = vrot.lane.b32.xlu1 %v4684_v35, %s5907_s10 }
0x4161   :  { %v4688_v22 = vpop.permute.xlu1 %4687 }
0x4162   :  { %v4690_v46 = vmul.f32 %v5771_v10, %v4688_v22 }
0x4164   :  { %v4691_v23 = vpack.c.bf16 %v4690_v46, %v4690_v46 }
0x4165   :  { %v4780_v33 = vpop.permute.xlu1 %4779 }
0x4166   :  { %4782 = vst.msk [vmem:[#allocation3] sm:$0xff] %vm87_vm0, %v4780_v33  ;;  %4709 = vrot.lane.b32.xlu0 %v4691_v23, %s5904_s9 }
0x4169   :  { %v4790_v24 = vpop.permute.xlu1 %4789 }
0x416a   :  { %4792 = vst.msk [vmem:[#allocation3 + $0x8] sm:$0xff] %vm87_vm0, %v4790_v24  ;;  %4784 = vrot.lane.b32.xlu0 %v4690_v46, %s5904_s9  ;;  %s5862_s9 = scalar_lea.vmem %s4800_s15, 1024 }
0x416b   :  { %p5863_p4 = scmp.ne.s32.totalorder %s4800_s15, %s5862_s9  ;;  %p5868_p6 = scmp.lt.s32.totalorder %s5862_s9, %s5862_s9 }
0x416d   :  { %p5869_p7 = por %p5868_p6, %p5867_p5 }
0x416f   :  { %p5870_p8 = pnand %p5869_p7, %p5863_p4 }
0x41d8   :  { %v4710_v56 = vpop.permute.xlu0 %4709 }
0x41d9   :  { %4957 = vmatmul.mubr.msk.bf16.vlgmr.msra.gmra.mrb[44].mxu1 %vm87_vm0, %v4710_v56 }
0x41dc   :  { %v4785_v12 = vpop.permute.xlu0 %4784 }
0x41dd   :  { %4787 = vst.msk [vmem:[#allocation2 + $0x8] sm:$0xff] %vm87_vm0, %v4785_v12 }
0x42ac   :  { %v4768_v28 = vpop.f32.mrb[44].mxu1 }
0x42ad   :  { %v4770_v41 = vpop.f32.mrb[45].mxu1 }
0x42ae   :  { %v4771_v29 = vadd.f32 %v4770_v41, %v4705_v18  ;;  %v4772_v30 = vpop.f32.mrb[46].mxu1 }
0x42af   :  { %v4773_v45 = vpop.f32.mrb[47].mxu1 }
0x42b0   :  { %4776 = vst [vmem:[#allocation13 + $0x38] sm:$0xff] %v4771_v29 }
0x42b1   :  { %5873 = shalt.err (!%p5870_p8)
}
0x42b2   :  { %s5874_s0 = scalar_lea.hbm %s6916_s7, 1024 }
0x42b3   :  { %p5875_p9 = scmp.ne.s32.totalorder %s6916_s7, %s5874_s0  ;;  %p5878_p10 = scmp.lt.u32.totalorder %s5874_s0, %s6916_s7 }
0x42b5   :  { %p5880_p11 = pnand %p5878_p10, %p5875_p9 }
0x42b7   :  { %5883 = shalt.err (!%p5880_p11)
}
0x42b8   :  { %4805 = dma.vmem_to_hbm [thread:$0]  %s4800_s15, 1024, %s6916_s7, [#allocation7], %s5898_s3, %s5898_s3, %s5899_s14  }
0x42b9   :  { %5890 = dma.done.wait [#allocation7], 1024  }
0x42ba   :  { %5891 = vsyncadd [#allocation7], 4294966272 }
0x42bb   :  { %4809 = vsyncpa [#allocation6], 1 }
0x42bc   :  { %4810 = vsyncpa [#allocation9], 1 }
0x42bd   :  { %4811 = vsyncpa [#allocation12], 1 }
0x42be   :  { %4812 = vsyncpa [#allocation7], 1 }

</bundles_post_ra>
